<compile_context>
chip_gen: v5e
topology: v5e:2x2
jax: 0.10.0
libtpu: 0.0.40
codegen_flags: <defaults>
</compile_context>

<pallas_src>
import functools

import jax
import jax.numpy as jnp
from jax.experimental import pallas as pl
from jax.experimental.pallas import tpu as pltpu

_VMEM = pl.BlockSpec(memory_space=pltpu.MemorySpace.VMEM)

_TM_CAP = 512     # rows per tile: fits v5e's 16 MiB scoped VMEM, v7x's 64 MiB VMEM
_TK_CAP = 2048    # keep K whole below this, else tile the reduction axis


def _round_up(a, b):
    return (a + b - 1) // b * b


# ---------------------------------------------------------------------------
# Pallas kernels
# ---------------------------------------------------------------------------
def _conv_mm_kernel(x_ref, w_ref, s_ref, b_ref, o_ref, acc_ref, *, relu):
    """Tiled matmul + folded-BN affine (+ReLU).  K reduction on grid axis 1."""
    @pl.when(pl.program_id(1) == 0)
    def _init():
        acc_ref[...] = jnp.zeros_like(acc_ref)

    acc_ref[...] += jnp.dot(x_ref[...], w_ref[...],
                            preferred_element_type=jnp.float32)

    @pl.when(pl.program_id(1) == pl.num_programs(1) - 1)
    def _fin():
        out = acc_ref[...] * s_ref[...] + b_ref[...]
        if relu:
            out = jnp.maximum(out, 0.0)
        o_ref[...] = out.astype(o_ref.dtype)


def _conv_mm_res_kernel(x_ref, w_ref, s_ref, b_ref, r_ref, o_ref, acc_ref):
    """Tiled matmul + folded-BN affine + residual add + ReLU (BasicBlock tail)."""
    @pl.when(pl.program_id(1) == 0)
    def _init():
        acc_ref[...] = jnp.zeros_like(acc_ref)

    acc_ref[...] += jnp.dot(x_ref[...], w_ref[...],
                            preferred_element_type=jnp.float32)

    @pl.when(pl.program_id(1) == pl.num_programs(1) - 1)
    def _fin():
        out = acc_ref[...] * s_ref[...] + b_ref[...] + r_ref[...].astype(jnp.float32)
        o_ref[...] = jnp.maximum(out, 0.0).astype(o_ref.dtype)


def _maxpool_kernel(*refs):
    """3x3x3 / stride-2 max pool from 8 stride-2 phase views (channels-last).

    refs[0:8]: phase[bd,bh,bw] = padded_x[:, bd::2, bh::2, bw::2, :] of shape
               (N, Do+1, Ho+1, Wo+1, C);  refs[8]: output (N, Do, Ho, Wo, C).
    """
    o_ref = refs[-1]
    phases = [r[...] for r in refs[:-1]]
    _, Do, Ho, Wo, _ = o_ref.shape
    out = None
    for i in range(3):
        for j in range(3):
            for l in range(3):
                p = phases[((i % 2) << 2) | ((j % 2) << 1) | (l % 2)]
                v = p[:, i // 2:i // 2 + Do,
                      j // 2:j // 2 + Ho,
                      l // 2:l // 2 + Wo, :]
                out = v if out is None else jnp.maximum(out, v)
    o_ref[...] = out


def _avgpool_fc_kernel(x_ref, w_ref, b_ref, o_ref, *, inv_s):
    """x: (N, S, C) channels-last -> mean over S (sublane reduce) -> @W + b."""
    pooled = jnp.sum(x_ref[...].astype(jnp.float32), axis=1) * inv_s   # (N, C)
    logits = jnp.dot(pooled, w_ref[...], preferred_element_type=jnp.float32)
    o_ref[...] = logits + b_ref[...]


# ---------------------------------------------------------------------------
# Pallas wrappers
# ---------------------------------------------------------------------------
def matmul_bn_act(x2d, wmat, scale, bias, *, relu, residual=None,
                  out_dtype=jnp.bfloat16):
    """(x2d @ wmat) * scale + bias [+ residual] [ReLU], tiled over (M, K)."""
    M, K = x2d.shape
    Cout = wmat.shape[1]

    TM = min(_round_up(max(M, 1), 8), _TM_CAP)
    Mp = _round_up(M, TM)
    if K <= _TK_CAP:
        TK, Kp = K, K
    else:
        TK = 512
        Kp = _round_up(K, TK)

    if Mp != M or Kp != K:
        x2d = jnp.pad(x2d, ((0, Mp - M), (0, Kp - K)))
    if Kp != K:
        wmat = jnp.pad(wmat, ((0, Kp - K), (0, 0)))

    scale = scale.reshape(1, Cout).astype(jnp.float32)
    bias = bias.reshape(1, Cout).astype(jnp.float32)

    grid = (Mp // TM, Kp // TK)
    x_spec = pl.BlockSpec((TM, TK), lambda i, k: (i, k))
    w_spec = pl.BlockSpec((TK, Cout), lambda i, k: (k, 0))
    v_spec = pl.BlockSpec((1, Cout), lambda i, k: (0, 0))
    o_spec = pl.BlockSpec((TM, Cout), lambda i, k: (i, 0))
    out_shape = jax.ShapeDtypeStruct((Mp, Cout), out_dtype)
    scratch = [pltpu.VMEM((TM, Cout), jnp.float32)]
    cparams = pltpu.CompilerParams(
        dimension_semantics=("parallel", "arbitrary"))

    itemsize = 2  # bf16 operands
    cost = pl.CostEstimate(
        flops=2 * Mp * Kp * Cout, transcendentals=0,
        bytes_accessed=(Mp * Kp + Kp * Cout + 2 * Mp * Cout) * itemsize)

    if residual is None:
        kern = functools.partial(_conv_mm_kernel, relu=relu)
        out = pl.pallas_call(
            kern, out_shape=out_shape,
            grid_spec=pltpu.PrefetchScalarGridSpec(
                num_scalar_prefetch=0, grid=grid,
                in_specs=[x_spec, w_spec, v_spec, v_spec],
                out_specs=o_spec, scratch_shapes=scratch),
            compiler_params=cparams, cost_estimate=cost,
        )(x2d, wmat, scale, bias)
    else:
        if Mp != M:
            residual = jnp.pad(residual, ((0, Mp - M), (0, 0)))
        r_spec = pl.BlockSpec((TM, Cout), lambda i, k: (i, 0))
        out = pl.pallas_call(
            _conv_mm_res_kernel, out_shape=out_shape,
            grid_spec=pltpu.PrefetchScalarGridSpec(
                num_scalar_prefetch=0, grid=grid,
                in_specs=[x_spec, w_spec, v_spec, v_spec, r_spec],
                out_specs=o_spec, scratch_shapes=scratch),
            compiler_params=cparams, cost_estimate=cost,
        )(x2d, wmat, scale, bias, residual)

    return out if Mp == M else out[:M]


def _im2col_ndhwc(x, ksize, stride, padding):
    """x: (N, D, H, W, C) -> patches (N*Do*Ho*Wo, K*C), channels innermost."""
    N, D, H, W, C = x.shape
    kt, kh, kw = ksize
    st, sh, sw = stride
    pt, ph, pw = padding
    Do = (D + 2 * pt - kt) // st + 1
    Ho = (H + 2 * ph - kh) // sh + 1
    Wo = (W + 2 * pw - kw) // sw + 1
    xp = jnp.pad(x, ((0, 0), (pt, pt), (ph, ph), (pw, pw), (0, 0)))
    cols = []
    for i in range(kt):
        for j in range(kh):
            for k in range(kw):
                cols.append(xp[:,
                               i:i + st * (Do - 1) + 1:st,
                               j:j + sh * (Ho - 1) + 1:sh,
                               k:k + sw * (Wo - 1) + 1:sw, :])
    patches = jnp.stack(cols, axis=4)                 # (N, Do, Ho, Wo, K, C)
    patches = patches.reshape(N * Do * Ho * Wo, kt * kh * kw * C)
    return patches, (N, Do, Ho, Wo)


def conv3d_bn(x, w, bn_scale, bn_bias, stride, padding, relu, residual=None):
    """Conv3d (bias=False) + folded eval-mode BN (+ReLU / +residual+ReLU).

    x: (N, D, H, W, Cin) bf16 channels-last; w: (Cout, Cin, kt, kh, kw) f32.
    """
    Cout = w.shape[0]
    kt, kh, kw = w.shape[2:]
    patches, (N, Do, Ho, Wo) = _im2col_ndhwc(x, (kt, kh, kw), stride, padding)
    wmat = w.transpose(2, 3, 4, 1, 0).reshape(-1, Cout).astype(jnp.bfloat16)
    res2d = None
    if residual is not None:
        res2d = residual.reshape(-1, Cout)
    out2d = matmul_bn_act(patches, wmat, bn_scale, bn_bias,
                          relu=relu, residual=res2d)
    return out2d.reshape(N, Do, Ho, Wo, Cout)


def maxpool3d(x):
    """MaxPool3d(kernel=3, stride=2, padding=1) on a channels-last tensor."""
    N, D, H, W, C = x.shape
    Do, Ho, Wo = (D - 1) // 2 + 1, (H - 1) // 2 + 1, (W - 1) // 2 + 1
    # pad with -inf so every padded axis has even length 2*Lo + 2
    xp = jnp.pad(x, ((0, 0),
                     (1, 2 * Do + 1 - D),
                     (1, 2 * Ho + 1 - H),
                     (1, 2 * Wo + 1 - W),
                     (0, 0)),
                 constant_values=-jnp.inf)
    phases = [xp[:, bd::2, bh::2, bw::2, :]
              for bd in (0, 1) for bh in (0, 1) for bw in (0, 1)]
    return pl.pallas_call(
        _maxpool_kernel,
        out_shape=jax.ShapeDtypeStruct((N, Do, Ho, Wo, C), x.dtype),
        in_specs=[_VMEM] * 8, out_specs=_VMEM,
    )(*phases)


def avgpool_fc(x, fc_w, fc_b):
    """Global average pool (over D,H,W) fused with the final Linear layer."""
    N, D, H, W, C = x.shape
    S = D * H * W
    n_classes = fc_w.shape[0]
    x3 = x.reshape(N, S, C)
    kern = functools.partial(_avgpool_fc_kernel, inv_s=1.0 / float(S))
    return pl.pallas_call(
        kern,
        out_shape=jax.ShapeDtypeStruct((N, n_classes), jnp.float32),
        in_specs=[_VMEM, _VMEM, _VMEM], out_specs=_VMEM,
    )(x3, fc_w.T.astype(jnp.float32),
      fc_b.reshape(1, n_classes).astype(jnp.float32))


# ---------------------------------------------------------------------------
# Parameter init (deterministic, mirrors the module's __init__ shapes)
# ---------------------------------------------------------------------------
def _kaiming_conv(key, cout, cin, kt, kh, kw):
    fan_out = cout * kt * kh * kw
    std = (2.0 / fan_out) ** 0.5
    return jax.random.normal(key, (cout, cin, kt, kh, kw), jnp.float32) * std


def _bn_fold(c, eps=1e-5):
    # eval-mode BN with gamma=1, beta=0 (per module init), running mean=0, var=1.
    gamma = jnp.ones((c,), jnp.float32)
    beta = jnp.zeros((c,), jnp.float32)
    mean = jnp.zeros((c,), jnp.float32)
    var = jnp.ones((c,), jnp.float32)
    scale = gamma / jnp.sqrt(var + eps)
    bias = beta - mean * scale
    return scale, bias


def init_params(key, block_inplanes=(8, 16, 32, 64), n_input_channels=5,
                conv1_t_size=7, n_classes=10):
    keys = list(jax.random.split(key, 16))
    ki = iter(keys)
    p = {}
    in_planes = block_inplanes[0]
    p['conv1_w'] = _kaiming_conv(next(ki), in_planes, n_input_channels,
                                 conv1_t_size, 7, 7)
    p['bn1_s'], p['bn1_b'] = _bn_fold(in_planes)
    strides = (1, 2, 2, 2)
    for li, (planes, stride) in enumerate(zip(block_inplanes, strides), start=1):
        bp = {}
        bp['conv1_w'] = _kaiming_conv(next(ki), planes, in_planes, 3, 3, 3)
        bp['bn1_s'], bp['bn1_b'] = _bn_fold(planes)
        bp['conv2_w'] = _kaiming_conv(next(ki), planes, planes, 3, 3, 3)
        bp['bn2_s'], bp['bn2_b'] = _bn_fold(planes)
        if stride != 1 or in_planes != planes:  # shortcut_type='B' downsample
            bp['ds_w'] = _kaiming_conv(next(ki), planes, in_planes, 1, 1, 1)
            bp['ds_bn_s'], bp['ds_bn_b'] = _bn_fold(planes)
        p[f'layer{li}'] = bp
        in_planes = planes
    kf1, kf2 = jax.random.split(next(ki))
    bound = 1.0 / (in_planes ** 0.5)
    p['fc_w'] = jax.random.uniform(kf1, (n_classes, in_planes), jnp.float32,
                                   -bound, bound)
    p['fc_b'] = jax.random.uniform(kf2, (n_classes,), jnp.float32, -bound, bound)
    return p


# ---------------------------------------------------------------------------
# Forward pass (ResNet with BasicBlock, expansion=1, layers=[1,1,1,1])
# ---------------------------------------------------------------------------
def resnet_forward(params, x):
    p = params
    # NCDHW (PyTorch) -> channels-last NDHWC, bf16, once at the entry.
    x = jnp.transpose(x, (0, 2, 3, 4, 1)).astype(jnp.bfloat16)
    # stem: conv1 (k=(7,7,7), stride=(1,2,2), pad=(3,3,3)) + bn1 + relu
    x = conv3d_bn(x, p['conv1_w'], p['bn1_s'], p['bn1_b'],
                  stride=(1, 2, 2), padding=(3, 3, 3), relu=True)
    # maxpool 3x3x3 stride 2 pad 1
    x = maxpool3d(x)
    # residual layers
    strides = {'layer1': 1, 'layer2': 2, 'layer3': 2, 'layer4': 2}
    for lname in ('layer1', 'layer2', 'layer3', 'layer4'):
        bp = p[lname]
        s = strides[lname]
        identity = x
        out = conv3d_bn(x, bp['conv1_w'], bp['bn1_s'], bp['bn1_b'],
                        stride=(s, s, s), padding=(1, 1, 1), relu=True)
        if 'ds_w' in bp:
            identity = conv3d_bn(x, bp['ds_w'], bp['ds_bn_s'], bp['ds_bn_b'],
                                 stride=(s, s, s), padding=(0, 0, 0), relu=False)
        # conv2 + bn2 + residual add + relu fused in one gridded Pallas kernel
        x = conv3d_bn(out, bp['conv2_w'], bp['bn2_s'], bp['bn2_b'],
                      stride=(1, 1, 1), padding=(1, 1, 1), relu=True,
                      residual=identity)
    # global avg pool + flatten + fc fused in one Pallas kernel
    logits = avgpool_fc(x, p['fc_w'], p['fc_b'])
    return logits


if __name__ == "__main__":
    key = jax.random.PRNGKey(0)
    pkey, xkey = jax.random.split(key)
    params = init_params(pkey)
    # N=2, C_in=5 (n_input_channels), D=8, H=8, W=8  (NCDHW like PyTorch)
    x = jax.random.normal(xkey, (2, 5, 8, 8, 8), dtype=jnp.float32)
    fwd = jax.jit(resnet_forward)
    out = fwd(params, x)
    jax.block_until_ready(out)
    assert out.shape == (2, 10), out.shape
    print("KERNEL_OK")
</pallas_src>

<mosaic_0001>
module attributes {stable_mosaic.version = 11 : i64} {
  func.func @_conv_mm_kernel(%arg0: i32, %arg1: i32, %arg2: memref<256x1715xbf16, #tpu.memory_space<vmem>>, %arg3: memref<1715x8xbf16, #tpu.memory_space<vmem>>, %arg4: memref<1x8xf32, #tpu.memory_space<vmem>>, %arg5: memref<1x8xf32, #tpu.memory_space<vmem>>, %arg6: memref<256x8xbf16, #tpu.memory_space<vmem>>, %arg7: memref<256x8xf32, #tpu.memory_space<vmem>>) attributes {dimension_semantics = [#tpu.dimension_semantics<parallel>, #tpu.dimension_semantics<arbitrary>], iteration_bounds = array<i64: 1, 1>, scalar_prefetch = 0 : i64, scratch_operands = 1 : i64, tpu.core_type = #tpu.core_type<tc>, window_params = [{transform_indices = @transform_0, window_bounds = array<i64: 256, 1715>}, {transform_indices = @transform_1, window_bounds = array<i64: 1715, 8>}, {pipeline_mode = #tpu.pipeline_mode<synchronous>, transform_indices = @transform_2, window_bounds = array<i64: 1, 8>}, {pipeline_mode = #tpu.pipeline_mode<synchronous>, transform_indices = @transform_3, window_bounds = array<i64: 1, 8>}, {transform_indices = @transform_4, window_bounds = array<i64: 256, 8>}]} {
    %c0_i32 = arith.constant 0 : i32
    %0 = arith.cmpi eq, %arg1, %c0_i32 : i32
    %1 = arith.extui %0 : i1 to i32
    %c0_i32_0 = arith.constant 0 : i32
    %2 = arith.cmpi ne, %1, %c0_i32_0 : i32
    scf.if %2 {
      %cst_10 = arith.constant 0.000000e+00 : f32
      %12 = vector.broadcast %cst_10 : f32 to vector<256x8xf32>
      %c0_11 = arith.constant 0 : index
      %c0_12 = arith.constant 0 : index
      %13 = vector.load %arg7[%c0_11, %c0_12] : memref<256x8xf32, #tpu.memory_space<vmem>>, vector<256x8xf32>
      tpu.vector_store %arg7[%c0_11, %c0_12], %12 {strides = array<i32>} : memref<256x8xf32, #tpu.memory_space<vmem>>, vector<256x8xf32>,
    } else {
    }
    %c0 = arith.constant 0 : index
    %c0_1 = arith.constant 0 : index
    %3 = vector.load %arg7[%c0, %c0_1] : memref<256x8xf32, #tpu.memory_space<vmem>>, vector<256x8xf32>
    %c0_2 = arith.constant 0 : index
    %c0_3 = arith.constant 0 : index
    %4 = vector.load %arg2[%c0_2, %c0_3] : memref<256x1715xbf16, #tpu.memory_space<vmem>>, vector<256x1715xbf16>
    %c0_4 = arith.constant 0 : index
    %c0_5 = arith.constant 0 : index
    %5 = vector.load %arg3[%c0_4, %c0_5] : memref<1715x8xbf16, #tpu.memory_space<vmem>>, vector<1715x8xbf16>
    %cst = arith.constant dense<0.000000e+00> : vector<256x8xf32>
    %6 = tpu.matmul %4, %5, %cst {dimension_numbers = #tpu.dot_dimension_numbers<[1], [0], [0], [1], [0, 0, 1, 1], [], []>} : vector<256x1715xbf16>, vector<1715x8xbf16>, vector<256x8xf32> -> vector<256x8xf32>
    %7 = arith.addf %3, %6 : vector<256x8xf32>
    %c0_6 = arith.constant 0 : index
    %c0_7 = arith.constant 0 : index
    %8 = vector.load %arg7[%c0_6, %c0_7] : memref<256x8xf32, #tpu.memory_space<vmem>>, vector<256x8xf32>
    tpu.vector_store %arg7[%c0_6, %c0_7], %7 {strides = array<i32>} : memref<256x8xf32, #tpu.memory_space<vmem>>, vector<256x8xf32>,
    %c0_i32_8 = arith.constant 0 : i32
    %9 = arith.cmpi eq, %arg1, %c0_i32_8 : i32
    %10 = arith.extui %9 : i1 to i32
    %c0_i32_9 = arith.constant 0 : i32
    %11 = arith.cmpi ne, %10, %c0_i32_9 : i32
    scf.if %11 {
      %c0_10 = arith.constant 0 : index
      %c0_11 = arith.constant 0 : index
      %12 = vector.load %arg7[%c0_10, %c0_11] : memref<256x8xf32, #tpu.memory_space<vmem>>, vector<256x8xf32>
      %c0_12 = arith.constant 0 : index
      %c0_13 = arith.constant 0 : index
      %13 = vector.load %arg4[%c0_12, %c0_13] : memref<1x8xf32, #tpu.memory_space<vmem>>, vector<1x8xf32>
      %14 = vector.broadcast %13 : vector<1x8xf32> to vector<256x8xf32>
      %15 = arith.mulf %12, %14 : vector<256x8xf32>
      %c0_14 = arith.constant 0 : index
      %c0_15 = arith.constant 0 : index
      %16 = vector.load %arg5[%c0_14, %c0_15] : memref<1x8xf32, #tpu.memory_space<vmem>>, vector<1x8xf32>
      %17 = vector.broadcast %16 : vector<1x8xf32> to vector<256x8xf32>
      %18 = arith.addf %15, %17 : vector<256x8xf32>
      %cst_16 = arith.constant 0.000000e+00 : f32
      %19 = vector.broadcast %cst_16 : f32 to vector<256x8xf32>
      %20 = arith.maximumf %18, %19 : vector<256x8xf32>
      %21 = arith.truncf %20 : vector<256x8xf32> to vector<256x8xbf16>
      %c0_17 = arith.constant 0 : index
      %c0_18 = arith.constant 0 : index
      %22 = vector.load %arg6[%c0_17, %c0_18] : memref<256x8xbf16, #tpu.memory_space<vmem>>, vector<256x8xbf16>
      tpu.vector_store %arg6[%c0_17, %c0_18], %21 {strides = array<i32>} : memref<256x8xbf16, #tpu.memory_space<vmem>>, vector<256x8xbf16>,
    } else {
    }
    return
  }
  func.func @transform_0(%arg0: i32, %arg1: i32) -> (i32, i32) {
    %c0_i32 = arith.constant 0 : i32
    return %arg0, %arg1 : i32, i32
  }
  func.func @transform_1(%arg0: i32, %arg1: i32) -> (i32, i32) {
    %c0_i32 = arith.constant 0 : i32
    %c0_i32_0 = arith.constant 0 : i32
    return %arg1, %c0_i32 : i32, i32
  }
  func.func @transform_2(%arg0: i32, %arg1: i32) -> (i32, i32) {
    %c0_i32 = arith.constant 0 : i32
    %c0_i32_0 = arith.constant 0 : i32
    %c0_i32_1 = arith.constant 0 : i32
    return %c0_i32, %c0_i32_0 : i32, i32
  }
  func.func @transform_3(%arg0: i32, %arg1: i32) -> (i32, i32) {
    %c0_i32 = arith.constant 0 : i32
    %c0_i32_0 = arith.constant 0 : i32
    %c0_i32_1 = arith.constant 0 : i32
    return %c0_i32, %c0_i32_0 : i32, i32
  }
  func.func @transform_4(%arg0: i32, %arg1: i32) -> (i32, i32) {
    %c0_i32 = arith.constant 0 : i32
    %c0_i32_0 = arith.constant 0 : i32
    return %arg0, %c0_i32 : i32, i32
  }
}

module attributes {stable_mosaic.version = 11 : i64} {
  func.func @_maxpool_kernel(%arg0: memref<2x5x3x3x8xbf16, #tpu.memory_space<vmem>>, %arg1: memref<2x5x3x3x8xbf16, #tpu.memory_space<vmem>>, %arg2: memref<2x5x3x3x8xbf16, #tpu.memory_space<vmem>>, %arg3: memref<2x5x3x3x8xbf16, #tpu.memory_space<vmem>>, %arg4: memref<2x5x3x3x8xbf16, #tpu.memory_space<vmem>>, %arg5: memref<2x5x3x3x8xbf16, #tpu.memory_space<vmem>>, %arg6: memref<2x5x3x3x8xbf16, #tpu.memory_space<vmem>>, %arg7: memref<2x5x3x3x8xbf16, #tpu.memory_space<vmem>>, %arg8: memref<2x4x2x2x8xbf16, #tpu.memory_space<vmem>>) attributes {dimension_semantics = [], scalar_prefetch = 0 : i64, scratch_operands = 0 : i64, tpu.core_type = #tpu.core_type<tc>} {
    %c0 = arith.constant 0 : index
    %c0_0 = arith.constant 0 : index
    %c0_1 = arith.constant 0 : index
    %c0_2 = arith.constant 0 : index
    %c0_3 = arith.constant 0 : index
    %0 = vector.load %arg0[%c0, %c0_0, %c0_1, %c0_2, %c0_3] : memref<2x5x3x3x8xbf16, #tpu.memory_space<vmem>>, vector<2x5x3x3x8xbf16>
    %c0_4 = arith.constant 0 : index
    %c0_5 = arith.constant 0 : index
    %c0_6 = arith.constant 0 : index
    %c0_7 = arith.constant 0 : index
    %c0_8 = arith.constant 0 : index
    %1 = vector.load %arg1[%c0_4, %c0_5, %c0_6, %c0_7, %c0_8] : memref<2x5x3x3x8xbf16, #tpu.memory_space<vmem>>, vector<2x5x3x3x8xbf16>
    %c0_9 = arith.constant 0 : index
    %c0_10 = arith.constant 0 : index
    %c0_11 = arith.constant 0 : index
    %c0_12 = arith.constant 0 : index
    %c0_13 = arith.constant 0 : index
    %2 = vector.load %arg2[%c0_9, %c0_10, %c0_11, %c0_12, %c0_13] : memref<2x5x3x3x8xbf16, #tpu.memory_space<vmem>>, vector<2x5x3x3x8xbf16>
    %c0_14 = arith.constant 0 : index
    %c0_15 = arith.constant 0 : index
    %c0_16 = arith.constant 0 : index
    %c0_17 = arith.constant 0 : index
    %c0_18 = arith.constant 0 : index
    %3 = vector.load %arg3[%c0_14, %c0_15, %c0_16, %c0_17, %c0_18] : memref<2x5x3x3x8xbf16, #tpu.memory_space<vmem>>, vector<2x5x3x3x8xbf16>
    %c0_19 = arith.constant 0 : index
    %c0_20 = arith.constant 0 : index
    %c0_21 = arith.constant 0 : index
    %c0_22 = arith.constant 0 : index
    %c0_23 = arith.constant 0 : index
    %4 = vector.load %arg4[%c0_19, %c0_20, %c0_21, %c0_22, %c0_23] : memref<2x5x3x3x8xbf16, #tpu.memory_space<vmem>>, vector<2x5x3x3x8xbf16>
    %c0_24 = arith.constant 0 : index
    %c0_25 = arith.constant 0 : index
    %c0_26 = arith.constant 0 : index
    %c0_27 = arith.constant 0 : index
    %c0_28 = arith.constant 0 : index
    %5 = vector.load %arg5[%c0_24, %c0_25, %c0_26, %c0_27, %c0_28] : memref<2x5x3x3x8xbf16, #tpu.memory_space<vmem>>, vector<2x5x3x3x8xbf16>
    %c0_29 = arith.constant 0 : index
    %c0_30 = arith.constant 0 : index
    %c0_31 = arith.constant 0 : index
    %c0_32 = arith.constant 0 : index
    %c0_33 = arith.constant 0 : index
    %6 = vector.load %arg6[%c0_29, %c0_30, %c0_31, %c0_32, %c0_33] : memref<2x5x3x3x8xbf16, #tpu.memory_space<vmem>>, vector<2x5x3x3x8xbf16>
    %c0_34 = arith.constant 0 : index
    %c0_35 = arith.constant 0 : index
    %c0_36 = arith.constant 0 : index
    %c0_37 = arith.constant 0 : index
    %c0_38 = arith.constant 0 : index
    %7 = vector.load %arg7[%c0_34, %c0_35, %c0_36, %c0_37, %c0_38] : memref<2x5x3x3x8xbf16, #tpu.memory_space<vmem>>, vector<2x5x3x3x8xbf16>
    %8 = vector.extract_strided_slice %0 {offsets = [0, 0, 0, 0, 0], sizes = [2, 4, 2, 2, 8], strides = [1, 1, 1, 1, 1]} : vector<2x5x3x3x8xbf16> to vector<2x4x2x2x8xbf16>
    %9 = vector.extract_strided_slice %1 {offsets = [0, 0, 0, 0, 0], sizes = [2, 4, 2, 2, 8], strides = [1, 1, 1, 1, 1]} : vector<2x5x3x3x8xbf16> to vector<2x4x2x2x8xbf16>
    %10 = arith.maximumf %8, %9 : vector<2x4x2x2x8xbf16>
    %11 = vector.extract_strided_slice %0 {offsets = [0, 0, 0, 1, 0], sizes = [2, 4, 2, 2, 8], strides = [1, 1, 1, 1, 1]} : vector<2x5x3x3x8xbf16> to vector<2x4x2x2x8xbf16>
    %12 = arith.maximumf %10, %11 : vector<2x4x2x2x8xbf16>
    %13 = vector.extract_strided_slice %2 {offsets = [0, 0, 0, 0, 0], sizes = [2, 4, 2, 2, 8], strides = [1, 1, 1, 1, 1]} : vector<2x5x3x3x8xbf16> to vector<2x4x2x2x8xbf16>
    %14 = arith.maximumf %12, %13 : vector<2x4x2x2x8xbf16>
    %15 = vector.extract_strided_slice %3 {offsets = [0, 0, 0, 0, 0], sizes = [2, 4, 2, 2, 8], strides = [1, 1, 1, 1, 1]} : vector<2x5x3x3x8xbf16> to vector<2x4x2x2x8xbf16>
    %16 = arith.maximumf %14, %15 : vector<2x4x2x2x8xbf16>
    %17 = vector.extract_strided_slice %2 {offsets = [0, 0, 0, 1, 0], sizes = [2, 4, 2, 2, 8], strides = [1, 1, 1, 1, 1]} : vector<2x5x3x3x8xbf16> to vector<2x4x2x2x8xbf16>
    %18 = arith.maximumf %16, %17 : vector<2x4x2x2x8xbf16>
    %19 = vector.extract_strided_slice %0 {offsets = [0, 0, 1, 0, 0], sizes = [2, 4, 2, 2, 8], strides = [1, 1, 1, 1, 1]} : vector<2x5x3x3x8xbf16> to vector<2x4x2x2x8xbf16>
    %20 = arith.maximumf %18, %19 : vector<2x4x2x2x8xbf16>
    %21 = vector.extract_strided_slice %1 {offsets = [0, 0, 1, 0, 0], sizes = [2, 4, 2, 2, 8], strides = [1, 1, 1, 1, 1]} : vector<2x5x3x3x8xbf16> to vector<2x4x2x2x8xbf16>
    %22 = arith.maximumf %20, %21 : vector<2x4x2x2x8xbf16>
    %23 = vector.extract_strided_slice %0 {offsets = [0, 0, 1, 1, 0], sizes = [2, 4, 2, 2, 8], strides = [1, 1, 1, 1, 1]} : vector<2x5x3x3x8xbf16> to vector<2x4x2x2x8xbf16>
    %24 = arith.maximumf %22, %23 : vector<2x4x2x2x8xbf16>
    %25 = vector.extract_strided_slice %4 {offsets = [0, 0, 0, 0, 0], sizes = [2, 4, 2, 2, 8], strides = [1, 1, 1, 1, 1]} : vector<2x5x3x3x8xbf16> to vector<2x4x2x2x8xbf16>
    %26 = arith.maximumf %24, %25 : vector<2x4x2x2x8xbf16>
    %27 = vector.extract_strided_slice %5 {offsets = [0, 0, 0, 0, 0], sizes = [2, 4, 2, 2, 8], strides = [1, 1, 1, 1, 1]} : vector<2x5x3x3x8xbf16> to vector<2x4x2x2x8xbf16>
    %28 = arith.maximumf %26, %27 : vector<2x4x2x2x8xbf16>
    %29 = vector.extract_strided_slice %4 {offsets = [0, 0, 0, 1, 0], sizes = [2, 4, 2, 2, 8], strides = [1, 1, 1, 1, 1]} : vector<2x5x3x3x8xbf16> to vector<2x4x2x2x8xbf16>
    %30 = arith.maximumf %28, %29 : vector<2x4x2x2x8xbf16>
    %31 = vector.extract_strided_slice %6 {offsets = [0, 0, 0, 0, 0], sizes = [2, 4, 2, 2, 8], strides = [1, 1, 1, 1, 1]} : vector<2x5x3x3x8xbf16> to vector<2x4x2x2x8xbf16>
    %32 = arith.maximumf %30, %31 : vector<2x4x2x2x8xbf16>
    %33 = vector.extract_strided_slice %7 {offsets = [0, 0, 0, 0, 0], sizes = [2, 4, 2, 2, 8], strides = [1, 1, 1, 1, 1]} : vector<2x5x3x3x8xbf16> to vector<2x4x2x2x8xbf16>
    %34 = arith.maximumf %32, %33 : vector<2x4x2x2x8xbf16>
    %35 = vector.extract_strided_slice %6 {offsets = [0, 0, 0, 1, 0], sizes = [2, 4, 2, 2, 8], strides = [1, 1, 1, 1, 1]} : vector<2x5x3x3x8xbf16> to vector<2x4x2x2x8xbf16>
    %36 = arith.maximumf %34, %35 : vector<2x4x2x2x8xbf16>
    %37 = vector.extract_strided_slice %4 {offsets = [0, 0, 1, 0, 0], sizes = [2, 4, 2, 2, 8], strides = [1, 1, 1, 1, 1]} : vector<2x5x3x3x8xbf16> to vector<2x4x2x2x8xbf16>
    %38 = arith.maximumf %36, %37 : vector<2x4x2x2x8xbf16>
    %39 = vector.extract_strided_slice %5 {offsets = [0, 0, 1, 0, 0], sizes = [2, 4, 2, 2, 8], strides = [1, 1, 1, 1, 1]} : vector<2x5x3x3x8xbf16> to vector<2x4x2x2x8xbf16>
    %40 = arith.maximumf %38, %39 : vector<2x4x2x2x8xbf16>
    %41 = vector.extract_strided_slice %4 {offsets = [0, 0, 1, 1, 0], sizes = [2, 4, 2, 2, 8], strides = [1, 1, 1, 1, 1]} : vector<2x5x3x3x8xbf16> to vector<2x4x2x2x8xbf16>
    %42 = arith.maximumf %40, %41 : vector<2x4x2x2x8xbf16>
    %43 = vector.extract_strided_slice %0 {offsets = [0, 1, 0, 0, 0], sizes = [2, 4, 2, 2, 8], strides = [1, 1, 1, 1, 1]} : vector<2x5x3x3x8xbf16> to vector<2x4x2x2x8xbf16>
    %44 = arith.maximumf %42, %43 : vector<2x4x2x2x8xbf16>
    %45 = vector.extract_strided_slice %1 {offsets = [0, 1, 0, 0, 0], sizes = [2, 4, 2, 2, 8], strides = [1, 1, 1, 1, 1]} : vector<2x5x3x3x8xbf16> to vector<2x4x2x2x8xbf16>
    %46 = arith.maximumf %44, %45 : vector<2x4x2x2x8xbf16>
    %47 = vector.extract_strided_slice %0 {offsets = [0, 1, 0, 1, 0], sizes = [2, 4, 2, 2, 8], strides = [1, 1, 1, 1, 1]} : vector<2x5x3x3x8xbf16> to vector<2x4x2x2x8xbf16>
    %48 = arith.maximumf %46, %47 : vector<2x4x2x2x8xbf16>
    %49 = vector.extract_strided_slice %2 {offsets = [0, 1, 0, 0, 0], sizes = [2, 4, 2, 2, 8], strides = [1, 1, 1, 1, 1]} : vector<2x5x3x3x8xbf16> to vector<2x4x2x2x8xbf16>
    %50 = arith.maximumf %48, %49 : vector<2x4x2x2x8xbf16>
    %51 = vector.extract_strided_slice %3 {offsets = [0, 1, 0, 0, 0], sizes = [2, 4, 2, 2, 8], strides = [1, 1, 1, 1, 1]} : vector<2x5x3x3x8xbf16> to vector<2x4x2x2x8xbf16>
    %52 = arith.maximumf %50, %51 : vector<2x4x2x2x8xbf16>
    %53 = vector.extract_strided_slice %2 {offsets = [0, 1, 0, 1, 0], sizes = [2, 4, 2, 2, 8], strides = [1, 1, 1, 1, 1]} : vector<2x5x3x3x8xbf16> to vector<2x4x2x2x8xbf16>
    %54 = arith.maximumf %52, %53 : vector<2x4x2x2x8xbf16>
    %55 = vector.extract_strided_slice %0 {offsets = [0, 1, 1, 0, 0], sizes = [2, 4, 2, 2, 8], strides = [1, 1, 1, 1, 1]} : vector<2x5x3x3x8xbf16> to vector<2x4x2x2x8xbf16>
    %56 = arith.maximumf %54, %55 : vector<2x4x2x2x8xbf16>
    %57 = vector.extract_strided_slice %1 {offsets = [0, 1, 1, 0, 0], sizes = [2, 4, 2, 2, 8], strides = [1, 1, 1, 1, 1]} : vector<2x5x3x3x8xbf16> to vector<2x4x2x2x8xbf16>
    %58 = arith.maximumf %56, %57 : vector<2x4x2x2x8xbf16>
    %59 = vector.extract_strided_slice %0 {offsets = [0, 1, 1, 1, 0], sizes = [2, 4, 2, 2, 8], strides = [1, 1, 1, 1, 1]} : vector<2x5x3x3x8xbf16> to vector<2x4x2x2x8xbf16>
    %60 = arith.maximumf %58, %59 : vector<2x4x2x2x8xbf16>
    %c0_39 = arith.constant 0 : index
    %c0_40 = arith.constant 0 : index
    %c0_41 = arith.constant 0 : index
    %c0_42 = arith.constant 0 : index
    %c0_43 = arith.constant 0 : index
    %61 = vector.load %arg8[%c0_39, %c0_40, %c0_41, %c0_42, %c0_43] : memref<2x4x2x2x8xbf16, #tpu.memory_space<vmem>>, vector<2x4x2x2x8xbf16>
    tpu.vector_store %arg8[%c0_39, %c0_40, %c0_41, %c0_42, %c0_43], %60 {strides = array<i32>} : memref<2x4x2x2x8xbf16, #tpu.memory_space<vmem>>, vector<2x4x2x2x8xbf16>,
    return
  }
}

module attributes {stable_mosaic.version = 11 : i64} {
  func.func @_conv_mm_kernel(%arg0: i32, %arg1: i32, %arg2: memref<32x216xbf16, #tpu.memory_space<vmem>>, %arg3: memref<216x8xbf16, #tpu.memory_space<vmem>>, %arg4: memref<1x8xf32, #tpu.memory_space<vmem>>, %arg5: memref<1x8xf32, #tpu.memory_space<vmem>>, %arg6: memref<32x8xbf16, #tpu.memory_space<vmem>>, %arg7: memref<32x8xf32, #tpu.memory_space<vmem>>) attributes {dimension_semantics = [#tpu.dimension_semantics<parallel>, #tpu.dimension_semantics<arbitrary>], iteration_bounds = array<i64: 1, 1>, scalar_prefetch = 0 : i64, scratch_operands = 1 : i64, tpu.core_type = #tpu.core_type<tc>, window_params = [{transform_indices = @transform_0, window_bounds = array<i64: 32, 216>}, {transform_indices = @transform_1, window_bounds = array<i64: 216, 8>}, {pipeline_mode = #tpu.pipeline_mode<synchronous>, transform_indices = @transform_2, window_bounds = array<i64: 1, 8>}, {pipeline_mode = #tpu.pipeline_mode<synchronous>, transform_indices = @transform_3, window_bounds = array<i64: 1, 8>}, {transform_indices = @transform_4, window_bounds = array<i64: 32, 8>}]} {
    %c0_i32 = arith.constant 0 : i32
    %0 = arith.cmpi eq, %arg1, %c0_i32 : i32
    %1 = arith.extui %0 : i1 to i32
    %c0_i32_0 = arith.constant 0 : i32
    %2 = arith.cmpi ne, %1, %c0_i32_0 : i32
    scf.if %2 {
      %cst_10 = arith.constant 0.000000e+00 : f32
      %12 = vector.broadcast %cst_10 : f32 to vector<32x8xf32>
      %c0_11 = arith.constant 0 : index
      %c0_12 = arith.constant 0 : index
      %13 = vector.load %arg7[%c0_11, %c0_12] : memref<32x8xf32, #tpu.memory_space<vmem>>, vector<32x8xf32>
      tpu.vector_store %arg7[%c0_11, %c0_12], %12 {strides = array<i32>} : memref<32x8xf32, #tpu.memory_space<vmem>>, vector<32x8xf32>,
    } else {
    }
    %c0 = arith.constant 0 : index
    %c0_1 = arith.constant 0 : index
    %3 = vector.load %arg7[%c0, %c0_1] : memref<32x8xf32, #tpu.memory_space<vmem>>, vector<32x8xf32>
    %c0_2 = arith.constant 0 : index
    %c0_3 = arith.constant 0 : index
    %4 = vector.load %arg2[%c0_2, %c0_3] : memref<32x216xbf16, #tpu.memory_space<vmem>>, vector<32x216xbf16>
    %c0_4 = arith.constant 0 : index
    %c0_5 = arith.constant 0 : index
    %5 = vector.load %arg3[%c0_4, %c0_5] : memref<216x8xbf16, #tpu.memory_space<vmem>>, vector<216x8xbf16>
    %cst = arith.constant dense<0.000000e+00> : vector<32x8xf32>
    %6 = tpu.matmul %4, %5, %cst {dimension_numbers = #tpu.dot_dimension_numbers<[1], [0], [0], [1], [0, 0, 1, 1], [], []>} : vector<32x216xbf16>, vector<216x8xbf16>, vector<32x8xf32> -> vector<32x8xf32>
    %7 = arith.addf %3, %6 : vector<32x8xf32>
    %c0_6 = arith.constant 0 : index
    %c0_7 = arith.constant 0 : index
    %8 = vector.load %arg7[%c0_6, %c0_7] : memref<32x8xf32, #tpu.memory_space<vmem>>, vector<32x8xf32>
    tpu.vector_store %arg7[%c0_6, %c0_7], %7 {strides = array<i32>} : memref<32x8xf32, #tpu.memory_space<vmem>>, vector<32x8xf32>,
    %c0_i32_8 = arith.constant 0 : i32
    %9 = arith.cmpi eq, %arg1, %c0_i32_8 : i32
    %10 = arith.extui %9 : i1 to i32
    %c0_i32_9 = arith.constant 0 : i32
    %11 = arith.cmpi ne, %10, %c0_i32_9 : i32
    scf.if %11 {
      %c0_10 = arith.constant 0 : index
      %c0_11 = arith.constant 0 : index
      %12 = vector.load %arg7[%c0_10, %c0_11] : memref<32x8xf32, #tpu.memory_space<vmem>>, vector<32x8xf32>
      %c0_12 = arith.constant 0 : index
      %c0_13 = arith.constant 0 : index
      %13 = vector.load %arg4[%c0_12, %c0_13] : memref<1x8xf32, #tpu.memory_space<vmem>>, vector<1x8xf32>
      %14 = vector.broadcast %13 : vector<1x8xf32> to vector<32x8xf32>
      %15 = arith.mulf %12, %14 : vector<32x8xf32>
      %c0_14 = arith.constant 0 : index
      %c0_15 = arith.constant 0 : index
      %16 = vector.load %arg5[%c0_14, %c0_15] : memref<1x8xf32, #tpu.memory_space<vmem>>, vector<1x8xf32>
      %17 = vector.broadcast %16 : vector<1x8xf32> to vector<32x8xf32>
      %18 = arith.addf %15, %17 : vector<32x8xf32>
      %cst_16 = arith.constant 0.000000e+00 : f32
      %19 = vector.broadcast %cst_16 : f32 to vector<32x8xf32>
      %20 = arith.maximumf %18, %19 : vector<32x8xf32>
      %21 = arith.truncf %20 : vector<32x8xf32> to vector<32x8xbf16>
      %c0_17 = arith.constant 0 : index
      %c0_18 = arith.constant 0 : index
      %22 = vector.load %arg6[%c0_17, %c0_18] : memref<32x8xbf16, #tpu.memory_space<vmem>>, vector<32x8xbf16>
      tpu.vector_store %arg6[%c0_17, %c0_18], %21 {strides = array<i32>} : memref<32x8xbf16, #tpu.memory_space<vmem>>, vector<32x8xbf16>,
    } else {
    }
    return
  }
  func.func @transform_0(%arg0: i32, %arg1: i32) -> (i32, i32) {
    %c0_i32 = arith.constant 0 : i32
    return %arg0, %arg1 : i32, i32
  }
  func.func @transform_1(%arg0: i32, %arg1: i32) -> (i32, i32) {
    %c0_i32 = arith.constant 0 : i32
    %c0_i32_0 = arith.constant 0 : i32
    return %arg1, %c0_i32 : i32, i32
  }
  func.func @transform_2(%arg0: i32, %arg1: i32) -> (i32, i32) {
    %c0_i32 = arith.constant 0 : i32
    %c0_i32_0 = arith.constant 0 : i32
    %c0_i32_1 = arith.constant 0 : i32
    return %c0_i32, %c0_i32_0 : i32, i32
  }
  func.func @transform_3(%arg0: i32, %arg1: i32) -> (i32, i32) {
    %c0_i32 = arith.constant 0 : i32
    %c0_i32_0 = arith.constant 0 : i32
    %c0_i32_1 = arith.constant 0 : i32
    return %c0_i32, %c0_i32_0 : i32, i32
  }
  func.func @transform_4(%arg0: i32, %arg1: i32) -> (i32, i32) {
    %c0_i32 = arith.constant 0 : i32
    %c0_i32_0 = arith.constant 0 : i32
    return %arg0, %c0_i32 : i32, i32
  }
}

module attributes {stable_mosaic.version = 11 : i64} {
  func.func @_conv_mm_res_kernel(%arg0: i32, %arg1: i32, %arg2: memref<32x216xbf16, #tpu.memory_space<vmem>>, %arg3: memref<216x8xbf16, #tpu.memory_space<vmem>>, %arg4: memref<1x8xf32, #tpu.memory_space<vmem>>, %arg5: memref<1x8xf32, #tpu.memory_space<vmem>>, %arg6: memref<32x8xbf16, #tpu.memory_space<vmem>>, %arg7: memref<32x8xbf16, #tpu.memory_space<vmem>>, %arg8: memref<32x8xf32, #tpu.memory_space<vmem>>) attributes {dimension_semantics = [#tpu.dimension_semantics<parallel>, #tpu.dimension_semantics<arbitrary>], iteration_bounds = array<i64: 1, 1>, scalar_prefetch = 0 : i64, scratch_operands = 1 : i64, tpu.core_type = #tpu.core_type<tc>, window_params = [{transform_indices = @transform_0, window_bounds = array<i64: 32, 216>}, {transform_indices = @transform_1, window_bounds = array<i64: 216, 8>}, {pipeline_mode = #tpu.pipeline_mode<synchronous>, transform_indices = @transform_2, window_bounds = array<i64: 1, 8>}, {pipeline_mode = #tpu.pipeline_mode<synchronous>, transform_indices = @transform_3, window_bounds = array<i64: 1, 8>}, {transform_indices = @transform_4, window_bounds = array<i64: 32, 8>}, {transform_indices = @transform_5, window_bounds = array<i64: 32, 8>}]} {
    %c0_i32 = arith.constant 0 : i32
    %0 = arith.cmpi eq, %arg1, %c0_i32 : i32
    %1 = arith.extui %0 : i1 to i32
    %c0_i32_0 = arith.constant 0 : i32
    %2 = arith.cmpi ne, %1, %c0_i32_0 : i32
    scf.if %2 {
      %cst_10 = arith.constant 0.000000e+00 : f32
      %12 = vector.broadcast %cst_10 : f32 to vector<32x8xf32>
      %c0_11 = arith.constant 0 : index
      %c0_12 = arith.constant 0 : index
      %13 = vector.load %arg8[%c0_11, %c0_12] : memref<32x8xf32, #tpu.memory_space<vmem>>, vector<32x8xf32>
      tpu.vector_store %arg8[%c0_11, %c0_12], %12 {strides = array<i32>} : memref<32x8xf32, #tpu.memory_space<vmem>>, vector<32x8xf32>,
    } else {
    }
    %c0 = arith.constant 0 : index
    %c0_1 = arith.constant 0 : index
    %3 = vector.load %arg8[%c0, %c0_1] : memref<32x8xf32, #tpu.memory_space<vmem>>, vector<32x8xf32>
    %c0_2 = arith.constant 0 : index
    %c0_3 = arith.constant 0 : index
    %4 = vector.load %arg2[%c0_2, %c0_3] : memref<32x216xbf16, #tpu.memory_space<vmem>>, vector<32x216xbf16>
    %c0_4 = arith.constant 0 : index
    %c0_5 = arith.constant 0 : index
    %5 = vector.load %arg3[%c0_4, %c0_5] : memref<216x8xbf16, #tpu.memory_space<vmem>>, vector<216x8xbf16>
    %cst = arith.constant dense<0.000000e+00> : vector<32x8xf32>
    %6 = tpu.matmul %4, %5, %cst {dimension_numbers = #tpu.dot_dimension_numbers<[1], [0], [0], [1], [0, 0, 1, 1], [], []>} : vector<32x216xbf16>, vector<216x8xbf16>, vector<32x8xf32> -> vector<32x8xf32>
    %7 = arith.addf %3, %6 : vector<32x8xf32>
    %c0_6 = arith.constant 0 : index
    %c0_7 = arith.constant 0 : index
    %8 = vector.load %arg8[%c0_6, %c0_7] : memref<32x8xf32, #tpu.memory_space<vmem>>, vector<32x8xf32>
    tpu.vector_store %arg8[%c0_6, %c0_7], %7 {strides = array<i32>} : memref<32x8xf32, #tpu.memory_space<vmem>>, vector<32x8xf32>,
    %c0_i32_8 = arith.constant 0 : i32
    %9 = arith.cmpi eq, %arg1, %c0_i32_8 : i32
    %10 = arith.extui %9 : i1 to i32
    %c0_i32_9 = arith.constant 0 : i32
    %11 = arith.cmpi ne, %10, %c0_i32_9 : i32
    scf.if %11 {
      %c0_10 = arith.constant 0 : index
      %c0_11 = arith.constant 0 : index
      %12 = vector.load %arg8[%c0_10, %c0_11] : memref<32x8xf32, #tpu.memory_space<vmem>>, vector<32x8xf32>
      %c0_12 = arith.constant 0 : index
      %c0_13 = arith.constant 0 : index
      %13 = vector.load %arg4[%c0_12, %c0_13] : memref<1x8xf32, #tpu.memory_space<vmem>>, vector<1x8xf32>
      %14 = vector.broadcast %13 : vector<1x8xf32> to vector<32x8xf32>
      %15 = arith.mulf %12, %14 : vector<32x8xf32>
      %c0_14 = arith.constant 0 : index
      %c0_15 = arith.constant 0 : index
      %16 = vector.load %arg5[%c0_14, %c0_15] : memref<1x8xf32, #tpu.memory_space<vmem>>, vector<1x8xf32>
      %17 = vector.broadcast %16 : vector<1x8xf32> to vector<32x8xf32>
      %18 = arith.addf %15, %17 : vector<32x8xf32>
      %c0_16 = arith.constant 0 : index
      %c0_17 = arith.constant 0 : index
      %19 = vector.load %arg6[%c0_16, %c0_17] : memref<32x8xbf16, #tpu.memory_space<vmem>>, vector<32x8xbf16>
      %20 = arith.extf %19 : vector<32x8xbf16> to vector<32x8xf32>
      %21 = arith.addf %18, %20 : vector<32x8xf32>
      %cst_18 = arith.constant 0.000000e+00 : f32
      %22 = vector.broadcast %cst_18 : f32 to vector<32x8xf32>
      %23 = arith.maximumf %21, %22 : vector<32x8xf32>
      %24 = arith.truncf %23 : vector<32x8xf32> to vector<32x8xbf16>
      %c0_19 = arith.constant 0 : index
      %c0_20 = arith.constant 0 : index
      %25 = vector.load %arg7[%c0_19, %c0_20] : memref<32x8xbf16, #tpu.memory_space<vmem>>, vector<32x8xbf16>
      tpu.vector_store %arg7[%c0_19, %c0_20], %24 {strides = array<i32>} : memref<32x8xbf16, #tpu.memory_space<vmem>>, vector<32x8xbf16>,
    } else {
    }
    return
  }
  func.func @transform_0(%arg0: i32, %arg1: i32) -> (i32, i32) {
    %c0_i32 = arith.constant 0 : i32
    return %arg0, %arg1 : i32, i32
  }
  func.func @transform_1(%arg0: i32, %arg1: i32) -> (i32, i32) {
    %c0_i32 = arith.constant 0 : i32
    %c0_i32_0 = arith.constant 0 : i32
    return %arg1, %c0_i32 : i32, i32
  }
  func.func @transform_2(%arg0: i32, %arg1: i32) -> (i32, i32) {
    %c0_i32 = arith.constant 0 : i32
    %c0_i32_0 = arith.constant 0 : i32
    %c0_i32_1 = arith.constant 0 : i32
    return %c0_i32, %c0_i32_0 : i32, i32
  }
  func.func @transform_3(%arg0: i32, %arg1: i32) -> (i32, i32) {
    %c0_i32 = arith.constant 0 : i32
    %c0_i32_0 = arith.constant 0 : i32
    %c0_i32_1 = arith.constant 0 : i32
    return %c0_i32, %c0_i32_0 : i32, i32
  }
  func.func @transform_4(%arg0: i32, %arg1: i32) -> (i32, i32) {
    %c0_i32 = arith.constant 0 : i32
    %c0_i32_0 = arith.constant 0 : i32
    return %arg0, %c0_i32 : i32, i32
  }
  func.func @transform_5(%arg0: i32, %arg1: i32) -> (i32, i32) {
    %c0_i32 = arith.constant 0 : i32
    %c0_i32_0 = arith.constant 0 : i32
    return %arg0, %c0_i32 : i32, i32
  }
}

module attributes {stable_mosaic.version = 11 : i64} {
  func.func @_conv_mm_kernel(%arg0: i32, %arg1: i32, %arg2: memref<8x216xbf16, #tpu.memory_space<vmem>>, %arg3: memref<216x16xbf16, #tpu.memory_space<vmem>>, %arg4: memref<1x16xf32, #tpu.memory_space<vmem>>, %arg5: memref<1x16xf32, #tpu.memory_space<vmem>>, %arg6: memref<8x16xbf16, #tpu.memory_space<vmem>>, %arg7: memref<8x16xf32, #tpu.memory_space<vmem>>) attributes {dimension_semantics = [#tpu.dimension_semantics<parallel>, #tpu.dimension_semantics<arbitrary>], iteration_bounds = array<i64: 1, 1>, scalar_prefetch = 0 : i64, scratch_operands = 1 : i64, tpu.core_type = #tpu.core_type<tc>, window_params = [{transform_indices = @transform_0, window_bounds = array<i64: 8, 216>}, {transform_indices = @transform_1, window_bounds = array<i64: 216, 16>}, {pipeline_mode = #tpu.pipeline_mode<synchronous>, transform_indices = @transform_2, window_bounds = array<i64: 1, 16>}, {pipeline_mode = #tpu.pipeline_mode<synchronous>, transform_indices = @transform_3, window_bounds = array<i64: 1, 16>}, {transform_indices = @transform_4, window_bounds = array<i64: 8, 16>}]} {
    %c0_i32 = arith.constant 0 : i32
    %0 = arith.cmpi eq, %arg1, %c0_i32 : i32
    %1 = arith.extui %0 : i1 to i32
    %c0_i32_0 = arith.constant 0 : i32
    %2 = arith.cmpi ne, %1, %c0_i32_0 : i32
    scf.if %2 {
      %cst_10 = arith.constant 0.000000e+00 : f32
      %12 = vector.broadcast %cst_10 : f32 to vector<8x16xf32>
      %c0_11 = arith.constant 0 : index
      %c0_12 = arith.constant 0 : index
      %13 = vector.load %arg7[%c0_11, %c0_12] : memref<8x16xf32, #tpu.memory_space<vmem>>, vector<8x16xf32>
      tpu.vector_store %arg7[%c0_11, %c0_12], %12 {strides = array<i32>} : memref<8x16xf32, #tpu.memory_space<vmem>>, vector<8x16xf32>,
    } else {
    }
    %c0 = arith.constant 0 : index
    %c0_1 = arith.constant 0 : index
    %3 = vector.load %arg7[%c0, %c0_1] : memref<8x16xf32, #tpu.memory_space<vmem>>, vector<8x16xf32>
    %c0_2 = arith.constant 0 : index
    %c0_3 = arith.constant 0 : index
    %4 = vector.load %arg2[%c0_2, %c0_3] : memref<8x216xbf16, #tpu.memory_space<vmem>>, vector<8x216xbf16>
    %c0_4 = arith.constant 0 : index
    %c0_5 = arith.constant 0 : index
    %5 = vector.load %arg3[%c0_4, %c0_5] : memref<216x16xbf16, #tpu.memory_space<vmem>>, vector<216x16xbf16>
    %cst = arith.constant dense<0.000000e+00> : vector<8x16xf32>
    %6 = tpu.matmul %4, %5, %cst {dimension_numbers = #tpu.dot_dimension_numbers<[1], [0], [0], [1], [0, 0, 1, 1], [], []>} : vector<8x216xbf16>, vector<216x16xbf16>, vector<8x16xf32> -> vector<8x16xf32>
    %7 = arith.addf %3, %6 : vector<8x16xf32>
    %c0_6 = arith.constant 0 : index
    %c0_7 = arith.constant 0 : index
    %8 = vector.load %arg7[%c0_6, %c0_7] : memref<8x16xf32, #tpu.memory_space<vmem>>, vector<8x16xf32>
    tpu.vector_store %arg7[%c0_6, %c0_7], %7 {strides = array<i32>} : memref<8x16xf32, #tpu.memory_space<vmem>>, vector<8x16xf32>,
    %c0_i32_8 = arith.constant 0 : i32
    %9 = arith.cmpi eq, %arg1, %c0_i32_8 : i32
    %10 = arith.extui %9 : i1 to i32
    %c0_i32_9 = arith.constant 0 : i32
    %11 = arith.cmpi ne, %10, %c0_i32_9 : i32
    scf.if %11 {
      %c0_10 = arith.constant 0 : index
      %c0_11 = arith.constant 0 : index
      %12 = vector.load %arg7[%c0_10, %c0_11] : memref<8x16xf32, #tpu.memory_space<vmem>>, vector<8x16xf32>
      %c0_12 = arith.constant 0 : index
      %c0_13 = arith.constant 0 : index
      %13 = vector.load %arg4[%c0_12, %c0_13] : memref<1x16xf32, #tpu.memory_space<vmem>>, vector<1x16xf32>
      %14 = vector.broadcast %13 : vector<1x16xf32> to vector<8x16xf32>
      %15 = arith.mulf %12, %14 : vector<8x16xf32>
      %c0_14 = arith.constant 0 : index
      %c0_15 = arith.constant 0 : index
      %16 = vector.load %arg5[%c0_14, %c0_15] : memref<1x16xf32, #tpu.memory_space<vmem>>, vector<1x16xf32>
      %17 = vector.broadcast %16 : vector<1x16xf32> to vector<8x16xf32>
      %18 = arith.addf %15, %17 : vector<8x16xf32>
      %cst_16 = arith.constant 0.000000e+00 : f32
      %19 = vector.broadcast %cst_16 : f32 to vector<8x16xf32>
      %20 = arith.maximumf %18, %19 : vector<8x16xf32>
      %21 = arith.truncf %20 : vector<8x16xf32> to vector<8x16xbf16>
      %c0_17 = arith.constant 0 : index
      %c0_18 = arith.constant 0 : index
      %22 = vector.load %arg6[%c0_17, %c0_18] : memref<8x16xbf16, #tpu.memory_space<vmem>>, vector<8x16xbf16>
      tpu.vector_store %arg6[%c0_17, %c0_18], %21 {strides = array<i32>} : memref<8x16xbf16, #tpu.memory_space<vmem>>, vector<8x16xbf16>,
    } else {
    }
    return
  }
  func.func @transform_0(%arg0: i32, %arg1: i32) -> (i32, i32) {
    %c0_i32 = arith.constant 0 : i32
    return %arg0, %arg1 : i32, i32
  }
  func.func @transform_1(%arg0: i32, %arg1: i32) -> (i32, i32) {
    %c0_i32 = arith.constant 0 : i32
    %c0_i32_0 = arith.constant 0 : i32
    return %arg1, %c0_i32 : i32, i32
  }
  func.func @transform_2(%arg0: i32, %arg1: i32) -> (i32, i32) {
    %c0_i32 = arith.constant 0 : i32
    %c0_i32_0 = arith.constant 0 : i32
    %c0_i32_1 = arith.constant 0 : i32
    return %c0_i32, %c0_i32_0 : i32, i32
  }
  func.func @transform_3(%arg0: i32, %arg1: i32) -> (i32, i32) {
    %c0_i32 = arith.constant 0 : i32
    %c0_i32_0 = arith.constant 0 : i32
    %c0_i32_1 = arith.constant 0 : i32
    return %c0_i32, %c0_i32_0 : i32, i32
  }
  func.func @transform_4(%arg0: i32, %arg1: i32) -> (i32, i32) {
    %c0_i32 = arith.constant 0 : i32
    %c0_i32_0 = arith.constant 0 : i32
    return %arg0, %c0_i32 : i32, i32
  }
}

module attributes {stable_mosaic.version = 11 : i64} {
  func.func @_conv_mm_res_kernel(%arg0: i32, %arg1: i32, %arg2: memref<8x432xbf16, #tpu.memory_space<vmem>>, %arg3: memref<432x16xbf16, #tpu.memory_space<vmem>>, %arg4: memref<1x16xf32, #tpu.memory_space<vmem>>, %arg5: memref<1x16xf32, #tpu.memory_space<vmem>>, %arg6: memref<8x16xbf16, #tpu.memory_space<vmem>>, %arg7: memref<8x16xbf16, #tpu.memory_space<vmem>>, %arg8: memref<8x16xf32, #tpu.memory_space<vmem>>) attributes {dimension_semantics = [#tpu.dimension_semantics<parallel>, #tpu.dimension_semantics<arbitrary>], iteration_bounds = array<i64: 1, 1>, scalar_prefetch = 0 : i64, scratch_operands = 1 : i64, tpu.core_type = #tpu.core_type<tc>, window_params = [{transform_indices = @transform_0, window_bounds = array<i64: 8, 432>}, {transform_indices = @transform_1, window_bounds = array<i64: 432, 16>}, {pipeline_mode = #tpu.pipeline_mode<synchronous>, transform_indices = @transform_2, window_bounds = array<i64: 1, 16>}, {pipeline_mode = #tpu.pipeline_mode<synchronous>, transform_indices = @transform_3, window_bounds = array<i64: 1, 16>}, {transform_indices = @transform_4, window_bounds = array<i64: 8, 16>}, {transform_indices = @transform_5, window_bounds = array<i64: 8, 16>}]} {
    %c0_i32 = arith.constant 0 : i32
    %0 = arith.cmpi eq, %arg1, %c0_i32 : i32
    %1 = arith.extui %0 : i1 to i32
    %c0_i32_0 = arith.constant 0 : i32
    %2 = arith.cmpi ne, %1, %c0_i32_0 : i32
    scf.if %2 {
      %cst_10 = arith.constant 0.000000e+00 : f32
      %12 = vector.broadcast %cst_10 : f32 to vector<8x16xf32>
      %c0_11 = arith.constant 0 : index
      %c0_12 = arith.constant 0 : index
      %13 = vector.load %arg8[%c0_11, %c0_12] : memref<8x16xf32, #tpu.memory_space<vmem>>, vector<8x16xf32>
      tpu.vector_store %arg8[%c0_11, %c0_12], %12 {strides = array<i32>} : memref<8x16xf32, #tpu.memory_space<vmem>>, vector<8x16xf32>,
    } else {
    }
    %c0 = arith.constant 0 : index
    %c0_1 = arith.constant 0 : index
    %3 = vector.load %arg8[%c0, %c0_1] : memref<8x16xf32, #tpu.memory_space<vmem>>, vector<8x16xf32>
    %c0_2 = arith.constant 0 : index
    %c0_3 = arith.constant 0 : index
    %4 = vector.load %arg2[%c0_2, %c0_3] : memref<8x432xbf16, #tpu.memory_space<vmem>>, vector<8x432xbf16>
    %c0_4 = arith.constant 0 : index
    %c0_5 = arith.constant 0 : index
    %5 = vector.load %arg3[%c0_4, %c0_5] : memref<432x16xbf16, #tpu.memory_space<vmem>>, vector<432x16xbf16>
    %cst = arith.constant dense<0.000000e+00> : vector<8x16xf32>
    %6 = tpu.matmul %4, %5, %cst {dimension_numbers = #tpu.dot_dimension_numbers<[1], [0], [0], [1], [0, 0, 1, 1], [], []>} : vector<8x432xbf16>, vector<432x16xbf16>, vector<8x16xf32> -> vector<8x16xf32>
    %7 = arith.addf %3, %6 : vector<8x16xf32>
    %c0_6 = arith.constant 0 : index
    %c0_7 = arith.constant 0 : index
    %8 = vector.load %arg8[%c0_6, %c0_7] : memref<8x16xf32, #tpu.memory_space<vmem>>, vector<8x16xf32>
    tpu.vector_store %arg8[%c0_6, %c0_7], %7 {strides = array<i32>} : memref<8x16xf32, #tpu.memory_space<vmem>>, vector<8x16xf32>,
    %c0_i32_8 = arith.constant 0 : i32
    %9 = arith.cmpi eq, %arg1, %c0_i32_8 : i32
    %10 = arith.extui %9 : i1 to i32
    %c0_i32_9 = arith.constant 0 : i32
    %11 = arith.cmpi ne, %10, %c0_i32_9 : i32
    scf.if %11 {
      %c0_10 = arith.constant 0 : index
      %c0_11 = arith.constant 0 : index
      %12 = vector.load %arg8[%c0_10, %c0_11] : memref<8x16xf32, #tpu.memory_space<vmem>>, vector<8x16xf32>
      %c0_12 = arith.constant 0 : index
      %c0_13 = arith.constant 0 : index
      %13 = vector.load %arg4[%c0_12, %c0_13] : memref<1x16xf32, #tpu.memory_space<vmem>>, vector<1x16xf32>
      %14 = vector.broadcast %13 : vector<1x16xf32> to vector<8x16xf32>
      %15 = arith.mulf %12, %14 : vector<8x16xf32>
      %c0_14 = arith.constant 0 : index
      %c0_15 = arith.constant 0 : index
      %16 = vector.load %arg5[%c0_14, %c0_15] : memref<1x16xf32, #tpu.memory_space<vmem>>, vector<1x16xf32>
      %17 = vector.broadcast %16 : vector<1x16xf32> to vector<8x16xf32>
      %18 = arith.addf %15, %17 : vector<8x16xf32>
      %c0_16 = arith.constant 0 : index
      %c0_17 = arith.constant 0 : index
      %19 = vector.load %arg6[%c0_16, %c0_17] : memref<8x16xbf16, #tpu.memory_space<vmem>>, vector<8x16xbf16>
      %20 = arith.extf %19 : vector<8x16xbf16> to vector<8x16xf32>
      %21 = arith.addf %18, %20 : vector<8x16xf32>
      %cst_18 = arith.constant 0.000000e+00 : f32
      %22 = vector.broadcast %cst_18 : f32 to vector<8x16xf32>
      %23 = arith.maximumf %21, %22 : vector<8x16xf32>
      %24 = arith.truncf %23 : vector<8x16xf32> to vector<8x16xbf16>
      %c0_19 = arith.constant 0 : index
      %c0_20 = arith.constant 0 : index
      %25 = vector.load %arg7[%c0_19, %c0_20] : memref<8x16xbf16, #tpu.memory_space<vmem>>, vector<8x16xbf16>
      tpu.vector_store %arg7[%c0_19, %c0_20], %24 {strides = array<i32>} : memref<8x16xbf16, #tpu.memory_space<vmem>>, vector<8x16xbf16>,
    } else {
    }
    return
  }
  func.func @transform_0(%arg0: i32, %arg1: i32) -> (i32, i32) {
    %c0_i32 = arith.constant 0 : i32
    return %arg0, %arg1 : i32, i32
  }
  func.func @transform_1(%arg0: i32, %arg1: i32) -> (i32, i32) {
    %c0_i32 = arith.constant 0 : i32
    %c0_i32_0 = arith.constant 0 : i32
    return %arg1, %c0_i32 : i32, i32
  }
  func.func @transform_2(%arg0: i32, %arg1: i32) -> (i32, i32) {
    %c0_i32 = arith.constant 0 : i32
    %c0_i32_0 = arith.constant 0 : i32
    %c0_i32_1 = arith.constant 0 : i32
    return %c0_i32, %c0_i32_0 : i32, i32
  }
  func.func @transform_3(%arg0: i32, %arg1: i32) -> (i32, i32) {
    %c0_i32 = arith.constant 0 : i32
    %c0_i32_0 = arith.constant 0 : i32
    %c0_i32_1 = arith.constant 0 : i32
    return %c0_i32, %c0_i32_0 : i32, i32
  }
  func.func @transform_4(%arg0: i32, %arg1: i32) -> (i32, i32) {
    %c0_i32 = arith.constant 0 : i32
    %c0_i32_0 = arith.constant 0 : i32
    return %arg0, %c0_i32 : i32, i32
  }
  func.func @transform_5(%arg0: i32, %arg1: i32) -> (i32, i32) {
    %c0_i32 = arith.constant 0 : i32
    %c0_i32_0 = arith.constant 0 : i32
    return %arg0, %c0_i32 : i32, i32
  }
}

module attributes {stable_mosaic.version = 11 : i64} {
  func.func @_conv_mm_kernel(%arg0: i32, %arg1: i32, %arg2: memref<8x8xbf16, #tpu.memory_space<vmem>>, %arg3: memref<8x16xbf16, #tpu.memory_space<vmem>>, %arg4: memref<1x16xf32, #tpu.memory_space<vmem>>, %arg5: memref<1x16xf32, #tpu.memory_space<vmem>>, %arg6: memref<8x16xbf16, #tpu.memory_space<vmem>>, %arg7: memref<8x16xf32, #tpu.memory_space<vmem>>) attributes {dimension_semantics = [#tpu.dimension_semantics<parallel>, #tpu.dimension_semantics<arbitrary>], iteration_bounds = array<i64: 1, 1>, scalar_prefetch = 0 : i64, scratch_operands = 1 : i64, tpu.core_type = #tpu.core_type<tc>, window_params = [{transform_indices = @transform_0, window_bounds = array<i64: 8, 8>}, {transform_indices = @transform_1, window_bounds = array<i64: 8, 16>}, {pipeline_mode = #tpu.pipeline_mode<synchronous>, transform_indices = @transform_2, window_bounds = array<i64: 1, 16>}, {pipeline_mode = #tpu.pipeline_mode<synchronous>, transform_indices = @transform_3, window_bounds = array<i64: 1, 16>}, {transform_indices = @transform_4, window_bounds = array<i64: 8, 16>}]} {
    %c0_i32 = arith.constant 0 : i32
    %0 = arith.cmpi eq, %arg1, %c0_i32 : i32
    %1 = arith.extui %0 : i1 to i32
    %c0_i32_0 = arith.constant 0 : i32
    %2 = arith.cmpi ne, %1, %c0_i32_0 : i32
    scf.if %2 {
      %cst_10 = arith.constant 0.000000e+00 : f32
      %12 = vector.broadcast %cst_10 : f32 to vector<8x16xf32>
      %c0_11 = arith.constant 0 : index
      %c0_12 = arith.constant 0 : index
      %13 = vector.load %arg7[%c0_11, %c0_12] : memref<8x16xf32, #tpu.memory_space<vmem>>, vector<8x16xf32>
      tpu.vector_store %arg7[%c0_11, %c0_12], %12 {strides = array<i32>} : memref<8x16xf32, #tpu.memory_space<vmem>>, vector<8x16xf32>,
    } else {
    }
    %c0 = arith.constant 0 : index
    %c0_1 = arith.constant 0 : index
    %3 = vector.load %arg7[%c0, %c0_1] : memref<8x16xf32, #tpu.memory_space<vmem>>, vector<8x16xf32>
    %c0_2 = arith.constant 0 : index
    %c0_3 = arith.constant 0 : index
    %4 = vector.load %arg2[%c0_2, %c0_3] : memref<8x8xbf16, #tpu.memory_space<vmem>>, vector<8x8xbf16>
    %c0_4 = arith.constant 0 : index
    %c0_5 = arith.constant 0 : index
    %5 = vector.load %arg3[%c0_4, %c0_5] : memref<8x16xbf16, #tpu.memory_space<vmem>>, vector<8x16xbf16>
    %cst = arith.constant dense<0.000000e+00> : vector<8x16xf32>
    %6 = tpu.matmul %4, %5, %cst {dimension_numbers = #tpu.dot_dimension_numbers<[1], [0], [0], [1], [0, 0, 1, 1], [], []>} : vector<8x8xbf16>, vector<8x16xbf16>, vector<8x16xf32> -> vector<8x16xf32>
    %7 = arith.addf %3, %6 : vector<8x16xf32>
    %c0_6 = arith.constant 0 : index
    %c0_7 = arith.constant 0 : index
    %8 = vector.load %arg7[%c0_6, %c0_7] : memref<8x16xf32, #tpu.memory_space<vmem>>, vector<8x16xf32>
    tpu.vector_store %arg7[%c0_6, %c0_7], %7 {strides = array<i32>} : memref<8x16xf32, #tpu.memory_space<vmem>>, vector<8x16xf32>,
    %c0_i32_8 = arith.constant 0 : i32
    %9 = arith.cmpi eq, %arg1, %c0_i32_8 : i32
    %10 = arith.extui %9 : i1 to i32
    %c0_i32_9 = arith.constant 0 : i32
    %11 = arith.cmpi ne, %10, %c0_i32_9 : i32
    scf.if %11 {
      %c0_10 = arith.constant 0 : index
      %c0_11 = arith.constant 0 : index
      %12 = vector.load %arg7[%c0_10, %c0_11] : memref<8x16xf32, #tpu.memory_space<vmem>>, vector<8x16xf32>
      %c0_12 = arith.constant 0 : index
      %c0_13 = arith.constant 0 : index
      %13 = vector.load %arg4[%c0_12, %c0_13] : memref<1x16xf32, #tpu.memory_space<vmem>>, vector<1x16xf32>
      %14 = vector.broadcast %13 : vector<1x16xf32> to vector<8x16xf32>
      %15 = arith.mulf %12, %14 : vector<8x16xf32>
      %c0_14 = arith.constant 0 : index
      %c0_15 = arith.constant 0 : index
      %16 = vector.load %arg5[%c0_14, %c0_15] : memref<1x16xf32, #tpu.memory_space<vmem>>, vector<1x16xf32>
      %17 = vector.broadcast %16 : vector<1x16xf32> to vector<8x16xf32>
      %18 = arith.addf %15, %17 : vector<8x16xf32>
      %19 = arith.truncf %18 : vector<8x16xf32> to vector<8x16xbf16>
      %c0_16 = arith.constant 0 : index
      %c0_17 = arith.constant 0 : index
      %20 = vector.load %arg6[%c0_16, %c0_17] : memref<8x16xbf16, #tpu.memory_space<vmem>>, vector<8x16xbf16>
      tpu.vector_store %arg6[%c0_16, %c0_17], %19 {strides = array<i32>} : memref<8x16xbf16, #tpu.memory_space<vmem>>, vector<8x16xbf16>,
    } else {
    }
    return
  }
  func.func @transform_0(%arg0: i32, %arg1: i32) -> (i32, i32) {
    %c0_i32 = arith.constant 0 : i32
    return %arg0, %arg1 : i32, i32
  }
  func.func @transform_1(%arg0: i32, %arg1: i32) -> (i32, i32) {
    %c0_i32 = arith.constant 0 : i32
    %c0_i32_0 = arith.constant 0 : i32
    return %arg1, %c0_i32 : i32, i32
  }
  func.func @transform_2(%arg0: i32, %arg1: i32) -> (i32, i32) {
    %c0_i32 = arith.constant 0 : i32
    %c0_i32_0 = arith.constant 0 : i32
    %c0_i32_1 = arith.constant 0 : i32
    return %c0_i32, %c0_i32_0 : i32, i32
  }
  func.func @transform_3(%arg0: i32, %arg1: i32) -> (i32, i32) {
    %c0_i32 = arith.constant 0 : i32
    %c0_i32_0 = arith.constant 0 : i32
    %c0_i32_1 = arith.constant 0 : i32
    return %c0_i32, %c0_i32_0 : i32, i32
  }
  func.func @transform_4(%arg0: i32, %arg1: i32) -> (i32, i32) {
    %c0_i32 = arith.constant 0 : i32
    %c0_i32_0 = arith.constant 0 : i32
    return %arg0, %c0_i32 : i32, i32
  }
}

module attributes {stable_mosaic.version = 11 : i64} {
  func.func @_conv_mm_kernel(%arg0: i32, %arg1: i32, %arg2: memref<8x432xbf16, #tpu.memory_space<vmem>>, %arg3: memref<432x32xbf16, #tpu.memory_space<vmem>>, %arg4: memref<1x32xf32, #tpu.memory_space<vmem>>, %arg5: memref<1x32xf32, #tpu.memory_space<vmem>>, %arg6: memref<8x32xbf16, #tpu.memory_space<vmem>>, %arg7: memref<8x32xf32, #tpu.memory_space<vmem>>) attributes {dimension_semantics = [#tpu.dimension_semantics<parallel>, #tpu.dimension_semantics<arbitrary>], iteration_bounds = array<i64: 1, 1>, scalar_prefetch = 0 : i64, scratch_operands = 1 : i64, tpu.core_type = #tpu.core_type<tc>, window_params = [{transform_indices = @transform_0, window_bounds = array<i64: 8, 432>}, {transform_indices = @transform_1, window_bounds = array<i64: 432, 32>}, {pipeline_mode = #tpu.pipeline_mode<synchronous>, transform_indices = @transform_2, window_bounds = array<i64: 1, 32>}, {pipeline_mode = #tpu.pipeline_mode<synchronous>, transform_indices = @transform_3, window_bounds = array<i64: 1, 32>}, {transform_indices = @transform_4, window_bounds = array<i64: 8, 32>}]} {
    %c0_i32 = arith.constant 0 : i32
    %0 = arith.cmpi eq, %arg1, %c0_i32 : i32
    %1 = arith.extui %0 : i1 to i32
    %c0_i32_0 = arith.constant 0 : i32
    %2 = arith.cmpi ne, %1, %c0_i32_0 : i32
    scf.if %2 {
      %cst_10 = arith.constant 0.000000e+00 : f32
      %12 = vector.broadcast %cst_10 : f32 to vector<8x32xf32>
      %c0_11 = arith.constant 0 : index
      %c0_12 = arith.constant 0 : index
      %13 = vector.load %arg7[%c0_11, %c0_12] : memref<8x32xf32, #tpu.memory_space<vmem>>, vector<8x32xf32>
      tpu.vector_store %arg7[%c0_11, %c0_12], %12 {strides = array<i32>} : memref<8x32xf32, #tpu.memory_space<vmem>>, vector<8x32xf32>,
    } else {
    }
    %c0 = arith.constant 0 : index
    %c0_1 = arith.constant 0 : index
    %3 = vector.load %arg7[%c0, %c0_1] : memref<8x32xf32, #tpu.memory_space<vmem>>, vector<8x32xf32>
    %c0_2 = arith.constant 0 : index
    %c0_3 = arith.constant 0 : index
    %4 = vector.load %arg2[%c0_2, %c0_3] : memref<8x432xbf16, #tpu.memory_space<vmem>>, vector<8x432xbf16>
    %c0_4 = arith.constant 0 : index
    %c0_5 = arith.constant 0 : index
    %5 = vector.load %arg3[%c0_4, %c0_5] : memref<432x32xbf16, #tpu.memory_space<vmem>>, vector<432x32xbf16>
    %cst = arith.constant dense<0.000000e+00> : vector<8x32xf32>
    %6 = tpu.matmul %4, %5, %cst {dimension_numbers = #tpu.dot_dimension_numbers<[1], [0], [0], [1], [0, 0, 1, 1], [], []>} : vector<8x432xbf16>, vector<432x32xbf16>, vector<8x32xf32> -> vector<8x32xf32>
    %7 = arith.addf %3, %6 : vector<8x32xf32>
    %c0_6 = arith.constant 0 : index
    %c0_7 = arith.constant 0 : index
    %8 = vector.load %arg7[%c0_6, %c0_7] : memref<8x32xf32, #tpu.memory_space<vmem>>, vector<8x32xf32>
    tpu.vector_store %arg7[%c0_6, %c0_7], %7 {strides = array<i32>} : memref<8x32xf32, #tpu.memory_space<vmem>>, vector<8x32xf32>,
    %c0_i32_8 = arith.constant 0 : i32
    %9 = arith.cmpi eq, %arg1, %c0_i32_8 : i32
    %10 = arith.extui %9 : i1 to i32
    %c0_i32_9 = arith.constant 0 : i32
    %11 = arith.cmpi ne, %10, %c0_i32_9 : i32
    scf.if %11 {
      %c0_10 = arith.constant 0 : index
      %c0_11 = arith.constant 0 : index
      %12 = vector.load %arg7[%c0_10, %c0_11] : memref<8x32xf32, #tpu.memory_space<vmem>>, vector<8x32xf32>
      %c0_12 = arith.constant 0 : index
      %c0_13 = arith.constant 0 : index
      %13 = vector.load %arg4[%c0_12, %c0_13] : memref<1x32xf32, #tpu.memory_space<vmem>>, vector<1x32xf32>
      %14 = vector.broadcast %13 : vector<1x32xf32> to vector<8x32xf32>
      %15 = arith.mulf %12, %14 : vector<8x32xf32>
      %c0_14 = arith.constant 0 : index
      %c0_15 = arith.constant 0 : index
      %16 = vector.load %arg5[%c0_14, %c0_15] : memref<1x32xf32, #tpu.memory_space<vmem>>, vector<1x32xf32>
      %17 = vector.broadcast %16 : vector<1x32xf32> to vector<8x32xf32>
      %18 = arith.addf %15, %17 : vector<8x32xf32>
      %cst_16 = arith.constant 0.000000e+00 : f32
      %19 = vector.broadcast %cst_16 : f32 to vector<8x32xf32>
      %20 = arith.maximumf %18, %19 : vector<8x32xf32>
      %21 = arith.truncf %20 : vector<8x32xf32> to vector<8x32xbf16>
      %c0_17 = arith.constant 0 : index
      %c0_18 = arith.constant 0 : index
      %22 = vector.load %arg6[%c0_17, %c0_18] : memref<8x32xbf16, #tpu.memory_space<vmem>>, vector<8x32xbf16>
      tpu.vector_store %arg6[%c0_17, %c0_18], %21 {strides = array<i32>} : memref<8x32xbf16, #tpu.memory_space<vmem>>, vector<8x32xbf16>,
    } else {
    }
    return
  }
  func.func @transform_0(%arg0: i32, %arg1: i32) -> (i32, i32) {
    %c0_i32 = arith.constant 0 : i32
    return %arg0, %arg1 : i32, i32
  }
  func.func @transform_1(%arg0: i32, %arg1: i32) -> (i32, i32) {
    %c0_i32 = arith.constant 0 : i32
    %c0_i32_0 = arith.constant 0 : i32
    return %arg1, %c0_i32 : i32, i32
  }
  func.func @transform_2(%arg0: i32, %arg1: i32) -> (i32, i32) {
    %c0_i32 = arith.constant 0 : i32
    %c0_i32_0 = arith.constant 0 : i32
    %c0_i32_1 = arith.constant 0 : i32
    return %c0_i32, %c0_i32_0 : i32, i32
  }
  func.func @transform_3(%arg0: i32, %arg1: i32) -> (i32, i32) {
    %c0_i32 = arith.constant 0 : i32
    %c0_i32_0 = arith.constant 0 : i32
    %c0_i32_1 = arith.constant 0 : i32
    return %c0_i32, %c0_i32_0 : i32, i32
  }
  func.func @transform_4(%arg0: i32, %arg1: i32) -> (i32, i32) {
    %c0_i32 = arith.constant 0 : i32
    %c0_i32_0 = arith.constant 0 : i32
    return %arg0, %c0_i32 : i32, i32
  }
}

module attributes {stable_mosaic.version = 11 : i64} {
  func.func @_conv_mm_res_kernel(%arg0: i32, %arg1: i32, %arg2: memref<8x864xbf16, #tpu.memory_space<vmem>>, %arg3: memref<864x32xbf16, #tpu.memory_space<vmem>>, %arg4: memref<1x32xf32, #tpu.memory_space<vmem>>, %arg5: memref<1x32xf32, #tpu.memory_space<vmem>>, %arg6: memref<8x32xbf16, #tpu.memory_space<vmem>>, %arg7: memref<8x32xbf16, #tpu.memory_space<vmem>>, %arg8: memref<8x32xf32, #tpu.memory_space<vmem>>) attributes {dimension_semantics = [#tpu.dimension_semantics<parallel>, #tpu.dimension_semantics<arbitrary>], iteration_bounds = array<i64: 1, 1>, scalar_prefetch = 0 : i64, scratch_operands = 1 : i64, tpu.core_type = #tpu.core_type<tc>, window_params = [{transform_indices = @transform_0, window_bounds = array<i64: 8, 864>}, {transform_indices = @transform_1, window_bounds = array<i64: 864, 32>}, {pipeline_mode = #tpu.pipeline_mode<synchronous>, transform_indices = @transform_2, window_bounds = array<i64: 1, 32>}, {pipeline_mode = #tpu.pipeline_mode<synchronous>, transform_indices = @transform_3, window_bounds = array<i64: 1, 32>}, {transform_indices = @transform_4, window_bounds = array<i64: 8, 32>}, {transform_indices = @transform_5, window_bounds = array<i64: 8, 32>}]} {
    %c0_i32 = arith.constant 0 : i32
    %0 = arith.cmpi eq, %arg1, %c0_i32 : i32
    %1 = arith.extui %0 : i1 to i32
    %c0_i32_0 = arith.constant 0 : i32
    %2 = arith.cmpi ne, %1, %c0_i32_0 : i32
    scf.if %2 {
      %cst_10 = arith.constant 0.000000e+00 : f32
      %12 = vector.broadcast %cst_10 : f32 to vector<8x32xf32>
      %c0_11 = arith.constant 0 : index
      %c0_12 = arith.constant 0 : index
      %13 = vector.load %arg8[%c0_11, %c0_12] : memref<8x32xf32, #tpu.memory_space<vmem>>, vector<8x32xf32>
      tpu.vector_store %arg8[%c0_11, %c0_12], %12 {strides = array<i32>} : memref<8x32xf32, #tpu.memory_space<vmem>>, vector<8x32xf32>,
    } else {
    }
    %c0 = arith.constant 0 : index
    %c0_1 = arith.constant 0 : index
    %3 = vector.load %arg8[%c0, %c0_1] : memref<8x32xf32, #tpu.memory_space<vmem>>, vector<8x32xf32>
    %c0_2 = arith.constant 0 : index
    %c0_3 = arith.constant 0 : index
    %4 = vector.load %arg2[%c0_2, %c0_3] : memref<8x864xbf16, #tpu.memory_space<vmem>>, vector<8x864xbf16>
    %c0_4 = arith.constant 0 : index
    %c0_5 = arith.constant 0 : index
    %5 = vector.load %arg3[%c0_4, %c0_5] : memref<864x32xbf16, #tpu.memory_space<vmem>>, vector<864x32xbf16>
    %cst = arith.constant dense<0.000000e+00> : vector<8x32xf32>
    %6 = tpu.matmul %4, %5, %cst {dimension_numbers = #tpu.dot_dimension_numbers<[1], [0], [0], [1], [0, 0, 1, 1], [], []>} : vector<8x864xbf16>, vector<864x32xbf16>, vector<8x32xf32> -> vector<8x32xf32>
    %7 = arith.addf %3, %6 : vector<8x32xf32>
    %c0_6 = arith.constant 0 : index
    %c0_7 = arith.constant 0 : index
    %8 = vector.load %arg8[%c0_6, %c0_7] : memref<8x32xf32, #tpu.memory_space<vmem>>, vector<8x32xf32>
    tpu.vector_store %arg8[%c0_6, %c0_7], %7 {strides = array<i32>} : memref<8x32xf32, #tpu.memory_space<vmem>>, vector<8x32xf32>,
    %c0_i32_8 = arith.constant 0 : i32
    %9 = arith.cmpi eq, %arg1, %c0_i32_8 : i32
    %10 = arith.extui %9 : i1 to i32
    %c0_i32_9 = arith.constant 0 : i32
    %11 = arith.cmpi ne, %10, %c0_i32_9 : i32
    scf.if %11 {
      %c0_10 = arith.constant 0 : index
      %c0_11 = arith.constant 0 : index
      %12 = vector.load %arg8[%c0_10, %c0_11] : memref<8x32xf32, #tpu.memory_space<vmem>>, vector<8x32xf32>
      %c0_12 = arith.constant 0 : index
      %c0_13 = arith.constant 0 : index
      %13 = vector.load %arg4[%c0_12, %c0_13] : memref<1x32xf32, #tpu.memory_space<vmem>>, vector<1x32xf32>
      %14 = vector.broadcast %13 : vector<1x32xf32> to vector<8x32xf32>
      %15 = arith.mulf %12, %14 : vector<8x32xf32>
      %c0_14 = arith.constant 0 : index
      %c0_15 = arith.constant 0 : index
      %16 = vector.load %arg5[%c0_14, %c0_15] : memref<1x32xf32, #tpu.memory_space<vmem>>, vector<1x32xf32>
      %17 = vector.broadcast %16 : vector<1x32xf32> to vector<8x32xf32>
      %18 = arith.addf %15, %17 : vector<8x32xf32>
      %c0_16 = arith.constant 0 : index
      %c0_17 = arith.constant 0 : index
      %19 = vector.load %arg6[%c0_16, %c0_17] : memref<8x32xbf16, #tpu.memory_space<vmem>>, vector<8x32xbf16>
      %20 = arith.extf %19 : vector<8x32xbf16> to vector<8x32xf32>
      %21 = arith.addf %18, %20 : vector<8x32xf32>
      %cst_18 = arith.constant 0.000000e+00 : f32
      %22 = vector.broadcast %cst_18 : f32 to vector<8x32xf32>
      %23 = arith.maximumf %21, %22 : vector<8x32xf32>
      %24 = arith.truncf %23 : vector<8x32xf32> to vector<8x32xbf16>
      %c0_19 = arith.constant 0 : index
      %c0_20 = arith.constant 0 : index
      %25 = vector.load %arg7[%c0_19, %c0_20] : memref<8x32xbf16, #tpu.memory_space<vmem>>, vector<8x32xbf16>
      tpu.vector_store %arg7[%c0_19, %c0_20], %24 {strides = array<i32>} : memref<8x32xbf16, #tpu.memory_space<vmem>>, vector<8x32xbf16>,
    } else {
    }
    return
  }
  func.func @transform_0(%arg0: i32, %arg1: i32) -> (i32, i32) {
    %c0_i32 = arith.constant 0 : i32
    return %arg0, %arg1 : i32, i32
  }
  func.func @transform_1(%arg0: i32, %arg1: i32) -> (i32, i32) {
    %c0_i32 = arith.constant 0 : i32
    %c0_i32_0 = arith.constant 0 : i32
    return %arg1, %c0_i32 : i32, i32
  }
  func.func @transform_2(%arg0: i32, %arg1: i32) -> (i32, i32) {
    %c0_i32 = arith.constant 0 : i32
    %c0_i32_0 = arith.constant 0 : i32
    %c0_i32_1 = arith.constant 0 : i32
    return %c0_i32, %c0_i32_0 : i32, i32
  }
  func.func @transform_3(%arg0: i32, %arg1: i32) -> (i32, i32) {
    %c0_i32 = arith.constant 0 : i32
    %c0_i32_0 = arith.constant 0 : i32
    %c0_i32_1 = arith.constant 0 : i32
    return %c0_i32, %c0_i32_0 : i32, i32
  }
  func.func @transform_4(%arg0: i32, %arg1: i32) -> (i32, i32) {
    %c0_i32 = arith.constant 0 : i32
    %c0_i32_0 = arith.constant 0 : i32
    return %arg0, %c0_i32 : i32, i32
  }
  func.func @transform_5(%arg0: i32, %arg1: i32) -> (i32, i32) {
    %c0_i32 = arith.constant 0 : i32
    %c0_i32_0 = arith.constant 0 : i32
    return %arg0, %c0_i32 : i32, i32
  }
}

module attributes {stable_mosaic.version = 11 : i64} {
  func.func @_conv_mm_kernel(%arg0: i32, %arg1: i32, %arg2: memref<8x16xbf16, #tpu.memory_space<vmem>>, %arg3: memref<16x32xbf16, #tpu.memory_space<vmem>>, %arg4: memref<1x32xf32, #tpu.memory_space<vmem>>, %arg5: memref<1x32xf32, #tpu.memory_space<vmem>>, %arg6: memref<8x32xbf16, #tpu.memory_space<vmem>>, %arg7: memref<8x32xf32, #tpu.memory_space<vmem>>) attributes {dimension_semantics = [#tpu.dimension_semantics<parallel>, #tpu.dimension_semantics<arbitrary>], iteration_bounds = array<i64: 1, 1>, scalar_prefetch = 0 : i64, scratch_operands = 1 : i64, tpu.core_type = #tpu.core_type<tc>, window_params = [{transform_indices = @transform_0, window_bounds = array<i64: 8, 16>}, {transform_indices = @transform_1, window_bounds = array<i64: 16, 32>}, {pipeline_mode = #tpu.pipeline_mode<synchronous>, transform_indices = @transform_2, window_bounds = array<i64: 1, 32>}, {pipeline_mode = #tpu.pipeline_mode<synchronous>, transform_indices = @transform_3, window_bounds = array<i64: 1, 32>}, {transform_indices = @transform_4, window_bounds = array<i64: 8, 32>}]} {
    %c0_i32 = arith.constant 0 : i32
    %0 = arith.cmpi eq, %arg1, %c0_i32 : i32
    %1 = arith.extui %0 : i1 to i32
    %c0_i32_0 = arith.constant 0 : i32
    %2 = arith.cmpi ne, %1, %c0_i32_0 : i32
    scf.if %2 {
      %cst_10 = arith.constant 0.000000e+00 : f32
      %12 = vector.broadcast %cst_10 : f32 to vector<8x32xf32>
      %c0_11 = arith.constant 0 : index
      %c0_12 = arith.constant 0 : index
      %13 = vector.load %arg7[%c0_11, %c0_12] : memref<8x32xf32, #tpu.memory_space<vmem>>, vector<8x32xf32>
      tpu.vector_store %arg7[%c0_11, %c0_12], %12 {strides = array<i32>} : memref<8x32xf32, #tpu.memory_space<vmem>>, vector<8x32xf32>,
    } else {
    }
    %c0 = arith.constant 0 : index
    %c0_1 = arith.constant 0 : index
    %3 = vector.load %arg7[%c0, %c0_1] : memref<8x32xf32, #tpu.memory_space<vmem>>, vector<8x32xf32>
    %c0_2 = arith.constant 0 : index
    %c0_3 = arith.constant 0 : index
    %4 = vector.load %arg2[%c0_2, %c0_3] : memref<8x16xbf16, #tpu.memory_space<vmem>>, vector<8x16xbf16>
    %c0_4 = arith.constant 0 : index
    %c0_5 = arith.constant 0 : index
    %5 = vector.load %arg3[%c0_4, %c0_5] : memref<16x32xbf16, #tpu.memory_space<vmem>>, vector<16x32xbf16>
    %cst = arith.constant dense<0.000000e+00> : vector<8x32xf32>
    %6 = tpu.matmul %4, %5, %cst {dimension_numbers = #tpu.dot_dimension_numbers<[1], [0], [0], [1], [0, 0, 1, 1], [], []>} : vector<8x16xbf16>, vector<16x32xbf16>, vector<8x32xf32> -> vector<8x32xf32>
    %7 = arith.addf %3, %6 : vector<8x32xf32>
    %c0_6 = arith.constant 0 : index
    %c0_7 = arith.constant 0 : index
    %8 = vector.load %arg7[%c0_6, %c0_7] : memref<8x32xf32, #tpu.memory_space<vmem>>, vector<8x32xf32>
    tpu.vector_store %arg7[%c0_6, %c0_7], %7 {strides = array<i32>} : memref<8x32xf32, #tpu.memory_space<vmem>>, vector<8x32xf32>,
    %c0_i32_8 = arith.constant 0 : i32
    %9 = arith.cmpi eq, %arg1, %c0_i32_8 : i32
    %10 = arith.extui %9 : i1 to i32
    %c0_i32_9 = arith.constant 0 : i32
    %11 = arith.cmpi ne, %10, %c0_i32_9 : i32
    scf.if %11 {
      %c0_10 = arith.constant 0 : index
      %c0_11 = arith.constant 0 : index
      %12 = vector.load %arg7[%c0_10, %c0_11] : memref<8x32xf32, #tpu.memory_space<vmem>>, vector<8x32xf32>
      %c0_12 = arith.constant 0 : index
      %c0_13 = arith.constant 0 : index
      %13 = vector.load %arg4[%c0_12, %c0_13] : memref<1x32xf32, #tpu.memory_space<vmem>>, vector<1x32xf32>
      %14 = vector.broadcast %13 : vector<1x32xf32> to vector<8x32xf32>
      %15 = arith.mulf %12, %14 : vector<8x32xf32>
      %c0_14 = arith.constant 0 : index
      %c0_15 = arith.constant 0 : index
      %16 = vector.load %arg5[%c0_14, %c0_15] : memref<1x32xf32, #tpu.memory_space<vmem>>, vector<1x32xf32>
      %17 = vector.broadcast %16 : vector<1x32xf32> to vector<8x32xf32>
      %18 = arith.addf %15, %17 : vector<8x32xf32>
      %19 = arith.truncf %18 : vector<8x32xf32> to vector<8x32xbf16>
      %c0_16 = arith.constant 0 : index
      %c0_17 = arith.constant 0 : index
      %20 = vector.load %arg6[%c0_16, %c0_17] : memref<8x32xbf16, #tpu.memory_space<vmem>>, vector<8x32xbf16>
      tpu.vector_store %arg6[%c0_16, %c0_17], %19 {strides = array<i32>} : memref<8x32xbf16, #tpu.memory_space<vmem>>, vector<8x32xbf16>,
    } else {
    }
    return
  }
  func.func @transform_0(%arg0: i32, %arg1: i32) -> (i32, i32) {
    %c0_i32 = arith.constant 0 : i32
    return %arg0, %arg1 : i32, i32
  }
  func.func @transform_1(%arg0: i32, %arg1: i32) -> (i32, i32) {
    %c0_i32 = arith.constant 0 : i32
    %c0_i32_0 = arith.constant 0 : i32
    return %arg1, %c0_i32 : i32, i32
  }
  func.func @transform_2(%arg0: i32, %arg1: i32) -> (i32, i32) {
    %c0_i32 = arith.constant 0 : i32
    %c0_i32_0 = arith.constant 0 : i32
    %c0_i32_1 = arith.constant 0 : i32
    return %c0_i32, %c0_i32_0 : i32, i32
  }
  func.func @transform_3(%arg0: i32, %arg1: i32) -> (i32, i32) {
    %c0_i32 = arith.constant 0 : i32
    %c0_i32_0 = arith.constant 0 : i32
    %c0_i32_1 = arith.constant 0 : i32
    return %c0_i32, %c0_i32_0 : i32, i32
  }
  func.func @transform_4(%arg0: i32, %arg1: i32) -> (i32, i32) {
    %c0_i32 = arith.constant 0 : i32
    %c0_i32_0 = arith.constant 0 : i32
    return %arg0, %c0_i32 : i32, i32
  }
}

module attributes {stable_mosaic.version = 11 : i64} {
  func.func @_conv_mm_kernel(%arg0: i32, %arg1: i32, %arg2: memref<8x864xbf16, #tpu.memory_space<vmem>>, %arg3: memref<864x64xbf16, #tpu.memory_space<vmem>>, %arg4: memref<1x64xf32, #tpu.memory_space<vmem>>, %arg5: memref<1x64xf32, #tpu.memory_space<vmem>>, %arg6: memref<8x64xbf16, #tpu.memory_space<vmem>>, %arg7: memref<8x64xf32, #tpu.memory_space<vmem>>) attributes {dimension_semantics = [#tpu.dimension_semantics<parallel>, #tpu.dimension_semantics<arbitrary>], iteration_bounds = array<i64: 1, 1>, scalar_prefetch = 0 : i64, scratch_operands = 1 : i64, tpu.core_type = #tpu.core_type<tc>, window_params = [{transform_indices = @transform_0, window_bounds = array<i64: 8, 864>}, {transform_indices = @transform_1, window_bounds = array<i64: 864, 64>}, {pipeline_mode = #tpu.pipeline_mode<synchronous>, transform_indices = @transform_2, window_bounds = array<i64: 1, 64>}, {pipeline_mode = #tpu.pipeline_mode<synchronous>, transform_indices = @transform_3, window_bounds = array<i64: 1, 64>}, {transform_indices = @transform_4, window_bounds = array<i64: 8, 64>}]} {
    %c0_i32 = arith.constant 0 : i32
    %0 = arith.cmpi eq, %arg1, %c0_i32 : i32
    %1 = arith.extui %0 : i1 to i32
    %c0_i32_0 = arith.constant 0 : i32
    %2 = arith.cmpi ne, %1, %c0_i32_0 : i32
    scf.if %2 {
      %cst_10 = arith.constant 0.000000e+00 : f32
      %12 = vector.broadcast %cst_10 : f32 to vector<8x64xf32>
      %c0_11 = arith.constant 0 : index
      %c0_12 = arith.constant 0 : index
      %13 = vector.load %arg7[%c0_11, %c0_12] : memref<8x64xf32, #tpu.memory_space<vmem>>, vector<8x64xf32>
      tpu.vector_store %arg7[%c0_11, %c0_12], %12 {strides = array<i32>} : memref<8x64xf32, #tpu.memory_space<vmem>>, vector<8x64xf32>,
    } else {
    }
    %c0 = arith.constant 0 : index
    %c0_1 = arith.constant 0 : index
    %3 = vector.load %arg7[%c0, %c0_1] : memref<8x64xf32, #tpu.memory_space<vmem>>, vector<8x64xf32>
    %c0_2 = arith.constant 0 : index
    %c0_3 = arith.constant 0 : index
    %4 = vector.load %arg2[%c0_2, %c0_3] : memref<8x864xbf16, #tpu.memory_space<vmem>>, vector<8x864xbf16>
    %c0_4 = arith.constant 0 : index
    %c0_5 = arith.constant 0 : index
    %5 = vector.load %arg3[%c0_4, %c0_5] : memref<864x64xbf16, #tpu.memory_space<vmem>>, vector<864x64xbf16>
    %cst = arith.constant dense<0.000000e+00> : vector<8x64xf32>
    %6 = tpu.matmul %4, %5, %cst {dimension_numbers = #tpu.dot_dimension_numbers<[1], [0], [0], [1], [0, 0, 1, 1], [], []>} : vector<8x864xbf16>, vector<864x64xbf16>, vector<8x64xf32> -> vector<8x64xf32>
    %7 = arith.addf %3, %6 : vector<8x64xf32>
    %c0_6 = arith.constant 0 : index
    %c0_7 = arith.constant 0 : index
    %8 = vector.load %arg7[%c0_6, %c0_7] : memref<8x64xf32, #tpu.memory_space<vmem>>, vector<8x64xf32>
    tpu.vector_store %arg7[%c0_6, %c0_7], %7 {strides = array<i32>} : memref<8x64xf32, #tpu.memory_space<vmem>>, vector<8x64xf32>,
    %c0_i32_8 = arith.constant 0 : i32
    %9 = arith.cmpi eq, %arg1, %c0_i32_8 : i32
    %10 = arith.extui %9 : i1 to i32
    %c0_i32_9 = arith.constant 0 : i32
    %11 = arith.cmpi ne, %10, %c0_i32_9 : i32
    scf.if %11 {
      %c0_10 = arith.constant 0 : index
      %c0_11 = arith.constant 0 : index
      %12 = vector.load %arg7[%c0_10, %c0_11] : memref<8x64xf32, #tpu.memory_space<vmem>>, vector<8x64xf32>
      %c0_12 = arith.constant 0 : index
      %c0_13 = arith.constant 0 : index
      %13 = vector.load %arg4[%c0_12, %c0_13] : memref<1x64xf32, #tpu.memory_space<vmem>>, vector<1x64xf32>
      %14 = vector.broadcast %13 : vector<1x64xf32> to vector<8x64xf32>
      %15 = arith.mulf %12, %14 : vector<8x64xf32>
      %c0_14 = arith.constant 0 : index
      %c0_15 = arith.constant 0 : index
      %16 = vector.load %arg5[%c0_14, %c0_15] : memref<1x64xf32, #tpu.memory_space<vmem>>, vector<1x64xf32>
      %17 = vector.broadcast %16 : vector<1x64xf32> to vector<8x64xf32>
      %18 = arith.addf %15, %17 : vector<8x64xf32>
      %cst_16 = arith.constant 0.000000e+00 : f32
      %19 = vector.broadcast %cst_16 : f32 to vector<8x64xf32>
      %20 = arith.maximumf %18, %19 : vector<8x64xf32>
      %21 = arith.truncf %20 : vector<8x64xf32> to vector<8x64xbf16>
      %c0_17 = arith.constant 0 : index
      %c0_18 = arith.constant 0 : index
      %22 = vector.load %arg6[%c0_17, %c0_18] : memref<8x64xbf16, #tpu.memory_space<vmem>>, vector<8x64xbf16>
      tpu.vector_store %arg6[%c0_17, %c0_18], %21 {strides = array<i32>} : memref<8x64xbf16, #tpu.memory_space<vmem>>, vector<8x64xbf16>,
    } else {
    }
    return
  }
  func.func @transform_0(%arg0: i32, %arg1: i32) -> (i32, i32) {
    %c0_i32 = arith.constant 0 : i32
    return %arg0, %arg1 : i32, i32
  }
  func.func @transform_1(%arg0: i32, %arg1: i32) -> (i32, i32) {
    %c0_i32 = arith.constant 0 : i32
    %c0_i32_0 = arith.constant 0 : i32
    return %arg1, %c0_i32 : i32, i32
  }
  func.func @transform_2(%arg0: i32, %arg1: i32) -> (i32, i32) {
    %c0_i32 = arith.constant 0 : i32
    %c0_i32_0 = arith.constant 0 : i32
    %c0_i32_1 = arith.constant 0 : i32
    return %c0_i32, %c0_i32_0 : i32, i32
  }
  func.func @transform_3(%arg0: i32, %arg1: i32) -> (i32, i32) {
    %c0_i32 = arith.constant 0 : i32
    %c0_i32_0 = arith.constant 0 : i32
    %c0_i32_1 = arith.constant 0 : i32
    return %c0_i32, %c0_i32_0 : i32, i32
  }
  func.func @transform_4(%arg0: i32, %arg1: i32) -> (i32, i32) {
    %c0_i32 = arith.constant 0 : i32
    %c0_i32_0 = arith.constant 0 : i32
    return %arg0, %c0_i32 : i32, i32
  }
}

module attributes {stable_mosaic.version = 11 : i64} {
  func.func @_conv_mm_kernel(%arg0: i32, %arg1: i32, %arg2: memref<8x32xbf16, #tpu.memory_space<vmem>>, %arg3: memref<32x64xbf16, #tpu.memory_space<vmem>>, %arg4: memref<1x64xf32, #tpu.memory_space<vmem>>, %arg5: memref<1x64xf32, #tpu.memory_space<vmem>>, %arg6: memref<8x64xbf16, #tpu.memory_space<vmem>>, %arg7: memref<8x64xf32, #tpu.memory_space<vmem>>) attributes {dimension_semantics = [#tpu.dimension_semantics<parallel>, #tpu.dimension_semantics<arbitrary>], iteration_bounds = array<i64: 1, 1>, scalar_prefetch = 0 : i64, scratch_operands = 1 : i64, tpu.core_type = #tpu.core_type<tc>, window_params = [{transform_indices = @transform_0, window_bounds = array<i64: 8, 32>}, {transform_indices = @transform_1, window_bounds = array<i64: 32, 64>}, {pipeline_mode = #tpu.pipeline_mode<synchronous>, transform_indices = @transform_2, window_bounds = array<i64: 1, 64>}, {pipeline_mode = #tpu.pipeline_mode<synchronous>, transform_indices = @transform_3, window_bounds = array<i64: 1, 64>}, {transform_indices = @transform_4, window_bounds = array<i64: 8, 64>}]} {
    %c0_i32 = arith.constant 0 : i32
    %0 = arith.cmpi eq, %arg1, %c0_i32 : i32
    %1 = arith.extui %0 : i1 to i32
    %c0_i32_0 = arith.constant 0 : i32
    %2 = arith.cmpi ne, %1, %c0_i32_0 : i32
    scf.if %2 {
      %cst_10 = arith.constant 0.000000e+00 : f32
      %12 = vector.broadcast %cst_10 : f32 to vector<8x64xf32>
      %c0_11 = arith.constant 0 : index
      %c0_12 = arith.constant 0 : index
      %13 = vector.load %arg7[%c0_11, %c0_12] : memref<8x64xf32, #tpu.memory_space<vmem>>, vector<8x64xf32>
      tpu.vector_store %arg7[%c0_11, %c0_12], %12 {strides = array<i32>} : memref<8x64xf32, #tpu.memory_space<vmem>>, vector<8x64xf32>,
    } else {
    }
    %c0 = arith.constant 0 : index
    %c0_1 = arith.constant 0 : index
    %3 = vector.load %arg7[%c0, %c0_1] : memref<8x64xf32, #tpu.memory_space<vmem>>, vector<8x64xf32>
    %c0_2 = arith.constant 0 : index
    %c0_3 = arith.constant 0 : index
    %4 = vector.load %arg2[%c0_2, %c0_3] : memref<8x32xbf16, #tpu.memory_space<vmem>>, vector<8x32xbf16>
    %c0_4 = arith.constant 0 : index
    %c0_5 = arith.constant 0 : index
    %5 = vector.load %arg3[%c0_4, %c0_5] : memref<32x64xbf16, #tpu.memory_space<vmem>>, vector<32x64xbf16>
    %cst = arith.constant dense<0.000000e+00> : vector<8x64xf32>
    %6 = tpu.matmul %4, %5, %cst {dimension_numbers = #tpu.dot_dimension_numbers<[1], [0], [0], [1], [0, 0, 1, 1], [], []>} : vector<8x32xbf16>, vector<32x64xbf16>, vector<8x64xf32> -> vector<8x64xf32>
    %7 = arith.addf %3, %6 : vector<8x64xf32>
    %c0_6 = arith.constant 0 : index
    %c0_7 = arith.constant 0 : index
    %8 = vector.load %arg7[%c0_6, %c0_7] : memref<8x64xf32, #tpu.memory_space<vmem>>, vector<8x64xf32>
    tpu.vector_store %arg7[%c0_6, %c0_7], %7 {strides = array<i32>} : memref<8x64xf32, #tpu.memory_space<vmem>>, vector<8x64xf32>,
    %c0_i32_8 = arith.constant 0 : i32
    %9 = arith.cmpi eq, %arg1, %c0_i32_8 : i32
    %10 = arith.extui %9 : i1 to i32
    %c0_i32_9 = arith.constant 0 : i32
    %11 = arith.cmpi ne, %10, %c0_i32_9 : i32
    scf.if %11 {
      %c0_10 = arith.constant 0 : index
      %c0_11 = arith.constant 0 : index
      %12 = vector.load %arg7[%c0_10, %c0_11] : memref<8x64xf32, #tpu.memory_space<vmem>>, vector<8x64xf32>
      %c0_12 = arith.constant 0 : index
      %c0_13 = arith.constant 0 : index
      %13 = vector.load %arg4[%c0_12, %c0_13] : memref<1x64xf32, #tpu.memory_space<vmem>>, vector<1x64xf32>
      %14 = vector.broadcast %13 : vector<1x64xf32> to vector<8x64xf32>
      %15 = arith.mulf %12, %14 : vector<8x64xf32>
      %c0_14 = arith.constant 0 : index
      %c0_15 = arith.constant 0 : index
      %16 = vector.load %arg5[%c0_14, %c0_15] : memref<1x64xf32, #tpu.memory_space<vmem>>, vector<1x64xf32>
      %17 = vector.broadcast %16 : vector<1x64xf32> to vector<8x64xf32>
      %18 = arith.addf %15, %17 : vector<8x64xf32>
      %19 = arith.truncf %18 : vector<8x64xf32> to vector<8x64xbf16>
      %c0_16 = arith.constant 0 : index
      %c0_17 = arith.constant 0 : index
      %20 = vector.load %arg6[%c0_16, %c0_17] : memref<8x64xbf16, #tpu.memory_space<vmem>>, vector<8x64xbf16>
      tpu.vector_store %arg6[%c0_16, %c0_17], %19 {strides = array<i32>} : memref<8x64xbf16, #tpu.memory_space<vmem>>, vector<8x64xbf16>,
    } else {
    }
    return
  }
  func.func @transform_0(%arg0: i32, %arg1: i32) -> (i32, i32) {
    %c0_i32 = arith.constant 0 : i32
    return %arg0, %arg1 : i32, i32
  }
  func.func @transform_1(%arg0: i32, %arg1: i32) -> (i32, i32) {
    %c0_i32 = arith.constant 0 : i32
    %c0_i32_0 = arith.constant 0 : i32
    return %arg1, %c0_i32 : i32, i32
  }
  func.func @transform_2(%arg0: i32, %arg1: i32) -> (i32, i32) {
    %c0_i32 = arith.constant 0 : i32
    %c0_i32_0 = arith.constant 0 : i32
    %c0_i32_1 = arith.constant 0 : i32
    return %c0_i32, %c0_i32_0 : i32, i32
  }
  func.func @transform_3(%arg0: i32, %arg1: i32) -> (i32, i32) {
    %c0_i32 = arith.constant 0 : i32
    %c0_i32_0 = arith.constant 0 : i32
    %c0_i32_1 = arith.constant 0 : i32
    return %c0_i32, %c0_i32_0 : i32, i32
  }
  func.func @transform_4(%arg0: i32, %arg1: i32) -> (i32, i32) {
    %c0_i32 = arith.constant 0 : i32
    %c0_i32_0 = arith.constant 0 : i32
    return %arg0, %c0_i32 : i32, i32
  }
}

module attributes {stable_mosaic.version = 11 : i64} {
  func.func @_conv_mm_res_kernel(%arg0: i32, %arg1: i32, %arg2: memref<8x1728xbf16, #tpu.memory_space<vmem>>, %arg3: memref<1728x64xbf16, #tpu.memory_space<vmem>>, %arg4: memref<1x64xf32, #tpu.memory_space<vmem>>, %arg5: memref<1x64xf32, #tpu.memory_space<vmem>>, %arg6: memref<8x64xbf16, #tpu.memory_space<vmem>>, %arg7: memref<8x64xbf16, #tpu.memory_space<vmem>>, %arg8: memref<8x64xf32, #tpu.memory_space<vmem>>) attributes {dimension_semantics = [#tpu.dimension_semantics<parallel>, #tpu.dimension_semantics<arbitrary>], iteration_bounds = array<i64: 1, 1>, scalar_prefetch = 0 : i64, scratch_operands = 1 : i64, tpu.core_type = #tpu.core_type<tc>, window_params = [{transform_indices = @transform_0, window_bounds = array<i64: 8, 1728>}, {transform_indices = @transform_1, window_bounds = array<i64: 1728, 64>}, {pipeline_mode = #tpu.pipeline_mode<synchronous>, transform_indices = @transform_2, window_bounds = array<i64: 1, 64>}, {pipeline_mode = #tpu.pipeline_mode<synchronous>, transform_indices = @transform_3, window_bounds = array<i64: 1, 64>}, {transform_indices = @transform_4, window_bounds = array<i64: 8, 64>}, {transform_indices = @transform_5, window_bounds = array<i64: 8, 64>}]} {
    %c0_i32 = arith.constant 0 : i32
    %0 = arith.cmpi eq, %arg1, %c0_i32 : i32
    %1 = arith.extui %0 : i1 to i32
    %c0_i32_0 = arith.constant 0 : i32
    %2 = arith.cmpi ne, %1, %c0_i32_0 : i32
    scf.if %2 {
      %cst_10 = arith.constant 0.000000e+00 : f32
      %12 = vector.broadcast %cst_10 : f32 to vector<8x64xf32>
      %c0_11 = arith.constant 0 : index
      %c0_12 = arith.constant 0 : index
      %13 = vector.load %arg8[%c0_11, %c0_12] : memref<8x64xf32, #tpu.memory_space<vmem>>, vector<8x64xf32>
      tpu.vector_store %arg8[%c0_11, %c0_12], %12 {strides = array<i32>} : memref<8x64xf32, #tpu.memory_space<vmem>>, vector<8x64xf32>,
    } else {
    }
    %c0 = arith.constant 0 : index
    %c0_1 = arith.constant 0 : index
    %3 = vector.load %arg8[%c0, %c0_1] : memref<8x64xf32, #tpu.memory_space<vmem>>, vector<8x64xf32>
    %c0_2 = arith.constant 0 : index
    %c0_3 = arith.constant 0 : index
    %4 = vector.load %arg2[%c0_2, %c0_3] : memref<8x1728xbf16, #tpu.memory_space<vmem>>, vector<8x1728xbf16>
    %c0_4 = arith.constant 0 : index
    %c0_5 = arith.constant 0 : index
    %5 = vector.load %arg3[%c0_4, %c0_5] : memref<1728x64xbf16, #tpu.memory_space<vmem>>, vector<1728x64xbf16>
    %cst = arith.constant dense<0.000000e+00> : vector<8x64xf32>
    %6 = tpu.matmul %4, %5, %cst {dimension_numbers = #tpu.dot_dimension_numbers<[1], [0], [0], [1], [0, 0, 1, 1], [], []>} : vector<8x1728xbf16>, vector<1728x64xbf16>, vector<8x64xf32> -> vector<8x64xf32>
    %7 = arith.addf %3, %6 : vector<8x64xf32>
    %c0_6 = arith.constant 0 : index
    %c0_7 = arith.constant 0 : index
    %8 = vector.load %arg8[%c0_6, %c0_7] : memref<8x64xf32, #tpu.memory_space<vmem>>, vector<8x64xf32>
    tpu.vector_store %arg8[%c0_6, %c0_7], %7 {strides = array<i32>} : memref<8x64xf32, #tpu.memory_space<vmem>>, vector<8x64xf32>,
    %c0_i32_8 = arith.constant 0 : i32
    %9 = arith.cmpi eq, %arg1, %c0_i32_8 : i32
    %10 = arith.extui %9 : i1 to i32
    %c0_i32_9 = arith.constant 0 : i32
    %11 = arith.cmpi ne, %10, %c0_i32_9 : i32
    scf.if %11 {
      %c0_10 = arith.constant 0 : index
      %c0_11 = arith.constant 0 : index
      %12 = vector.load %arg8[%c0_10, %c0_11] : memref<8x64xf32, #tpu.memory_space<vmem>>, vector<8x64xf32>
      %c0_12 = arith.constant 0 : index
      %c0_13 = arith.constant 0 : index
      %13 = vector.load %arg4[%c0_12, %c0_13] : memref<1x64xf32, #tpu.memory_space<vmem>>, vector<1x64xf32>
      %14 = vector.broadcast %13 : vector<1x64xf32> to vector<8x64xf32>
      %15 = arith.mulf %12, %14 : vector<8x64xf32>
      %c0_14 = arith.constant 0 : index
      %c0_15 = arith.constant 0 : index
      %16 = vector.load %arg5[%c0_14, %c0_15] : memref<1x64xf32, #tpu.memory_space<vmem>>, vector<1x64xf32>
      %17 = vector.broadcast %16 : vector<1x64xf32> to vector<8x64xf32>
      %18 = arith.addf %15, %17 : vector<8x64xf32>
      %c0_16 = arith.constant 0 : index
      %c0_17 = arith.constant 0 : index
      %19 = vector.load %arg6[%c0_16, %c0_17] : memref<8x64xbf16, #tpu.memory_space<vmem>>, vector<8x64xbf16>
      %20 = arith.extf %19 : vector<8x64xbf16> to vector<8x64xf32>
      %21 = arith.addf %18, %20 : vector<8x64xf32>
      %cst_18 = arith.constant 0.000000e+00 : f32
      %22 = vector.broadcast %cst_18 : f32 to vector<8x64xf32>
      %23 = arith.maximumf %21, %22 : vector<8x64xf32>
      %24 = arith.truncf %23 : vector<8x64xf32> to vector<8x64xbf16>
      %c0_19 = arith.constant 0 : index
      %c0_20 = arith.constant 0 : index
      %25 = vector.load %arg7[%c0_19, %c0_20] : memref<8x64xbf16, #tpu.memory_space<vmem>>, vector<8x64xbf16>
      tpu.vector_store %arg7[%c0_19, %c0_20], %24 {strides = array<i32>} : memref<8x64xbf16, #tpu.memory_space<vmem>>, vector<8x64xbf16>,
    } else {
    }
    return
  }
  func.func @transform_0(%arg0: i32, %arg1: i32) -> (i32, i32) {
    %c0_i32 = arith.constant 0 : i32
    return %arg0, %arg1 : i32, i32
  }
  func.func @transform_1(%arg0: i32, %arg1: i32) -> (i32, i32) {
    %c0_i32 = arith.constant 0 : i32
    %c0_i32_0 = arith.constant 0 : i32
    return %arg1, %c0_i32 : i32, i32
  }
  func.func @transform_2(%arg0: i32, %arg1: i32) -> (i32, i32) {
    %c0_i32 = arith.constant 0 : i32
    %c0_i32_0 = arith.constant 0 : i32
    %c0_i32_1 = arith.constant 0 : i32
    return %c0_i32, %c0_i32_0 : i32, i32
  }
  func.func @transform_3(%arg0: i32, %arg1: i32) -> (i32, i32) {
    %c0_i32 = arith.constant 0 : i32
    %c0_i32_0 = arith.constant 0 : i32
    %c0_i32_1 = arith.constant 0 : i32
    return %c0_i32, %c0_i32_0 : i32, i32
  }
  func.func @transform_4(%arg0: i32, %arg1: i32) -> (i32, i32) {
    %c0_i32 = arith.constant 0 : i32
    %c0_i32_0 = arith.constant 0 : i32
    return %arg0, %c0_i32 : i32, i32
  }
  func.func @transform_5(%arg0: i32, %arg1: i32) -> (i32, i32) {
    %c0_i32 = arith.constant 0 : i32
    %c0_i32_0 = arith.constant 0 : i32
    return %arg0, %c0_i32 : i32, i32
  }
}

module attributes {stable_mosaic.version = 11 : i64} {
  func.func @_avgpool_fc_kernel(%arg0: memref<2x1x64xbf16, #tpu.memory_space<vmem>>, %arg1: memref<64x10xf32, #tpu.memory_space<vmem>>, %arg2: memref<1x10xf32, #tpu.memory_space<vmem>>, %arg3: memref<2x10xf32, #tpu.memory_space<vmem>>) attributes {dimension_semantics = [], scalar_prefetch = 0 : i64, scratch_operands = 0 : i64, tpu.core_type = #tpu.core_type<tc>} {
    %c0 = arith.constant 0 : index
    %c0_0 = arith.constant 0 : index
    %c0_1 = arith.constant 0 : index
    %0 = vector.load %arg0[%c0, %c0_0, %c0_1] : memref<2x1x64xbf16, #tpu.memory_space<vmem>>, vector<2x1x64xbf16>
    %1 = arith.extf %0 : vector<2x1x64xbf16> to vector<2x1x64xf32>
    %cst = arith.constant dense<0.000000e+00> : vector<2x64xf32>
    %2 = vector.multi_reduction <add>, %1, %cst [1] : vector<2x1x64xf32> to vector<2x64xf32>
    %cst_2 = arith.constant 1.000000e+00 : f32
    %3 = vector.broadcast %cst_2 : f32 to vector<2x64xf32>
    %4 = arith.mulf %2, %3 : vector<2x64xf32>
    %c0_3 = arith.constant 0 : index
    %c0_4 = arith.constant 0 : index
    %5 = vector.load %arg1[%c0_3, %c0_4] : memref<64x10xf32, #tpu.memory_space<vmem>>, vector<64x10xf32>
    %cst_5 = arith.constant dense<0.000000e+00> : vector<2x10xf32>
    %6 = tpu.matmul %4, %5, %cst_5 {dimension_numbers = #tpu.dot_dimension_numbers<[1], [0], [0], [1], [0, 0, 1, 1], [], []>} : vector<2x64xf32>, vector<64x10xf32>, vector<2x10xf32> -> vector<2x10xf32>
    %c0_6 = arith.constant 0 : index
    %c0_7 = arith.constant 0 : index
    %7 = vector.load %arg2[%c0_6, %c0_7] : memref<1x10xf32, #tpu.memory_space<vmem>>, vector<1x10xf32>
    %8 = vector.broadcast %7 : vector<1x10xf32> to vector<2x10xf32>
    %9 = arith.addf %6, %8 : vector<2x10xf32>
    %c0_8 = arith.constant 0 : index
    %c0_9 = arith.constant 0 : index
    %10 = vector.load %arg3[%c0_8, %c0_9] : memref<2x10xf32, #tpu.memory_space<vmem>>, vector<2x10xf32>
    tpu.vector_store %arg3[%c0_8, %c0_9], %9 {strides = array<i32>} : memref<2x10xf32, #tpu.memory_space<vmem>>, vector<2x10xf32>,
    return
  }
}

</mosaic_0001>

<bundles_post_ra>
// kernel: resnet_forward.14
= control target key start
LH: loop header
LB: loop body
LE: loop exit
PB: predicated region body
PF: predicated region fallthrough
CT: control target
= control target key end

     0   :  { %vm2324_vm0 = vcmask 1040384   ;;  %vm2325_vm1 = vcmask 1041408   ;;  %vm2275_vm2 = vcmask 416768   ;;  %vm22_vm3 = vcmask 64512   ;;  %s7850_s1 = inlined_call_operand.vmem [shape: bf16[1715,8], index: 1, kind: input, shape index: {}]   ;;  %s7851_s0 = inlined_call_operand.vmem [shape: bf16[256,1715], index: 0, kind: input, shape index: {}]   ;;  %s7852_s2 = inlined_call_operand.vmem [shape: f32[1,8], index: 2, kind: input, shape index: {}]   ;;  %s7853_s3 = inlined_call_operand.vmem [shape: f32[1,8], index: 3, kind: input, shape index: {}]   ;;  %s7854_s4 = inlined_call_operand.vmem [shape: bf16[256,8], index: 4, kind: output, shape index: {}]  }
   0x1   :  { %v5421_v0 = vld [vmem:[%s7850_s1 + $0x38] sm:$0xff]  ;;  %v5420_v2 = vld [vmem:[%s7850_s1 + $0x30] sm:$0xff]  ;;  %v5419_v4 = vld [vmem:[%s7850_s1 + $0x28] sm:$0xff]  ;;  %vm3813_vm4 = vcmask 60416  }
   0x2   :  { %v5429_v1 = vld [vmem:[%s7850_s1 + $0x78] sm:$0xff]  ;;  %5521 = vmatpush.bf16.msra.mxu2 %v5421_v0  ;;  %v5428_v3 = vld [vmem:[%s7850_s1 + $0x70] sm:$0xff]  ;;  %2331 = vmatpush.bf16.msra.mxu0 %v5421_v0  ;;  %v5427_v5 = vld [vmem:[%s7850_s1 + $0x68] sm:$0xff] }
   0x3   :  { %5529 = vmatpush.bf16.msra.mxu3 %v5429_v1  ;;  %2420 = vmatpush.bf16.msra.mxu1 %v5429_v1  ;;  %v5418_v6 = vld [vmem:[%s7850_s1 + $0x20] sm:$0xff]  ;;  %v5417_v8 = vld [vmem:[%s7850_s1 + $0x18] sm:$0xff]  ;;  %v5416_v10 = vld [vmem:[%s7850_s1 + $0x10] sm:$0xff] }
   0x4   :  { %v5426_v7 = vld [vmem:[%s7850_s1 + $0x60] sm:$0xff]  ;;  %v5425_v9 = vld [vmem:[%s7850_s1 + $0x58] sm:$0xff]  ;;  %v5424_v11 = vld [vmem:[%s7850_s1 + $0x50] sm:$0xff] }
   0x5   :  { %v5415_v12 = vld [vmem:[%s7850_s1 + $0x8] sm:$0xff]  ;;  %v5414_v14 = vld [vmem:[%s7850_s1] sm:$0xff]  ;;  %v5309_v17 = vld [vmem:[%s7851_s0 + $0x3b4] sm:$0xf0] }
   0x6   :  { %5522 = vmatpush.bf16.msra.mxu2 %v5420_v2  ;;  %2332 = vmatpush.bf16.msra.mxu0 %v5420_v2  ;;  %v5423_v13 = vld [vmem:[%s7850_s1 + $0x48] sm:$0xff]  ;;  %v5422_v15 = vld [vmem:[%s7850_s1 + $0x40] sm:$0xff]  ;;  %v4302_v19 = vld [vmem:[%s7851_s0 + $0x3b8] sm:$0xf0] }
   0x7   :  { %5530 = vmatpush.bf16.msra.mxu3 %v5428_v3  ;;  %2421 = vmatpush.bf16.msra.mxu1 %v5428_v3  ;;  %v4300_v16 = vld [vmem:[%s7851_s0 + $0x380] sm:$0xf]  ;;  %v5302_v18 = vld [vmem:[%s7851_s0 + $0x384] sm:$0xf]  ;;  %v5197_v21 = vld [vmem:[%s7851_s0 + $0x34] sm:$0xf0] }
   0x8   :  { %v3852_v20 = vld [vmem:[%s7851_s0] sm:$0xf]  ;;  %v5190_v22 = vld [vmem:[%s7851_s0 + $0x4] sm:$0xf]  ;;  %v3854_v23 = vld [vmem:[%s7851_s0 + $0x38] sm:$0xf0]  ;;  %v4301_v26 = vor.u32 %v5309_v17, %v4300_v16  ;;  %v4305_v27 = vor.u32 %v5302_v18, %v4302_v19 }
   0x9   :  { %v5437_v24 = vld [vmem:[%s7850_s1 + $0xb8] sm:$0xff]  ;;  %v3853_v28 = vor.u32 %v5197_v21, %v3852_v20  ;;  %v3857_v29 = vor.u32 %v5190_v22, %v3854_v23  ;;  %v5436_v32 = vld [vmem:[%s7850_s1 + $0xb0] sm:$0xff]  ;;  %v5435_v36 = vld [vmem:[%s7850_s1 + $0xa8] sm:$0xff] }
   0xa   :  { %5523 = vmatpush.bf16.msra.mxu2 %v5419_v4  ;;  %2333 = vmatpush.bf16.msra.mxu0 %v5419_v4  ;;  %v5445_v25 = vld [vmem:[%s7850_s1 + $0xf8] sm:$0xff]  ;;  %v5444_v33 = vld [vmem:[%s7850_s1 + $0xf0] sm:$0xff]  ;;  %v5443_v37 = vld [vmem:[%s7850_s1 + $0xe8] sm:$0xff] }
   0xb   :  { %5531 = vmatpush.bf16.msra.mxu3 %v5427_v5  ;;  %2422 = vmatpush.bf16.msra.mxu1 %v5427_v5  ;;  %v5453_v30 = vld [vmem:[%s7850_s1 + $0x138] sm:$0xff]  ;;  %v5452_v34 = vld [vmem:[%s7850_s1 + $0x130] sm:$0xff]  ;;  %v5451_v38 = vld [vmem:[%s7850_s1 + $0x128] sm:$0xff] }
   0xc   :  { %v5461_v31 = vld [vmem:[%s7850_s1 + $0x178] sm:$0xff]  ;;  %v5460_v35 = vld [vmem:[%s7850_s1 + $0x170] sm:$0xff]  ;;  %v5459_v39 = vld [vmem:[%s7850_s1 + $0x168] sm:$0xff] }
   0xd   :  { %v4356_v40 = vld [vmem:[%s7851_s0 + $0x3f0] sm:$0xf]  ;;  %v5323_v41 = vld [vmem:[%s7851_s0 + $0x424] sm:$0xf0]  ;;  %v5316_v42 = vld [vmem:[%s7851_s0 + $0x3f4] sm:$0xf] }
   0xe   :  { %5524 = vmatpush.bf16.msra.mxu2 %v5418_v6  ;;  %2334 = vmatpush.bf16.msra.mxu0 %v5418_v6  ;;  %v4358_v43 = vld [vmem:[%s7851_s0 + $0x428] sm:$0xf0]  ;;  %v3908_v44 = vld [vmem:[%s7851_s0 + $0x70] sm:$0xf]  ;;  %v5211_v45 = vld [vmem:[%s7851_s0 + $0xa4] sm:$0xf0]  ;;  %v4357_v48 = vor.u32 %v5323_v41, %v4356_v40 }
   0xf   :  { %5532 = vmatpush.bf16.msra.mxu3 %v5426_v7  ;;  %2423 = vmatpush.bf16.msra.mxu1 %v5426_v7  ;;  %v5204_v46 = vld [vmem:[%s7851_s0 + $0x74] sm:$0xf]  ;;  %v3910_v47 = vld [vmem:[%s7851_s0 + $0xa8] sm:$0xf0]  ;;  %v4361_v49 = vor.u32 %v5316_v42, %v4358_v43  ;;  %v3909_v50 = vor.u32 %v5211_v45, %v3908_v44  ;;  %v5434_v52 = vld [vmem:[%s7850_s1 + $0xa0] sm:$0xff] }
  0x10   :  { %v3913_v51 = vor.u32 %v5204_v46, %v3910_v47  ;;  %v5442_v53 = vld [vmem:[%s7850_s1 + $0xe0] sm:$0xff]  ;;  %v5337_v57 = vld [vmem:[%s7851_s0 + $0x494] sm:$0xf0]  ;;  %v4414_v59 = vld [vmem:[%s7851_s0 + $0x498] sm:$0xf0] }
  0x11   :  { %v5450_v54 = vld [vmem:[%s7850_s1 + $0x120] sm:$0xff]  ;;  %v5225_v61 = vld [vmem:[%s7851_s0 + $0x114] sm:$0xf0]  ;;  %v3966_v63 = vld [vmem:[%s7851_s0 + $0x118] sm:$0xf0] }
  0x12   :  { %5525 = vmatpush.bf16.msra.mxu2 %v5417_v8  ;;  %2335 = vmatpush.bf16.msra.mxu0 %v5417_v8  ;;  %v5458_v55 = vld [vmem:[%s7850_s1 + $0x160] sm:$0xff]  ;;  %v5433_v4 = vld [vmem:[%s7850_s1 + $0x98] sm:$0xff]  ;;  %v4468_v8 = vld [vmem:[%s7851_s0 + $0x4d0] sm:$0xf] }
  0x13   :  { %5533 = vmatpush.bf16.msra.mxu3 %v5425_v9  ;;  %2424 = vmatpush.bf16.msra.mxu1 %v5425_v9  ;;  %v4412_v56 = vld [vmem:[%s7851_s0 + $0x460] sm:$0xf]  ;;  %v5330_v58 = vld [vmem:[%s7851_s0 + $0x464] sm:$0xf]  ;;  %v5441_v5 = vld [vmem:[%s7850_s1 + $0xd8] sm:$0xff] }
  0x14   :  { %v3964_v60 = vld [vmem:[%s7851_s0 + $0xe0] sm:$0xf]  ;;  %v5218_v62 = vld [vmem:[%s7851_s0 + $0xe4] sm:$0xf]  ;;  %v4413_v0 = vor.u32 %v5337_v57, %v4412_v56  ;;  %v4417_v1 = vor.u32 %v5330_v58, %v4414_v59  ;;  %v5449_v6 = vld [vmem:[%s7850_s1 + $0x118] sm:$0xff] }
  0x15   :  { %v3965_v2 = vor.u32 %v5225_v61, %v3964_v60  ;;  %v3969_v3 = vor.u32 %v5218_v62, %v3966_v63  ;;  %v5457_v7 = vld [vmem:[%s7850_s1 + $0x158] sm:$0xff]  ;;  %v5351_v9 = vld [vmem:[%s7851_s0 + $0x504] sm:$0xf0]  ;;  %v5432_v20 = vld [vmem:[%s7850_s1 + $0x90] sm:$0xff] }
  0x16   :  { %5526 = vmatpush.bf16.msra.mxu2 %v5416_v10  ;;  %2336 = vmatpush.bf16.msra.mxu0 %v5416_v10  ;;  %v5344_v10 = vld [vmem:[%s7851_s0 + $0x4d4] sm:$0xf]  ;;  %v4469_v16 = vor.u32 %v5351_v9, %v4468_v8  ;;  %v4580_v40 = vld [vmem:[%s7851_s0 + $0x5b0] sm:$0xf]  ;;  %v5379_v41 = vld [vmem:[%s7851_s0 + $0x5e4] sm:$0xf0] }
  0x17   :  { %5534 = vmatpush.bf16.msra.mxu3 %v5424_v11  ;;  %2425 = vmatpush.bf16.msra.mxu1 %v5424_v11  ;;  %v4470_v11 = vld [vmem:[%s7851_s0 + $0x508] sm:$0xf0]  ;;  %v5440_v21 = vld [vmem:[%s7850_s1 + $0xd0] sm:$0xff]  ;;  %v5267_v45 = vld [vmem:[%s7851_s0 + $0x264] sm:$0xf0] }
  0x18   :  { %v4473_v17 = vor.u32 %v5344_v10, %v4470_v11  ;;  %v5448_v22 = vld [vmem:[%s7850_s1 + $0x110] sm:$0xff]  ;;  %v4582_v43 = vld [vmem:[%s7851_s0 + $0x5e8] sm:$0xf0]  ;;  %v4636_v56 = vld [vmem:[%s7851_s0 + $0x620] sm:$0xf] }
  0x19   :  { %v5456_v23 = vld [vmem:[%s7850_s1 + $0x150] sm:$0xff]  ;;  %v4134_v47 = vld [vmem:[%s7851_s0 + $0x268] sm:$0xf0]  ;;  %v5393_v57 = vld [vmem:[%s7851_s0 + $0x654] sm:$0xf0] }
  0x1a   :  { %5527 = vmatpush.bf16.msra.mxu2 %v5415_v12  ;;  %2337 = vmatpush.bf16.msra.mxu0 %v5415_v12  ;;  %v4020_v12 = vld [vmem:[%s7851_s0 + $0x150] sm:$0xf]  ;;  %v5372_v42 = vld [vmem:[%s7851_s0 + $0x5b4] sm:$0xf]  ;;  %v5386_v58 = vld [vmem:[%s7851_s0 + $0x624] sm:$0xf] }
  0x1b   :  { %5535 = vmatpush.bf16.msra.mxu3 %v5423_v13  ;;  %2426 = vmatpush.bf16.msra.mxu1 %v5423_v13  ;;  %v5239_v13 = vld [vmem:[%s7851_s0 + $0x184] sm:$0xf0]  ;;  %v4132_v44 = vld [vmem:[%s7851_s0 + $0x230] sm:$0xf]  ;;  %v5260_v46 = vld [vmem:[%s7851_s0 + $0x234] sm:$0xf] }
  0x1c   :  { %v4021_v18 = vor.u32 %v5239_v13, %v4020_v12  ;;  %v4638_v59 = vld [vmem:[%s7851_s0 + $0x658] sm:$0xf0]  ;;  %v4188_v60 = vld [vmem:[%s7851_s0 + $0x2a0] sm:$0xf]  ;;  %v5281_v61 = vld [vmem:[%s7851_s0 + $0x2d4] sm:$0xf0] }
  0x1d   :  { %v5274_v62 = vld [vmem:[%s7851_s0 + $0x2a4] sm:$0xf]  ;;  %v4190_v63 = vld [vmem:[%s7851_s0 + $0x2d8] sm:$0xf0]  ;;  %v5407_v8 = vld [vmem:[%s7851_s0 + $0x6c4] sm:$0xf0] }
  0x1e   :  { %5528 = vmatpush.bf16.msra.mxu2 %v5414_v14  ;;  %2338 = vmatpush.bf16.msra.mxu0 %v5414_v14  ;;  %v5232_v14 = vld [vmem:[%s7851_s0 + $0x154] sm:$0xf]  ;;  %v4694_v10 = vld [vmem:[%s7851_s0 + $0x6c8] sm:$0xf0]  ;;  %v4244_v11 = vld [vmem:[%s7851_s0 + $0x310] sm:$0xf] }
  0x1f   :  { %5536 = vmatpush.bf16.msra.mxu3 %v5422_v15  ;;  %2427 = vmatpush.bf16.msra.mxu1 %v5422_v15  ;;  %v4022_v15 = vld [vmem:[%s7851_s0 + $0x188] sm:$0xf0]  ;;  %v5400_v9 = vld [vmem:[%s7851_s0 + $0x694] sm:$0xf]  ;;  %v5295_v12 = vld [vmem:[%s7851_s0 + $0x344] sm:$0xf0] }
  0x20   :  { %v4025_v19 = vor.u32 %v5232_v14, %v4022_v15  ;;  %v5288_v13 = vld [vmem:[%s7851_s0 + $0x314] sm:$0xf]  ;;  %v4246_v14 = vld [vmem:[%s7851_s0 + $0x348] sm:$0xf0] }
  0x21   :  { %2379 = vmatmul.bf16.vlgmr.msra.gmra.mxu2 %v4301_v26  ;;  %2339 = vmatmul.bf16.vlgmr.msra.gmra.mxu0 %v3853_v28  ;;  %v5358_v26 = vld [vmem:[%s7851_s0 + $0x544] sm:$0xf]  ;;  %v4076_v28 = vld [vmem:[%s7851_s0 + $0x1c0] sm:$0xf] }
  0x22   :  { %2509 = vmatpush.bf16.msrb.mxu2 %v5437_v24  ;;  %2468 = vmatmul.bf16.vlgmr.msra.gmra.mxu3 %v4305_v27  ;;  %v4524_v24 = vld [vmem:[%s7851_s0 + $0x540] sm:$0xf]  ;;  %v4526_v27 = vld [vmem:[%s7851_s0 + $0x578] sm:$0xf0] }
  0x23   :  { %2598 = vmatpush.bf16.msrb.mxu3 %v5445_v25  ;;  %2428 = vmatmul.bf16.vlgmr.msra.gmra.mxu1 %v3857_v29  ;;  %v5365_v25 = vld [vmem:[%s7851_s0 + $0x574] sm:$0xf0] }
  0x24   :  { %2687 = vmatpush.bf16.msrb.mxu0 %v5453_v30  ;;  %2776 = vmatpush.bf16.msrb.mxu1 %v5461_v31  ;;  %v5253_v29 = vld [vmem:[%s7851_s0 + $0x1f4] sm:$0xf0]  ;;  %v5246_v30 = vld [vmem:[%s7851_s0 + $0x1c4] sm:$0xf]  ;;  %v4078_v31 = vld [vmem:[%s7851_s0 + $0x1f8] sm:$0xf0] }
  0x26   :  { %2510 = vmatpush.bf16.msrb.mxu2 %v5436_v32  ;;  %v4525_v32 = vor.u32 %v5365_v25, %v4524_v24  ;;  %v3868_v24 = vld [vmem:[%s7851_s0 + $0x10] sm:$0xf]  ;;  %v5199_v25 = vld [vmem:[%s7851_s0 + $0x44] sm:$0xf0] }
  0x27   :  { %2599 = vmatpush.bf16.msrb.mxu3 %v5444_v33  ;;  %v4529_v33 = vor.u32 %v5358_v26, %v4526_v27  ;;  %v5192_v26 = vld [vmem:[%s7851_s0 + $0x14] sm:$0xf]  ;;  %v3870_v27 = vld [vmem:[%s7851_s0 + $0x48] sm:$0xf0] }
  0x28   :  { %2688 = vmatpush.bf16.msrb.mxu0 %v5452_v34  ;;  %2777 = vmatpush.bf16.msrb.mxu1 %v5460_v35  ;;  %v4077_v34 = vor.u32 %v5253_v29, %v4076_v28  ;;  %v4081_v35 = vor.u32 %v5246_v30, %v4078_v31  ;;  %v3869_v30 = vor.u32 %v5199_v25, %v3868_v24  ;;  %v5475_v24 = vld [vmem:[%s7850_s1 + $0x1e8] sm:$0xff] }
  0x29   :  { %v3873_v31 = vor.u32 %v5192_v26, %v3870_v27 }
  0x2a   :  { %2511 = vmatpush.bf16.msrb.mxu2 %v5435_v36  ;;  %v5431_v36 = vld [vmem:[%s7850_s1 + $0x88] sm:$0xff] }
  0x2b   :  { %2600 = vmatpush.bf16.msrb.mxu3 %v5443_v37  ;;  %v5439_v37 = vld [vmem:[%s7850_s1 + $0xc8] sm:$0xff] }
  0x2c   :  { %2689 = vmatpush.bf16.msrb.mxu0 %v5451_v38  ;;  %2778 = vmatpush.bf16.msrb.mxu1 %v5459_v39  ;;  %v5447_v38 = vld [vmem:[%s7850_s1 + $0x108] sm:$0xff] }
  0x2d   :  { %v5455_v39 = vld [vmem:[%s7850_s1 + $0x148] sm:$0xff] }
  0x2e   :  { %2512 = vmatpush.bf16.msrb.mxu2 %v5434_v52  ;;  %v5430_v52 = vld [vmem:[%s7850_s1 + $0x80] sm:$0xff] }
  0x2f   :  { %2601 = vmatpush.bf16.msrb.mxu3 %v5442_v53  ;;  %v5438_v53 = vld [vmem:[%s7850_s1 + $0xc0] sm:$0xff] }
  0x30   :  { %2690 = vmatpush.bf16.msrb.mxu0 %v5450_v54  ;;  %2779 = vmatpush.bf16.msrb.mxu1 %v5458_v55  ;;  %v5446_v54 = vld [vmem:[%s7850_s1 + $0x100] sm:$0xff] }
  0x31   :  { %2384 = vmatmul.bf16.gmra.mxu2 %v4357_v48  ;;  %2344 = vmatmul.bf16.gmra.mxu0 %v3909_v50  ;;  %v4581_v48 = vor.u32 %v5379_v41, %v4580_v40  ;;  %v4133_v50 = vor.u32 %v5267_v45, %v4132_v44  ;;  %v5454_v55 = vld [vmem:[%s7850_s1 + $0x140] sm:$0xff]  ;;  %v3916_v44 = vld [vmem:[%s7851_s0 + $0x78] sm:$0xf]  ;;  %v5212_v45 = vld [vmem:[%s7851_s0 + $0xac] sm:$0xf0] }
  0x32   :  { %2473 = vmatmul.bf16.gmra.mxu3 %v4361_v49  ;;  %2513 = vmatpush.bf16.msrb.mxu2 %v5433_v4  ;;  %v4585_v49 = vor.u32 %v5372_v42, %v4582_v43  ;;  %v5469_v4 = vld [vmem:[%s7850_s1 + $0x1b8] sm:$0xff]  ;;  %v5484_v43 = vld [vmem:[%s7850_s1 + $0x230] sm:$0xff] }
  0x33   :  { %2433 = vmatmul.bf16.gmra.mxu1 %v3913_v51  ;;  %2602 = vmatpush.bf16.msrb.mxu3 %v5441_v5  ;;  %v4137_v51 = vor.u32 %v5260_v46, %v4134_v47  ;;  %v5477_v5 = vld [vmem:[%s7850_s1 + $0x1f8] sm:$0xff]  ;;  %v3918_v47 = vld [vmem:[%s7851_s0 + $0xb0] sm:$0xf0] }
  0x34   :  { %2691 = vmatpush.bf16.msrb.mxu0 %v5449_v6  ;;  %2780 = vmatpush.bf16.msrb.mxu1 %v5457_v7  ;;  %v5485_v6 = vld [vmem:[%s7850_s1 + $0x238] sm:$0xff]  ;;  %v4692_v7 = vld [vmem:[%s7851_s0 + $0x690] sm:$0xf] }
  0x35   :  { %v4693_v15 = vor.u32 %v5407_v8, %v4692_v7  ;;  %v5205_v46 = vld [vmem:[%s7851_s0 + $0x7c] sm:$0xf]  ;;  %v5219_v7 = vld [vmem:[%s7851_s0 + $0xec] sm:$0xf]  ;;  %v3974_v8 = vld [vmem:[%s7851_s0 + $0x120] sm:$0xf0] }
  0x36   :  { %2514 = vmatpush.bf16.msrb.mxu2 %v5432_v20  ;;  %v3860_v20 = vld [vmem:[%s7851_s0 + $0x8] sm:$0xf] }
  0x37   :  { %2603 = vmatpush.bf16.msrb.mxu3 %v5440_v21  ;;  %v5198_v21 = vld [vmem:[%s7851_s0 + $0x3c] sm:$0xf0] }
  0x38   :  { %2692 = vmatpush.bf16.msrb.mxu0 %v5448_v22  ;;  %2781 = vmatpush.bf16.msrb.mxu1 %v5456_v23  ;;  %v5191_v22 = vld [vmem:[%s7851_s0 + $0xc] sm:$0xf]  ;;  %v3862_v23 = vld [vmem:[%s7851_s0 + $0x40] sm:$0xf0]  ;;  %v3861_v28 = vor.u32 %v5198_v21, %v3860_v20 }
  0x39   :  { %v3865_v29 = vor.u32 %v5191_v22, %v3862_v23  ;;  %v5467_v23 = vld [vmem:[%s7850_s1 + $0x1a8] sm:$0xff] }
  0x3a   :  { %2515 = vmatpush.bf16.msrb.mxu2 %v5431_v36  ;;  %v5476_v36 = vld [vmem:[%s7850_s1 + $0x1f0] sm:$0xff] }
  0x3b   :  { %2604 = vmatpush.bf16.msrb.mxu3 %v5439_v37 }
  0x3c   :  { %2693 = vmatpush.bf16.msrb.mxu0 %v5447_v38  ;;  %2782 = vmatpush.bf16.msrb.mxu1 %v5455_v39 }
  0x3e   :  { %2516 = vmatpush.bf16.msrb.mxu2 %v5430_v52 }
  0x3f   :  { %2605 = vmatpush.bf16.msrb.mxu3 %v5438_v53 }
  0x40   :  { %2694 = vmatpush.bf16.msrb.mxu0 %v5446_v54  ;;  %2783 = vmatpush.bf16.msrb.mxu1 %v5454_v55  ;;  %v3917_v55 = vor.u32 %v5212_v45, %v3916_v44 }
  0x41   :  { %2389 = vmatmul.bf16.gmra.mxu2 %v4413_v0  ;;  %2349 = vmatmul.bf16.gmra.mxu0 %v3965_v2  ;;  %v4637_v0 = vor.u32 %v5393_v57, %v4636_v56  ;;  %v4189_v2 = vor.u32 %v5281_v61, %v4188_v60  ;;  %v3921_v56 = vor.u32 %v5205_v46, %v3918_v47  ;;  %v5492_v57 = vld [vmem:[%s7850_s1 + $0x270] sm:$0xff] }
  0x42   :  { %2478 = vmatmul.bf16.gmra.mxu3 %v4417_v1  ;;  %v4641_v1 = vor.u32 %v5386_v58, %v4638_v59  ;;  %2865 = vmatpush.bf16.msra.mxu2 %v5469_v4 }
  0x43   :  { %2438 = vmatmul.bf16.gmra.mxu1 %v3969_v3  ;;  %v4193_v3 = vor.u32 %v5274_v62, %v4190_v63  ;;  %2954 = vmatpush.bf16.msra.mxu3 %v5477_v5  ;;  %v3972_v5 = vld [vmem:[%s7851_s0 + $0xe8] sm:$0xf] }
  0x44   :  { %3043 = vmatpush.bf16.msra.mxu0 %v5485_v6  ;;  %v5226_v6 = vld [vmem:[%s7851_s0 + $0x11c] sm:$0xf0] }
  0x47   :  { %2955 = vmatpush.bf16.msra.mxu3 %v5476_v36  ;;  %v4030_v36 = vld [vmem:[%s7851_s0 + $0x190] sm:$0xf0] }
  0x48   :  { %3044 = vmatpush.bf16.msra.mxu0 %v5484_v43 }
  0x4b   :  { %2956 = vmatpush.bf16.msra.mxu3 %v5475_v24 }
  0x51   :  { %2394 = vmatmul.bf16.gmra.mxu2 %v4469_v16  ;;  %2354 = vmatmul.bf16.gmra.mxu0 %v4021_v18  ;;  %v4697_v16 = vor.u32 %v5400_v9, %v4694_v10  ;;  %v4245_v18 = vor.u32 %v5295_v12, %v4244_v11  ;;  %v3980_v9 = vld [vmem:[%s7851_s0 + $0xf0] sm:$0xf]  ;;  %v5227_v10 = vld [vmem:[%s7851_s0 + $0x124] sm:$0xf0]  ;;  %v5220_v11 = vld [vmem:[%s7851_s0 + $0xf4] sm:$0xf] }
  0x52   :  { %2483 = vmatmul.bf16.gmra.mxu3 %v4473_v17  ;;  %v5493_v17 = vld [vmem:[%s7850_s1 + $0x278] sm:$0xff]  ;;  %v3982_v12 = vld [vmem:[%s7851_s0 + $0x128] sm:$0xf0] }
  0x53   :  { %2443 = vmatmul.bf16.gmra.mxu1 %v4025_v19  ;;  %v4249_v19 = vor.u32 %v5288_v13, %v4246_v14 }
  0x54   :  { %3132 = vmatpush.bf16.msra.mxu1 %v5493_v17  ;;  %v3977_v17 = vor.u32 %v5219_v7, %v3974_v8  ;;  %v4094_v7 = vld [vmem:[%s7851_s0 + $0x208] sm:$0xf0] }
  0x58   :  { %3133 = vmatpush.bf16.msra.mxu1 %v5492_v57 }
  0x61   :  { %2399 = vmatmul.bf16.gmra.mxu2 %v4525_v32  ;;  %2359 = vmatmul.bf16.gmra.mxu0 %v4077_v34 }
  0x62   :  { %2488 = vmatmul.bf16.gmra.mxu3 %v4529_v33 }
  0x63   :  { %2448 = vmatmul.bf16.gmra.mxu1 %v4081_v35  ;;  %v5468_v35 = vld [vmem:[%s7850_s1 + $0x1b0] sm:$0xff] }
  0x64   :  { %2866 = vmatpush.bf16.msra.mxu2 %v5468_v35  ;;  %v5233_v35 = vld [vmem:[%s7851_s0 + $0x15c] sm:$0xf] }
  0x65   :  { %v4033_v47 = vor.u32 %v5233_v35, %v4030_v36  ;;  %v4142_v35 = vld [vmem:[%s7851_s0 + $0x270] sm:$0xf0]  ;;  %v4148_v36 = vld [vmem:[%s7851_s0 + $0x240] sm:$0xf] }
  0x68   :  { %2867 = vmatpush.bf16.msra.mxu2 %v5467_v23 }
  0x71   :  { %2404 = vmatmul.bf16.gmra.mxu2 %v4581_v48  ;;  %2364 = vmatmul.bf16.gmra.mxu0 %v4133_v50  ;;  %v3924_v48 = vld [vmem:[%s7851_s0 + $0x80] sm:$0xf]  ;;  %v5206_v50 = vld [vmem:[%s7851_s0 + $0x84] sm:$0xf] }
  0x72   :  { %2493 = vmatmul.bf16.gmra.mxu3 %v4585_v49  ;;  %v5213_v49 = vld [vmem:[%s7851_s0 + $0xb4] sm:$0xf0] }
  0x73   :  { %2453 = vmatmul.bf16.gmra.mxu1 %v4137_v51  ;;  %v3926_v51 = vld [vmem:[%s7851_s0 + $0xb8] sm:$0xf0]  ;;  %v3925_v58 = vor.u32 %v5213_v49, %v3924_v48  ;;  %v5491_v48 = vld [vmem:[%s7850_s1 + $0x268] sm:$0xff] }
  0x74   :  { %v3929_v59 = vor.u32 %v5206_v50, %v3926_v51  ;;  %3134 = vmatpush.bf16.msra.mxu1 %v5491_v48  ;;  %v5490_v48 = vld [vmem:[%s7850_s1 + $0x260] sm:$0xff] }
  0x78   :  { %3135 = vmatpush.bf16.msra.mxu1 %v5490_v48  ;;  %v5297_v48 = vld [vmem:[%s7851_s0 + $0x354] sm:$0xf0] }
  0x81   :  { %2409 = vmatmul.bf16.gmra.mxu2 %v4637_v0  ;;  %2369 = vmatmul.bf16.gmra.mxu0 %v4189_v2 }
  0x82   :  { %2498 = vmatmul.bf16.gmra.mxu3 %v4641_v1 }
  0x83   :  { %2458 = vmatmul.bf16.gmra.mxu1 %v4193_v3 }
  0x91   :  { %2414 = vmatmul.bf16.gmra.mxu2 %v4693_v15  ;;  %2374 = vmatmul.bf16.gmra.mxu0 %v4245_v18  ;;  %v3981_v18 = vor.u32 %v5227_v10, %v3980_v9 }
  0x92   :  { %2503 = vmatmul.bf16.gmra.mxu3 %v4697_v16  ;;  %v3973_v16 = vor.u32 %v5226_v6, %v3972_v5  ;;  %v5255_v5 = vld [vmem:[%s7851_s0 + $0x204] sm:$0xf0]  ;;  %v5248_v6 = vld [vmem:[%s7851_s0 + $0x1d4] sm:$0xf] }
  0x93   :  { %2463 = vmatmul.bf16.gmra.mxu1 %v4249_v19  ;;  %v3985_v19 = vor.u32 %v5220_v11, %v3982_v12 }
  0x9e   :  { %v2340_v32 = vpop.f32.mrf.mxu0 }
  0xa0   :  { %v2429_v33 = vpop.f32.mrf.mxu1 }
  0xa1   :  { %v5942_v34 = vadd.f32 %v2429_v33, %v2340_v32  ;;  %2517 = vmatmul.bf16.vlgmr.msrb.gmra.mxu2 %v3861_v28  ;;  %2695 = vmatmul.bf16.vlgmr.msrb.gmra.mxu0 %v3869_v30  ;;  %v4028_v32 = vld [vmem:[%s7851_s0 + $0x158] sm:$0xf]  ;;  %v5240_v33 = vld [vmem:[%s7851_s0 + $0x18c] sm:$0xf0] }
  0xa2   :  { %2606 = vmatmul.bf16.vlgmr.msrb.gmra.mxu3 %v3865_v29  ;;  %v4029_v46 = vor.u32 %v5240_v33, %v4028_v32  ;;  %v5268_v32 = vld [vmem:[%s7851_s0 + $0x26c] sm:$0xf0]  ;;  %v5261_v33 = vld [vmem:[%s7851_s0 + $0x23c] sm:$0xf] }
  0xa3   :  { %2784 = vmatmul.bf16.vlgmr.msrb.gmra.mxu1 %v3873_v31  ;;  %v5483_v31 = vld [vmem:[%s7850_s1 + $0x228] sm:$0xff] }
  0xa4   :  { %v2380_v37 = vpop.f32.mrf.mxu2  ;;  %3045 = vmatpush.bf16.msra.mxu0 %v5483_v31  ;;  %v4140_v31 = vld [vmem:[%s7851_s0 + $0x238] sm:$0xf] }
  0xa5   :  { %v2469_v38 = vpop.f32.mrf.mxu3 }
  0xa6   :  { %v5950_v39 = vadd.f32 %v2469_v38, %v2380_v37  ;;  %v2342_v40 = vpop.f32.mrf.mxu0  ;;  %v4036_v37 = vld [vmem:[%s7851_s0 + $0x160] sm:$0xf]  ;;  %v5241_v38 = vld [vmem:[%s7851_s0 + $0x194] sm:$0xf0] }
  0xa7   :  { %v4037_v49 = vor.u32 %v5241_v38, %v4036_v37  ;;  %v5269_v37 = vld [vmem:[%s7851_s0 + $0x274] sm:$0xf0]  ;;  %v5262_v38 = vld [vmem:[%s7851_s0 + $0x244] sm:$0xf] }
  0xa8   :  { %v2431_v41 = vpop.f32.mrf.mxu1 }
  0xa9   :  { %v5952_v42 = vadd.f32 %v2431_v41, %v2342_v40  ;;  %v5234_v40 = vld [vmem:[%s7851_s0 + $0x164] sm:$0xf]  ;;  %v4038_v41 = vld [vmem:[%s7851_s0 + $0x198] sm:$0xf0] }
  0xaa   :  { %v4041_v50 = vor.u32 %v5234_v40, %v4038_v41  ;;  %v4150_v40 = vld [vmem:[%s7851_s0 + $0x278] sm:$0xf0] }
  0xac   :  { %v2382_v52 = vpop.f32.mrf.mxu2 }
  0xad   :  { %v2471_v53 = vpop.f32.mrf.mxu3 }
  0xae   :  { %v5981_v54 = vadd.f32 %v2471_v53, %v2382_v52  ;;  %v2345_v60 = vpop.f32.mrf.mxu0 }
  0xb0   :  { %v2434_v61 = vpop.f32.mrf.mxu1 }
  0xb1   :  { %v5986_v62 = vadd.f32 %v2434_v61, %v2345_v60  ;;  %2522 = vmatmul.bf16.gmra.mxu2 %v3917_v55  ;;  %2700 = vmatmul.bf16.gmra.mxu0 %v3925_v58  ;;  %v4084_v61 = vld [vmem:[%s7851_s0 + $0x1c8] sm:$0xf] }
  0xb2   :  { %2611 = vmatmul.bf16.gmra.mxu3 %v3921_v56 }
  0xb3   :  { %2789 = vmatmul.bf16.gmra.mxu1 %v3929_v59 }
  0xb4   :  { %v2385_v63 = vpop.f32.mrf.mxu2 }
  0xb5   :  { %v2474_v0 = vpop.f32.mrf.mxu3 }
  0xb6   :  { %v5988_v1 = vadd.f32 %v2474_v0, %v2385_v63  ;;  %v2347_v2 = vpop.f32.mrf.mxu0  ;;  %v5254_v63 = vld [vmem:[%s7851_s0 + $0x1fc] sm:$0xf0]  ;;  %v5247_v0 = vld [vmem:[%s7851_s0 + $0x1cc] sm:$0xf] }
  0xb7   :  { %v4085_v11 = vor.u32 %v5254_v63, %v4084_v61 }
  0xb8   :  { %v2436_v3 = vpop.f32.mrf.mxu1 }
  0xb9   :  { %v5990_v4 = vadd.f32 %v2436_v3, %v2347_v2  ;;  %v4086_v2 = vld [vmem:[%s7851_s0 + $0x200] sm:$0xf0]  ;;  %v4092_v3 = vld [vmem:[%s7851_s0 + $0x1d0] sm:$0xf] }
  0xba   :  { %v4089_v12 = vor.u32 %v5247_v0, %v4086_v2  ;;  %v4196_v2 = vld [vmem:[%s7851_s0 + $0x2a8] sm:$0xf] }
  0xbc   :  { %v2387_v13 = vpop.f32.mrf.mxu2 }
  0xbd   :  { %v2476_v14 = vpop.f32.mrf.mxu3 }
  0xbe   :  { %v6016_v15 = vadd.f32 %v2476_v14, %v2387_v13  ;;  %v2350_v20 = vpop.f32.mrf.mxu0  ;;  %v4093_v13 = vor.u32 %v5255_v5, %v4092_v3  ;;  %v4097_v14 = vor.u32 %v5248_v6, %v4094_v7  ;;  %v5282_v3 = vld [vmem:[%s7851_s0 + $0x2dc] sm:$0xf0]  ;;  %v5275_v5 = vld [vmem:[%s7851_s0 + $0x2ac] sm:$0xf]  ;;  %v4198_v6 = vld [vmem:[%s7851_s0 + $0x2e0] sm:$0xf0] }
  0xbf   :  { %v4204_v7 = vld [vmem:[%s7851_s0 + $0x2b0] sm:$0xf] }
  0xc0   :  { %v2439_v21 = vpop.f32.mrf.mxu1 }
  0xc1   :  { %v6018_v22 = vadd.f32 %v2439_v21, %v2350_v20  ;;  %2527 = vmatmul.bf16.gmra.mxu2 %v3973_v16  ;;  %2705 = vmatmul.bf16.gmra.mxu0 %v3981_v18  ;;  %v5474_v20 = vld [vmem:[%s7850_s1 + $0x1e0] sm:$0xff] }
  0xc2   :  { %2616 = vmatmul.bf16.gmra.mxu3 %v3977_v17 }
  0xc3   :  { %2794 = vmatmul.bf16.gmra.mxu1 %v3985_v19  ;;  %v5466_v19 = vld [vmem:[%s7850_s1 + $0x1a0] sm:$0xff]  ;;  %2957 = vmatpush.bf16.msra.mxu3 %v5474_v20 }
  0xc4   :  { %v2390_v25 = vpop.f32.mrf.mxu2  ;;  %2868 = vmatpush.bf16.msra.mxu2 %v5466_v19 }
  0xc5   :  { %v2479_v26 = vpop.f32.mrf.mxu3 }
  0xc6   :  { %v6026_v27 = vadd.f32 %v2479_v26, %v2390_v25  ;;  %v2352_v28 = vpop.f32.mrf.mxu0 }
  0xc8   :  { %v2441_v29 = vpop.f32.mrf.mxu1 }
  0xc9   :  { %v6028_v30 = vadd.f32 %v2441_v29, %v2352_v28  ;;  %v5482_v29 = vld [vmem:[%s7850_s1 + $0x220] sm:$0xff] }
  0xca   :  { %3046 = vmatpush.bf16.msra.mxu0 %v5482_v29  ;;  %v5473_v29 = vld [vmem:[%s7850_s1 + $0x1d8] sm:$0xff] }
  0xcb   :  { %2958 = vmatpush.bf16.msra.mxu3 %v5473_v29  ;;  %v5304_v29 = vld [vmem:[%s7851_s0 + $0x394] sm:$0xf] }
  0xcc   :  { %v2392_v43 = vpop.f32.mrf.mxu2 }
  0xcd   :  { %v2481_v44 = vpop.f32.mrf.mxu3 }
  0xce   :  { %v6057_v45 = vadd.f32 %v2481_v44, %v2392_v43  ;;  %v2355_v51 = vpop.f32.mrf.mxu0 }
  0xd0   :  { %v2444_v52 = vpop.f32.mrf.mxu1 }
  0xd1   :  { %v6062_v53 = vadd.f32 %v2444_v52, %v2355_v51  ;;  %2532 = vmatmul.bf16.gmra.mxu2 %v4029_v46  ;;  %2710 = vmatmul.bf16.gmra.mxu0 %v4037_v49  ;;  %v4141_v46 = vor.u32 %v5268_v32, %v4140_v31  ;;  %v4149_v49 = vor.u32 %v5269_v37, %v4148_v36 }
  0xd2   :  { %2621 = vmatmul.bf16.gmra.mxu3 %v4033_v47  ;;  %v4145_v47 = vor.u32 %v5261_v33, %v4142_v35 }
  0xd3   :  { %2799 = vmatmul.bf16.gmra.mxu1 %v4041_v50  ;;  %v4153_v50 = vor.u32 %v5262_v38, %v4150_v40  ;;  %v4252_v38 = vld [vmem:[%s7851_s0 + $0x318] sm:$0xf]  ;;  %v5296_v40 = vld [vmem:[%s7851_s0 + $0x34c] sm:$0xf0] }
  0xd4   :  { %v2395_v55 = vpop.f32.mrf.mxu2 }
  0xd5   :  { %v2484_v56 = vpop.f32.mrf.mxu3 }
  0xd6   :  { %v6064_v57 = vadd.f32 %v2484_v56, %v2395_v55  ;;  %v2357_v58 = vpop.f32.mrf.mxu0 }
  0xd8   :  { %v2446_v59 = vpop.f32.mrf.mxu1 }
  0xd9   :  { %v6066_v60 = vadd.f32 %v2446_v59, %v2357_v58 }
  0xdc   :  { %v2397_v8 = vpop.f32.mrf.mxu2 }
  0xdd   :  { %v2486_v9 = vpop.f32.mrf.mxu3 }
  0xde   :  { %v6092_v10 = vadd.f32 %v2486_v9, %v2397_v8  ;;  %v2360_v16 = vpop.f32.mrf.mxu0  ;;  %v5283_v8 = vld [vmem:[%s7851_s0 + $0x2e4] sm:$0xf0]  ;;  %v5276_v9 = vld [vmem:[%s7851_s0 + $0x2b4] sm:$0xf] }
  0xdf   :  { %v4205_v19 = vor.u32 %v5283_v8, %v4204_v7  ;;  %v5489_v7 = vld [vmem:[%s7850_s1 + $0x258] sm:$0xff] }
  0xe0   :  { %v2449_v17 = vpop.f32.mrf.mxu1  ;;  %3136 = vmatpush.bf16.msra.mxu1 %v5489_v7  ;;  %v5480_v7 = vld [vmem:[%s7850_s1 + $0x210] sm:$0xff] }
  0xe1   :  { %v6094_v18 = vadd.f32 %v2449_v17, %v2360_v16  ;;  %2537 = vmatmul.bf16.gmra.mxu2 %v4085_v11  ;;  %2715 = vmatmul.bf16.gmra.mxu0 %v4093_v13  ;;  %v4206_v11 = vld [vmem:[%s7851_s0 + $0x2e8] sm:$0xf0]  ;;  %v4197_v16 = vor.u32 %v5282_v3, %v4196_v2  ;;  %v4201_v17 = vor.u32 %v5275_v5, %v4198_v6 }
  0xe2   :  { %2626 = vmatmul.bf16.gmra.mxu3 %v4089_v12  ;;  %v4209_v20 = vor.u32 %v5276_v9, %v4206_v11 }
  0xe3   :  { %2804 = vmatmul.bf16.gmra.mxu1 %v4097_v14 }
  0xe4   :  { %v2400_v21 = vpop.f32.mrf.mxu2 }
  0xe5   :  { %v2489_v23 = vpop.f32.mrf.mxu3 }
  0xe6   :  { %v6102_v24 = vadd.f32 %v2489_v23, %v2400_v21  ;;  %v2362_v25 = vpop.f32.mrf.mxu0 }
  0xe8   :  { %v2451_v26 = vpop.f32.mrf.mxu1 }
  0xe9   :  { %v6104_v28 = vadd.f32 %v2451_v26, %v2362_v25  ;;  %v5465_v26 = vld [vmem:[%s7850_s1 + $0x198] sm:$0xff] }
  0xea   :  { %2869 = vmatpush.bf16.msra.mxu2 %v5465_v26  ;;  %v5311_v26 = vld [vmem:[%s7851_s0 + $0x3c4] sm:$0xf0] }
  0xec   :  { %v2402_v41 = vpop.f32.mrf.mxu2 }
  0xed   :  { %v2491_v43 = vpop.f32.mrf.mxu3 }
  0xee   :  { %v6133_v44 = vadd.f32 %v2491_v43, %v2402_v41  ;;  %v2365_v51 = vpop.f32.mrf.mxu0  ;;  %v5481_v41 = vld [vmem:[%s7850_s1 + $0x218] sm:$0xff] }
  0xef   :  { %v5289_v43 = vld [vmem:[%s7851_s0 + $0x31c] sm:$0xf]  ;;  %3047 = vmatpush.bf16.msra.mxu0 %v5481_v41 }
  0xf0   :  { %v2454_v52 = vpop.f32.mrf.mxu1 }
  0xf1   :  { %v6138_v55 = vadd.f32 %v2454_v52, %v2365_v51  ;;  %2542 = vmatmul.bf16.gmra.mxu2 %v4141_v46  ;;  %2720 = vmatmul.bf16.gmra.mxu0 %v4149_v49  ;;  %v4254_v46 = vld [vmem:[%s7851_s0 + $0x350] sm:$0xf0]  ;;  %v5290_v49 = vld [vmem:[%s7851_s0 + $0x324] sm:$0xf] }
  0xf2   :  { %2631 = vmatmul.bf16.gmra.mxu3 %v4145_v47  ;;  %v4260_v47 = vld [vmem:[%s7851_s0 + $0x320] sm:$0xf] }
  0xf3   :  { %2809 = vmatmul.bf16.gmra.mxu1 %v4153_v50  ;;  %v4262_v50 = vld [vmem:[%s7851_s0 + $0x358] sm:$0xf0]  ;;  %3048 = vmatpush.bf16.msra.mxu0 %v5480_v7  ;;  %v4430_v7 = vld [vmem:[%s7851_s0 + $0x4a8] sm:$0xf0] }
  0xf4   :  { %v2405_v56 = vpop.f32.mrf.mxu2  ;;  %v4265_v2 = vor.u32 %v5290_v49, %v4262_v50  ;;  %v5472_v49 = vld [vmem:[%s7850_s1 + $0x1d0] sm:$0xff] }
  0xf5   :  { %v2494_v58 = vpop.f32.mrf.mxu3  ;;  %2959 = vmatpush.bf16.msra.mxu3 %v5472_v49 }
  0xf6   :  { %v6140_v59 = vadd.f32 %v2494_v58, %v2405_v56  ;;  %v2367_v61 = vpop.f32.mrf.mxu0  ;;  %v4253_v58 = vor.u32 %v5296_v40, %v4252_v38 }
  0xf8   :  { %v2456_v63 = vpop.f32.mrf.mxu1 }
  0xf9   :  { %v6142_v0 = vadd.f32 %v2456_v63, %v2367_v61  ;;  %v4257_v61 = vor.u32 %v5289_v43, %v4254_v46  ;;  %v4261_v63 = vor.u32 %v5297_v48, %v4260_v47  ;;  %v5464_v48 = vld [vmem:[%s7850_s1 + $0x190] sm:$0xff] }
  0xfa   :  { %2870 = vmatpush.bf16.msra.mxu2 %v5464_v48 }
  0xfc   :  { %v2407_v12 = vpop.f32.mrf.mxu2 }
  0xfd   :  { %v2496_v13 = vpop.f32.mrf.mxu3 }
  0xfe   :  { %v6168_v14 = vadd.f32 %v2496_v13, %v2407_v12  ;;  %v2370_v21 = vpop.f32.mrf.mxu0 }
 0x100   :  { %v2459_v23 = vpop.f32.mrf.mxu1 }
 0x101   :  { %v6170_v25 = vadd.f32 %v2459_v23, %v2370_v21  ;;  %2547 = vmatmul.bf16.gmra.mxu2 %v4197_v16  ;;  %2725 = vmatmul.bf16.gmra.mxu0 %v4205_v19  ;;  %v5310_v19 = vld [vmem:[%s7851_s0 + $0x3bc] sm:$0xf0]  ;;  %v4310_v21 = vld [vmem:[%s7851_s0 + $0x3c0] sm:$0xf0]  ;;  %v4316_v23 = vld [vmem:[%s7851_s0 + $0x390] sm:$0xf] }
 0x102   :  { %2636 = vmatmul.bf16.gmra.mxu3 %v4201_v17  ;;  %v4308_v17 = vld [vmem:[%s7851_s0 + $0x388] sm:$0xf]  ;;  %v4317_v41 = vor.u32 %v5311_v26, %v4316_v23 }
 0x103   :  { %2814 = vmatmul.bf16.gmra.mxu1 %v4209_v20  ;;  %v5303_v20 = vld [vmem:[%s7851_s0 + $0x38c] sm:$0xf]  ;;  %v4309_v38 = vor.u32 %v5310_v19, %v4308_v17  ;;  %v4374_v17 = vld [vmem:[%s7851_s0 + $0x438] sm:$0xf0] }
 0x104   :  { %v2410_v31 = vpop.f32.mrf.mxu2  ;;  %v4313_v40 = vor.u32 %v5303_v20, %v4310_v21 }
 0x105   :  { %v2499_v32 = vpop.f32.mrf.mxu3 }
 0x106   :  { %v6178_v33 = vadd.f32 %v2499_v32, %v2410_v31  ;;  %v2372_v35 = vpop.f32.mrf.mxu0  ;;  %v4318_v31 = vld [vmem:[%s7851_s0 + $0x3c8] sm:$0xf0] }
 0x107   :  { %v4321_v43 = vor.u32 %v5304_v29, %v4318_v31 }
 0x108   :  { %v2461_v36 = vpop.f32.mrf.mxu1 }
 0x109   :  { %v6180_v37 = vadd.f32 %v2461_v36, %v2372_v35 }
 0x10c   :  { %v2412_v51 = vpop.f32.mrf.mxu2 }
 0x10d   :  { %v2501_v52 = vpop.f32.mrf.mxu3 }
 0x10e   :  { %v6209_v56 = vadd.f32 %v2501_v52, %v2412_v51  ;;  %v2375_v3 = vpop.f32.mrf.mxu0 }
 0x110   :  { %v2464_v5 = vpop.f32.mrf.mxu1 }
 0x111   :  { %v6211_v6 = vadd.f32 %v2464_v5, %v2375_v3  ;;  %2552 = vmatmul.bf16.gmra.mxu2 %v4253_v58  ;;  %2730 = vmatmul.bf16.gmra.mxu0 %v4261_v63  ;;  %v4364_v3 = vld [vmem:[%s7851_s0 + $0x3f8] sm:$0xf]  ;;  %v5324_v5 = vld [vmem:[%s7851_s0 + $0x42c] sm:$0xf0] }
 0x112   :  { %2641 = vmatmul.bf16.gmra.mxu3 %v4257_v61  ;;  %v4365_v26 = vor.u32 %v5324_v5, %v4364_v3  ;;  %v5339_v3 = vld [vmem:[%s7851_s0 + $0x4a4] sm:$0xf0]  ;;  %v5332_v5 = vld [vmem:[%s7851_s0 + $0x474] sm:$0xf] }
 0x113   :  { %2819 = vmatmul.bf16.gmra.mxu1 %v4265_v2 }
 0x114   :  { %v2415_v8 = vpop.f32.mrf.mxu2 }
 0x115   :  { %v2504_v9 = vpop.f32.mrf.mxu3 }
 0x116   :  { %v6216_v11 = vadd.f32 %v2504_v9, %v2415_v8  ;;  %v2377_v12 = vpop.f32.mrf.mxu0  ;;  %v4366_v8 = vld [vmem:[%s7851_s0 + $0x430] sm:$0xf0]  ;;  %v4372_v9 = vld [vmem:[%s7851_s0 + $0x400] sm:$0xf] }
 0x118   :  { %v2466_v13 = vpop.f32.mrf.mxu1 }
 0x119   :  { %v6218_v16 = vadd.f32 %v2466_v13, %v2377_v12  ;;  %v5325_v12 = vld [vmem:[%s7851_s0 + $0x434] sm:$0xf0]  ;;  %v5318_v13 = vld [vmem:[%s7851_s0 + $0x404] sm:$0xf] }
 0x11a   :  { %v4373_v31 = vor.u32 %v5325_v12, %v4372_v9 }
 0x11c   :  { %v2417_v32 = vpop.f32.mrf.mxu2 }
 0x11d   :  { %v2506_v35 = vpop.f32.mrf.mxu3 }
 0x11e   :  { %v6244_v36 = vadd.f32 %v2506_v35, %v2417_v32  ;;  %v2696_v46 = vpop.f32.mrf.mxu0  ;;  %v4377_v32 = vor.u32 %v5318_v13, %v4374_v17 }
 0x120   :  { %v2785_v47 = vpop.f32.mrf.mxu1 }
 0x121   :  { %2557 = vmatmul.bf16.gmra.mxu2 %v4309_v38  ;;  %2735 = vmatmul.bf16.gmra.mxu0 %v4317_v41 }
 0x122   :  { %2646 = vmatmul.bf16.gmra.mxu3 %v4313_v40 }
 0x123   :  { %2824 = vmatmul.bf16.gmra.mxu1 %v4321_v43  ;;  %v5488_v43 = vld [vmem:[%s7850_s1 + $0x250] sm:$0xff] }
 0x124   :  { %v2518_v50 = vpop.f32.mrf.mxu2  ;;  %3137 = vmatpush.bf16.msra.mxu1 %v5488_v43 }
 0x125   :  { %v2607_v51 = vpop.f32.mrf.mxu3  ;;  %v2519_v52 = vadd.f32 %v2518_v50, %v5942_v34  ;;  %v5317_v34 = vld [vmem:[%s7851_s0 + $0x3fc] sm:$0xf] }
 0x126   :  { %v2698_v61 = vpop.f32.mrf.mxu0  ;;  %v4369_v29 = vor.u32 %v5317_v34, %v4366_v8 }
 0x127   :  { %v2608_v58 = vadd.f32 %v2607_v51, %v2519_v52 }
 0x128   :  { %v2787_v63 = vpop.f32.mrf.mxu1 }
 0x129   :  { %v2697_v2 = vadd.f32 %v2696_v46, %v2608_v58  ;;  %v4420_v58 = vld [vmem:[%s7851_s0 + $0x468] sm:$0xf] }
 0x12b   :  { %v6280_v19 = vadd.f32 %v2785_v47, %v2697_v2  ;;  %v4428_v2 = vld [vmem:[%s7851_s0 + $0x470] sm:$0xf] }
 0x12c   :  { %v2520_v20 = vpop.f32.mrf.mxu2 }
 0x12d   :  { %v2609_v21 = vpop.f32.mrf.mxu3  ;;  %v2521_v23 = vadd.f32 %v2520_v20, %v5952_v42  ;;  %v4429_v20 = vor.u32 %v5339_v3, %v4428_v2 }
 0x12e   :  { %v2701_v38 = vpop.f32.mrf.mxu0 }
 0x12f   :  { %v2610_v35 = vadd.f32 %v2609_v21, %v2521_v23  ;;  %v4433_v21 = vor.u32 %v5332_v5, %v4430_v7 }
 0x130   :  { %v2790_v40 = vpop.f32.mrf.mxu1 }
 0x131   :  { %v2699_v41 = vadd.f32 %v2698_v61, %v2610_v35  ;;  %2562 = vmatmul.bf16.gmra.mxu2 %v4365_v26  ;;  %2740 = vmatmul.bf16.gmra.mxu0 %v4373_v31  ;;  %v5338_v61 = vld [vmem:[%s7851_s0 + $0x49c] sm:$0xf0] }
 0x132   :  { %2651 = vmatmul.bf16.gmra.mxu3 %v4369_v29  ;;  %v4421_v13 = vor.u32 %v5338_v61, %v4420_v58  ;;  %v4484_v58 = vld [vmem:[%s7851_s0 + $0x4e0] sm:$0xf]  ;;  %v5353_v61 = vld [vmem:[%s7851_s0 + $0x514] sm:$0xf0] }
 0x133   :  { %2829 = vmatmul.bf16.gmra.mxu1 %v4377_v32  ;;  %v6286_v46 = vadd.f32 %v2787_v63, %v2699_v41  ;;  %v5331_v63 = vld [vmem:[%s7851_s0 + $0x46c] sm:$0xf] }
 0x134   :  { %v2523_v42 = vpop.f32.mrf.mxu2  ;;  %v5463_v32 = vld [vmem:[%s7850_s1 + $0x188] sm:$0xff] }
 0x135   :  { %v2612_v47 = vpop.f32.mrf.mxu3  ;;  %v2524_v48 = vadd.f32 %v2523_v42, %v5986_v62  ;;  %v4422_v62 = vld [vmem:[%s7851_s0 + $0x4a0] sm:$0xf0]  ;;  %2871 = vmatpush.bf16.msra.mxu2 %v5463_v32 }
 0x136   :  { %v2703_v50 = vpop.f32.mrf.mxu0  ;;  %v4425_v17 = vor.u32 %v5331_v63, %v4422_v62  ;;  %v5346_v63 = vld [vmem:[%s7851_s0 + $0x4e4] sm:$0xf]  ;;  %v4486_v62 = vld [vmem:[%s7851_s0 + $0x518] sm:$0xf0] }
 0x137   :  { %v2613_v49 = vadd.f32 %v2612_v47, %v2524_v48 }
 0x138   :  { %v2792_v51 = vpop.f32.mrf.mxu1 }
 0x139   :  { %v2702_v52 = vadd.f32 %v2701_v38, %v2613_v49  ;;  %v4476_v49 = vld [vmem:[%s7851_s0 + $0x4d8] sm:$0xf] }
 0x13b   :  { %v6313_v34 = vadd.f32 %v2790_v40, %v2702_v52  ;;  %v4478_v52 = vld [vmem:[%s7851_s0 + $0x510] sm:$0xf0] }
 0x13c   :  { %v2525_v8 = vpop.f32.mrf.mxu2 }
 0x13d   :  { %v2614_v9 = vpop.f32.mrf.mxu3  ;;  %v2526_v12 = vadd.f32 %v2525_v8, %v5990_v4  ;;  %v5471_v4 = vld [vmem:[%s7850_s1 + $0x1c8] sm:$0xff] }
 0x13e   :  { %v2706_v26 = vpop.f32.mrf.mxu0  ;;  %2960 = vmatpush.bf16.msra.mxu3 %v5471_v4 }
 0x13f   :  { %v2615_v23 = vadd.f32 %v2614_v9, %v2526_v12  ;;  %v4485_v12 = vor.u32 %v5353_v61, %v4484_v58 }
 0x140   :  { %v2795_v29 = vpop.f32.mrf.mxu1 }
 0x141   :  { %v2704_v31 = vadd.f32 %v2703_v50, %v2615_v23  ;;  %2567 = vmatmul.bf16.gmra.mxu2 %v4421_v13  ;;  %2745 = vmatmul.bf16.gmra.mxu0 %v4429_v20  ;;  %v5352_v50 = vld [vmem:[%s7851_s0 + $0x50c] sm:$0xf0]  ;;  %v4489_v13 = vor.u32 %v5346_v63, %v4486_v62 }
 0x142   :  { %2656 = vmatmul.bf16.gmra.mxu3 %v4425_v17  ;;  %v4477_v8 = vor.u32 %v5352_v50, %v4476_v49  ;;  %v5367_v49 = vld [vmem:[%s7851_s0 + $0x584] sm:$0xf0]  ;;  %v5360_v50 = vld [vmem:[%s7851_s0 + $0x554] sm:$0xf] }
 0x143   :  { %2834 = vmatmul.bf16.gmra.mxu1 %v4433_v21  ;;  %v6322_v35 = vadd.f32 %v2792_v51, %v2704_v31  ;;  %v5479_v51 = vld [vmem:[%s7850_s1 + $0x208] sm:$0xff] }
 0x144   :  { %v2528_v38 = vpop.f32.mrf.mxu2  ;;  %3049 = vmatpush.bf16.msra.mxu0 %v5479_v51  ;;  %v4542_v51 = vld [vmem:[%s7851_s0 + $0x588] sm:$0xf0] }
 0x145   :  { %v2617_v40 = vpop.f32.mrf.mxu3  ;;  %v2529_v41 = vadd.f32 %v2528_v38, %v6018_v22  ;;  %v5345_v22 = vld [vmem:[%s7851_s0 + $0x4dc] sm:$0xf] }
 0x146   :  { %v2708_v42 = vpop.f32.mrf.mxu0  ;;  %v4481_v9 = vor.u32 %v5345_v22, %v4478_v52 }
 0x147   :  { %v2618_v43 = vadd.f32 %v2617_v40, %v2529_v41 }
 0x148   :  { %v2797_v47 = vpop.f32.mrf.mxu1 }
 0x149   :  { %v2707_v48 = vadd.f32 %v2706_v26, %v2618_v43  ;;  %v5487_v26 = vld [vmem:[%s7850_s1 + $0x248] sm:$0xff] }
 0x14a   :  { %3138 = vmatpush.bf16.msra.mxu1 %v5487_v26  ;;  %v4532_v43 = vld [vmem:[%s7851_s0 + $0x548] sm:$0xf] }
 0x14b   :  { %v6352_v2 = vadd.f32 %v2795_v29, %v2707_v48  ;;  %v4540_v48 = vld [vmem:[%s7851_s0 + $0x550] sm:$0xf] }
 0x14c   :  { %v2530_v3 = vpop.f32.mrf.mxu2 }
 0x14d   :  { %v2619_v5 = vpop.f32.mrf.mxu3  ;;  %v2531_v7 = vadd.f32 %v2530_v3, %v6028_v30  ;;  %v4541_v3 = vor.u32 %v5367_v49, %v4540_v48 }
 0x14e   :  { %v2711_v20 = vpop.f32.mrf.mxu0 }
 0x14f   :  { %v2620_v17 = vadd.f32 %v2619_v5, %v2531_v7  ;;  %v4545_v5 = vor.u32 %v5360_v50, %v4542_v51 }
 0x150   :  { %v2800_v21 = vpop.f32.mrf.mxu1 }
 0x151   :  { %v2709_v23 = vadd.f32 %v2708_v42, %v2620_v17  ;;  %2572 = vmatmul.bf16.gmra.mxu2 %v4477_v8  ;;  %2750 = vmatmul.bf16.gmra.mxu0 %v4485_v12  ;;  %v5366_v42 = vld [vmem:[%s7851_s0 + $0x57c] sm:$0xf0] }
 0x152   :  { %2661 = vmatmul.bf16.gmra.mxu3 %v4481_v9  ;;  %v4533_v63 = vor.u32 %v5366_v42, %v4532_v43  ;;  %v4596_v43 = vld [vmem:[%s7851_s0 + $0x5c0] sm:$0xf]  ;;  %v5381_v42 = vld [vmem:[%s7851_s0 + $0x5f4] sm:$0xf0] }
 0x153   :  { %2839 = vmatmul.bf16.gmra.mxu1 %v4489_v13  ;;  %v6358_v29 = vadd.f32 %v2797_v47, %v2709_v23  ;;  %v5359_v47 = vld [vmem:[%s7851_s0 + $0x54c] sm:$0xf]  ;;  %v5462_v13 = vld [vmem:[%s7850_s1 + $0x180] sm:$0xff] }
 0x154   :  { %v2533_v30 = vpop.f32.mrf.mxu2  ;;  %2872 = vmatpush.bf16.msra.mxu2 %v5462_v13 }
 0x155   :  { %v2622_v31 = vpop.f32.mrf.mxu3  ;;  %v2534_v32 = vadd.f32 %v2533_v30, %v6062_v53  ;;  %v4534_v53 = vld [vmem:[%s7851_s0 + $0x580] sm:$0xf0] }
 0x156   :  { %v2713_v38 = vpop.f32.mrf.mxu0  ;;  %v4537_v62 = vor.u32 %v5359_v47, %v4534_v53  ;;  %v5374_v47 = vld [vmem:[%s7851_s0 + $0x5c4] sm:$0xf]  ;;  %v4598_v53 = vld [vmem:[%s7851_s0 + $0x5f8] sm:$0xf0] }
 0x157   :  { %v2623_v4 = vadd.f32 %v2622_v31, %v2534_v32 }
 0x158   :  { %v2802_v40 = vpop.f32.mrf.mxu1 }
 0x159   :  { %v2712_v41 = vadd.f32 %v2711_v20, %v2623_v4  ;;  %v4588_v4 = vld [vmem:[%s7851_s0 + $0x5b8] sm:$0xf] }
 0x15b   :  { %v6385_v22 = vadd.f32 %v2800_v21, %v2712_v41  ;;  %v4590_v41 = vld [vmem:[%s7851_s0 + $0x5f0] sm:$0xf0] }
 0x15c   :  { %v2535_v52 = vpop.f32.mrf.mxu2 }
 0x15d   :  { %v2624_v58 = vpop.f32.mrf.mxu3  ;;  %v2536_v61 = vadd.f32 %v2535_v52, %v6066_v60  ;;  %v5470_v60 = vld [vmem:[%s7850_s1 + $0x1c0] sm:$0xff] }
 0x15e   :  { %v2716_v8 = vpop.f32.mrf.mxu0  ;;  %2961 = vmatpush.bf16.msra.mxu3 %v5470_v60 }
 0x15f   :  { %v2625_v7 = vadd.f32 %v2624_v58, %v2536_v61  ;;  %v4597_v61 = vor.u32 %v5381_v42, %v4596_v43 }
 0x160   :  { %v2805_v9 = vpop.f32.mrf.mxu1 }
 0x161   :  { %v2714_v12 = vadd.f32 %v2713_v38, %v2625_v7  ;;  %2577 = vmatmul.bf16.gmra.mxu2 %v4533_v63  ;;  %2755 = vmatmul.bf16.gmra.mxu0 %v4541_v3  ;;  %v5380_v38 = vld [vmem:[%s7851_s0 + $0x5ec] sm:$0xf0]  ;;  %v4601_v63 = vor.u32 %v5374_v47, %v4598_v53 }
 0x162   :  { %2666 = vmatmul.bf16.gmra.mxu3 %v4537_v62  ;;  %v4589_v52 = vor.u32 %v5380_v38, %v4588_v4  ;;  %v5395_v4 = vld [vmem:[%s7851_s0 + $0x664] sm:$0xf0]  ;;  %v5388_v38 = vld [vmem:[%s7851_s0 + $0x634] sm:$0xf] }
 0x163   :  { %2844 = vmatmul.bf16.gmra.mxu1 %v4545_v5  ;;  %v6394_v17 = vadd.f32 %v2802_v40, %v2714_v12  ;;  %v5478_v40 = vld [vmem:[%s7850_s1 + $0x200] sm:$0xff] }
 0x164   :  { %v2538_v20 = vpop.f32.mrf.mxu2  ;;  %3050 = vmatpush.bf16.msra.mxu0 %v5478_v40  ;;  %v4654_v40 = vld [vmem:[%s7851_s0 + $0x668] sm:$0xf0] }
 0x165   :  { %v2627_v21 = vpop.f32.mrf.mxu3  ;;  %v2539_v23 = vadd.f32 %v2538_v20, %v6094_v18  ;;  %v5373_v18 = vld [vmem:[%s7851_s0 + $0x5bc] sm:$0xf] }
 0x166   :  { %v2718_v30 = vpop.f32.mrf.mxu0  ;;  %v4593_v58 = vor.u32 %v5373_v18, %v4590_v41 }
 0x167   :  { %v2628_v26 = vadd.f32 %v2627_v21, %v2539_v23 }
 0x168   :  { %v2807_v31 = vpop.f32.mrf.mxu1 }
 0x169   :  { %v2717_v32 = vadd.f32 %v2716_v8, %v2628_v26  ;;  %v5486_v8 = vld [vmem:[%s7850_s1 + $0x240] sm:$0xff]  ;;  %v4644_v26 = vld [vmem:[%s7851_s0 + $0x628] sm:$0xf] }
 0x16a   :  { %3139 = vmatpush.bf16.msra.mxu1 %v5486_v8 }
 0x16b   :  { %v6424_v48 = vadd.f32 %v2805_v9, %v2717_v32  ;;  %v4652_v32 = vld [vmem:[%s7851_s0 + $0x630] sm:$0xf] }
 0x16c   :  { %v2540_v49 = vpop.f32.mrf.mxu2 }
 0x16d   :  { %v2629_v50 = vpop.f32.mrf.mxu3  ;;  %v2541_v51 = vadd.f32 %v2540_v49, %v6104_v28  ;;  %v4653_v49 = vor.u32 %v5395_v4, %v4652_v32 }
 0x16e   :  { %v2721_v3 = vpop.f32.mrf.mxu0 }
 0x16f   :  { %v2630_v62 = vadd.f32 %v2629_v50, %v2541_v51  ;;  %v4657_v50 = vor.u32 %v5388_v38, %v4654_v40 }
 0x170   :  { %v2810_v5 = vpop.f32.mrf.mxu1 }
 0x171   :  { %v2719_v7 = vadd.f32 %v2718_v30, %v2630_v62  ;;  %2582 = vmatmul.bf16.gmra.mxu2 %v4589_v52  ;;  %2760 = vmatmul.bf16.gmra.mxu0 %v4597_v61  ;;  %v5394_v30 = vld [vmem:[%s7851_s0 + $0x65c] sm:$0xf0] }
 0x172   :  { %2671 = vmatmul.bf16.gmra.mxu3 %v4593_v58  ;;  %v4645_v47 = vor.u32 %v5394_v30, %v4644_v26  ;;  %v4708_v26 = vld [vmem:[%s7851_s0 + $0x6a0] sm:$0xf]  ;;  %v5409_v30 = vld [vmem:[%s7851_s0 + $0x6d4] sm:$0xf0] }
 0x173   :  { %2849 = vmatmul.bf16.gmra.mxu1 %v4601_v63  ;;  %v6430_v9 = vadd.f32 %v2807_v31, %v2719_v7  ;;  %v5387_v31 = vld [vmem:[%s7851_s0 + $0x62c] sm:$0xf]  ;;  %v5501_v63 = vld [vmem:[%s7850_s1 + $0x2b8] sm:$0xff] }
 0x174   :  { %v2543_v28 = vpop.f32.mrf.mxu2  ;;  %3221 = vmatpush.bf16.msrb.mxu2 %v5501_v63 }
 0x175   :  { %v2632_v12 = vpop.f32.mrf.mxu3  ;;  %v2544_v13 = vadd.f32 %v2543_v28, %v6138_v55  ;;  %v4646_v55 = vld [vmem:[%s7851_s0 + $0x660] sm:$0xf0] }
 0x176   :  { %v2723_v20 = vpop.f32.mrf.mxu0  ;;  %v4649_v53 = vor.u32 %v5387_v31, %v4646_v55  ;;  %v5402_v31 = vld [vmem:[%s7851_s0 + $0x6a4] sm:$0xf]  ;;  %v4710_v55 = vld [vmem:[%s7851_s0 + $0x6d8] sm:$0xf0] }
 0x177   :  { %v2633_v60 = vadd.f32 %v2632_v12, %v2544_v13 }
 0x178   :  { %v2812_v21 = vpop.f32.mrf.mxu1 }
 0x179   :  { %v2722_v23 = vadd.f32 %v2721_v3, %v2633_v60  ;;  %v4700_v60 = vld [vmem:[%s7851_s0 + $0x698] sm:$0xf] }
 0x17b   :  { %v6457_v18 = vadd.f32 %v2810_v5, %v2722_v23  ;;  %v4702_v23 = vld [vmem:[%s7851_s0 + $0x6d0] sm:$0xf0] }
 0x17c   :  { %v2545_v41 = vpop.f32.mrf.mxu2 }
 0x17d   :  { %v2634_v43 = vpop.f32.mrf.mxu3  ;;  %v2546_v42 = vadd.f32 %v2545_v41, %v6142_v0  ;;  %v5509_v0 = vld [vmem:[%s7850_s1 + $0x2f8] sm:$0xff] }
 0x17e   :  { %v2726_v52 = vpop.f32.mrf.mxu0  ;;  %3310 = vmatpush.bf16.msrb.mxu3 %v5509_v0 }
 0x17f   :  { %v2635_v51 = vadd.f32 %v2634_v43, %v2546_v42  ;;  %v4709_v42 = vor.u32 %v5409_v30, %v4708_v26  ;;  %v3884_v26 = vld [vmem:[%s7851_s0 + $0x20] sm:$0xf]  ;;  %v5201_v30 = vld [vmem:[%s7851_s0 + $0x54] sm:$0xf0] }
 0x180   :  { %v2815_v58 = vpop.f32.mrf.mxu1 }
 0x181   :  { %v2724_v61 = vadd.f32 %v2723_v20, %v2635_v51  ;;  %2587 = vmatmul.bf16.gmra.mxu2 %v4645_v47  ;;  %2765 = vmatmul.bf16.gmra.mxu0 %v4653_v49  ;;  %v5408_v20 = vld [vmem:[%s7851_s0 + $0x6cc] sm:$0xf0]  ;;  %v4713_v47 = vor.u32 %v5402_v31, %v4710_v55  ;;  %v5194_v31 = vld [vmem:[%s7851_s0 + $0x24] sm:$0xf]  ;;  %v3886_v55 = vld [vmem:[%s7851_s0 + $0x58] sm:$0xf0] }
 0x182   :  { %2676 = vmatmul.bf16.gmra.mxu3 %v4649_v53  ;;  %v4701_v41 = vor.u32 %v5408_v20, %v4700_v60 }
 0x183   :  { %2854 = vmatmul.bf16.gmra.mxu1 %v4657_v50  ;;  %v6466_v62 = vadd.f32 %v2812_v21, %v2724_v61  ;;  %v5517_v21 = vld [vmem:[%s7850_s1 + $0x338] sm:$0xff] }
 0x184   :  { %v2548_v3 = vpop.f32.mrf.mxu2  ;;  %3399 = vmatpush.bf16.msrb.mxu0 %v5517_v21 }
 0x185   :  { %v2637_v5 = vpop.f32.mrf.mxu3  ;;  %v2549_v7 = vadd.f32 %v2548_v3, %v6170_v25  ;;  %v5401_v25 = vld [vmem:[%s7851_s0 + $0x69c] sm:$0xf] }
 0x186   :  { %v2728_v28 = vpop.f32.mrf.mxu0  ;;  %v4705_v43 = vor.u32 %v5401_v25, %v4702_v23  ;;  %v3876_v25 = vld [vmem:[%s7851_s0 + $0x18] sm:$0xf]  ;;  %v5193_v23 = vld [vmem:[%s7851_s0 + $0x1c] sm:$0xf] }
 0x187   :  { %v2638_v8 = vadd.f32 %v2637_v5, %v2549_v7 }
 0x188   :  { %v2817_v12 = vpop.f32.mrf.mxu1 }
 0x189   :  { %v2727_v13 = vadd.f32 %v2726_v52, %v2638_v8  ;;  %v525_v52 = vld [vmem:[%s7850_s1 + $0x358] sm:$0x3] }
 0x18b   :  { %v6496_v32 = vadd.f32 %v2815_v58, %v2727_v13  ;;  %v2059_v58 = vunpack.c.l.b16 %v525_v52 }
 0x18c   :  { %v2550_v4 = vpop.f32.mrf.mxu2 }
 0x18d   :  { %v2639_v38 = vpop.f32.mrf.mxu3  ;;  %v2551_v40 = vadd.f32 %v2550_v4, %v6180_v37  ;;  %v5543_v37 = vmov 65535   ;;  %v2167_v7 = vpack.c.b16 %v2059_v58, %v2059_v58 }
 0x18e   :  { %v2731_v49 = vpop.f32.mrf.mxu0  ;;  %v2326_v61 = vsel %vm2324_vm0, 4294967295, %v5543_v37  ;;  %v5500_v37 = vld [vmem:[%s7850_s1 + $0x2b0] sm:$0xff] }
 0x18f   :  { %v2640_v53 = vadd.f32 %v2639_v38, %v2551_v40  ;;  %v2327_v63 = vsel %vm2325_vm1, %v2326_v61, 0  ;;  %3222 = vmatpush.bf16.msrb.mxu2 %v5500_v37 }
 0x190   :  { %v2820_v50 = vpop.f32.mrf.mxu1 }
 0x191   :  { %v2729_v51 = vadd.f32 %v2728_v28, %v2640_v53  ;;  %2592 = vmatmul.bf16.gmra.mxu2 %v4701_v41  ;;  %2770 = vmatmul.bf16.gmra.mxu0 %v4709_v42  ;;  %v2329_v28 = vand.u32 %v2327_v63, %v2167_v7  ;;  %v3889_v53 = vor.u32 %v5194_v31, %v3886_v55 }
 0x192   :  { %2681 = vmatmul.bf16.gmra.mxu3 %v4705_v43 }
 0x193   :  { %2859 = vmatmul.bf16.gmra.mxu1 %v4713_v47  ;;  %v6502_v0 = vadd.f32 %v2817_v12, %v2729_v51  ;;  %v5200_v12 = vld [vmem:[%s7851_s0 + $0x4c] sm:$0xf0]  ;;  %v3885_v47 = vor.u32 %v5201_v30, %v3884_v26 }
 0x194   :  { %v2553_v3 = vpop.f32.mrf.mxu2  ;;  %3492 = vmatpush.bf16.msrb.mxu1 %v2329_v28  ;;  %v3877_v43 = vor.u32 %v5200_v12, %v3876_v25  ;;  %v3940_v25 = vld [vmem:[%s7851_s0 + $0x90] sm:$0xf]  ;;  %v5215_v12 = vld [vmem:[%s7851_s0 + $0xc4] sm:$0xf0] }
 0x195   :  { %v2642_v5 = vpop.f32.mrf.mxu3  ;;  %v2554_v8 = vadd.f32 %v2553_v3, %v6211_v6  ;;  %v3878_v6 = vld [vmem:[%s7851_s0 + $0x50] sm:$0xf0] }
 0x196   :  { %v2733_v60 = vpop.f32.mrf.mxu0  ;;  %v3881_v42 = vor.u32 %v5193_v23, %v3878_v6  ;;  %v5208_v23 = vld [vmem:[%s7851_s0 + $0x94] sm:$0xf]  ;;  %v3942_v6 = vld [vmem:[%s7851_s0 + $0xc8] sm:$0xf0] }
 0x197   :  { %v2643_v13 = vadd.f32 %v2642_v5, %v2554_v8 }
 0x198   :  { %v2822_v20 = vpop.f32.mrf.mxu1 }
 0x199   :  { %v2732_v21 = vadd.f32 %v2731_v49, %v2643_v13  ;;  %v3932_v13 = vld [vmem:[%s7851_s0 + $0x88] sm:$0xf] }
 0x19b   :  { %v6529_v4 = vadd.f32 %v2820_v50, %v2732_v21  ;;  %v3934_v21 = vld [vmem:[%s7851_s0 + $0xc0] sm:$0xf0] }
 0x19c   :  { %v2555_v38 = vpop.f32.mrf.mxu2 }
 0x19d   :  { %v2644_v40 = vpop.f32.mrf.mxu3  ;;  %v2556_v41 = vadd.f32 %v2555_v38, %v6218_v16  ;;  %v5508_v16 = vld [vmem:[%s7850_s1 + $0x2f0] sm:$0xff] }
 0x19e   :  { %v2736_v51 = vpop.f32.mrf.mxu0  ;;  %3311 = vmatpush.bf16.msrb.mxu3 %v5508_v16 }
 0x19f   :  { %v2645_v49 = vadd.f32 %v2644_v40, %v2556_v41  ;;  %v3941_v41 = vor.u32 %v5215_v12, %v3940_v25 }
 0x1a0   :  { %v2825_v52 = vpop.f32.mrf.mxu1 }
 0x1a1   :  { %v2734_v58 = vadd.f32 %v2733_v60, %v2645_v49  ;;  %2873 = vmatmul.bf16.vlgmr.msra.gmra.mxu2 %v3877_v43  ;;  %3051 = vmatmul.bf16.vlgmr.msra.gmra.mxu0 %v3885_v47  ;;  %v5214_v60 = vld [vmem:[%s7851_s0 + $0xbc] sm:$0xf0]  ;;  %v3945_v43 = vor.u32 %v5208_v23, %v3942_v6 }
 0x1a2   :  { %2962 = vmatmul.bf16.vlgmr.msra.gmra.mxu3 %v3881_v42  ;;  %v3933_v38 = vor.u32 %v5214_v60, %v3932_v13  ;;  %v5222_v13 = vld [vmem:[%s7851_s0 + $0x104] sm:$0xf]  ;;  %v3998_v60 = vld [vmem:[%s7851_s0 + $0x138] sm:$0xf0] }
 0x1a3   :  { %3140 = vmatmul.bf16.vlgmr.msra.gmra.mxu1 %v3889_v53  ;;  %v6538_v50 = vadd.f32 %v2822_v20, %v2734_v58  ;;  %v5516_v20 = vld [vmem:[%s7850_s1 + $0x330] sm:$0xff] }
 0x1a4   :  { %v2558_v61 = vpop.f32.mrf.mxu2  ;;  %3400 = vmatpush.bf16.msrb.mxu0 %v5516_v20 }
 0x1a5   :  { %v2647_v63 = vpop.f32.mrf.mxu3  ;;  %v2559_v3 = vadd.f32 %v2558_v61, %v5950_v39  ;;  %v5207_v39 = vld [vmem:[%s7851_s0 + $0x8c] sm:$0xf] }
 0x1a6   :  { %v2738_v7 = vpop.f32.mrf.mxu0  ;;  %v3937_v40 = vor.u32 %v5207_v39, %v3934_v21 }
 0x1a7   :  { %v2648_v5 = vadd.f32 %v2647_v63, %v2559_v3  ;;  %v3988_v3 = vld [vmem:[%s7851_s0 + $0xf8] sm:$0xf] }
 0x1a8   :  { %v2827_v8 = vpop.f32.mrf.mxu1 }
 0x1a9   :  { %v2737_v28 = vadd.f32 %v2736_v51, %v2648_v5  ;;  %v5228_v5 = vld [vmem:[%s7851_s0 + $0x12c] sm:$0xf0] }
 0x1aa   :  { %v3989_v12 = vor.u32 %v5228_v5, %v3988_v3  ;;  %v4052_v3 = vld [vmem:[%s7851_s0 + $0x170] sm:$0xf]  ;;  %v5243_v5 = vld [vmem:[%s7851_s0 + $0x1a4] sm:$0xf0] }
 0x1ab   :  { %v6568_v26 = vadd.f32 %v2825_v52, %v2737_v28  ;;  %v5229_v28 = vld [vmem:[%s7851_s0 + $0x134] sm:$0xf0] }
 0x1ac   :  { %v2560_v30 = vpop.f32.mrf.mxu2 }
 0x1ad   :  { %v2649_v31 = vpop.f32.mrf.mxu3  ;;  %v2561_v55 = vadd.f32 %v2560_v30, %v5981_v54  ;;  %v4001_v30 = vor.u32 %v5222_v13, %v3998_v60 }
 0x1ae   :  { %v2741_v47 = vpop.f32.mrf.mxu0 }
 0x1af   :  { %v2650_v42 = vadd.f32 %v2649_v31, %v2561_v55 }
 0x1b0   :  { %v2830_v53 = vpop.f32.mrf.mxu1 }
 0x1b1   :  { %v2739_v49 = vadd.f32 %v2738_v7, %v2650_v42  ;;  %2878 = vmatmul.bf16.gmra.mxu2 %v3933_v38  ;;  %3056 = vmatmul.bf16.gmra.mxu0 %v3941_v41  ;;  %v5221_v7 = vld [vmem:[%s7851_s0 + $0xfc] sm:$0xf]  ;;  %v5499_v41 = vld [vmem:[%s7850_s1 + $0x2a8] sm:$0xff] }
 0x1b2   :  { %2967 = vmatmul.bf16.gmra.mxu3 %v3937_v40  ;;  %3223 = vmatpush.bf16.msrb.mxu2 %v5499_v41 }
 0x1b3   :  { %3145 = vmatmul.bf16.gmra.mxu1 %v3945_v43  ;;  %v6571_v51 = vadd.f32 %v2827_v8, %v2739_v49  ;;  %v3996_v8 = vld [vmem:[%s7851_s0 + $0x100] sm:$0xf] }
 0x1b4   :  { %v2563_v52 = vpop.f32.mrf.mxu2  ;;  %v3997_v6 = vor.u32 %v5229_v28, %v3996_v8 }
 0x1b5   :  { %v2652_v58 = vpop.f32.mrf.mxu3  ;;  %v2564_v37 = vadd.f32 %v2563_v52, %v5988_v1  ;;  %v3990_v1 = vld [vmem:[%s7851_s0 + $0x130] sm:$0xf0] }
 0x1b6   :  { %v2743_v54 = vpop.f32.mrf.mxu0  ;;  %v3993_v23 = vor.u32 %v5221_v7, %v3990_v1  ;;  %v5236_v7 = vld [vmem:[%s7851_s0 + $0x174] sm:$0xf]  ;;  %v4054_v1 = vld [vmem:[%s7851_s0 + $0x1a8] sm:$0xf0] }
 0x1b7   :  { %v2653_v16 = vadd.f32 %v2652_v58, %v2564_v37 }
 0x1b8   :  { %v2832_v61 = vpop.f32.mrf.mxu1 }
 0x1b9   :  { %v2742_v63 = vadd.f32 %v2741_v47, %v2653_v16  ;;  %v4044_v16 = vld [vmem:[%s7851_s0 + $0x168] sm:$0xf] }
 0x1bb   :  { %v6598_v20 = vadd.f32 %v2830_v53, %v2742_v63  ;;  %v4046_v63 = vld [vmem:[%s7851_s0 + $0x1a0] sm:$0xf0] }
 0x1bc   :  { %v2565_v39 = vpop.f32.mrf.mxu2 }
 0x1bd   :  { %v2654_v21 = vpop.f32.mrf.mxu3  ;;  %v2566_v25 = vadd.f32 %v2565_v39, %v6016_v15  ;;  %v5507_v15 = vld [vmem:[%s7850_s1 + $0x2e8] sm:$0xff] }
 0x1be   :  { %v2746_v55 = vpop.f32.mrf.mxu0  ;;  %3312 = vmatpush.bf16.msrb.mxu3 %v5507_v15 }
 0x1bf   :  { %v2655_v31 = vadd.f32 %v2654_v21, %v2566_v25  ;;  %v4053_v25 = vor.u32 %v5243_v5, %v4052_v3 }
 0x1c0   :  { %v2835_v38 = vpop.f32.mrf.mxu1 }
 0x1c1   :  { %v2744_v40 = vadd.f32 %v2743_v54, %v2655_v31  ;;  %2883 = vmatmul.bf16.gmra.mxu2 %v3989_v12  ;;  %3061 = vmatmul.bf16.gmra.mxu0 %v3997_v6  ;;  %v5242_v54 = vld [vmem:[%s7851_s0 + $0x19c] sm:$0xf0]  ;;  %v4057_v12 = vor.u32 %v5236_v7, %v4054_v1 }
 0x1c2   :  { %2972 = vmatmul.bf16.gmra.mxu3 %v3993_v23  ;;  %v4045_v39 = vor.u32 %v5242_v54, %v4044_v16  ;;  %v5257_v16 = vld [vmem:[%s7851_s0 + $0x214] sm:$0xf0]  ;;  %v5250_v54 = vld [vmem:[%s7851_s0 + $0x1e4] sm:$0xf] }
 0x1c3   :  { %3150 = vmatmul.bf16.gmra.mxu1 %v4001_v30  ;;  %v6607_v43 = vadd.f32 %v2832_v61, %v2744_v40  ;;  %v5515_v61 = vld [vmem:[%s7850_s1 + $0x328] sm:$0xff] }
 0x1c4   :  { %v2568_v42 = vpop.f32.mrf.mxu2  ;;  %3401 = vmatpush.bf16.msrb.mxu0 %v5515_v61  ;;  %v4110_v61 = vld [vmem:[%s7851_s0 + $0x218] sm:$0xf0] }
 0x1c5   :  { %v2657_v47 = vpop.f32.mrf.mxu3  ;;  %v2569_v53 = vadd.f32 %v2568_v42, %v6026_v27  ;;  %v5235_v27 = vld [vmem:[%s7851_s0 + $0x16c] sm:$0xf] }
 0x1c6   :  { %v2748_v52 = vpop.f32.mrf.mxu0  ;;  %v4049_v21 = vor.u32 %v5235_v27, %v4046_v63 }
 0x1c7   :  { %v2658_v49 = vadd.f32 %v2657_v47, %v2569_v53 }
 0x1c8   :  { %v2837_v58 = vpop.f32.mrf.mxu1 }
 0x1c9   :  { %v2747_v37 = vadd.f32 %v2746_v55, %v2658_v49  ;;  %v5520_v55 = vld [vmem:[%s7850_s1 + $0x350] sm:$0xff]  ;;  %v4100_v49 = vld [vmem:[%s7851_s0 + $0x1d8] sm:$0xf] }
 0x1ca   :  { %3493 = vmatpush.bf16.msrb.mxu1 %v5520_v55 }
 0x1cb   :  { %v6637_v8 = vadd.f32 %v2835_v38, %v2747_v37  ;;  %v4108_v37 = vld [vmem:[%s7851_s0 + $0x1e0] sm:$0xf] }
 0x1cc   :  { %v2570_v28 = vpop.f32.mrf.mxu2 }
 0x1cd   :  { %v2659_v13 = vpop.f32.mrf.mxu3  ;;  %v2571_v60 = vadd.f32 %v2570_v28, %v6057_v45  ;;  %v4109_v28 = vor.u32 %v5257_v16, %v4108_v37 }
 0x1ce   :  { %v2751_v6 = vpop.f32.mrf.mxu0 }
 0x1cf   :  { %v2660_v23 = vadd.f32 %v2659_v13, %v2571_v60  ;;  %v4113_v13 = vor.u32 %v5250_v54, %v4110_v61 }
 0x1d0   :  { %v2840_v30 = vpop.f32.mrf.mxu1 }
 0x1d1   :  { %v2749_v31 = vadd.f32 %v2748_v52, %v2660_v23  ;;  %2888 = vmatmul.bf16.gmra.mxu2 %v4045_v39  ;;  %3066 = vmatmul.bf16.gmra.mxu0 %v4053_v25  ;;  %v5256_v52 = vld [vmem:[%s7851_s0 + $0x20c] sm:$0xf0] }
 0x1d2   :  { %2977 = vmatmul.bf16.gmra.mxu3 %v4049_v21  ;;  %v4101_v7 = vor.u32 %v5256_v52, %v4100_v49  ;;  %v4164_v49 = vld [vmem:[%s7851_s0 + $0x250] sm:$0xf]  ;;  %v5271_v52 = vld [vmem:[%s7851_s0 + $0x284] sm:$0xf0] }
 0x1d3   :  { %3155 = vmatmul.bf16.gmra.mxu1 %v4057_v12  ;;  %v6643_v38 = vadd.f32 %v2837_v58, %v2749_v31  ;;  %v5249_v58 = vld [vmem:[%s7851_s0 + $0x1dc] sm:$0xf]  ;;  %v5498_v12 = vld [vmem:[%s7850_s1 + $0x2a0] sm:$0xff] }
 0x1d4   :  { %v2573_v45 = vpop.f32.mrf.mxu2  ;;  %3224 = vmatpush.bf16.msrb.mxu2 %v5498_v12 }
 0x1d5   :  { %v2662_v40 = vpop.f32.mrf.mxu3  ;;  %v2574_v41 = vadd.f32 %v2573_v45, %v6064_v57  ;;  %v4102_v57 = vld [vmem:[%s7851_s0 + $0x210] sm:$0xf0] }
 0x1d6   :  { %v2753_v42 = vpop.f32.mrf.mxu0  ;;  %v4105_v1 = vor.u32 %v5249_v58, %v4102_v57  ;;  %v5264_v58 = vld [vmem:[%s7851_s0 + $0x254] sm:$0xf]  ;;  %v4166_v57 = vld [vmem:[%s7851_s0 + $0x288] sm:$0xf0] }
 0x1d7   :  { %v2663_v15 = vadd.f32 %v2662_v40, %v2574_v41 }
 0x1d8   :  { %v2842_v47 = vpop.f32.mrf.mxu1 }
 0x1d9   :  { %v2752_v53 = vadd.f32 %v2751_v6, %v2663_v15  ;;  %v4156_v15 = vld [vmem:[%s7851_s0 + $0x248] sm:$0xf] }
 0x1db   :  { %v6670_v27 = vadd.f32 %v2840_v30, %v2752_v53  ;;  %v4158_v53 = vld [vmem:[%s7851_s0 + $0x280] sm:$0xf0] }
 0x1dc   :  { %v2575_v63 = vpop.f32.mrf.mxu2 }
 0x1dd   :  { %v2664_v3 = vpop.f32.mrf.mxu3  ;;  %v2576_v5 = vadd.f32 %v2575_v63, %v6092_v10  ;;  %v5506_v10 = vld [vmem:[%s7850_s1 + $0x2e0] sm:$0xff] }
 0x1de   :  { %v2756_v39 = vpop.f32.mrf.mxu0  ;;  %3313 = vmatpush.bf16.msrb.mxu3 %v5506_v10 }
 0x1df   :  { %v2665_v60 = vadd.f32 %v2664_v3, %v2576_v5  ;;  %v4165_v5 = vor.u32 %v5271_v52, %v4164_v49 }
 0x1e0   :  { %v2845_v21 = vpop.f32.mrf.mxu1 }
 0x1e1   :  { %v2754_v25 = vadd.f32 %v2753_v42, %v2665_v60  ;;  %2893 = vmatmul.bf16.gmra.mxu2 %v4101_v7  ;;  %3071 = vmatmul.bf16.gmra.mxu0 %v4109_v28  ;;  %v5270_v42 = vld [vmem:[%s7851_s0 + $0x27c] sm:$0xf0]  ;;  %v4169_v7 = vor.u32 %v5264_v58, %v4166_v57 }
 0x1e2   :  { %2982 = vmatmul.bf16.gmra.mxu3 %v4105_v1  ;;  %v4157_v63 = vor.u32 %v5270_v42, %v4156_v15  ;;  %v5278_v15 = vld [vmem:[%s7851_s0 + $0x2c4] sm:$0xf]  ;;  %v4222_v42 = vld [vmem:[%s7851_s0 + $0x2f8] sm:$0xf0] }
 0x1e3   :  { %3160 = vmatmul.bf16.gmra.mxu1 %v4113_v13  ;;  %v6679_v23 = vadd.f32 %v2842_v47, %v2754_v25  ;;  %v5514_v47 = vld [vmem:[%s7850_s1 + $0x320] sm:$0xff] }
 0x1e4   :  { %v2578_v6 = vpop.f32.mrf.mxu2  ;;  %3402 = vmatpush.bf16.msrb.mxu0 %v5514_v47 }
 0x1e5   :  { %v2667_v30 = vpop.f32.mrf.mxu3  ;;  %v2579_v31 = vadd.f32 %v2578_v6, %v6102_v24  ;;  %v5263_v24 = vld [vmem:[%s7851_s0 + $0x24c] sm:$0xf] }
 0x1e6   :  { %v2758_v45 = vpop.f32.mrf.mxu0  ;;  %v4161_v3 = vor.u32 %v5263_v24, %v4158_v53 }
 0x1e7   :  { %v2668_v55 = vadd.f32 %v2667_v30, %v2579_v31  ;;  %v4212_v31 = vld [vmem:[%s7851_s0 + $0x2b8] sm:$0xf] }
 0x1e8   :  { %v2847_v40 = vpop.f32.mrf.mxu1 }
 0x1e9   :  { %v2757_v41 = vadd.f32 %v2756_v39, %v2668_v55  ;;  %v5284_v55 = vld [vmem:[%s7851_s0 + $0x2ec] sm:$0xf0] }
 0x1ea   :  { %v4213_v52 = vor.u32 %v5284_v55, %v4212_v31  ;;  %v4276_v31 = vld [vmem:[%s7851_s0 + $0x330] sm:$0xf]  ;;  %v5299_v55 = vld [vmem:[%s7851_s0 + $0x364] sm:$0xf0] }
 0x1eb   :  { %v6709_v37 = vadd.f32 %v2845_v21, %v2757_v41  ;;  %v5285_v41 = vld [vmem:[%s7851_s0 + $0x2f4] sm:$0xf0] }
 0x1ec   :  { %v2580_v16 = vpop.f32.mrf.mxu2 }
 0x1ed   :  { %v2669_v54 = vpop.f32.mrf.mxu3  ;;  %v2581_v61 = vadd.f32 %v2580_v16, %v6133_v44  ;;  %v4225_v16 = vor.u32 %v5278_v15, %v4222_v42 }
 0x1ee   :  { %v2761_v28 = vpop.f32.mrf.mxu0 }
 0x1ef   :  { %v2670_v1 = vadd.f32 %v2669_v54, %v2581_v61 }
 0x1f0   :  { %v2850_v13 = vpop.f32.mrf.mxu1 }
 0x1f1   :  { %v2759_v60 = vadd.f32 %v2758_v45, %v2670_v1  ;;  %2898 = vmatmul.bf16.gmra.mxu2 %v4157_v63  ;;  %3076 = vmatmul.bf16.gmra.mxu0 %v4165_v5  ;;  %v5277_v45 = vld [vmem:[%s7851_s0 + $0x2bc] sm:$0xf] }
 0x1f2   :  { %2987 = vmatmul.bf16.gmra.mxu3 %v4161_v3  ;;  %v5497_v5 = vld [vmem:[%s7850_s1 + $0x298] sm:$0xff] }
 0x1f3   :  { %3165 = vmatmul.bf16.gmra.mxu1 %v4169_v7  ;;  %v6712_v39 = vadd.f32 %v2847_v40, %v2759_v60  ;;  %v4220_v40 = vld [vmem:[%s7851_s0 + $0x2c0] sm:$0xf]  ;;  %3225 = vmatpush.bf16.msrb.mxu2 %v5497_v5 }
 0x1f4   :  { %v2583_v21 = vpop.f32.mrf.mxu2  ;;  %v4221_v57 = vor.u32 %v5285_v41, %v4220_v40 }
 0x1f5   :  { %v2672_v25 = vpop.f32.mrf.mxu3  ;;  %v2584_v12 = vadd.f32 %v2583_v21, %v6140_v59  ;;  %v4214_v59 = vld [vmem:[%s7851_s0 + $0x2f0] sm:$0xf0] }
 0x1f6   :  { %v2763_v44 = vpop.f32.mrf.mxu0  ;;  %v4217_v58 = vor.u32 %v5277_v45, %v4214_v59  ;;  %v5292_v45 = vld [vmem:[%s7851_s0 + $0x334] sm:$0xf]  ;;  %v4278_v59 = vld [vmem:[%s7851_s0 + $0x368] sm:$0xf0] }
 0x1f7   :  { %v2673_v10 = vadd.f32 %v2672_v25, %v2584_v12 }
 0x1f8   :  { %v2852_v6 = vpop.f32.mrf.mxu1 }
 0x1f9   :  { %v2762_v30 = vadd.f32 %v2761_v28, %v2673_v10  ;;  %v4268_v10 = vld [vmem:[%s7851_s0 + $0x328] sm:$0xf] }
 0x1fb   :  { %v6739_v47 = vadd.f32 %v2850_v13, %v2762_v30  ;;  %v4270_v30 = vld [vmem:[%s7851_s0 + $0x360] sm:$0xf0] }
 0x1fc   :  { %v2585_v24 = vpop.f32.mrf.mxu2 }
 0x1fd   :  { %v2674_v53 = vpop.f32.mrf.mxu3  ;;  %v2586_v49 = vadd.f32 %v2585_v24, %v6168_v14  ;;  %v5505_v14 = vld [vmem:[%s7850_s1 + $0x2d8] sm:$0xff] }
 0x1fe   :  { %v2766_v61 = vpop.f32.mrf.mxu0  ;;  %3314 = vmatpush.bf16.msrb.mxu3 %v5505_v14 }
 0x1ff   :  { %v2675_v54 = vadd.f32 %v2674_v53, %v2586_v49  ;;  %v4277_v49 = vor.u32 %v5299_v55, %v4276_v31 }
 0x200   :  { %v2855_v63 = vpop.f32.mrf.mxu1 }
 0x201   :  { %v2764_v3 = vadd.f32 %v2763_v44, %v2675_v54  ;;  %2903 = vmatmul.bf16.gmra.mxu2 %v4213_v52  ;;  %3081 = vmatmul.bf16.gmra.mxu0 %v4221_v57  ;;  %v5298_v44 = vld [vmem:[%s7851_s0 + $0x35c] sm:$0xf0]  ;;  %v4281_v52 = vor.u32 %v5292_v45, %v4278_v59 }
 0x202   :  { %2992 = vmatmul.bf16.gmra.mxu3 %v4217_v58  ;;  %v4269_v24 = vor.u32 %v5298_v44, %v4268_v10  ;;  %v5313_v10 = vld [vmem:[%s7851_s0 + $0x3d4] sm:$0xf0]  ;;  %v5306_v44 = vld [vmem:[%s7851_s0 + $0x3a4] sm:$0xf] }
 0x203   :  { %3170 = vmatmul.bf16.gmra.mxu1 %v4225_v16  ;;  %v6748_v7 = vadd.f32 %v2852_v6, %v2764_v3  ;;  %v5513_v6 = vld [vmem:[%s7850_s1 + $0x318] sm:$0xff] }
 0x204   :  { %v2588_v1 = vpop.f32.mrf.mxu2  ;;  %3403 = vmatpush.bf16.msrb.mxu0 %v5513_v6  ;;  %v4334_v6 = vld [vmem:[%s7851_s0 + $0x3d8] sm:$0xf0] }
 0x205   :  { %v2677_v28 = vpop.f32.mrf.mxu3  ;;  %v2589_v13 = vadd.f32 %v2588_v1, %v6178_v33  ;;  %v5291_v33 = vld [vmem:[%s7851_s0 + $0x32c] sm:$0xf] }
 0x206   :  { %v2768_v21 = vpop.f32.mrf.mxu0  ;;  %v4273_v53 = vor.u32 %v5291_v33, %v4270_v30 }
 0x207   :  { %v2678_v60 = vadd.f32 %v2677_v28, %v2589_v13 }
 0x208   :  { %v2857_v25 = vpop.f32.mrf.mxu1 }
 0x209   :  { %v2767_v12 = vadd.f32 %v2766_v61, %v2678_v60  ;;  %v5519_v61 = vld [vmem:[%s7850_s1 + $0x348] sm:$0xff]  ;;  %v4324_v60 = vld [vmem:[%s7851_s0 + $0x398] sm:$0xf] }
 0x20a   :  { %3494 = vmatpush.bf16.msrb.mxu1 %v5519_v61 }
 0x20b   :  { %v6778_v40 = vadd.f32 %v2855_v63, %v2767_v12  ;;  %v4332_v12 = vld [vmem:[%s7851_s0 + $0x3a0] sm:$0xf] }
 0x20c   :  { %v2590_v41 = vpop.f32.mrf.mxu2 }
 0x20d   :  { %v2679_v15 = vpop.f32.mrf.mxu3  ;;  %v2591_v42 = vadd.f32 %v2590_v41, %v6209_v56  ;;  %v4333_v41 = vor.u32 %v5313_v10, %v4332_v12 }
 0x20e   :  { %v2771_v57 = vpop.f32.mrf.mxu0 }
 0x20f   :  { %v2680_v58 = vadd.f32 %v2679_v15, %v2591_v42  ;;  %v4337_v15 = vor.u32 %v5306_v44, %v4334_v6 }
 0x210   :  { %v2860_v16 = vpop.f32.mrf.mxu1 }
 0x211   :  { %v2769_v54 = vadd.f32 %v2768_v21, %v2680_v58  ;;  %2908 = vmatmul.bf16.gmra.mxu2 %v4269_v24  ;;  %3086 = vmatmul.bf16.gmra.mxu0 %v4277_v49  ;;  %v5312_v21 = vld [vmem:[%s7851_s0 + $0x3cc] sm:$0xf0] }
 0x212   :  { %2997 = vmatmul.bf16.gmra.mxu3 %v4273_v53  ;;  %v4325_v45 = vor.u32 %v5312_v21, %v4324_v60  ;;  %v4388_v60 = vld [vmem:[%s7851_s0 + $0x410] sm:$0xf]  ;;  %v5327_v21 = vld [vmem:[%s7851_s0 + $0x444] sm:$0xf0] }
 0x213   :  { %3175 = vmatmul.bf16.gmra.mxu1 %v4281_v52  ;;  %v6784_v63 = vadd.f32 %v2857_v25, %v2769_v54  ;;  %v5305_v25 = vld [vmem:[%s7851_s0 + $0x39c] sm:$0xf]  ;;  %v5496_v52 = vld [vmem:[%s7850_s1 + $0x290] sm:$0xff] }
 0x214   :  { %v2593_v56 = vpop.f32.mrf.mxu2  ;;  %3226 = vmatpush.bf16.msrb.mxu2 %v5496_v52 }
 0x215   :  { %v2682_v3 = vpop.f32.mrf.mxu3  ;;  %v2594_v5 = vadd.f32 %v2593_v56, %v6216_v11  ;;  %v4326_v11 = vld [vmem:[%s7851_s0 + $0x3d0] sm:$0xf0] }
 0x216   :  { %v2773_v1 = vpop.f32.mrf.mxu0  ;;  %v4329_v59 = vor.u32 %v5305_v25, %v4326_v11  ;;  %v5320_v25 = vld [vmem:[%s7851_s0 + $0x414] sm:$0xf]  ;;  %v4390_v11 = vld [vmem:[%s7851_s0 + $0x448] sm:$0xf0] }
 0x217   :  { %v2683_v14 = vadd.f32 %v2682_v3, %v2594_v5 }
 0x218   :  { %v2862_v28 = vpop.f32.mrf.mxu1 }
 0x219   :  { %v2772_v13 = vadd.f32 %v2771_v57, %v2683_v14  ;;  %v4380_v14 = vld [vmem:[%s7851_s0 + $0x408] sm:$0xf] }
 0x21b   :  { %v6811_v33 = vadd.f32 %v2860_v16, %v2772_v13  ;;  %v4382_v13 = vld [vmem:[%s7851_s0 + $0x440] sm:$0xf0] }
 0x21c   :  { %v2595_v30 = vpop.f32.mrf.mxu2 }
 0x21d   :  { %v2684_v31 = vpop.f32.mrf.mxu3  ;;  %v2596_v55 = vadd.f32 %v2595_v30, %v6244_v36  ;;  %v5504_v36 = vld [vmem:[%s7850_s1 + $0x2d0] sm:$0xff] }
 0x21e   :  { %v3052_v24 = vpop.f32.mrf.mxu0  ;;  %3315 = vmatpush.bf16.msrb.mxu3 %v5504_v36 }
 0x21f   :  { %v2685_v42 = vadd.f32 %v2684_v31, %v2596_v55  ;;  %v4389_v55 = vor.u32 %v5327_v21, %v4388_v60 }
 0x220   :  { %v3141_v53 = vpop.f32.mrf.mxu1 }
 0x221   :  { %v2774_v49 = vadd.f32 %v2773_v1, %v2685_v42  ;;  %2913 = vmatmul.bf16.gmra.mxu2 %v4325_v45  ;;  %3091 = vmatmul.bf16.gmra.mxu0 %v4333_v41  ;;  %v5326_v1 = vld [vmem:[%s7851_s0 + $0x43c] sm:$0xf0]  ;;  %v4393_v45 = vor.u32 %v5320_v25, %v4390_v11 }
 0x222   :  { %3002 = vmatmul.bf16.gmra.mxu3 %v4329_v59  ;;  %v4381_v30 = vor.u32 %v5326_v1, %v4380_v14  ;;  %v5334_v14 = vld [vmem:[%s7851_s0 + $0x484] sm:$0xf]  ;;  %v4446_v1 = vld [vmem:[%s7851_s0 + $0x4b8] sm:$0xf0] }
 0x223   :  { %3180 = vmatmul.bf16.gmra.mxu1 %v4337_v15  ;;  %v6820_v58 = vadd.f32 %v2862_v28, %v2774_v49  ;;  %v5512_v28 = vld [vmem:[%s7850_s1 + $0x310] sm:$0xff] }
 0x224   :  { %v2874_v57 = vpop.f32.mrf.mxu2  ;;  %3404 = vmatpush.bf16.msrb.mxu0 %v5512_v28 }
 0x225   :  { %v2963_v16 = vpop.f32.mrf.mxu3  ;;  %v2875_v54 = vadd.f32 %v2874_v57, %v6280_v19  ;;  %v5319_v19 = vld [vmem:[%s7851_s0 + $0x40c] sm:$0xf] }
 0x226   :  { %v3054_v56 = vpop.f32.mrf.mxu0  ;;  %v4385_v31 = vor.u32 %v5319_v19, %v4382_v13 }
 0x227   :  { %v2964_v61 = vadd.f32 %v2963_v16, %v2875_v54  ;;  %v4436_v54 = vld [vmem:[%s7851_s0 + $0x478] sm:$0xf] }
 0x228   :  { %v3143_v3 = vpop.f32.mrf.mxu1 }
 0x229   :  { %v3053_v5 = vadd.f32 %v3052_v24, %v2964_v61  ;;  %v5340_v61 = vld [vmem:[%s7851_s0 + $0x4ac] sm:$0xf0] }
 0x22a   :  { %v4437_v21 = vor.u32 %v5340_v61, %v4436_v54  ;;  %v4500_v54 = vld [vmem:[%s7851_s0 + $0x4f0] sm:$0xf]  ;;  %v5355_v61 = vld [vmem:[%s7851_s0 + $0x524] sm:$0xf0] }
 0x22b   :  { %v6850_v12 = vadd.f32 %v3141_v53, %v3053_v5  ;;  %v5341_v5 = vld [vmem:[%s7851_s0 + $0x4b4] sm:$0xf0] }
 0x22c   :  { %v2876_v10 = vpop.f32.mrf.mxu2 }
 0x22d   :  { %v2965_v44 = vpop.f32.mrf.mxu3  ;;  %v2877_v6 = vadd.f32 %v2876_v10, %v6286_v46  ;;  %v4449_v10 = vor.u32 %v5334_v14, %v4446_v1 }
 0x22e   :  { %v3057_v41 = vpop.f32.mrf.mxu0 }
 0x22f   :  { %v2966_v59 = vadd.f32 %v2965_v44, %v2877_v6 }
 0x230   :  { %v3146_v15 = vpop.f32.mrf.mxu1 }
 0x231   :  { %v3055_v42 = vadd.f32 %v3054_v56, %v2966_v59  ;;  %2918 = vmatmul.bf16.gmra.mxu2 %v4381_v30  ;;  %3096 = vmatmul.bf16.gmra.mxu0 %v4389_v55  ;;  %v5333_v56 = vld [vmem:[%s7851_s0 + $0x47c] sm:$0xf]  ;;  %v5495_v55 = vld [vmem:[%s7850_s1 + $0x288] sm:$0xff] }
 0x232   :  { %3007 = vmatmul.bf16.gmra.mxu3 %v4385_v31  ;;  %3227 = vmatpush.bf16.msrb.mxu2 %v5495_v55 }
 0x233   :  { %3185 = vmatmul.bf16.gmra.mxu1 %v4393_v45  ;;  %v6853_v24 = vadd.f32 %v3143_v3, %v3055_v42  ;;  %v4444_v3 = vld [vmem:[%s7851_s0 + $0x480] sm:$0xf] }
 0x234   :  { %v2879_v53 = vpop.f32.mrf.mxu2  ;;  %v4445_v11 = vor.u32 %v5341_v5, %v4444_v3 }
 0x235   :  { %v2968_v49 = vpop.f32.mrf.mxu3  ;;  %v2880_v52 = vadd.f32 %v2879_v53, %v6313_v34  ;;  %v4438_v34 = vld [vmem:[%s7851_s0 + $0x4b0] sm:$0xf0] }
 0x236   :  { %v3059_v46 = vpop.f32.mrf.mxu0  ;;  %v4441_v25 = vor.u32 %v5333_v56, %v4438_v34  ;;  %v5348_v56 = vld [vmem:[%s7851_s0 + $0x4f4] sm:$0xf]  ;;  %v4502_v34 = vld [vmem:[%s7851_s0 + $0x528] sm:$0xf0] }
 0x237   :  { %v2969_v36 = vadd.f32 %v2968_v49, %v2880_v52 }
 0x238   :  { %v3148_v57 = vpop.f32.mrf.mxu1 }
 0x239   :  { %v3058_v16 = vadd.f32 %v3057_v41, %v2969_v36  ;;  %v4492_v36 = vld [vmem:[%s7851_s0 + $0x4e8] sm:$0xf] }
 0x23b   :  { %v6880_v28 = vadd.f32 %v3146_v15, %v3058_v16  ;;  %v4494_v16 = vld [vmem:[%s7851_s0 + $0x520] sm:$0xf0] }
 0x23c   :  { %v2881_v19 = vpop.f32.mrf.mxu2 }
 0x23d   :  { %v2970_v13 = vpop.f32.mrf.mxu3  ;;  %v2882_v60 = vadd.f32 %v2881_v19, %v6322_v35  ;;  %v5503_v35 = vld [vmem:[%s7850_s1 + $0x2c8] sm:$0xff] }
 0x23e   :  { %v3062_v6 = vpop.f32.mrf.mxu0  ;;  %3316 = vmatpush.bf16.msrb.mxu3 %v5503_v35 }
 0x23f   :  { %v2971_v44 = vadd.f32 %v2970_v13, %v2882_v60  ;;  %v4501_v60 = vor.u32 %v5355_v61, %v4500_v54 }
 0x240   :  { %v3151_v30 = vpop.f32.mrf.mxu1 }
 0x241   :  { %v3060_v31 = vadd.f32 %v3059_v46, %v2971_v44  ;;  %2923 = vmatmul.bf16.gmra.mxu2 %v4437_v21  ;;  %3101 = vmatmul.bf16.gmra.mxu0 %v4445_v11  ;;  %v5354_v46 = vld [vmem:[%s7851_s0 + $0x51c] sm:$0xf0]  ;;  %v4505_v21 = vor.u32 %v5348_v56, %v4502_v34 }
 0x242   :  { %3012 = vmatmul.bf16.gmra.mxu3 %v4441_v25  ;;  %v4493_v19 = vor.u32 %v5354_v46, %v4492_v36  ;;  %v5369_v36 = vld [vmem:[%s7851_s0 + $0x594] sm:$0xf0]  ;;  %v5362_v46 = vld [vmem:[%s7851_s0 + $0x564] sm:$0xf] }
 0x243   :  { %3190 = vmatmul.bf16.gmra.mxu1 %v4449_v10  ;;  %v6889_v45 = vadd.f32 %v3148_v57, %v3060_v31  ;;  %v5511_v57 = vld [vmem:[%s7850_s1 + $0x308] sm:$0xff] }
 0x244   :  { %v2884_v59 = vpop.f32.mrf.mxu2  ;;  %3405 = vmatpush.bf16.msrb.mxu0 %v5511_v57  ;;  %v4558_v57 = vld [vmem:[%s7851_s0 + $0x598] sm:$0xf0] }
 0x245   :  { %v2973_v41 = vpop.f32.mrf.mxu3  ;;  %v2885_v15 = vadd.f32 %v2884_v59, %v6352_v2  ;;  %v5347_v2 = vld [vmem:[%s7851_s0 + $0x4ec] sm:$0xf] }
 0x246   :  { %v3064_v53 = vpop.f32.mrf.mxu0  ;;  %v4497_v13 = vor.u32 %v5347_v2, %v4494_v16 }
 0x247   :  { %v2974_v42 = vadd.f32 %v2973_v41, %v2885_v15 }
 0x248   :  { %v3153_v49 = vpop.f32.mrf.mxu1 }
 0x249   :  { %v3063_v52 = vadd.f32 %v3062_v6, %v2974_v42  ;;  %v5518_v6 = vld [vmem:[%s7850_s1 + $0x340] sm:$0xff]  ;;  %v4548_v42 = vld [vmem:[%s7851_s0 + $0x558] sm:$0xf] }
 0x24a   :  { %3495 = vmatpush.bf16.msrb.mxu1 %v5518_v6 }
 0x24b   :  { %v6919_v3 = vadd.f32 %v3151_v30, %v3063_v52  ;;  %v4556_v52 = vld [vmem:[%s7851_s0 + $0x560] sm:$0xf] }
 0x24c   :  { %v2886_v5 = vpop.f32.mrf.mxu2 }
 0x24d   :  { %v2975_v14 = vpop.f32.mrf.mxu3  ;;  %v2887_v1 = vadd.f32 %v2886_v5, %v6358_v29  ;;  %v4557_v5 = vor.u32 %v5369_v36, %v4556_v52 }
 0x24e   :  { %v3067_v11 = vpop.f32.mrf.mxu0 }
 0x24f   :  { %v2976_v25 = vadd.f32 %v2975_v14, %v2887_v1  ;;  %v4561_v14 = vor.u32 %v5362_v46, %v4558_v57 }
 0x250   :  { %v3156_v10 = vpop.f32.mrf.mxu1 }
 0x251   :  { %v3065_v44 = vadd.f32 %v3064_v53, %v2976_v25  ;;  %2928 = vmatmul.bf16.gmra.mxu2 %v4493_v19  ;;  %3106 = vmatmul.bf16.gmra.mxu0 %v4501_v60  ;;  %v5368_v53 = vld [vmem:[%s7851_s0 + $0x58c] sm:$0xf0] }
 0x252   :  { %3017 = vmatmul.bf16.gmra.mxu3 %v4497_v13  ;;  %v4549_v56 = vor.u32 %v5368_v53, %v4548_v42  ;;  %v4612_v42 = vld [vmem:[%s7851_s0 + $0x5d0] sm:$0xf]  ;;  %v5383_v53 = vld [vmem:[%s7851_s0 + $0x604] sm:$0xf0] }
 0x253   :  { %3195 = vmatmul.bf16.gmra.mxu1 %v4505_v21  ;;  %v6925_v30 = vadd.f32 %v3153_v49, %v3065_v44  ;;  %v5361_v49 = vld [vmem:[%s7851_s0 + $0x55c] sm:$0xf]  ;;  %v5494_v21 = vld [vmem:[%s7850_s1 + $0x280] sm:$0xff] }
 0x254   :  { %v2889_v29 = vpop.f32.mrf.mxu2  ;;  %3228 = vmatpush.bf16.msrb.mxu2 %v5494_v21 }
 0x255   :  { %v2978_v31 = vpop.f32.mrf.mxu3  ;;  %v2890_v55 = vadd.f32 %v2889_v29, %v6385_v22  ;;  %v4550_v22 = vld [vmem:[%s7851_s0 + $0x590] sm:$0xf0] }
 0x256   :  { %v3069_v59 = vpop.f32.mrf.mxu0  ;;  %v4553_v34 = vor.u32 %v5361_v49, %v4550_v22  ;;  %v5376_v49 = vld [vmem:[%s7851_s0 + $0x5d4] sm:$0xf]  ;;  %v4614_v22 = vld [vmem:[%s7851_s0 + $0x608] sm:$0xf0] }
 0x257   :  { %v2979_v35 = vadd.f32 %v2978_v31, %v2890_v55 }
 0x258   :  { %v3158_v41 = vpop.f32.mrf.mxu1 }
 0x259   :  { %v3068_v15 = vadd.f32 %v3067_v11, %v2979_v35  ;;  %v4604_v35 = vld [vmem:[%s7851_s0 + $0x5c8] sm:$0xf] }
 0x25b   :  { %v6952_v2 = vadd.f32 %v3156_v10, %v3068_v15  ;;  %v4606_v15 = vld [vmem:[%s7851_s0 + $0x600] sm:$0xf0] }
 0x25c   :  { %v2891_v16 = vpop.f32.mrf.mxu2 }
 0x25d   :  { %v2980_v54 = vpop.f32.mrf.mxu3  ;;  %v2892_v61 = vadd.f32 %v2891_v16, %v6394_v17  ;;  %v5502_v17 = vld [vmem:[%s7850_s1 + $0x2c0] sm:$0xff] }
 0x25e   :  { %v3072_v19 = vpop.f32.mrf.mxu0  ;;  %3317 = vmatpush.bf16.msrb.mxu3 %v5502_v17 }
 0x25f   :  { %v2981_v1 = vadd.f32 %v2980_v54, %v2892_v61  ;;  %v4613_v61 = vor.u32 %v5383_v53, %v4612_v42 }
 0x260   :  { %v3161_v13 = vpop.f32.mrf.mxu1 }
 0x261   :  { %v3070_v60 = vadd.f32 %v3069_v59, %v2981_v1  ;;  %2933 = vmatmul.bf16.gmra.mxu2 %v4549_v56  ;;  %3111 = vmatmul.bf16.gmra.mxu0 %v4557_v5  ;;  %v5382_v59 = vld [vmem:[%s7851_s0 + $0x5fc] sm:$0xf0]  ;;  %v4617_v56 = vor.u32 %v5376_v49, %v4614_v22 }
 0x262   :  { %3022 = vmatmul.bf16.gmra.mxu3 %v4553_v34  ;;  %v4605_v16 = vor.u32 %v5382_v59, %v4604_v35  ;;  %v5390_v35 = vld [vmem:[%s7851_s0 + $0x644] sm:$0xf]  ;;  %v4670_v59 = vld [vmem:[%s7851_s0 + $0x678] sm:$0xf0] }
 0x263   :  { %3200 = vmatmul.bf16.gmra.mxu1 %v4561_v14  ;;  %v6961_v25 = vadd.f32 %v3158_v41, %v3070_v60  ;;  %v5510_v41 = vld [vmem:[%s7850_s1 + $0x300] sm:$0xff] }
 0x264   :  { %v2894_v11 = vpop.f32.mrf.mxu2  ;;  %3406 = vmatpush.bf16.msrb.mxu0 %v5510_v41 }
 0x265   :  { %v2983_v10 = vpop.f32.mrf.mxu3  ;;  %v2895_v44 = vadd.f32 %v2894_v11, %v6424_v48  ;;  %v5375_v48 = vld [vmem:[%s7851_s0 + $0x5cc] sm:$0xf] }
 0x266   :  { %v3074_v29 = vpop.f32.mrf.mxu0  ;;  %v4609_v54 = vor.u32 %v5375_v48, %v4606_v15 }
 0x267   :  { %v2984_v6 = vadd.f32 %v2983_v10, %v2895_v44  ;;  %v4660_v44 = vld [vmem:[%s7851_s0 + $0x638] sm:$0xf] }
 0x268   :  { %v3163_v31 = vpop.f32.mrf.mxu1 }
 0x269   :  { %v3073_v55 = vadd.f32 %v3072_v19, %v2984_v6  ;;  %v5396_v6 = vld [vmem:[%s7851_s0 + $0x66c] sm:$0xf0] }
 0x26a   :  { %v4661_v53 = vor.u32 %v5396_v6, %v4660_v44  ;;  %v4726_v44 = vld [vmem:[%s7851_s0 + $0x6e8] sm:$0xf0] }
 0x26b   :  { %v6991_v52 = vadd.f32 %v3161_v13, %v3073_v55  ;;  %v5397_v55 = vld [vmem:[%s7851_s0 + $0x674] sm:$0xf0] }
 0x26c   :  { %v2896_v36 = vpop.f32.mrf.mxu2 }
 0x26d   :  { %v2985_v46 = vpop.f32.mrf.mxu3  ;;  %v2897_v57 = vadd.f32 %v2896_v36, %v6430_v9  ;;  %v4673_v36 = vor.u32 %v5390_v35, %v4670_v59 }
 0x26e   :  { %v3077_v5 = vpop.f32.mrf.mxu0 }
 0x26f   :  { %v2986_v34 = vadd.f32 %v2985_v46, %v2897_v57 }
 0x270   :  { %v3166_v14 = vpop.f32.mrf.mxu1 }
 0x271   :  { %v3075_v1 = vadd.f32 %v3074_v29, %v2986_v34  ;;  %2938 = vmatmul.bf16.gmra.mxu2 %v4605_v16  ;;  %3116 = vmatmul.bf16.gmra.mxu0 %v4613_v61  ;;  %v5389_v29 = vld [vmem:[%s7851_s0 + $0x63c] sm:$0xf] }
 0x272   :  { %3027 = vmatmul.bf16.gmra.mxu3 %v4609_v54 }
 0x273   :  { %3205 = vmatmul.bf16.gmra.mxu1 %v4617_v56  ;;  %v6994_v19 = vadd.f32 %v3163_v31, %v3075_v1  ;;  %v4668_v31 = vld [vmem:[%s7851_s0 + $0x640] sm:$0xf] }
 0x274   :  { %v2899_v13 = vpop.f32.mrf.mxu2  ;;  %v4669_v22 = vor.u32 %v5397_v55, %v4668_v31 }
 0x275   :  { %v2988_v60 = vpop.f32.mrf.mxu3  ;;  %v2900_v21 = vadd.f32 %v2899_v13, %v6457_v18  ;;  %v4662_v18 = vld [vmem:[%s7851_s0 + $0x670] sm:$0xf0] }
 0x276   :  { %v3079_v9 = vpop.f32.mrf.mxu0  ;;  %v4665_v49 = vor.u32 %v5389_v29, %v4662_v18 }
 0x277   :  { %v2989_v17 = vadd.f32 %v2988_v60, %v2900_v21  ;;  %v4716_v60 = vld [vmem:[%s7851_s0 + $0x6a8] sm:$0xf]  ;;  %v5410_v21 = vld [vmem:[%s7851_s0 + $0x6dc] sm:$0xf0] }
 0x278   :  { %v3168_v11 = vpop.f32.mrf.mxu1  ;;  %v4717_v55 = vor.u32 %v5410_v21, %v4716_v60  ;;  %v3902_v60 = vld [vmem:[%s7851_s0 + $0x68] sm:$0xf0] }
 0x279   :  { %v3078_v10 = vadd.f32 %v3077_v5, %v2989_v17  ;;  %v5403_v17 = vld [vmem:[%s7851_s0 + $0x6ac] sm:$0xf] }
 0x27b   :  { %v7021_v41 = vadd.f32 %v3166_v14, %v3078_v10  ;;  %v5404_v10 = vld [vmem:[%s7851_s0 + $0x6b4] sm:$0xf] }
 0x27c   :  { %v2901_v48 = vpop.f32.mrf.mxu2 }
 0x27d   :  { %v2990_v15 = vpop.f32.mrf.mxu3  ;;  %v2902_v42 = vadd.f32 %v2901_v48, %v6466_v62  ;;  %v4729_v48 = vor.u32 %v5404_v10, %v4726_v44 }
 0x27e   :  { %v3082_v57 = vpop.f32.mrf.mxu0 }
 0x27f   :  { %v2991_v46 = vadd.f32 %v2990_v15, %v2902_v42 }
 0x280   :  { %v3171_v16 = vpop.f32.mrf.mxu1 }
 0x281   :  { %v3080_v54 = vadd.f32 %v3079_v9, %v2991_v46  ;;  %2943 = vmatmul.bf16.gmra.mxu2 %v4661_v53  ;;  %3121 = vmatmul.bf16.gmra.mxu0 %v4669_v22  ;;  %v4724_v9 = vld [vmem:[%s7851_s0 + $0x6b0] sm:$0xf] }
 0x282   :  { %3032 = vmatmul.bf16.gmra.mxu3 %v4665_v49 }
 0x283   :  { %3210 = vmatmul.bf16.gmra.mxu1 %v4673_v36  ;;  %v7024_v61 = vadd.f32 %v3168_v11, %v3080_v54  ;;  %v5411_v11 = vld [vmem:[%s7851_s0 + $0x6e4] sm:$0xf0] }
 0x284   :  { %v2904_v56 = vpop.f32.mrf.mxu2  ;;  %v4725_v59 = vor.u32 %v5411_v11, %v4724_v9 }
 0x285   :  { %v2993_v34 = vpop.f32.mrf.mxu3  ;;  %v2905_v5 = vadd.f32 %v2904_v56, %v6496_v32  ;;  %v4718_v32 = vld [vmem:[%s7851_s0 + $0x6e0] sm:$0xf0] }
 0x286   :  { %v3084_v62 = vpop.f32.mrf.mxu0  ;;  %v4721_v35 = vor.u32 %v5403_v17, %v4718_v32 }
 0x287   :  { %v2994_v14 = vadd.f32 %v2993_v34, %v2905_v5  ;;  %v3892_v34 = vld [vmem:[%s7851_s0 + $0x28] sm:$0xf]  ;;  %v5202_v5 = vld [vmem:[%s7851_s0 + $0x5c] sm:$0xf0] }
 0x288   :  { %v3173_v1 = vpop.f32.mrf.mxu1  ;;  %v3893_v11 = vor.u32 %v5202_v5, %v3892_v34  ;;  %v3958_v34 = vld [vmem:[%s7851_s0 + $0xd8] sm:$0xf0] }
 0x289   :  { %v3083_v13 = vadd.f32 %v3082_v57, %v2994_v14  ;;  %v5195_v14 = vld [vmem:[%s7851_s0 + $0x2c] sm:$0xf] }
 0x28b   :  { %v7051_v6 = vadd.f32 %v3171_v16, %v3083_v13  ;;  %v5196_v13 = vld [vmem:[%s7851_s0 + $0x34] sm:$0xf] }
 0x28c   :  { %v2906_v29 = vpop.f32.mrf.mxu2 }
 0x28d   :  { %v2995_v18 = vpop.f32.mrf.mxu3  ;;  %v2907_v31 = vadd.f32 %v2906_v29, %v6502_v0  ;;  %v3905_v29 = vor.u32 %v5196_v13, %v3902_v60 }
 0x28e   :  { %v3087_v42 = vpop.f32.mrf.mxu0 }
 0x28f   :  { %v2996_v15 = vadd.f32 %v2995_v18, %v2907_v31 }
 0x290   :  { %v3176_v53 = vpop.f32.mrf.mxu1 }
 0x291   :  { %v3085_v49 = vadd.f32 %v3084_v62, %v2996_v15  ;;  %2948 = vmatmul.bf16.gmra.mxu2 %v4717_v55  ;;  %3126 = vmatmul.bf16.gmra.mxu0 %v4725_v59  ;;  %v3900_v62 = vld [vmem:[%s7851_s0 + $0x30] sm:$0xf] }
 0x292   :  { %3037 = vmatmul.bf16.gmra.mxu3 %v4721_v35 }
 0x293   :  { %3215 = vmatmul.bf16.gmra.mxu1 %v4729_v48  ;;  %v7054_v22 = vadd.f32 %v3173_v1, %v3085_v49  ;;  %v5203_v1 = vld [vmem:[%s7851_s0 + $0x64] sm:$0xf0] }
 0x294   :  { %v2909_v36 = vpop.f32.mrf.mxu2  ;;  %v3901_v44 = vor.u32 %v5203_v1, %v3900_v62 }
 0x295   :  { %v2998_v46 = vpop.f32.mrf.mxu3  ;;  %v2910_v57 = vadd.f32 %v2909_v36, %v6529_v4  ;;  %v3894_v4 = vld [vmem:[%s7851_s0 + $0x60] sm:$0xf0] }
 0x296   :  { %v3089_v0 = vpop.f32.mrf.mxu0  ;;  %v3897_v10 = vor.u32 %v5195_v14, %v3894_v4 }
 0x297   :  { %v2999_v16 = vadd.f32 %v2998_v46, %v2910_v57  ;;  %v3948_v46 = vld [vmem:[%s7851_s0 + $0x98] sm:$0xf]  ;;  %v5216_v57 = vld [vmem:[%s7851_s0 + $0xcc] sm:$0xf0] }
 0x298   :  { %v3178_v54 = vpop.f32.mrf.mxu1  ;;  %v3949_v1 = vor.u32 %v5216_v57, %v3948_v46  ;;  %v4014_v46 = vld [vmem:[%s7851_s0 + $0x148] sm:$0xf0] }
 0x299   :  { %v3088_v56 = vadd.f32 %v3087_v42, %v2999_v16  ;;  %v5209_v16 = vld [vmem:[%s7851_s0 + $0x9c] sm:$0xf] }
 0x29b   :  { %v7081_v21 = vadd.f32 %v3176_v53, %v3088_v56  ;;  %v5210_v56 = vld [vmem:[%s7851_s0 + $0xa4] sm:$0xf] }
 0x29c   :  { %v2911_v17 = vpop.f32.mrf.mxu2 }
 0x29d   :  { %v3000_v32 = vpop.f32.mrf.mxu3  ;;  %v2912_v9 = vadd.f32 %v2911_v17, %v6538_v50  ;;  %v3961_v17 = vor.u32 %v5210_v56, %v3958_v34 }
 0x29e   :  { %v3092_v31 = vpop.f32.mrf.mxu0 }
 0x29f   :  { %v3001_v18 = vadd.f32 %v3000_v32, %v2912_v9 }
 0x2a0   :  { %v3181_v55 = vpop.f32.mrf.mxu1 }
 0x2a1   :  { %v3090_v35 = vadd.f32 %v3089_v0, %v3001_v18  ;;  %3229 = vmatmul.bf16.vlgmr.msrb.gmra.mxu2 %v3893_v11  ;;  %3407 = vmatmul.bf16.vlgmr.msrb.gmra.mxu0 %v3901_v44  ;;  %v3956_v0 = vld [vmem:[%s7851_s0 + $0xa0] sm:$0xf] }
 0x2a2   :  { %3318 = vmatmul.bf16.vlgmr.msrb.gmra.mxu3 %v3897_v10 }
 0x2a3   :  { %5174 = vmatmul.msk.bf16.vlgmr.msrb.gmra.mxu1 %vm2275_vm2, %v3905_v29  ;;  %v7085_v59 = vadd.f32 %v3178_v54, %v3090_v35  ;;  %v5217_v54 = vld [vmem:[%s7851_s0 + $0xd4] sm:$0xf0] }
 0x2a4   :  { %v2914_v48 = vpop.f32.mrf.mxu2  ;;  %v3957_v60 = vor.u32 %v5217_v54, %v3956_v0 }
 0x2a5   :  { %v3003_v15 = vpop.f32.mrf.mxu3  ;;  %v2915_v50 = vadd.f32 %v2914_v48, %v6568_v26  ;;  %v3950_v26 = vld [vmem:[%s7851_s0 + $0xd0] sm:$0xf0] }
 0x2a6   :  { %v3094_v53 = vpop.f32.mrf.mxu0  ;;  %v3953_v13 = vor.u32 %v5209_v16, %v3950_v26 }
 0x2a7   :  { %v3004_v42 = vadd.f32 %v3003_v15, %v2915_v50  ;;  %v4004_v15 = vld [vmem:[%s7851_s0 + $0x108] sm:$0xf]  ;;  %v5230_v50 = vld [vmem:[%s7851_s0 + $0x13c] sm:$0xf0] }
 0x2a8   :  { %v3183_v49 = vpop.f32.mrf.mxu1  ;;  %v4005_v54 = vor.u32 %v5230_v50, %v4004_v15  ;;  %v4070_v15 = vld [vmem:[%s7851_s0 + $0x1b8] sm:$0xf0] }
 0x2a9   :  { %v3093_v36 = vadd.f32 %v3092_v31, %v3004_v42  ;;  %v5223_v42 = vld [vmem:[%s7851_s0 + $0x10c] sm:$0xf] }
 0x2ab   :  { %v7112_v5 = vadd.f32 %v3181_v55, %v3093_v36  ;;  %v5224_v36 = vld [vmem:[%s7851_s0 + $0x114] sm:$0xf] }
 0x2ac   :  { %v2916_v14 = vpop.f32.mrf.mxu2 }
 0x2ad   :  { %v3005_v4 = vpop.f32.mrf.mxu3  ;;  %v2917_v62 = vadd.f32 %v2916_v14, %v6571_v51  ;;  %v4017_v14 = vor.u32 %v5224_v36, %v4014_v46 }
 0x2ae   :  { %v3097_v9 = vpop.f32.mrf.mxu0 }
 0x2af   :  { %v3006_v32 = vadd.f32 %v3005_v4, %v2917_v62 }
 0x2b0   :  { %v3186_v11 = vpop.f32.mrf.mxu1 }
 0x2b1   :  { %v3095_v10 = vadd.f32 %v3094_v53, %v3006_v32  ;;  %3234 = vmatmul.bf16.gmra.mxu2 %v3949_v1  ;;  %3412 = vmatmul.bf16.gmra.mxu0 %v3957_v60  ;;  %v4012_v53 = vld [vmem:[%s7851_s0 + $0x110] sm:$0xf] }
 0x2b2   :  { %3323 = vmatmul.bf16.gmra.mxu3 %v3953_v13 }
 0x2b3   :  { %5175 = vmatmul.msk.bf16.gmra.mxu1 %vm2275_vm2, %v3961_v17  ;;  %v7116_v44 = vadd.f32 %v3183_v49, %v3095_v10  ;;  %v5231_v49 = vld [vmem:[%s7851_s0 + $0x144] sm:$0xf0] }
 0x2b4   :  { %v2919_v29 = vpop.f32.mrf.mxu2  ;;  %v4013_v34 = vor.u32 %v5231_v49, %v4012_v53 }
 0x2b5   :  { %v3008_v18 = vpop.f32.mrf.mxu3  ;;  %v2920_v31 = vadd.f32 %v2919_v29, %v6598_v20  ;;  %v4006_v20 = vld [vmem:[%s7851_s0 + $0x140] sm:$0xf0] }
 0x2b6   :  { %v3099_v55 = vpop.f32.mrf.mxu0  ;;  %v4009_v56 = vor.u32 %v5223_v42, %v4006_v20 }
 0x2b7   :  { %v3009_v51 = vadd.f32 %v3008_v18, %v2920_v31  ;;  %v4060_v18 = vld [vmem:[%s7851_s0 + $0x178] sm:$0xf]  ;;  %v5244_v31 = vld [vmem:[%s7851_s0 + $0x1ac] sm:$0xf0] }
 0x2b8   :  { %v3188_v35 = vpop.f32.mrf.mxu1  ;;  %v4061_v49 = vor.u32 %v5244_v31, %v4060_v18  ;;  %v4126_v18 = vld [vmem:[%s7851_s0 + $0x228] sm:$0xf0] }
 0x2b9   :  { %v3098_v48 = vadd.f32 %v3097_v9, %v3009_v51  ;;  %v5237_v51 = vld [vmem:[%s7851_s0 + $0x17c] sm:$0xf] }
 0x2bb   :  { %v7143_v57 = vadd.f32 %v3186_v11, %v3098_v48  ;;  %v5238_v48 = vld [vmem:[%s7851_s0 + $0x184] sm:$0xf] }
 0x2bc   :  { %v2921_v16 = vpop.f32.mrf.mxu2 }
 0x2bd   :  { %v3010_v26 = vpop.f32.mrf.mxu3  ;;  %v2922_v0 = vadd.f32 %v2921_v16, %v6607_v43  ;;  %v4073_v16 = vor.u32 %v5238_v48, %v4070_v15 }
 0x2be   :  { %v3102_v62 = vpop.f32.mrf.mxu0 }
 0x2bf   :  { %v3011_v4 = vadd.f32 %v3010_v26, %v2922_v0 }
 0x2c0   :  { %v3191_v1 = vpop.f32.mrf.mxu1 }
 0x2c1   :  { %v3100_v13 = vadd.f32 %v3099_v55, %v3011_v4  ;;  %3239 = vmatmul.bf16.gmra.mxu2 %v4005_v54  ;;  %3417 = vmatmul.bf16.gmra.mxu0 %v4013_v34  ;;  %v4068_v55 = vld [vmem:[%s7851_s0 + $0x180] sm:$0xf] }
 0x2c2   :  { %3328 = vmatmul.bf16.gmra.mxu3 %v4009_v56 }
 0x2c3   :  { %5176 = vmatmul.msk.bf16.gmra.mxu1 %vm2275_vm2, %v4017_v14  ;;  %v7147_v60 = vadd.f32 %v3188_v35, %v3100_v13  ;;  %v5245_v35 = vld [vmem:[%s7851_s0 + $0x1b4] sm:$0xf0] }
 0x2c4   :  { %v2924_v17 = vpop.f32.mrf.mxu2  ;;  %v4069_v46 = vor.u32 %v5245_v35, %v4068_v55 }
 0x2c5   :  { %v3013_v32 = vpop.f32.mrf.mxu3  ;;  %v2925_v9 = vadd.f32 %v2924_v17, %v6637_v8  ;;  %v4062_v8 = vld [vmem:[%s7851_s0 + $0x1b0] sm:$0xf0] }
 0x2c6   :  { %v3104_v11 = vpop.f32.mrf.mxu0  ;;  %v4065_v36 = vor.u32 %v5237_v51, %v4062_v8 }
 0x2c7   :  { %v3014_v43 = vadd.f32 %v3013_v32, %v2925_v9  ;;  %v4116_v32 = vld [vmem:[%s7851_s0 + $0x1e8] sm:$0xf]  ;;  %v5258_v9 = vld [vmem:[%s7851_s0 + $0x21c] sm:$0xf0] }
 0x2c8   :  { %v3193_v10 = vpop.f32.mrf.mxu1  ;;  %v4117_v35 = vor.u32 %v5258_v9, %v4116_v32  ;;  %v4182_v32 = vld [vmem:[%s7851_s0 + $0x298] sm:$0xf0] }
 0x2c9   :  { %v3103_v29 = vadd.f32 %v3102_v62, %v3014_v43  ;;  %v5251_v43 = vld [vmem:[%s7851_s0 + $0x1ec] sm:$0xf] }
 0x2cb   :  { %v7174_v50 = vadd.f32 %v3191_v1, %v3103_v29  ;;  %v5252_v29 = vld [vmem:[%s7851_s0 + $0x1f4] sm:$0xf] }
 0x2cc   :  { %v2926_v42 = vpop.f32.mrf.mxu2 }
 0x2cd   :  { %v3015_v20 = vpop.f32.mrf.mxu3  ;;  %v2927_v53 = vadd.f32 %v2926_v42, %v6643_v38  ;;  %v4129_v42 = vor.u32 %v5252_v29, %v4126_v18 }
 0x2ce   :  { %v3107_v0 = vpop.f32.mrf.mxu0 }
 0x2cf   :  { %v3016_v26 = vadd.f32 %v3015_v20, %v2927_v53 }
 0x2d0   :  { %v3196_v54 = vpop.f32.mrf.mxu1 }
 0x2d1   :  { %v3105_v56 = vadd.f32 %v3104_v11, %v3016_v26  ;;  %3244 = vmatmul.bf16.gmra.mxu2 %v4061_v49  ;;  %3422 = vmatmul.bf16.gmra.mxu0 %v4069_v46  ;;  %v4124_v11 = vld [vmem:[%s7851_s0 + $0x1f0] sm:$0xf] }
 0x2d2   :  { %3333 = vmatmul.bf16.gmra.mxu3 %v4065_v36 }
 0x2d3   :  { %5177 = vmatmul.msk.bf16.gmra.mxu1 %vm2275_vm2, %v4073_v16  ;;  %v7178_v34 = vadd.f32 %v3193_v10, %v3105_v56  ;;  %v5259_v10 = vld [vmem:[%s7851_s0 + $0x224] sm:$0xf0] }
 0x2d4   :  { %v2929_v14 = vpop.f32.mrf.mxu2  ;;  %v4125_v15 = vor.u32 %v5259_v10, %v4124_v11 }
 0x2d5   :  { %v3018_v4 = vpop.f32.mrf.mxu3  ;;  %v2930_v62 = vadd.f32 %v2929_v14, %v6670_v27  ;;  %v4118_v27 = vld [vmem:[%s7851_s0 + $0x220] sm:$0xf0] }
 0x2d6   :  { %v3109_v1 = vpop.f32.mrf.mxu0  ;;  %v4121_v48 = vor.u32 %v5251_v43, %v4118_v27 }
 0x2d7   :  { %v3019_v38 = vadd.f32 %v3018_v4, %v2930_v62  ;;  %v4172_v4 = vld [vmem:[%s7851_s0 + $0x258] sm:$0xf]  ;;  %v5272_v62 = vld [vmem:[%s7851_s0 + $0x28c] sm:$0xf0] }
 0x2d8   :  { %v3198_v13 = vpop.f32.mrf.mxu1  ;;  %v4173_v10 = vor.u32 %v5272_v62, %v4172_v4  ;;  %v4238_v4 = vld [vmem:[%s7851_s0 + $0x308] sm:$0xf0] }
 0x2d9   :  { %v3108_v17 = vadd.f32 %v3107_v0, %v3019_v38  ;;  %v5265_v38 = vld [vmem:[%s7851_s0 + $0x25c] sm:$0xf] }
 0x2db   :  { %v7205_v31 = vadd.f32 %v3196_v54, %v3108_v17  ;;  %v5266_v17 = vld [vmem:[%s7851_s0 + $0x264] sm:$0xf] }
 0x2dc   :  { %v2931_v51 = vpop.f32.mrf.mxu2 }
 0x2dd   :  { %v3020_v8 = vpop.f32.mrf.mxu3  ;;  %v2932_v55 = vadd.f32 %v2931_v51, %v6679_v23  ;;  %v4185_v51 = vor.u32 %v5266_v17, %v4182_v32 }
 0x2de   :  { %v3112_v53 = vpop.f32.mrf.mxu0 }
 0x2df   :  { %v3021_v20 = vadd.f32 %v3020_v8, %v2932_v55 }
 0x2e0   :  { %v3201_v49 = vpop.f32.mrf.mxu1 }
 0x2e1   :  { %v3110_v36 = vadd.f32 %v3109_v1, %v3021_v20  ;;  %3249 = vmatmul.bf16.gmra.mxu2 %v4117_v35  ;;  %3427 = vmatmul.bf16.gmra.mxu0 %v4125_v15  ;;  %v4180_v1 = vld [vmem:[%s7851_s0 + $0x260] sm:$0xf] }
 0x2e2   :  { %3338 = vmatmul.bf16.gmra.mxu3 %v4121_v48 }
 0x2e3   :  { %5178 = vmatmul.msk.bf16.gmra.mxu1 %vm2275_vm2, %v4129_v42  ;;  %v7209_v46 = vadd.f32 %v3198_v13, %v3110_v36  ;;  %v5273_v13 = vld [vmem:[%s7851_s0 + $0x294] sm:$0xf0] }
 0x2e4   :  { %v2934_v16 = vpop.f32.mrf.mxu2  ;;  %v4181_v18 = vor.u32 %v5273_v13, %v4180_v1 }
 0x2e5   :  { %v3023_v26 = vpop.f32.mrf.mxu3  ;;  %v2935_v0 = vadd.f32 %v2934_v16, %v6709_v37  ;;  %v4174_v37 = vld [vmem:[%s7851_s0 + $0x290] sm:$0xf0] }
 0x2e6   :  { %v3114_v54 = vpop.f32.mrf.mxu0  ;;  %v4177_v29 = vor.u32 %v5265_v38, %v4174_v37 }
 0x2e7   :  { %v3024_v23 = vadd.f32 %v3023_v26, %v2935_v0  ;;  %v4228_v26 = vld [vmem:[%s7851_s0 + $0x2c8] sm:$0xf]  ;;  %v5286_v0 = vld [vmem:[%s7851_s0 + $0x2fc] sm:$0xf0] }
 0x2e8   :  { %v3203_v56 = vpop.f32.mrf.mxu1  ;;  %v4229_v13 = vor.u32 %v5286_v0, %v4228_v26  ;;  %v5294_v26 = vld [vmem:[%s7851_s0 + $0x344] sm:$0xf]  ;;  %v4294_v0 = vld [vmem:[%s7851_s0 + $0x378] sm:$0xf0] }
 0x2e9   :  { %v3113_v14 = vadd.f32 %v3112_v53, %v3024_v23  ;;  %v5279_v23 = vld [vmem:[%s7851_s0 + $0x2cc] sm:$0xf] }
 0x2eb   :  { %v7236_v9 = vadd.f32 %v3201_v49, %v3113_v14  ;;  %v5280_v14 = vld [vmem:[%s7851_s0 + $0x2d4] sm:$0xf] }
 0x2ec   :  { %v2936_v43 = vpop.f32.mrf.mxu2 }
 0x2ed   :  { %v3025_v27 = vpop.f32.mrf.mxu3  ;;  %v2937_v11 = vadd.f32 %v2936_v43, %v6712_v39  ;;  %v4241_v43 = vor.u32 %v5280_v14, %v4238_v4 }
 0x2ee   :  { %v3117_v55 = vpop.f32.mrf.mxu0 }
 0x2ef   :  { %v3026_v8 = vadd.f32 %v3025_v27, %v2937_v11 }
 0x2f0   :  { %v3206_v35 = vpop.f32.mrf.mxu1 }
 0x2f1   :  { %v3115_v48 = vadd.f32 %v3114_v54, %v3026_v8  ;;  %3254 = vmatmul.bf16.gmra.mxu2 %v4173_v10  ;;  %3432 = vmatmul.bf16.gmra.mxu0 %v4181_v18  ;;  %v4236_v54 = vld [vmem:[%s7851_s0 + $0x2d0] sm:$0xf] }
 0x2f2   :  { %3343 = vmatmul.bf16.gmra.mxu3 %v4177_v29 }
 0x2f3   :  { %5179 = vmatmul.msk.bf16.gmra.mxu1 %vm2275_vm2, %v4185_v51  ;;  %v7240_v15 = vadd.f32 %v3203_v56, %v3115_v48  ;;  %v5287_v56 = vld [vmem:[%s7851_s0 + $0x304] sm:$0xf0] }
 0x2f4   :  { %v2939_v42 = vpop.f32.mrf.mxu2  ;;  %v4237_v32 = vor.u32 %v5287_v56, %v4236_v54 }
 0x2f5   :  { %v3028_v20 = vpop.f32.mrf.mxu3  ;;  %v2940_v53 = vadd.f32 %v2939_v42, %v6739_v47  ;;  %v4230_v47 = vld [vmem:[%s7851_s0 + $0x300] sm:$0xf0] }
 0x2f6   :  { %v3119_v49 = vpop.f32.mrf.mxu0  ;;  %v4233_v17 = vor.u32 %v5279_v23, %v4230_v47 }
 0x2f7   :  { %v3029_v39 = vadd.f32 %v3028_v20, %v2940_v53  ;;  %v4284_v20 = vld [vmem:[%s7851_s0 + $0x338] sm:$0xf] }
 0x2f8   :  { %v3208_v36 = vpop.f32.mrf.mxu1 }
 0x2f9   :  { %v3118_v16 = vadd.f32 %v3117_v55, %v3029_v39  ;;  %v5544_v55 = vmov 0.0   ;;  %v5293_v39 = vld [vmem:[%s7851_s0 + $0x33c] sm:$0xf] }
 0x2fa   :  { %23 = vst.msk [vmem:[#allocation2] sm:$0xff] %vm22_vm3, %v5544_v55 }
 0x2fb   :  { %v7267_v62 = vadd.f32 %v3206_v35, %v3118_v16  ;;  %24 = vst.msk [vmem:[#allocation2 + $0x8] sm:$0xff] %vm22_vm3, %v5544_v55  ;;  %v5301_v16 = vld [vmem:[%s7851_s0 + $0x374] sm:$0xf0] }
 0x2fc   :  { %v2941_v38 = vpop.f32.mrf.mxu2  ;;  %25 = vst.msk [vmem:[#allocation2 + $0x10] sm:$0xff] %vm22_vm3, %v5544_v55 }
 0x2fd   :  { %v3030_v37 = vpop.f32.mrf.mxu3  ;;  %v2942_v1 = vadd.f32 %v2941_v38, %v6748_v7  ;;  %26 = vst.msk [vmem:[#allocation2 + $0x18] sm:$0xff] %vm22_vm3, %v5544_v55 }
 0x2fe   :  { %v3122_v11 = vpop.f32.mrf.mxu0  ;;  %27 = vst.msk [vmem:[#allocation2 + $0x20] sm:$0xff] %vm22_vm3, %v5544_v55 }
 0x2ff   :  { %v3031_v27 = vadd.f32 %v3030_v37, %v2942_v1  ;;  %28 = vst.msk [vmem:[#allocation2 + $0x28] sm:$0xff] %vm22_vm3, %v5544_v55  ;;  %v4297_v37 = vor.u32 %v5294_v26, %v4294_v0 }
 0x300   :  { %v3211_v10 = vpop.f32.mrf.mxu1  ;;  %29 = vst.msk [vmem:[#allocation2 + $0x30] sm:$0xff] %vm22_vm3, %v5544_v55 }
 0x301   :  { %v3120_v29 = vadd.f32 %v3119_v49, %v3031_v27  ;;  %3259 = vmatmul.bf16.gmra.mxu2 %v4229_v13  ;;  %3437 = vmatmul.bf16.gmra.mxu0 %v4237_v32  ;;  %v4286_v49 = vld [vmem:[%s7851_s0 + $0x370] sm:$0xf0]  ;;  %30 = vst.msk [vmem:[#allocation2 + $0x38] sm:$0xff] %vm22_vm3, %v5544_v55 }
 0x302   :  { %3348 = vmatmul.bf16.gmra.mxu3 %v4233_v17  ;;  %v4289_v4 = vor.u32 %v5293_v39, %v4286_v49  ;;  %31 = vst.msk [vmem:[#allocation2 + $0x40] sm:$0xff] %vm22_vm3, %v5544_v55 }
 0x303   :  { %5180 = vmatmul.msk.bf16.gmra.mxu1 %vm2275_vm2, %v4241_v43  ;;  %v7271_v18 = vadd.f32 %v3208_v36, %v3120_v29  ;;  %v4292_v36 = vld [vmem:[%s7851_s0 + $0x340] sm:$0xf]  ;;  %32 = vst.msk [vmem:[#allocation2 + $0x48] sm:$0xff] %vm22_vm3, %v5544_v55 }
 0x304   :  { %v2944_v51 = vpop.f32.mrf.mxu2  ;;  %v4293_v38 = vor.u32 %v5301_v16, %v4292_v36  ;;  %33 = vst.msk [vmem:[#allocation2 + $0x50] sm:$0xff] %vm22_vm3, %v5544_v55 }
 0x305   :  { %v3033_v8 = vpop.f32.mrf.mxu3  ;;  %v2945_v7 = vadd.f32 %v2944_v51, %v6778_v40  ;;  %v5300_v40 = vld [vmem:[%s7851_s0 + $0x36c] sm:$0xf0]  ;;  %34 = vst.msk [vmem:[#allocation2 + $0x58] sm:$0xff] %vm22_vm3, %v5544_v55 }
 0x306   :  { %v3124_v48 = vpop.f32.mrf.mxu0  ;;  %v4285_v14 = vor.u32 %v5300_v40, %v4284_v20  ;;  %35 = vst.msk [vmem:[#allocation2 + $0x60] sm:$0xff] %vm22_vm3, %v5544_v55  ;;  %v5315_v20 = vld [vmem:[%s7851_s0 + $0x3e4] sm:$0xf0]  ;;  %v5308_v40 = vld [vmem:[%s7851_s0 + $0x3b4] sm:$0xf] }
 0x307   :  { %v3034_v35 = vadd.f32 %v3033_v8, %v2945_v7  ;;  %36 = vst.msk [vmem:[#allocation2 + $0x68] sm:$0xff] %vm22_vm3, %v5544_v55  ;;  %v4340_v8 = vld [vmem:[%s7851_s0 + $0x3a8] sm:$0xf] }
 0x308   :  { %v3213_v42 = vpop.f32.mrf.mxu1  ;;  %37 = vst.msk [vmem:[#allocation2 + $0x70] sm:$0xff] %vm22_vm3, %v5544_v55 }
 0x309   :  { %v3123_v53 = vadd.f32 %v3122_v11, %v3034_v35  ;;  %38 = vst.msk [vmem:[#allocation2 + $0x78] sm:$0xff] %vm22_vm3, %v5544_v55  ;;  %v5307_v35 = vld [vmem:[%s7851_s0 + $0x3ac] sm:$0xf] }
 0x30a   :  { %39 = vst.msk [vmem:[#allocation2 + $0x80] sm:$0xff] %vm22_vm3, %v5544_v55 }
 0x30b   :  { %v7312_v23 = vadd.f32 %v3211_v10, %v3123_v53  ;;  %40 = vst.msk [vmem:[#allocation2 + $0x88] sm:$0xff] %vm22_vm3, %v5544_v55  ;;  %v4350_v53 = vld [vmem:[%s7851_s0 + $0x3e8] sm:$0xf0] }
 0x30c   :  { %v2946_v47 = vpop.f32.mrf.mxu2  ;;  %41 = vst.msk [vmem:[#allocation2 + $0x90] sm:$0xff] %vm22_vm3, %v5544_v55 }
 0x30d   :  { %v3035_v54 = vpop.f32.mrf.mxu3  ;;  %v2947_v56 = vadd.f32 %v2946_v47, %v6784_v63  ;;  %42 = vst.msk [vmem:[#allocation2 + $0x98] sm:$0xff] %vm22_vm3, %v5544_v55 }
 0x30e   :  { %v3127_v13 = vpop.f32.mrf.mxu0  ;;  %43 = vst.msk [vmem:[#allocation2 + $0xa0] sm:$0xff] %vm22_vm3, %v5544_v55 }
 0x30f   :  { %v3036_v1 = vadd.f32 %v3035_v54, %v2947_v56  ;;  %44 = vst.msk [vmem:[#allocation2 + $0xa8] sm:$0xff] %vm22_vm3, %v5544_v55  ;;  %v4353_v54 = vor.u32 %v5308_v40, %v4350_v53 }
 0x310   :  { %v3216_v17 = vpop.f32.mrf.mxu1  ;;  %45 = vst.msk [vmem:[#allocation2 + $0xb0] sm:$0xff] %vm22_vm3, %v5544_v55 }
 0x311   :  { %v3125_v63 = vadd.f32 %v3124_v48, %v3036_v1  ;;  %3264 = vmatmul.bf16.gmra.mxu2 %v4285_v14  ;;  %3442 = vmatmul.bf16.gmra.mxu0 %v4293_v38  ;;  %v4342_v48 = vld [vmem:[%s7851_s0 + $0x3e0] sm:$0xf0]  ;;  %46 = vst.msk [vmem:[#allocation2 + $0xb8] sm:$0xff] %vm22_vm3, %v5544_v55 }
 0x312   :  { %3353 = vmatmul.bf16.gmra.mxu3 %v4289_v4  ;;  %v4345_v0 = vor.u32 %v5307_v35, %v4342_v48  ;;  %47 = vst.msk [vmem:[#allocation2 + $0xc0] sm:$0xff] %vm22_vm3, %v5544_v55  ;;  %v4406_v35 = vld [vmem:[%s7851_s0 + $0x458] sm:$0xf0] }
 0x313   :  { %5181 = vmatmul.msk.bf16.gmra.mxu1 %vm2275_vm2, %v4297_v37  ;;  %v7332_v32 = vadd.f32 %v3213_v42, %v3125_v63  ;;  %v4348_v42 = vld [vmem:[%s7851_s0 + $0x3b0] sm:$0xf]  ;;  %48 = vst.msk [vmem:[#allocation2 + $0xc8] sm:$0xff] %vm22_vm3, %v5544_v55 }
 0x314   :  { %v2949_v43 = vpop.f32.mrf.mxu2  ;;  %v4349_v47 = vor.u32 %v5315_v20, %v4348_v42  ;;  %49 = vst.msk [vmem:[#allocation2 + $0xd0] sm:$0xff] %vm22_vm3, %v5544_v55 }
 0x315   :  { %v3038_v27 = vpop.f32.mrf.mxu3  ;;  %v2950_v11 = vadd.f32 %v2949_v43, %v6811_v33  ;;  %v5314_v33 = vld [vmem:[%s7851_s0 + $0x3dc] sm:$0xf0]  ;;  %50 = vst.msk [vmem:[#allocation2 + $0xd8] sm:$0xff] %vm22_vm3, %v5544_v55 }
 0x316   :  { %v3129_v29 = vpop.f32.mrf.mxu0  ;;  %v4341_v26 = vor.u32 %v5314_v33, %v4340_v8  ;;  %51 = vst.msk [vmem:[#allocation2 + $0xe0] sm:$0xff] %vm22_vm3, %v5544_v55  ;;  %v5329_v33 = vld [vmem:[%s7851_s0 + $0x454] sm:$0xf0] }
 0x317   :  { %v3039_v10 = vadd.f32 %v3038_v27, %v2950_v11  ;;  %52 = vst.msk [vmem:[#allocation2 + $0xe8] sm:$0xff] %vm22_vm3, %v5544_v55  ;;  %v55_v27 = vld [vmem:[#allocation2] sm:$0xff] }
 0x318   :  { %v3218_v51 = vpop.f32.mrf.mxu1  ;;  %53 = vst.msk [vmem:[#allocation2 + $0xf0] sm:$0xff] %vm22_vm3, %v5544_v55 }
 0x319   :  { %v3128_v7 = vadd.f32 %v3127_v13, %v3039_v10  ;;  %54 = vst.msk [vmem:[#allocation2 + $0xf8] sm:$0xff] %vm22_vm3, %v5544_v55  ;;  %v4396_v10 = vld [vmem:[%s7851_s0 + $0x418] sm:$0xf]  ;;  %v4404_v55 = vld [vmem:[%s7851_s0 + $0x420] sm:$0xf] }
 0x31b   :  { %v7375_v39 = vadd.f32 %v3216_v17, %v3128_v7  ;;  %v5322_v7 = vld [vmem:[%s7851_s0 + $0x424] sm:$0xf] }
 0x31c   :  { %v2951_v49 = vpop.f32.mrf.mxu2 }
 0x31d   :  { %v3040_v36 = vpop.f32.mrf.mxu3  ;;  %v2952_v16 = vadd.f32 %v2951_v49, %v6820_v58 }
 0x31e   :  { %v3408_v14 = vpop.f32.mrf.mxu0 }
 0x31f   :  { %v3041_v56 = vadd.f32 %v3040_v36, %v2952_v16  ;;  %v4405_v36 = vor.u32 %v5329_v33, %v4404_v55  ;;  %v4409_v16 = vor.u32 %v5322_v7, %v4406_v35  ;;  %v5335_v55 = vld [vmem:[%s7851_s0 + $0x48c] sm:$0xf]  ;;  %v4460_v33 = vld [vmem:[%s7851_s0 + $0x490] sm:$0xf]  ;;  %v5343_v7 = vld [vmem:[%s7851_s0 + $0x4c4] sm:$0xf0] }
 0x320   :  { %v3497_v4 = vpop.f32.mrf.mxu1 }
 0x321   :  { %v3130_v58 = vadd.f32 %v3129_v29, %v3041_v56  ;;  %3269 = vmatmul.bf16.gmra.mxu2 %v4341_v26  ;;  %3447 = vmatmul.bf16.gmra.mxu0 %v4349_v47  ;;  %v5328_v29 = vld [vmem:[%s7851_s0 + $0x44c] sm:$0xf0]  ;;  %v56_v56 = vld [vmem:[#allocation2 + $0x8] sm:$0xff] }
 0x322   :  { %3358 = vmatmul.bf16.gmra.mxu3 %v4345_v0  ;;  %v4397_v53 = vor.u32 %v5328_v29, %v4396_v10  ;;  %v57_v29 = vld [vmem:[#allocation2 + $0x10] sm:$0xff] }
 0x323   :  { %5182 = vmatmul.msk.bf16.gmra.mxu1 %vm2275_vm2, %v4353_v54  ;;  %v7395_v38 = vadd.f32 %v3218_v51, %v3130_v58  ;;  %v5321_v51 = vld [vmem:[%s7851_s0 + $0x41c] sm:$0xf] }
 0x324   :  { %v3230_v37 = vpop.f32.mrf.mxu2 }
 0x325   :  { %v3319_v1 = vpop.f32.mrf.mxu3  ;;  %v3231_v13 = vadd.f32 %v3230_v37, %v6850_v12  ;;  %v4398_v12 = vld [vmem:[%s7851_s0 + $0x450] sm:$0xf0]  ;;  %v7435_v37 = vld [vmem:[%s7853_s3] ss:$0 sm:$0xff] }
 0x326   :  { %v3410_v63 = vpop.f32.mrf.mxu0  ;;  %v4401_v49 = vor.u32 %v5321_v51, %v4398_v12  ;;  %v4452_v12 = vld [vmem:[%s7851_s0 + $0x488] sm:$0xf] }
 0x327   :  { %v3320_v17 = vadd.f32 %v3319_v1, %v3231_v13 }
 0x328   :  { %v3499_v43 = vpop.f32.mrf.mxu1 }
 0x329   :  { %v3409_v11 = vadd.f32 %v3408_v14, %v3320_v17 }
 0x32b   :  { %v3498_v8 = vadd.f32 %v3497_v4, %v3409_v11 }
 0x32c   :  { %v3232_v48 = vpop.f32.mrf.mxu2 }
 0x32d   :  { %v3321_v42 = vpop.f32.mrf.mxu3  ;;  %v3577_v20 = vadd.f32 %v3498_v8, %v55_v27  ;;  %v3233_v40 = vadd.f32 %v3232_v48, %v6853_v24  ;;  %v7430_v24 = vld [vmem:[%s7852_s2] ss:$0 sm:$0xff]  ;;  %v4454_v8 = vld [vmem:[%s7851_s0 + $0x4c0] sm:$0xf0] }
 0x32e   :  { %v3413_v0 = vpop.f32.mrf.mxu0 }
 0x32f   :  { %3610 = vst.msk [vmem:[#allocation2] sm:$0xff] %vm22_vm3, %v3577_v20  ;;  %v3322_v26 = vadd.f32 %v3321_v42, %v3233_v40  ;;  %v5336_v42 = vld [vmem:[%s7851_s0 + $0x494] sm:$0xf]  ;;  %v4462_v20 = vld [vmem:[%s7851_s0 + $0x4c8] sm:$0xf0] }
 0x330   :  { %v3502_v47 = vpop.f32.mrf.mxu1 }
 0x331   :  { %v3411_v54 = vadd.f32 %v3410_v63, %v3322_v26  ;;  %3274 = vmatmul.bf16.gmra.mxu2 %v4397_v53  ;;  %3452 = vmatmul.bf16.gmra.mxu0 %v4405_v36 }
 0x332   :  { %3363 = vmatmul.bf16.gmra.mxu3 %v4401_v49 }
 0x333   :  { %5183 = vmatmul.msk.bf16.gmra.mxu1 %vm2275_vm2, %v4409_v16  ;;  %v3500_v14 = vadd.f32 %v3499_v43, %v3411_v54 }
 0x334   :  { %v3235_v4 = vpop.f32.mrf.mxu2 }
 0x335   :  { %v3324_v58 = vpop.f32.mrf.mxu3  ;;  %v3578_v1 = vadd.f32 %v3500_v14, %v56_v56  ;;  %v3236_v13 = vadd.f32 %v3235_v4, %v6880_v28  ;;  %v5342_v28 = vld [vmem:[%s7851_s0 + $0x4bc] sm:$0xf0]  ;;  %v4461_v56 = vor.u32 %v5343_v7, %v4460_v33 }
 0x336   :  { %v3645_v17 = vld [vmem:[#allocation2] sm:$0xff]  ;;  %v3415_v11 = vpop.f32.mrf.mxu0  ;;  %v4453_v49 = vor.u32 %v5342_v28, %v4452_v12 }
 0x337   :  { %v3681_v63 = vmul.f32 %v7430_v24, %v3645_v17  ;;  %3611 = vst.msk [vmem:[#allocation2 + $0x8] sm:$0xff] %vm22_vm3, %v3578_v1  ;;  %v3325_v27 = vadd.f32 %v3324_v58, %v3236_v13 }
 0x338   :  { %v3504_v10 = vpop.f32.mrf.mxu1 }
 0x339   :  { %v3717_v43 = vadd.f32 %v7435_v37, %v3681_v63  ;;  %v3414_v51 = vadd.f32 %v3413_v0, %v3325_v27  ;;  %v4457_v0 = vor.u32 %v5335_v55, %v4454_v8 }
 0x33b   :  { %v3749_v35 = vmax.f32 %v3717_v43, 0.0  ;;  %v3503_v48 = vadd.f32 %v3502_v47, %v3414_v51  ;;  %v4465_v47 = vor.u32 %v5336_v42, %v4462_v20  ;;  %v5349_v20 = vld [vmem:[%s7851_s0 + $0x4fc] sm:$0xf] }
 0x33c   :  { %v3237_v40 = vpop.f32.mrf.mxu2 }
 0x33d   :  { %v3326_v53 = vpop.f32.mrf.mxu3  ;;  %v3781_v36 = vpack.c.bf16 %v3749_v35, %v3749_v35  ;;  %v3579_v16 = vadd.f32 %v3503_v48, %v57_v29  ;;  %v3238_v26 = vadd.f32 %v3237_v40, %v6889_v45  ;;  %v58_v45 = vld [vmem:[#allocation2 + $0x18] sm:$0xff]  ;;  %v4510_v40 = vld [vmem:[%s7851_s0 + $0x530] sm:$0xf0] }
 0x33e   :  { %v3646_v54 = vld [vmem:[#allocation2 + $0x8] sm:$0xff]  ;;  %v3418_v58 = vpop.f32.mrf.mxu0  ;;  %v4508_v48 = vld [vmem:[%s7851_s0 + $0x4f8] sm:$0xf] }
 0x33f   :  { %3814 = vst.msk [vmem:[%s7854_s4] sm:$0xf] %vm3813_vm4, %v3781_v36  ;;  %v3682_v14 = vmul.f32 %v7430_v24, %v3646_v54  ;;  %v3327_v4 = vadd.f32 %v3326_v53, %v3238_v26  ;;  %v4516_v53 = vld [vmem:[%s7851_s0 + $0x500] sm:$0xf]  ;;  %v5357_v36 = vld [vmem:[%s7851_s0 + $0x534] sm:$0xf0] }
 0x340   :  { %v3507_v1 = vpop.f32.mrf.mxu1  ;;  %3612 = vst.msk [vmem:[#allocation2 + $0x10] sm:$0xff] %vm22_vm3, %v3579_v16  ;;  %v5350_v16 = vld [vmem:[%s7851_s0 + $0x504] sm:$0xf]  ;;  %v4518_v26 = vld [vmem:[%s7851_s0 + $0x538] sm:$0xf0] }
 0x341   :  { %v3718_v13 = vadd.f32 %v7435_v37, %v3682_v14  ;;  %v3416_v17 = vadd.f32 %v3415_v11, %v3327_v4  ;;  %3279 = vmatmul.bf16.gmra.mxu2 %v4453_v49  ;;  %3457 = vmatmul.bf16.gmra.mxu0 %v4461_v56 }
 0x342   :  { %3368 = vmatmul.bf16.gmra.mxu3 %v4457_v0 }
 0x343   :  { %5184 = vmatmul.msk.bf16.gmra.mxu1 %vm2275_vm2, %v4465_v47  ;;  %v3750_v63 = vmax.f32 %v3718_v13, 0.0  ;;  %v3505_v27 = vadd.f32 %v3504_v10, %v3416_v17  ;;  %v59_v10 = vld [vmem:[#allocation2 + $0x20] sm:$0xff]  ;;  %v4517_v13 = vor.u32 %v5357_v36, %v4516_v53  ;;  %v4521_v17 = vor.u32 %v5350_v16, %v4518_v26  ;;  %v5363_v16 = vld [vmem:[%s7851_s0 + $0x56c] sm:$0xf] }
 0x344   :  { %v3240_v29 = vpop.f32.mrf.mxu2  ;;  %v5370_v36 = vld [vmem:[%s7851_s0 + $0x59c] sm:$0xf0]  ;;  %v4566_v26 = vld [vmem:[%s7851_s0 + $0x5a0] sm:$0xf0] }
 0x345   :  { %v3329_v43 = vpop.f32.mrf.mxu3  ;;  %v3782_v51 = vpack.c.bf16 %v3750_v63, %v3750_v63  ;;  %v3580_v12 = vadd.f32 %v3505_v27, %v58_v45  ;;  %v3241_v28 = vadd.f32 %v3240_v29, %v6919_v3  ;;  %v5356_v3 = vld [vmem:[%s7851_s0 + $0x52c] sm:$0xf0] }
 0x346   :  { %v3420_v8 = vpop.f32.mrf.mxu0  ;;  %v4509_v4 = vor.u32 %v5356_v3, %v4508_v48 }
 0x347   :  { %3815 = vst.msk [vmem:[%s7854_s4 + $0x4] sm:$0xf] %vm3813_vm4, %v3782_v51  ;;  %v3647_v11 = vld [vmem:[#allocation2 + $0x10] sm:$0xff]  ;;  %v3330_v55 = vadd.f32 %v3329_v43, %v3241_v28 }
 0x348   :  { %v3509_v33 = vpop.f32.mrf.mxu1  ;;  %v3683_v7 = vmul.f32 %v7430_v24, %v3647_v11  ;;  %3613 = vst.msk [vmem:[#allocation2 + $0x18] sm:$0xff] %vm22_vm3, %v3580_v12  ;;  %v60_v12 = vld [vmem:[#allocation2 + $0x28] sm:$0xff] }
 0x349   :  { %v3419_v35 = vadd.f32 %v3418_v58, %v3330_v55  ;;  %v4513_v58 = vor.u32 %v5349_v20, %v4510_v40 }
 0x34a   :  { %v3719_v42 = vadd.f32 %v7435_v37, %v3683_v7 }
 0x34b   :  { %v3508_v49 = vadd.f32 %v3507_v1, %v3419_v35 }
 0x34c   :  { %v3751_v0 = vmax.f32 %v3719_v42, 0.0  ;;  %v3242_v54 = vpop.f32.mrf.mxu2 }
 0x34d   :  { %v3331_v56 = vpop.f32.mrf.mxu3  ;;  %v3581_v47 = vadd.f32 %v3508_v49, %v59_v10  ;;  %v3243_v14 = vadd.f32 %v3242_v54, %v6925_v30  ;;  %v5371_v54 = vld [vmem:[%s7851_s0 + $0x5a4] sm:$0xf0] }
 0x34e   :  { %v3783_v1 = vpack.c.bf16 %v3751_v0, %v3751_v0  ;;  %v3423_v27 = vpop.f32.mrf.mxu0  ;;  %v4572_v0 = vld [vmem:[%s7851_s0 + $0x570] sm:$0xf] }
 0x34f   :  { %v3648_v45 = vld [vmem:[#allocation2 + $0x18] sm:$0xff]  ;;  %3614 = vst.msk [vmem:[#allocation2 + $0x20] sm:$0xff] %vm22_vm3, %v3581_v47  ;;  %v3332_v63 = vadd.f32 %v3331_v56, %v3243_v14  ;;  %v5364_v14 = vld [vmem:[%s7851_s0 + $0x574] sm:$0xf] }
 0x350   :  { %v3512_v29 = vpop.f32.mrf.mxu1  ;;  %3816 = vst.msk [vmem:[%s7854_s4 + $0x8] sm:$0xf] %vm3813_vm4, %v3783_v1  ;;  %v3684_v43 = vmul.f32 %v7430_v24, %v3648_v45 }
 0x351   :  { %v3421_v51 = vadd.f32 %v3420_v8, %v3332_v63  ;;  %3284 = vmatmul.bf16.gmra.mxu2 %v4509_v4  ;;  %3462 = vmatmul.bf16.gmra.mxu0 %v4517_v13  ;;  %v4574_v4 = vld [vmem:[%s7851_s0 + $0x5a8] sm:$0xf0] }
 0x352   :  { %3373 = vmatmul.bf16.gmra.mxu3 %v4513_v58  ;;  %v3720_v30 = vadd.f32 %v7435_v37, %v3684_v43 }
 0x353   :  { %5185 = vmatmul.msk.bf16.gmra.mxu1 %vm2275_vm2, %v4521_v17  ;;  %v3510_v28 = vadd.f32 %v3509_v33, %v3421_v51  ;;  %v61_v33 = vld [vmem:[#allocation2 + $0x30] sm:$0xff]  ;;  %v4573_v51 = vor.u32 %v5371_v54, %v4572_v0  ;;  %v5377_v54 = vld [vmem:[%s7851_s0 + $0x5dc] sm:$0xf] }
 0x354   :  { %v3752_v11 = vmax.f32 %v3720_v30, 0.0  ;;  %v3245_v55 = vpop.f32.mrf.mxu2  ;;  %v4577_v30 = vor.u32 %v5364_v14, %v4574_v4  ;;  %v5385_v4 = vld [vmem:[%s7851_s0 + $0x614] sm:$0xf0] }
 0x355   :  { %v3334_v7 = vpop.f32.mrf.mxu3  ;;  %v3582_v10 = vadd.f32 %v3510_v28, %v60_v12  ;;  %v3246_v35 = vadd.f32 %v3245_v55, %v6952_v2  ;;  %v4564_v2 = vld [vmem:[%s7851_s0 + $0x568] sm:$0xf] }
 0x356   :  { %v3784_v48 = vpack.c.bf16 %v3752_v11, %v3752_v11  ;;  %v3649_v3 = vld [vmem:[#allocation2 + $0x20] sm:$0xff]  ;;  %v3425_v20 = vpop.f32.mrf.mxu0  ;;  %v4565_v13 = vor.u32 %v5370_v36, %v4564_v2 }
 0x357   :  { %v3685_v42 = vmul.f32 %v7430_v24, %v3649_v3  ;;  %3615 = vst.msk [vmem:[#allocation2 + $0x28] sm:$0xff] %vm22_vm3, %v3582_v10  ;;  %v3335_v8 = vadd.f32 %v3334_v7, %v3246_v35 }
 0x358   :  { %v3514_v40 = vpop.f32.mrf.mxu1  ;;  %3817 = vst.msk [vmem:[%s7854_s4 + $0xc] sm:$0xf] %vm3813_vm4, %v3784_v48 }
 0x359   :  { %v3721_v53 = vadd.f32 %v7435_v37, %v3685_v42  ;;  %v3424_v49 = vadd.f32 %v3423_v27, %v3335_v8  ;;  %v4569_v27 = vor.u32 %v5363_v16, %v4566_v26  ;;  %v4620_v26 = vld [vmem:[%s7851_s0 + $0x5d8] sm:$0xf] }
 0x35b   :  { %v3753_v56 = vmax.f32 %v3721_v53, 0.0  ;;  %v3513_v47 = vadd.f32 %v3512_v29, %v3424_v49 }
 0x35c   :  { %v3247_v58 = vpop.f32.mrf.mxu2 }
 0x35d   :  { %v3336_v1 = vpop.f32.mrf.mxu3  ;;  %v3785_v17 = vpack.c.bf16 %v3753_v56, %v3753_v56  ;;  %v3583_v45 = vadd.f32 %v3513_v47, %v61_v33  ;;  %v3248_v63 = vadd.f32 %v3247_v58, %v6961_v25  ;;  %v62_v25 = vld [vmem:[#allocation2 + $0x38] sm:$0xff]  ;;  %v4622_v56 = vld [vmem:[%s7851_s0 + $0x610] sm:$0xf0]  ;;  %v4628_v47 = vld [vmem:[%s7851_s0 + $0x5e0] sm:$0xf] }
 0x35e   :  { %v3650_v43 = vld [vmem:[#allocation2 + $0x28] sm:$0xff]  ;;  %v3428_v28 = vpop.f32.mrf.mxu0  ;;  %v5378_v58 = vld [vmem:[%s7851_s0 + $0x5e4] sm:$0xf] }
 0x35f   :  { %3818 = vst.msk [vmem:[%s7854_s4 + $0x10] sm:$0xf] %vm3813_vm4, %v3785_v17  ;;  %v3686_v29 = vmul.f32 %v7430_v24, %v3650_v43  ;;  %v3337_v12 = vadd.f32 %v3336_v1, %v3248_v63  ;;  %v4630_v1 = vld [vmem:[%s7851_s0 + $0x618] sm:$0xf0] }
 0x360   :  { %v3517_v11 = vpop.f32.mrf.mxu1  ;;  %3616 = vst.msk [vmem:[#allocation2 + $0x30] sm:$0xff] %vm22_vm3, %v3583_v45 }
 0x361   :  { %v3722_v55 = vadd.f32 %v7435_v37, %v3686_v29  ;;  %v3426_v7 = vadd.f32 %v3425_v20, %v3337_v12  ;;  %3289 = vmatmul.bf16.gmra.mxu2 %v4565_v13  ;;  %3467 = vmatmul.bf16.gmra.mxu0 %v4573_v51  ;;  %v4625_v51 = vor.u32 %v5377_v54, %v4622_v56  ;;  %v5398_v54 = vld [vmem:[%s7851_s0 + $0x67c] sm:$0xf0]  ;;  %v5391_v56 = vld [vmem:[%s7851_s0 + $0x64c] sm:$0xf] }
 0x362   :  { %3378 = vmatmul.bf16.gmra.mxu3 %v4569_v27  ;;  %v4629_v29 = vor.u32 %v5385_v4, %v4628_v47  ;;  %v4633_v12 = vor.u32 %v5378_v58, %v4630_v1  ;;  %v4678_v47 = vld [vmem:[%s7851_s0 + $0x680] sm:$0xf0]  ;;  %v5399_v4 = vld [vmem:[%s7851_s0 + $0x684] sm:$0xf0] }
 0x363   :  { %5186 = vmatmul.msk.bf16.gmra.mxu1 %vm2275_vm2, %v4577_v30  ;;  %v3754_v10 = vmax.f32 %v3722_v55, 0.0  ;;  %v3515_v35 = vadd.f32 %v3514_v40, %v3426_v7  ;;  %v63_v40 = vld [vmem:[#allocation2 + $0x40] sm:$0xff] }
 0x364   :  { %v3250_v48 = vpop.f32.mrf.mxu2 }
 0x365   :  { %v3339_v3 = vpop.f32.mrf.mxu3  ;;  %v3786_v42 = vpack.c.bf16 %v3754_v10, %v3754_v10  ;;  %v3584_v8 = vadd.f32 %v3515_v35, %v62_v25  ;;  %v3251_v33 = vadd.f32 %v3250_v48, %v6991_v52  ;;  %v5384_v52 = vld [vmem:[%s7851_s0 + $0x60c] sm:$0xf0]  ;;  %v64_v35 = vld [vmem:[#allocation2 + $0x48] sm:$0xff] }
 0x366   :  { %v3430_v49 = vpop.f32.mrf.mxu0  ;;  %v4621_v43 = vor.u32 %v5384_v52, %v4620_v26 }
 0x367   :  { %3819 = vst.msk [vmem:[%s7854_s4 + $0x14] sm:$0xf] %vm3813_vm4, %v3786_v42  ;;  %v3651_v20 = vld [vmem:[#allocation2 + $0x30] sm:$0xff]  ;;  %v3340_v53 = vadd.f32 %v3339_v3, %v3251_v33 }
 0x368   :  { %v3519_v2 = vpop.f32.mrf.mxu1  ;;  %v3687_v36 = vmul.f32 %v7430_v24, %v3651_v20  ;;  %3617 = vst.msk [vmem:[#allocation2 + $0x38] sm:$0xff] %vm22_vm3, %v3584_v8 }
 0x369   :  { %v3429_v16 = vadd.f32 %v3428_v28, %v3340_v53 }
 0x36a   :  { %v3723_v0 = vadd.f32 %v7435_v37, %v3687_v36 }
 0x36b   :  { %v3518_v14 = vadd.f32 %v3517_v11, %v3429_v16 }
 0x36c   :  { %v3755_v13 = vmax.f32 %v3723_v0, 0.0  ;;  %v3252_v17 = vpop.f32.mrf.mxu2 }
 0x36d   :  { %v3341_v45 = vpop.f32.mrf.mxu3  ;;  %v3585_v63 = vadd.f32 %v3518_v14, %v63_v40  ;;  %v3253_v27 = vadd.f32 %v3252_v17, %v6994_v19  ;;  %v4684_v14 = vld [vmem:[%s7851_s0 + $0x650] sm:$0xf]  ;;  %v4686_v17 = vld [vmem:[%s7851_s0 + $0x688] sm:$0xf0] }
 0x36e   :  { %v3787_v30 = vpack.c.bf16 %v3755_v13, %v3755_v13  ;;  %v3433_v55 = vpop.f32.mrf.mxu0  ;;  %v5392_v13 = vld [vmem:[%s7851_s0 + $0x654] sm:$0xf] }
 0x36f   :  { %v3652_v28 = vld [vmem:[#allocation2 + $0x38] sm:$0xff]  ;;  %3618 = vst.msk [vmem:[#allocation2 + $0x40] sm:$0xff] %vm22_vm3, %v3585_v63  ;;  %v3342_v11 = vadd.f32 %v3341_v45, %v3253_v27 }
 0x370   :  { %v3522_v7 = vpop.f32.mrf.mxu1  ;;  %3820 = vst.msk [vmem:[%s7854_s4 + $0x18] sm:$0xf] %vm3813_vm4, %v3787_v30  ;;  %v3688_v25 = vmul.f32 %v7430_v24, %v3652_v28  ;;  %v4685_v28 = vor.u32 %v5399_v4, %v4684_v14  ;;  %v5413_v4 = vld [vmem:[%s7851_s0 + $0x6f4] sm:$0xf0] }
 0x371   :  { %v3431_v10 = vadd.f32 %v3430_v49, %v3342_v11  ;;  %3294 = vmatmul.bf16.gmra.mxu2 %v4621_v43  ;;  %3472 = vmatmul.bf16.gmra.mxu0 %v4629_v29  ;;  %v4681_v29 = vor.u32 %v5391_v56, %v4678_v47  ;;  %v4689_v11 = vor.u32 %v5392_v13, %v4686_v17  ;;  %v4734_v56 = vld [vmem:[%s7851_s0 + $0x6f0] sm:$0xf0]  ;;  %v4740_v47 = vld [vmem:[%s7851_s0 + $0x6c0] sm:$0xf] }
 0x372   :  { %3383 = vmatmul.bf16.gmra.mxu3 %v4625_v51  ;;  %v3724_v19 = vadd.f32 %v7435_v37, %v3688_v25 }
 0x373   :  { %5187 = vmatmul.msk.bf16.gmra.mxu1 %vm2275_vm2, %v4633_v12  ;;  %v3520_v48 = vadd.f32 %v3519_v2, %v3431_v10  ;;  %v65_v2 = vld [vmem:[#allocation2 + $0x50] sm:$0xff] }
 0x374   :  { %v3756_v3 = vmax.f32 %v3724_v19, 0.0  ;;  %v3255_v42 = vpop.f32.mrf.mxu2 }
 0x375   :  { %v3344_v8 = vpop.f32.mrf.mxu3  ;;  %v3586_v33 = vadd.f32 %v3520_v48, %v64_v35  ;;  %v3256_v20 = vadd.f32 %v3255_v42, %v7021_v41  ;;  %v4676_v41 = vld [vmem:[%s7851_s0 + $0x648] sm:$0xf] }
 0x376   :  { %v3788_v53 = vpack.c.bf16 %v3756_v3, %v3756_v3  ;;  %v3653_v36 = vld [vmem:[#allocation2 + $0x40] sm:$0xff]  ;;  %v3435_v16 = vpop.f32.mrf.mxu0  ;;  %v4677_v27 = vor.u32 %v5398_v54, %v4676_v41  ;;  %v5405_v54 = vld [vmem:[%s7851_s0 + $0x6bc] sm:$0xf] }
 0x377   :  { %v3689_v40 = vmul.f32 %v7430_v24, %v3653_v36  ;;  %3619 = vst.msk [vmem:[#allocation2 + $0x48] sm:$0xff] %vm22_vm3, %v3586_v33  ;;  %v3345_v49 = vadd.f32 %v3344_v8, %v3256_v20 }
 0x378   :  { %v3524_v26 = vpop.f32.mrf.mxu1  ;;  %3821 = vst.msk [vmem:[%s7854_s4 + $0x1c] sm:$0xf] %vm3813_vm4, %v3788_v53 }
 0x379   :  { %v3725_v52 = vadd.f32 %v7435_v37, %v3689_v40  ;;  %v3434_v0 = vadd.f32 %v3433_v55, %v3345_v49 }
 0x37b   :  { %v3757_v58 = vmax.f32 %v3725_v52, 0.0  ;;  %v3523_v1 = vadd.f32 %v3522_v7, %v3434_v0  ;;  %v4732_v0 = vld [vmem:[%s7851_s0 + $0x6b8] sm:$0xf] }
 0x37c   :  { %v3257_v45 = vpop.f32.mrf.mxu2 }
 0x37d   :  { %v3346_v63 = vpop.f32.mrf.mxu3  ;;  %v3789_v43 = vpack.c.bf16 %v3757_v58, %v3757_v58  ;;  %v3587_v51 = vadd.f32 %v3523_v1, %v65_v2  ;;  %v3258_v30 = vadd.f32 %v3257_v45, %v7024_v61  ;;  %v66_v61 = vld [vmem:[#allocation2 + $0x58] sm:$0xff]  ;;  %v5406_v58 = vld [vmem:[%s7851_s0 + $0x6c4] sm:$0xf] }
 0x37e   :  { %v3654_v12 = vld [vmem:[#allocation2 + $0x48] sm:$0xff]  ;;  %v3438_v25 = vpop.f32.mrf.mxu0  ;;  %v4742_v1 = vld [vmem:[%s7851_s0 + $0x6f8] sm:$0xf0] }
 0x37f   :  { %3822 = vst.msk [vmem:[%s7854_s4 + $0x20] sm:$0xf] %vm3813_vm4, %v3789_v43  ;;  %v3690_v55 = vmul.f32 %v7430_v24, %v3654_v12  ;;  %v3347_v7 = vadd.f32 %v3346_v63, %v3258_v30  ;;  %v4745_v12 = vor.u32 %v5406_v58, %v4742_v1 }
 0x380   :  { %v3527_v10 = vpop.f32.mrf.mxu1  ;;  %3620 = vst.msk [vmem:[#allocation2 + $0x50] sm:$0xff] %vm22_vm3, %v3587_v51  ;;  %v4737_v51 = vor.u32 %v5405_v54, %v4734_v56 }
 0x381   :  { %v3726_v19 = vadd.f32 %v7435_v37, %v3690_v55  ;;  %v3436_v35 = vadd.f32 %v3435_v16, %v3347_v7  ;;  %3299 = vmatmul.bf16.gmra.mxu2 %v4677_v27  ;;  %3477 = vmatmul.bf16.gmra.mxu0 %v4685_v28 }
 0x382   :  { %3388 = vmatmul.bf16.gmra.mxu3 %v4681_v29  ;;  %v4741_v29 = vor.u32 %v5413_v4, %v4740_v47 }
 0x383   :  { %5188 = vmatmul.msk.bf16.gmra.mxu1 %vm2275_vm2, %v4689_v11  ;;  %v3758_v48 = vmax.f32 %v3726_v19, 0.0  ;;  %v3525_v3 = vadd.f32 %v3524_v26, %v3436_v35  ;;  %v67_v26 = vld [vmem:[#allocation2 + $0x60] sm:$0xff]  ;;  %v68_v19 = vld [vmem:[#allocation2 + $0x68] sm:$0xff] }
 0x384   :  { %v3260_v42 = vpop.f32.mrf.mxu2 }
 0x385   :  { %v3349_v8 = vpop.f32.mrf.mxu3  ;;  %v3790_v33 = vpack.c.bf16 %v3758_v48, %v3758_v48  ;;  %v3588_v20 = vadd.f32 %v3525_v3, %v66_v61  ;;  %v3261_v53 = vadd.f32 %v3260_v42, %v7051_v6  ;;  %v5412_v6 = vld [vmem:[%s7851_s0 + $0x6ec] sm:$0xf0] }
 0x386   :  { %v3440_v49 = vpop.f32.mrf.mxu0  ;;  %v4733_v43 = vor.u32 %v5412_v6, %v4732_v0 }
 0x387   :  { %3823 = vst.msk [vmem:[%s7854_s4 + $0x24] sm:$0xf] %vm3813_vm4, %v3790_v33  ;;  %v3655_v36 = vld [vmem:[#allocation2 + $0x50] sm:$0xff]  ;;  %v3350_v40 = vadd.f32 %v3349_v8, %v3261_v53 }
 0x388   :  { %v3529_v16 = vpop.f32.mrf.mxu1  ;;  %v3691_v2 = vmul.f32 %v7430_v24, %v3655_v36  ;;  %3621 = vst.msk [vmem:[#allocation2 + $0x58] sm:$0xff] %vm22_vm3, %v3588_v20 }
 0x389   :  { %v3439_v52 = vadd.f32 %v3438_v25, %v3350_v40 }
 0x38a   :  { %v3727_v41 = vadd.f32 %v7435_v37, %v3691_v2 }
 0x38b   :  { %v3528_v14 = vadd.f32 %v3527_v10, %v3439_v52 }
 0x38c   :  { %v3759_v13 = vmax.f32 %v3727_v41, 0.0  ;;  %v3262_v17 = vpop.f32.mrf.mxu2 }
 0x38d   :  { %v3351_v45 = vpop.f32.mrf.mxu3  ;;  %v3589_v63 = vadd.f32 %v3528_v14, %v67_v26  ;;  %v3263_v27 = vadd.f32 %v3262_v17, %v7054_v22  ;;  %v69_v26 = vld [vmem:[#allocation2 + $0x70] sm:$0xff] }
 0x38e   :  { %v3791_v30 = vpack.c.bf16 %v3759_v13, %v3759_v13  ;;  %v3443_v55 = vpop.f32.mrf.mxu0 }
 0x38f   :  { %v3656_v28 = vld [vmem:[#allocation2 + $0x58] sm:$0xff]  ;;  %3622 = vst.msk [vmem:[#allocation2 + $0x60] sm:$0xff] %vm22_vm3, %v3589_v63  ;;  %v3352_v11 = vadd.f32 %v3351_v45, %v3263_v27 }
 0x390   :  { %v3532_v7 = vpop.f32.mrf.mxu1  ;;  %3824 = vst.msk [vmem:[%s7854_s4 + $0x28] sm:$0xf] %vm3813_vm4, %v3791_v30  ;;  %v3692_v25 = vmul.f32 %v7430_v24, %v3656_v28  ;;  %v70_v45 = vld [vmem:[#allocation2 + $0x78] sm:$0xff] }
 0x391   :  { %v3441_v10 = vadd.f32 %v3440_v49, %v3352_v11  ;;  %3304 = vmatmul.bf16.gmra.mxu2 %v4733_v43  ;;  %3482 = vmatmul.bf16.gmra.mxu0 %v4741_v29 }
 0x392   :  { %3393 = vmatmul.bf16.gmra.mxu3 %v4737_v51  ;;  %v3728_v22 = vadd.f32 %v7435_v37, %v3692_v25 }
 0x393   :  { %5189 = vmatmul.msk.bf16.gmra.mxu1 %vm2275_vm2, %v4745_v12  ;;  %v3530_v35 = vadd.f32 %v3529_v16, %v3441_v10 }
 0x394   :  { %v3760_v61 = vmax.f32 %v3728_v22, 0.0  ;;  %v3265_v48 = vpop.f32.mrf.mxu2  ;;  %v71_v22 = vld [vmem:[#allocation2 + $0x80] sm:$0xff] }
 0x395   :  { %v3354_v3 = vpop.f32.mrf.mxu3  ;;  %v3590_v42 = vadd.f32 %v3530_v35, %v68_v19  ;;  %v3266_v8 = vadd.f32 %v3265_v48, %v7081_v21 }
 0x396   :  { %v3792_v33 = vpack.c.bf16 %v3760_v61, %v3760_v61  ;;  %v3657_v20 = vld [vmem:[#allocation2 + $0x60] sm:$0xff]  ;;  %v3445_v40 = vpop.f32.mrf.mxu0 }
 0x397   :  { %v3693_v53 = vmul.f32 %v7430_v24, %v3657_v20  ;;  %3623 = vst.msk [vmem:[#allocation2 + $0x68] sm:$0xff] %vm22_vm3, %v3590_v42  ;;  %v3355_v36 = vadd.f32 %v3354_v3, %v3266_v8 }
 0x398   :  { %v3534_v49 = vpop.f32.mrf.mxu1  ;;  %3825 = vst.msk [vmem:[%s7854_s4 + $0x2c] sm:$0xf] %vm3813_vm4, %v3792_v33 }
 0x399   :  { %v3729_v16 = vadd.f32 %v7435_v37, %v3693_v53  ;;  %v3444_v2 = vadd.f32 %v3443_v55, %v3355_v36 }
 0x39b   :  { %v3761_v52 = vmax.f32 %v3729_v16, 0.0  ;;  %v3533_v21 = vadd.f32 %v3532_v7, %v3444_v2  ;;  %v72_v16 = vld [vmem:[#allocation2 + $0x88] sm:$0xff] }
 0x39c   :  { %v3267_v0 = vpop.f32.mrf.mxu2 }
 0x39d   :  { %v3356_v6 = vpop.f32.mrf.mxu3  ;;  %v3793_v41 = vpack.c.bf16 %v3761_v52, %v3761_v52  ;;  %v3591_v54 = vadd.f32 %v3533_v21, %v69_v26  ;;  %v3268_v56 = vadd.f32 %v3267_v0, %v7085_v59 }
 0x39e   :  { %v3658_v47 = vld [vmem:[#allocation2 + $0x68] sm:$0xff]  ;;  %v3448_v58 = vpop.f32.mrf.mxu0 }
 0x39f   :  { %3826 = vst.msk [vmem:[%s7854_s4 + $0x30] sm:$0xf] %vm3813_vm4, %v3793_v41  ;;  %v3694_v14 = vmul.f32 %v7430_v24, %v3658_v47  ;;  %v3357_v4 = vadd.f32 %v3356_v6, %v3268_v56 }
 0x3a0   :  { %v3537_v1 = vpop.f32.mrf.mxu1  ;;  %3624 = vst.msk [vmem:[#allocation2 + $0x70] sm:$0xff] %vm22_vm3, %v3591_v54 }
 0x3a1   :  { %v3730_v13 = vadd.f32 %v7435_v37, %v3694_v14  ;;  %v3446_v17 = vadd.f32 %v3445_v40, %v3357_v4 }
 0x3a3   :  { %v3762_v63 = vmax.f32 %v3730_v13, 0.0  ;;  %v3535_v27 = vadd.f32 %v3534_v49, %v3446_v17 }
 0x3a4   :  { %v3270_v59 = vpop.f32.mrf.mxu2 }
 0x3a5   :  { %v3359_v43 = vpop.f32.mrf.mxu3  ;;  %v3794_v51 = vpack.c.bf16 %v3762_v63, %v3762_v63  ;;  %v3592_v30 = vadd.f32 %v3535_v27, %v70_v45  ;;  %v3271_v29 = vadd.f32 %v3270_v59, %v7112_v5 }
 0x3a6   :  { %v3450_v11 = vpop.f32.mrf.mxu0 }
 0x3a7   :  { %3827 = vst.msk [vmem:[%s7854_s4 + $0x34] sm:$0xf] %vm3813_vm4, %v3794_v51  ;;  %v3659_v12 = vld [vmem:[#allocation2 + $0x70] sm:$0xff]  ;;  %v3360_v28 = vadd.f32 %v3359_v43, %v3271_v29 }
 0x3a8   :  { %v3539_v55 = vpop.f32.mrf.mxu1  ;;  %v3695_v7 = vmul.f32 %v7430_v24, %v3659_v12  ;;  %3625 = vst.msk [vmem:[#allocation2 + $0x78] sm:$0xff] %vm22_vm3, %v3592_v30 }
 0x3a9   :  { %v3449_v25 = vadd.f32 %v3448_v58, %v3360_v28 }
 0x3aa   :  { %v3731_v10 = vadd.f32 %v7435_v37, %v3695_v7 }
 0x3ab   :  { %v3538_v19 = vadd.f32 %v3537_v1, %v3449_v25  ;;  %v73_v1 = vld [vmem:[#allocation2 + $0x90] sm:$0xff] }
 0x3ac   :  { %v3763_v35 = vmax.f32 %v3731_v10, 0.0  ;;  %v3272_v5 = vpop.f32.mrf.mxu2 }
 0x3ad   :  { %v3361_v61 = vpop.f32.mrf.mxu3  ;;  %v3593_v48 = vadd.f32 %v3538_v19, %v71_v22  ;;  %v3273_v3 = vadd.f32 %v3272_v5, %v7116_v44 }
 0x3ae   :  { %v3795_v42 = vpack.c.bf16 %v3763_v35, %v3763_v35  ;;  %v3453_v20 = vpop.f32.mrf.mxu0 }
 0x3af   :  { %v3660_v8 = vld [vmem:[#allocation2 + $0x78] sm:$0xff]  ;;  %3626 = vst.msk [vmem:[#allocation2 + $0x80] sm:$0xff] %vm22_vm3, %v3593_v48  ;;  %v3362_v33 = vadd.f32 %v3361_v61, %v3273_v3 }
 0x3b0   :  { %v3542_v53 = vpop.f32.mrf.mxu1  ;;  %3828 = vst.msk [vmem:[%s7854_s4 + $0x38] sm:$0xf] %vm3813_vm4, %v3795_v42  ;;  %v3696_v36 = vmul.f32 %v7430_v24, %v3660_v8 }
 0x3b1   :  { %v3451_v40 = vadd.f32 %v3450_v11, %v3362_v33 }
 0x3b2   :  { %v3732_v49 = vadd.f32 %v7435_v37, %v3696_v36 }
 0x3b3   :  { %v3540_v2 = vadd.f32 %v3539_v55, %v3451_v40  ;;  %v74_v55 = vld [vmem:[#allocation2 + $0x98] sm:$0xff] }
 0x3b4   :  { %v3764_v44 = vmax.f32 %v3732_v49, 0.0  ;;  %v3275_v26 = vpop.f32.mrf.mxu2 }
 0x3b5   :  { %v3364_v52 = vpop.f32.mrf.mxu3  ;;  %v3594_v21 = vadd.f32 %v3540_v2, %v72_v16  ;;  %v3276_v0 = vadd.f32 %v3275_v26, %v7143_v57 }
 0x3b6   :  { %v3796_v6 = vpack.c.bf16 %v3764_v44, %v3764_v44  ;;  %v3661_v41 = vld [vmem:[#allocation2 + $0x80] sm:$0xff]  ;;  %v3455_v47 = vpop.f32.mrf.mxu0 }
 0x3b7   :  { %v3697_v54 = vmul.f32 %v7430_v24, %v3661_v41  ;;  %3627 = vst.msk [vmem:[#allocation2 + $0x88] sm:$0xff] %vm22_vm3, %v3594_v21  ;;  %v3365_v56 = vadd.f32 %v3364_v52, %v3276_v0 }
 0x3b8   :  { %v3544_v14 = vpop.f32.mrf.mxu1  ;;  %3829 = vst.msk [vmem:[%s7854_s4 + $0x3c] sm:$0xf] %vm3813_vm4, %v3796_v6 }
 0x3b9   :  { %v3733_v4 = vadd.f32 %v7435_v37, %v3697_v54  ;;  %v3454_v58 = vadd.f32 %v3453_v20, %v3365_v56  ;;  %v75_v20 = vld [vmem:[#allocation2 + $0xa0] sm:$0xff]  ;;  %v76_v54 = vld [vmem:[#allocation2 + $0xa8] sm:$0xff] }
 0x3bb   :  { %v3765_v13 = vmax.f32 %v3733_v4, 0.0  ;;  %v3543_v57 = vadd.f32 %v3542_v53, %v3454_v58 }
 0x3bc   :  { %v3277_v17 = vpop.f32.mrf.mxu2 }
 0x3bd   :  { %v3366_v45 = vpop.f32.mrf.mxu3  ;;  %v3797_v63 = vpack.c.bf16 %v3765_v13, %v3765_v13  ;;  %v3595_v27 = vadd.f32 %v3543_v57, %v73_v1  ;;  %v3278_v59 = vadd.f32 %v3277_v17, %v7147_v60 }
 0x3be   :  { %v3662_v43 = vld [vmem:[#allocation2 + $0x88] sm:$0xff]  ;;  %v3458_v29 = vpop.f32.mrf.mxu0 }
 0x3bf   :  { %3830 = vst.msk [vmem:[%s7854_s4 + $0x40] sm:$0xf] %vm3813_vm4, %v3797_v63  ;;  %v3698_v51 = vmul.f32 %v7430_v24, %v3662_v43  ;;  %v3367_v30 = vadd.f32 %v3366_v45, %v3278_v59  ;;  %v77_v43 = vld [vmem:[#allocation2 + $0xb0] sm:$0xff] }
 0x3c0   :  { %v3547_v12 = vpop.f32.mrf.mxu1  ;;  %3628 = vst.msk [vmem:[#allocation2 + $0x90] sm:$0xff] %vm22_vm3, %v3595_v27 }
 0x3c1   :  { %v3734_v28 = vadd.f32 %v7435_v37, %v3698_v51  ;;  %v3456_v11 = vadd.f32 %v3455_v47, %v3367_v30 }
 0x3c3   :  { %v3766_v7 = vmax.f32 %v3734_v28, 0.0  ;;  %v3545_v25 = vadd.f32 %v3544_v14, %v3456_v11 }
 0x3c4   :  { %v3280_v60 = vpop.f32.mrf.mxu2 }
 0x3c5   :  { %v3369_v10 = vpop.f32.mrf.mxu3  ;;  %v3798_v22 = vpack.c.bf16 %v3766_v7, %v3766_v7  ;;  %v3596_v19 = vadd.f32 %v3545_v25, %v74_v55  ;;  %v3281_v35 = vadd.f32 %v3280_v60, %v7174_v50 }
 0x3c6   :  { %v3460_v48 = vpop.f32.mrf.mxu0 }
 0x3c7   :  { %3831 = vst.msk [vmem:[%s7854_s4 + $0x44] sm:$0xf] %vm3813_vm4, %v3798_v22  ;;  %v3663_v5 = vld [vmem:[#allocation2 + $0x90] sm:$0xff]  ;;  %v3370_v61 = vadd.f32 %v3369_v10, %v3281_v35  ;;  %v78_v35 = vld [vmem:[#allocation2 + $0xb8] sm:$0xff] }
 0x3c8   :  { %v3549_v3 = vpop.f32.mrf.mxu1  ;;  %v3699_v42 = vmul.f32 %v7430_v24, %v3663_v5  ;;  %3629 = vst.msk [vmem:[#allocation2 + $0x98] sm:$0xff] %vm22_vm3, %v3596_v19 }
 0x3c9   :  { %v3459_v8 = vadd.f32 %v3458_v29, %v3370_v61 }
 0x3ca   :  { %v3735_v33 = vadd.f32 %v7435_v37, %v3699_v42 }
 0x3cb   :  { %v3548_v53 = vadd.f32 %v3547_v12, %v3459_v8 }
 0x3cc   :  { %v3767_v36 = vmax.f32 %v3735_v33, 0.0  ;;  %v3282_v50 = vpop.f32.mrf.mxu2 }
 0x3cd   :  { %v3371_v40 = vpop.f32.mrf.mxu3  ;;  %v3597_v49 = vadd.f32 %v3548_v53, %v75_v20  ;;  %v3283_v16 = vadd.f32 %v3282_v50, %v7178_v34 }
 0x3ce   :  { %v3799_v2 = vpack.c.bf16 %v3767_v36, %v3767_v36  ;;  %v3463_v52 = vpop.f32.mrf.mxu0 }
 0x3cf   :  { %v3664_v44 = vld [vmem:[#allocation2 + $0x98] sm:$0xff]  ;;  %3630 = vst.msk [vmem:[#allocation2 + $0xa0] sm:$0xff] %vm22_vm3, %v3597_v49  ;;  %v3372_v26 = vadd.f32 %v3371_v40, %v3283_v16  ;;  %v79_v16 = vld [vmem:[#allocation2 + $0xc0] sm:$0xff] }
 0x3d0   :  { %v3552_v21 = vpop.f32.mrf.mxu1  ;;  %3832 = vst.msk [vmem:[%s7854_s4 + $0x48] sm:$0xf] %vm3813_vm4, %v3799_v2  ;;  %v3700_v0 = vmul.f32 %v7430_v24, %v3664_v44 }
 0x3d1   :  { %v3461_v6 = vadd.f32 %v3460_v48, %v3372_v26 }
 0x3d2   :  { %v3736_v41 = vadd.f32 %v7435_v37, %v3700_v0 }
 0x3d3   :  { %v3550_v56 = vadd.f32 %v3549_v3, %v3461_v6 }
 0x3d4   :  { %v3768_v34 = vmax.f32 %v3736_v41, 0.0  ;;  %v3285_v47 = vpop.f32.mrf.mxu2 }
 0x3d5   :  { %v3374_v14 = vpop.f32.mrf.mxu3  ;;  %v3598_v4 = vadd.f32 %v3550_v56, %v76_v54  ;;  %v3286_v58 = vadd.f32 %v3285_v47, %v7205_v31 }
 0x3d6   :  { %v3800_v1 = vpack.c.bf16 %v3768_v34, %v3768_v34  ;;  %v3665_v13 = vld [vmem:[#allocation2 + $0xa0] sm:$0xff]  ;;  %v3465_v45 = vpop.f32.mrf.mxu0 }
 0x3d7   :  { %v3701_v57 = vmul.f32 %v7430_v24, %v3665_v13  ;;  %3631 = vst.msk [vmem:[#allocation2 + $0xa8] sm:$0xff] %vm22_vm3, %v3598_v4  ;;  %v3375_v17 = vadd.f32 %v3374_v14, %v3286_v58  ;;  %v80_v4 = vld [vmem:[#allocation2 + $0xc8] sm:$0xff] }
 0x3d8   :  { %v3554_v63 = vpop.f32.mrf.mxu1  ;;  %3833 = vst.msk [vmem:[%s7854_s4 + $0x4c] sm:$0xf] %vm3813_vm4, %v3800_v1 }
 0x3d9   :  { %v3737_v27 = vadd.f32 %v7435_v37, %v3701_v57  ;;  %v3464_v59 = vadd.f32 %v3463_v52, %v3375_v17 }
 0x3db   :  { %v3769_v51 = vmax.f32 %v3737_v27, 0.0  ;;  %v3553_v31 = vadd.f32 %v3552_v21, %v3464_v59  ;;  %v7779_v27 = vld [vmem:[%s7852_s2] ss:$0 sm:$0xff] }
 0x3dc   :  { %v3287_v30 = vpop.f32.mrf.mxu2 }
 0x3dd   :  { %v3376_v29 = vpop.f32.mrf.mxu3  ;;  %v3801_v12 = vpack.c.bf16 %v3769_v51, %v3769_v51  ;;  %v3599_v28 = vadd.f32 %v3553_v31, %v77_v43  ;;  %v3288_v11 = vadd.f32 %v3287_v30, %v7209_v46  ;;  %v81_v30 = vld [vmem:[#allocation2 + $0xd0] sm:$0xff] }
 0x3de   :  { %v3666_v55 = vld [vmem:[#allocation2 + $0xa8] sm:$0xff]  ;;  %v3468_v60 = vpop.f32.mrf.mxu0 }
 0x3df   :  { %3834 = vst.msk [vmem:[%s7854_s4 + $0x50] sm:$0xf] %vm3813_vm4, %v3801_v12  ;;  %v3702_v7 = vmul.f32 %v7430_v24, %v3666_v55  ;;  %v3377_v25 = vadd.f32 %v3376_v29, %v3288_v11 }
 0x3e0   :  { %v3557_v10 = vpop.f32.mrf.mxu1  ;;  %3632 = vst.msk [vmem:[#allocation2 + $0xb0] sm:$0xff] %vm22_vm3, %v3599_v28 }
 0x3e1   :  { %v3738_v22 = vadd.f32 %v7435_v37, %v3702_v7  ;;  %v3466_v19 = vadd.f32 %v3465_v45, %v3377_v25 }
 0x3e3   :  { %v3770_v5 = vmax.f32 %v3738_v22, 0.0  ;;  %v3555_v61 = vadd.f32 %v3554_v63, %v3466_v19 }
 0x3e4   :  { %v3290_v46 = vpop.f32.mrf.mxu2 }
 0x3e5   :  { %v3379_v48 = vpop.f32.mrf.mxu3  ;;  %v3802_v3 = vpack.c.bf16 %v3770_v5, %v3770_v5  ;;  %v3600_v42 = vadd.f32 %v3555_v61, %v78_v35  ;;  %v3291_v8 = vadd.f32 %v3290_v46, %v7236_v9  ;;  %v82_v61 = vld [vmem:[#allocation2 + $0xd8] sm:$0xff] }
 0x3e6   :  { %v3470_v53 = vpop.f32.mrf.mxu0 }
 0x3e7   :  { %3835 = vst.msk [vmem:[%s7854_s4 + $0x54] sm:$0xf] %vm3813_vm4, %v3802_v3  ;;  %v3667_v33 = vld [vmem:[#allocation2 + $0xb0] sm:$0xff]  ;;  %v3380_v20 = vadd.f32 %v3379_v48, %v3291_v8 }
 0x3e8   :  { %v3559_v36 = vpop.f32.mrf.mxu1  ;;  %v3703_v50 = vmul.f32 %v7430_v24, %v3667_v33  ;;  %3633 = vst.msk [vmem:[#allocation2 + $0xb8] sm:$0xff] %vm22_vm3, %v3600_v42 }
 0x3e9   :  { %v3469_v40 = vadd.f32 %v3468_v60, %v3380_v20 }
 0x3ea   :  { %v3739_v49 = vadd.f32 %v7435_v37, %v3703_v50 }
 0x3eb   :  { %v3558_v2 = vadd.f32 %v3557_v10, %v3469_v40 }
 0x3ec   :  { %v3771_v44 = vmax.f32 %v3739_v49, 0.0  ;;  %v3292_v9 = vpop.f32.mrf.mxu2 }
 0x3ed   :  { %v3381_v26 = vpop.f32.mrf.mxu3  ;;  %v3601_v52 = vadd.f32 %v3558_v2, %v79_v16  ;;  %v3293_v21 = vadd.f32 %v3292_v9, %v7240_v15  ;;  %v83_v16 = vld [vmem:[#allocation2 + $0xe0] sm:$0xff] }
 0x3ee   :  { %v3803_v0 = vpack.c.bf16 %v3771_v44, %v3771_v44  ;;  %v3473_v54 = vpop.f32.mrf.mxu0 }
 0x3ef   :  { %v3668_v6 = vld [vmem:[#allocation2 + $0xb8] sm:$0xff]  ;;  %3634 = vst.msk [vmem:[#allocation2 + $0xc0] sm:$0xff] %vm22_vm3, %v3601_v52  ;;  %v3382_v41 = vadd.f32 %v3381_v26, %v3293_v21 }
 0x3f0   :  { %v3562_v56 = vpop.f32.mrf.mxu1  ;;  %3836 = vst.msk [vmem:[%s7854_s4 + $0x58] sm:$0xf] %vm3813_vm4, %v3803_v0  ;;  %v3704_v34 = vmul.f32 %v7430_v24, %v3668_v6 }
 0x3f1   :  { %v3471_v47 = vadd.f32 %v3470_v53, %v3382_v41 }
 0x3f2   :  { %v3740_v14 = vadd.f32 %v7435_v37, %v3704_v34 }
 0x3f3   :  { %v3560_v58 = vadd.f32 %v3559_v36, %v3471_v47 }
 0x3f4   :  { %v3772_v15 = vmax.f32 %v3740_v14, 0.0  ;;  %v3295_v1 = vpop.f32.mrf.mxu2  ;;  %v84_v14 = vld [vmem:[#allocation2 + $0xe8] sm:$0xff] }
 0x3f5   :  { %v3384_v13 = vpop.f32.mrf.mxu3  ;;  %v3602_v57 = vadd.f32 %v3560_v58, %v80_v4  ;;  %v3296_v17 = vadd.f32 %v3295_v1, %v7267_v62  ;;  %v7790_v62 = vld [vmem:[%s7853_s3] ss:$0 sm:$0xff] }
 0x3f6   :  { %v3804_v45 = vpack.c.bf16 %v3772_v15, %v3772_v15  ;;  %v3669_v63 = vld [vmem:[#allocation2 + $0xc0] sm:$0xff]  ;;  %v3475_v59 = vpop.f32.mrf.mxu0 }
 0x3f7   :  { %v3705_v24 = vmul.f32 %v7779_v27, %v3669_v63  ;;  %3635 = vst.msk [vmem:[#allocation2 + $0xc8] sm:$0xff] %vm22_vm3, %v3602_v57  ;;  %v3385_v37 = vadd.f32 %v3384_v13, %v3296_v17 }
 0x3f8   :  { %3837 = vst.msk [vmem:[%s7854_s4 + $0x5c] sm:$0xf] %vm3813_vm4, %v3804_v45  ;;  %v3564_v31 = vpop.f32.mrf.mxu1 }
 0x3f9   :  { %v3741_v43 = vadd.f32 %v7790_v62, %v3705_v24  ;;  %v3474_v51 = vadd.f32 %v3473_v54, %v3385_v37 }
 0x3fb   :  { %v3773_v29 = vmax.f32 %v3741_v43, 0.0  ;;  %v3563_v12 = vadd.f32 %v3562_v56, %v3474_v51  ;;  %v85_v51 = vld [vmem:[#allocation2 + $0xf0] sm:$0xff] }
 0x3fc   :  { %v3297_v28 = vpop.f32.mrf.mxu2 }
 0x3fd   :  { %v3386_v11 = vpop.f32.mrf.mxu3  ;;  %v3805_v55 = vpack.c.bf16 %v3773_v29, %v3773_v29  ;;  %v3603_v7 = vadd.f32 %v3563_v12, %v81_v30  ;;  %v3298_v25 = vadd.f32 %v3297_v28, %v7271_v18 }
 0x3fe   :  { %v3670_v60 = vld [vmem:[#allocation2 + $0xc8] sm:$0xff]  ;;  %v3478_v5 = vpop.f32.mrf.mxu0 }
 0x3ff   :  { %3838 = vst.msk [vmem:[%s7854_s4 + $0x60] sm:$0xf] %vm3813_vm4, %v3805_v55  ;;  %v3706_v10 = vmul.f32 %v7779_v27, %v3670_v60  ;;  %v3387_v22 = vadd.f32 %v3386_v11, %v3298_v25 }
 0x400   :  { %3636 = vst.msk [vmem:[#allocation2 + $0xd0] sm:$0xff] %vm22_vm3, %v3603_v7  ;;  %v3567_v3 = vpop.f32.mrf.mxu1 }
 0x401   :  { %v3742_v19 = vadd.f32 %v7790_v62, %v3706_v10  ;;  %v3476_v35 = vadd.f32 %v3475_v59, %v3387_v22 }
 0x403   :  { %v3774_v46 = vmax.f32 %v3742_v19, 0.0  ;;  %v3565_v48 = vadd.f32 %v3564_v31, %v3476_v35  ;;  %v86_v35 = vld [vmem:[#allocation2 + $0xf8] sm:$0xff] }
 0x404   :  { %v3300_v18 = vpop.f32.mrf.mxu2 }
 0x405   :  { %v3389_v42 = vpop.f32.mrf.mxu3  ;;  %v3806_v8 = vpack.c.bf16 %v3774_v46, %v3774_v46  ;;  %v3604_v33 = vadd.f32 %v3565_v48, %v82_v61  ;;  %v3301_v20 = vadd.f32 %v3300_v18, %v7312_v23 }
 0x406   :  { %v3480_v44 = vpop.f32.mrf.mxu0 }
 0x407   :  { %3839 = vst.msk [vmem:[%s7854_s4 + $0x64] sm:$0xf] %vm3813_vm4, %v3806_v8  ;;  %v3671_v53 = vld [vmem:[#allocation2 + $0xd0] sm:$0xff]  ;;  %v3390_v36 = vadd.f32 %v3389_v42, %v3301_v20 }
 0x408   :  { %v3707_v50 = vmul.f32 %v7779_v27, %v3671_v53  ;;  %3637 = vst.msk [vmem:[#allocation2 + $0xd8] sm:$0xff] %vm22_vm3, %v3604_v33  ;;  %v3569_v6 = vpop.f32.mrf.mxu1 }
 0x409   :  { %v3479_v40 = vadd.f32 %v3478_v5, %v3390_v36 }
 0x40a   :  { %v3743_v49 = vadd.f32 %v7790_v62, %v3707_v50 }
 0x40b   :  { %v3568_v2 = vadd.f32 %v3567_v3, %v3479_v40 }
 0x40c   :  { %v3775_v9 = vmax.f32 %v3743_v49, 0.0  ;;  %v3302_v26 = vpop.f32.mrf.mxu2 }
 0x40d   :  { %v3391_v23 = vpop.f32.mrf.mxu3  ;;  %v3605_v52 = vadd.f32 %v3568_v2, %v83_v16  ;;  %v3303_v21 = vadd.f32 %v3302_v26, %v7332_v32 }
 0x40e   :  { %v3807_v0 = vpack.c.bf16 %v3775_v9, %v3775_v9  ;;  %v3483_v45 = vpop.f32.mrf.mxu0 }
 0x40f   :  { %v3672_v41 = vld [vmem:[#allocation2 + $0xd8] sm:$0xff]  ;;  %3638 = vst.msk [vmem:[#allocation2 + $0xe0] sm:$0xff] %vm22_vm3, %v3605_v52  ;;  %v3392_v54 = vadd.f32 %v3391_v23, %v3303_v21 }
 0x410   :  { %3840 = vst.msk [vmem:[%s7854_s4 + $0x68] sm:$0xf] %vm3813_vm4, %v3807_v0  ;;  %v3708_v56 = vmul.f32 %v7779_v27, %v3672_v41  ;;  %v3572_v37 = vpop.f32.mrf.mxu1 }
 0x411   :  { %v3481_v34 = vadd.f32 %v3480_v44, %v3392_v54 }
 0x412   :  { %v3744_v47 = vadd.f32 %v7790_v62, %v3708_v56 }
 0x413   :  { %v3570_v4 = vadd.f32 %v3569_v6, %v3481_v34 }
 0x414   :  { %v3776_v58 = vmax.f32 %v3744_v47, 0.0  ;;  %v3305_v32 = vpop.f32.mrf.mxu2 }
 0x415   :  { %v3394_v15 = vpop.f32.mrf.mxu3  ;;  %v3606_v1 = vadd.f32 %v3570_v4, %v84_v14  ;;  %v3306_v13 = vadd.f32 %v3305_v32, %v7375_v39 }
 0x416   :  { %v3808_v57 = vpack.c.bf16 %v3776_v58, %v3776_v58  ;;  %v3673_v17 = vld [vmem:[#allocation2 + $0xe0] sm:$0xff]  ;;  %v3485_v60 = vpop.f32.mrf.mxu0 }
 0x417   :  { %v3709_v63 = vmul.f32 %v7779_v27, %v3673_v17  ;;  %3639 = vst.msk [vmem:[#allocation2 + $0xe8] sm:$0xff] %vm22_vm3, %v3606_v1  ;;  %v3395_v24 = vadd.f32 %v3394_v15, %v3306_v13 }
 0x418   :  { %3841 = vst.msk [vmem:[%s7854_s4 + $0x6c] sm:$0xf] %vm3813_vm4, %v3808_v57  ;;  %v3574_v19 = vpop.f32.mrf.mxu1 }
 0x419   :  { %v3745_v59 = vadd.f32 %v7790_v62, %v3709_v63  ;;  %v3484_v43 = vadd.f32 %v3483_v45, %v3395_v24 }
 0x41b   :  { %v3777_v31 = vmax.f32 %v3745_v59, 0.0  ;;  %v3573_v39 = vadd.f32 %v3572_v37, %v3484_v43 }
 0x41c   :  { %v3307_v30 = vpop.f32.mrf.mxu2 }
 0x41d   :  { %v3809_v29 = vpack.c.bf16 %v3777_v31, %v3777_v31  ;;  %v3607_v12 = vadd.f32 %v3573_v39, %v85_v51  ;;  %v3308_v28 = vadd.f32 %v3307_v30, %v7395_v38  ;;  %v3396_v55 = vpop.f32.mrf.mxu3 }
 0x41e   :  { %v3674_v11 = vld [vmem:[#allocation2 + $0xe8] sm:$0xff] }
 0x41f   :  { %3842 = vst.msk [vmem:[%s7854_s4 + $0x70] sm:$0xf] %vm3813_vm4, %v3809_v29  ;;  %v3710_v7 = vmul.f32 %v7779_v27, %v3674_v11  ;;  %v3397_v25 = vadd.f32 %v3396_v55, %v3308_v28 }
 0x420   :  { %3640 = vst.msk [vmem:[#allocation2 + $0xf0] sm:$0xff] %vm22_vm3, %v3607_v12 }
 0x421   :  { %v3746_v10 = vadd.f32 %v7790_v62, %v3710_v7  ;;  %v3486_v22 = vadd.f32 %v3485_v60, %v3397_v25 }
 0x423   :  { %v3778_v5 = vmax.f32 %v3746_v10, 0.0  ;;  %v3575_v38 = vadd.f32 %v3574_v19, %v3486_v22 }
 0x425   :  { %v3810_v61 = vpack.c.bf16 %v3778_v5, %v3778_v5  ;;  %v3608_v46 = vadd.f32 %v3575_v38, %v86_v35 }
 0x427   :  { %3843 = vst.msk [vmem:[%s7854_s4 + $0x74] sm:$0xf] %vm3813_vm4, %v3810_v61  ;;  %v3675_v48 = vld [vmem:[#allocation2 + $0xf0] sm:$0xff] }
 0x428   :  { %v3711_v3 = vmul.f32 %v7779_v27, %v3675_v48  ;;  %3641 = vst.msk [vmem:[#allocation2 + $0xf8] sm:$0xff] %vm22_vm3, %v3608_v46 }
 0x42a   :  { %v3747_v18 = vadd.f32 %v7790_v62, %v3711_v3 }
 0x42c   :  { %v3779_v42 = vmax.f32 %v3747_v18, 0.0 }
 0x42e   :  { %v3811_v8 = vpack.c.bf16 %v3779_v42, %v3779_v42 }
 0x42f   :  { %v3676_v33 = vld [vmem:[#allocation2 + $0xf8] sm:$0xff] }
 0x430   :  { %3844 = vst.msk [vmem:[%s7854_s4 + $0x78] sm:$0xf] %vm3813_vm4, %v3811_v8  ;;  %v3712_v20 = vmul.f32 %v7779_v27, %v3676_v33 }
 0x432   :  { %v3748_v53 = vadd.f32 %v7790_v62, %v3712_v20 }
 0x434   :  { %v3780_v36 = vmax.f32 %v3748_v53, 0.0 }
 0x436   :  { %v3812_v50 = vpack.c.bf16 %v3780_v36, %v3780_v36 }
 0x438   :  { %3845 = vst.msk [vmem:[%s7854_s4 + $0x7c] sm:$0xf] %vm3813_vm4, %v3812_v50 }

// kernel: resnet_forward.15
= control target key start
LH: loop header
LB: loop body
LE: loop exit
PB: predicated region body
PF: predicated region fallthrough
CT: control target
= control target key end

     0   :  { %vm2314_vm0 = vcmask 57344   ;;  %s4320_s0 = inlined_call_operand.vmem [shape: bf16[2,5,3,3,8], index: 0, kind: input, shape index: {}]   ;;  %s4321_s1 = inlined_call_operand.vmem [shape: bf16[2,5,3,3,8], index: 1, kind: input, shape index: {}]   ;;  %s4322_s3 = inlined_call_operand.vmem [shape: bf16[2,5,3,3,8], index: 3, kind: input, shape index: {}]   ;;  %s4323_s2 = inlined_call_operand.vmem [shape: bf16[2,5,3,3,8], index: 2, kind: input, shape index: {}]   ;;  %s4324_s4 = inlined_call_operand.vmem [shape: bf16[2,5,3,3,8], index: 4, kind: input, shape index: {}]   ;;  %s4325_s6 = inlined_call_operand.vmem [shape: bf16[2,5,3,3,8], index: 6, kind: input, shape index: {}]   ;;  %s4326_s5 = inlined_call_operand.vmem [shape: bf16[2,5,3,3,8], index: 5, kind: input, shape index: {}]   ;;  %s4327_s7 = inlined_call_operand.vmem [shape: bf16[2,5,3,3,8], index: 7, kind: input, shape index: {}]   ;;  %s4328_s8 = inlined_call_operand.vmem [shape: bf16[2,4,2,2,8], index: 8, kind: output, shape index: {}]  }
   0x1   :  { %v29_v0 = vld [vmem:[%s4320_s0] sm:$0x3]  ;;  %v30_v3 = vld [vmem:[%s4320_s0 + $0x2] sm:$0x3]  ;;  %v32_v5 = vld [vmem:[%s4320_s0 + $0x6] sm:$0x3] }
   0x2   :  { %v209_v1 = vunpack.c.l.bf16 %v29_v0  ;;  %v59_v2 = vld [vmem:[%s4321_s1] sm:$0x3]  ;;  %v2389_v4 = vunpack.c.l.bf16 %v30_v3  ;;  %v2397_v6 = vld [vmem:[%s4321_s1 + $0x2] sm:$0x3]  ;;  %v2399_v7 = vunpack.c.l.bf16 %v32_v5  ;;  %v33_v8 = vld [vmem:[%s4320_s0 + $0x8] sm:$0x3] }
   0x3   :  { %v35_v9 = vld [vmem:[%s4320_s0 + $0xc] sm:$0x3]  ;;  %v225_v10 = vunpack.c.l.bf16 %v59_v2  ;;  %v2408_v11 = vunpack.c.l.bf16 %v33_v8  ;;  %v226_v12 = vunpack.c.l.bf16 %v2397_v6  ;;  %v38_v14 = vld [vmem:[%s4320_s0 + $0x12] sm:$0x3]  ;;  %v2421_v15 = vld [vmem:[%s4323_s2] sm:$0x3] }
   0x4   :  { %305 = vst [vmem:[#allocation1] ss:$2 sm:$0xff] %v209_v1  ;;  %v2413_v13 = vunpack.c.l.bf16 %v35_v9  ;;  %v36_v16 = vld [vmem:[%s4320_s0 + $0xe] sm:$0x3]  ;;  %v109_v17 = vld [vmem:[%s4322_s3] sm:$0x3]  ;;  %v2429_v20 = vunpack.c.l.bf16 %v38_v14  ;;  %v420_v23 = vunpack.c.l.bf16 %v2421_v15 }
   0x5   :  { %4428 = vst [vmem:[#allocation2_spill] sm:$0xff] %v2399_v7  ;;  %v241_v18 = vmax.f32 %v209_v1, %v225_v10  ;;  %v39_v21 = vld [vmem:[%s4320_s0 + $0x14] sm:$0x3]  ;;  %v242_v24 = vmax.f32 %v2389_v4, %v226_v12  ;;  %v2439_v25 = vunpack.c.l.bf16 %v36_v16  ;;  %v44_v26 = vld [vmem:[%s4320_s0 + $0x1e] sm:$0x3]  ;;  %v484_v30 = vunpack.c.l.bf16 %v109_v17 }
   0x6   :  { %308 = vst [vmem:[#allocation1 + $0x10] ss:$2 sm:$0xff] %v2389_v4  ;;  %v45_v28 = vld [vmem:[%s4320_s0 + $0x20] sm:$0x3]  ;;  %v2450_v33 = vunpack.c.l.bf16 %v39_v21  ;;  %v217_v37 = vunpack.c.l.bf16 %v44_v26  ;;  %v47_v38 = vld [vmem:[%s4320_s0 + $0x24] sm:$0x3] }
   0x7   :  { %4429 = vst [vmem:[#allocation3_spill] sm:$0xff] %v2408_v11  ;;  %v48_v39 = vld [vmem:[%s4320_s0 + $0x26] sm:$0x3]  ;;  %v2464_v41 = vunpack.c.l.bf16 %v45_v28  ;;  %v74_v44 = vld [vmem:[%s4321_s1 + $0x1e] sm:$0x3]  ;;  %v2472_v45 = vunpack.c.l.bf16 %v47_v38 }
   0x8   :  { %311 = vst [vmem:[#allocation1 + $0x20] ss:$2 sm:$0xff] %v2399_v7  ;;  %v2478_v47 = vld [vmem:[%s4321_s1 + $0x20] sm:$0x3]  ;;  %v2480_v48 = vunpack.c.l.bf16 %v48_v39  ;;  %v2485_v49 = vld [vmem:[%s4323_s2 + $0x2] sm:$0x3]  ;;  %v233_v54 = vunpack.c.l.bf16 %v74_v44 }
   0x9   :  { %314 = vst [vmem:[#allocation1 + $0x30] ss:$2 sm:$0xff] %v2408_v11  ;;  %v50_v51 = vld [vmem:[%s4320_s0 + $0x2a] sm:$0x3]  ;;  %v421_v52 = vunpack.c.l.bf16 %v2485_v49  ;;  %v2504_v57 = vld [vmem:[%s4321_s1 + $0x12] sm:$0x3]  ;;  %v234_v58 = vunpack.c.l.bf16 %v2478_v47 }
   0xa   :  { %4430 = vst [vmem:[#allocation4_spill] sm:$0xff] %v2413_v13  ;;  %v2511_v59 = vld [vmem:[%s4323_s2 + $0x1e] sm:$0x3]  ;;  %v51_v60 = vld [vmem:[%s4320_s0 + $0x2c] sm:$0x3]  ;;  %v249_v62 = vmax.f32 %v217_v37, %v233_v54  ;;  %v2524_v0 = vunpack.c.l.bf16 %v50_v51  ;;  %v4330_v2 = vunpack.c.l.bf16 %v2504_v57 }
   0xb   :  { %v306_v19 = vld.sshfl [vmem:[#allocation1] sm:$0xff pattern:$0x75316420]  ;;  %4431 = vst [vmem:[#allocation5_spill] sm:$0xff] %v2429_v20  ;;  %v119_v61 = vld [vmem:[%s4322_s3 + $0x1e] sm:$0x3]  ;;  %v428_v9 = vunpack.c.l.bf16 %v2511_v59  ;;  %v250_v10 = vmax.f32 %v2464_v41, %v234_v58  ;;  %v2536_v14 = vunpack.c.l.bf16 %v51_v60 }
   0xc   :  { %v340_v22 = vrot.slane %v306_v19, 1  ;;  %316 = vst [vmem:[#allocation1] ss:$2 sm:$0xff] %v2413_v13  ;;  %v2522_v63 = vld [vmem:[%s4323_s2 + $0x20] sm:$0x3]  ;;  %v492_v16 = vunpack.c.l.bf16 %v119_v61  ;;  %v247_v28 = vmax.f32 %v2429_v20, %v4330_v2 }
   0xd   :  { %4432 = vst [vmem:[#allocation6_spill] sm:$0xff] %v2439_v25  ;;  %v309_v27 = vld.sshfl [vmem:[#allocation1 + $0x10] sm:$0xff pattern:$0x75316420]  ;;  %v120_v17 = vld [vmem:[%s4322_s3 + $0x20] sm:$0x3] }
   0xe   :  { %v372_v29 = vmax.f32 %v241_v18, %v340_v22  ;;  %v341_v31 = vrot.slane %v309_v27, 1  ;;  %318 = vst [vmem:[#allocation1 + $0x10] ss:$2 sm:$0xff] %v2439_v25  ;;  %v53_v1 = vld [vmem:[%s4320_s0 + $0x30] sm:$0x3]  ;;  %v493_v38 = vunpack.c.l.bf16 %v120_v17 }
   0xf   :  { %v2447_v32 = vld.sshfl [vmem:[#allocation1 + $0x20] sm:$0xff pattern:$0x75316420]  ;;  %4433 = vst [vmem:[#allocation7_spill] sm:$0xff] %v2450_v33  ;;  %v54_v5 = vld [vmem:[%s4320_s0 + $0x32] sm:$0x3]  ;;  %v2541_v19 = vunpack.c.l.bf16 %v53_v1 }
  0x10   :  { %v2452_v34 = vld.sshfl [vmem:[#allocation1 + $0x30] sm:$0xff pattern:$0x75316420]  ;;  %320 = vst [vmem:[#allocation1 + $0x20] ss:$2 sm:$0xff] %v2429_v20  ;;  %v436_v35 = vmax.f32 %v372_v29, %v420_v23  ;;  %v373_v36 = vmax.f32 %v242_v24, %v341_v31  ;;  %v429_v24 = vunpack.c.l.bf16 %v2522_v63  ;;  %v2547_v27 = vunpack.c.l.bf16 %v54_v5 }
  0x11   :  { %4434 = vst [vmem:[#allocation8_spill] sm:$0xff] %v2452_v34  ;;  %v2558_v31 = vld [vmem:[%s4323_s2 + $0x18] sm:$0x3]  ;;  %v2568_v39 = vld [vmem:[%s4321_s1 + $0x6] sm:$0x3] }
  0x12   :  { %322 = vst [vmem:[#allocation1 + $0x30] ss:$2 sm:$0xff] %v2450_v33  ;;  %v500_v40 = vmax.f32 %v436_v35, %v484_v30  ;;  %v437_v42 = vmax.f32 %v373_v36, %v2408_v11  ;;  %v91_v6 = vld [vmem:[%s4323_s2 + $0x6] sm:$0x3]  ;;  %v4329_v44 = vunpack.c.l.bf16 %v2558_v31  ;;  %v2589_v61 = vld [vmem:[%s4321_s1 + $0x24] sm:$0x3]  ;;  %v4332_v1 = vunpack.c.l.bf16 %v2568_v39 }
  0x13   :  { %v2467_v43 = vld.sshfl [vmem:[#allocation1] sm:$0xff pattern:$0x75316420]  ;;  %4435 = vst [vmem:[#allocation9_spill] sm:$0xff] %v2472_v45  ;;  %v2599_v5 = vunpack.c.l.bf16 %v91_v6  ;;  %v95_v49 = vld [vmem:[%s4323_s2 + $0x12] sm:$0x3] }
  0x14   :  { %v631_v46 = vmax.f32 %v500_v40, %v2389_v4  ;;  %324 = vst [vmem:[#allocation1] ss:$2 sm:$0xff] %v217_v37  ;;  %v2499_v56 = vmax.f32 %v437_v42, %v421_v52  ;;  %v102_v51 = vld [vmem:[%s4323_s2 + $0x26] sm:$0x3]  ;;  %v104_v59 = vld [vmem:[%s4323_s2 + $0x2c] sm:$0x3] }
  0x15   :  { %4436 = vst [vmem:[#allocation10_spill] sm:$0xff] %v2480_v48  ;;  %v2487_v50 = vld.sshfl [vmem:[#allocation1 + $0x10] sm:$0xff pattern:$0x75316420] }
  0x16   :  { %4437 = vst [vmem:[#allocation11_spill] sm:$0xff] %v2487_v50  ;;  %v687_v35 = vmax.f32 %v631_v46, %v226_v12  ;;  %v92_v12 = vld [vmem:[%s4323_s2 + $0x8] sm:$0x3]  ;;  %v105_v63 = vld [vmem:[%s4323_s2 + $0x30] sm:$0x3] }
  0x17   :  { %v321_v53 = vld.sshfl [vmem:[#allocation1 + $0x20] sm:$0xff pattern:$0x75316420]  ;;  %326 = vst [vmem:[#allocation1 + $0x10] ss:$2 sm:$0xff] %v2464_v41  ;;  %v2609_v15 = vunpack.c.l.bf16 %v92_v12 }
  0x18   :  { %328 = vst [vmem:[#allocation1 + $0x20] ss:$2 sm:$0xff] %v2472_v45  ;;  %v346_v29 = vrot.slane %v321_v53, 1  ;;  %v743_v53 = vmax.f32 %v687_v35, %v2399_v7 }
  0x19   :  { %v2494_v55 = vld.sshfl [vmem:[#allocation1 + $0x30] sm:$0xff pattern:$0x75316420]  ;;  %4439 = vst [vmem:[#allocation13_spill] sm:$0xff] %v2524_v0 }
  0x1a   :  { %4438 = vst [vmem:[#allocation12_spill] sm:$0xff] %v2494_v55  ;;  %v378_v46 = vmax.f32 %v247_v28, %v346_v29  ;;  %v4331_v28 = vunpack.c.l.bf16 %v2589_v61  ;;  %v2630_v29 = vld [vmem:[%s4320_s0 + $0x22] sm:$0x3] }
  0x1b   :  { %330 = vst [vmem:[#allocation1 + $0x30] ss:$2 sm:$0xff] %v2480_v48  ;;  %v325_v3 = vld.sshfl [vmem:[#allocation1] sm:$0xff pattern:$0x75316420] }
  0x1c   :  { %v348_v8 = vrot.slane %v325_v3, 1  ;;  %332 = vst [vmem:[#allocation1] ss:$2 sm:$0xff] %v2524_v0 }
  0x1d   :  { %4440 = vst [vmem:[#allocation14_spill] sm:$0xff] %v2536_v14 }
  0x1e   :  { %v327_v18 = vld.sshfl [vmem:[#allocation1 + $0x10] sm:$0xff pattern:$0x75316420]  ;;  %4441 = vst [vmem:[#allocation15_spill] sm:$0xff] %v2541_v19  ;;  %v380_v21 = vmax.f32 %v249_v62, %v348_v8  ;;  %v110_v62 = vld [vmem:[%s4322_s3 + $0x2] sm:$0x3] }
  0x1f   :  { %v349_v22 = vrot.slane %v327_v18, 1  ;;  %v2544_v26 = vld.sshfl [vmem:[#allocation1 + $0x20] sm:$0xff pattern:$0x75316420]  ;;  %334 = vst [vmem:[#allocation1 + $0x10] ss:$2 sm:$0xff] %v2536_v14  ;;  %v442_v18 = vmax.f32 %v378_v46, %v4329_v44  ;;  %v485_v35 = vunpack.c.l.bf16 %v110_v62  ;;  %v2646_v46 = vunpack.c.l.bf16 %v95_v49 }
  0x20   :  { %336 = vst [vmem:[#allocation1 + $0x20] ss:$2 sm:$0xff] %v2541_v19  ;;  %v444_v36 = vmax.f32 %v380_v21, %v428_v9  ;;  %v93_v8 = vld [vmem:[%s4323_s2 + $0xc] sm:$0x3] }
  0x21   :  { %4443 = vst [vmem:[#allocation17_spill] sm:$0xff] %v2558_v31  ;;  %v381_v37 = vmax.f32 %v250_v10, %v349_v22  ;;  %v506_v6 = vmax.f32 %v442_v18, %v2450_v33 }
  0x22   :  { %v2552_v30 = vld.sshfl [vmem:[#allocation1 + $0x30] sm:$0xff pattern:$0x75316420]  ;;  %v508_v40 = vmax.f32 %v444_v36, %v492_v16  ;;  %v94_v36 = vld [vmem:[%s4323_s2 + $0xe] sm:$0x3] }
  0x23   :  { %4442 = vst [vmem:[#allocation16_spill] sm:$0xff] %v2552_v30  ;;  %v445_v42 = vmax.f32 %v381_v37, %v429_v24  ;;  %v2579_v47 = vld.sshfl [vmem:[#allocation1] sm:$0xff pattern:$0x75316420]  ;;  %v4336_v37 = vunpack.c.l.bf16 %v2630_v29  ;;  %v2657_v62 = vunpack.c.l.bf16 %v94_v36 }
  0x24   :  { %338 = vst [vmem:[#allocation1 + $0x30] ss:$2 sm:$0xff] %v2547_v27  ;;  %v639_v54 = vmax.f32 %v508_v40, %v2464_v41  ;;  %v2641_v40 = vld [vmem:[%s4320_s0 + $0x4] sm:$0x3] }
  0x25   :  { %4444 = vst [vmem:[#allocation18_spill] sm:$0xff] %v2579_v47  ;;  %v509_v60 = vmax.f32 %v445_v42, %v493_v38  ;;  %v2643_v42 = vunpack.c.l.bf16 %v93_v8  ;;  %v101_v8 = vld [vmem:[%s4323_s2 + $0x24] sm:$0x3]  ;;  %v679_v18 = vunpack.c.l.bf16 %v2641_v40 }
  0x26   :  { %564 = vst [vmem:[#allocation1] ss:$2 sm:$0xff] %v420_v23  ;;  %v2597_v3 = vld.sshfl [vmem:[#allocation1 + $0x10] sm:$0xff pattern:$0x75316420]  ;;  %v695_v10 = vmax.f32 %v639_v54, %v234_v58  ;;  %v2611_v23 = vunpack.c.l.bf16 %v102_v51  ;;  %v866_v58 = vmax.f32 %v743_v53, %v4332_v1  ;;  %v2742_v1 = vunpack.c.l.bf16 %v104_v59 }
  0x27   :  { %4445 = vst [vmem:[#allocation19_spill] sm:$0xff] %v2597_v3  ;;  %v640_v16 = vmax.f32 %v509_v60, %v2480_v48  ;;  %v2605_v17 = vld.sshfl [vmem:[#allocation1 + $0x20] sm:$0xff pattern:$0x75316420]  ;;  %v96_v51 = vld [vmem:[%s4323_s2 + $0x14] sm:$0x3] }
  0x28   :  { %4446 = vst [vmem:[#allocation20_spill] sm:$0xff] %v2605_v17  ;;  %v751_v22 = vmax.f32 %v695_v10, %v2472_v45  ;;  %v930_v54 = vmax.f32 %v866_v58, %v2408_v11  ;;  %v632_v10 = vmax.f32 %v2499_v56, %v485_v35  ;;  %v637_v56 = vmax.f32 %v506_v6, %v2646_v46  ;;  %v34_v59 = vld [vmem:[%s4320_s0 + $0xa] sm:$0x3] }
  0x29   :  { %567 = vst [vmem:[#allocation1 + $0x10] ss:$2 sm:$0xff] %v421_v52  ;;  %v696_v52 = vmax.f32 %v640_v16, %v2611_v23 }
  0x2a   :  { %4447 = vst [vmem:[#allocation21_spill] sm:$0xff] %v2611_v23  ;;  %v874_v38 = vmax.f32 %v751_v22, %v4331_v28  ;;  %v2667_v22 = vld [vmem:[%s4324_s4 + $0x12] sm:$0x3] }
  0x2b   :  { %v2615_v21 = vld.sshfl [vmem:[#allocation1 + $0x30] sm:$0xff pattern:$0x75316420]  ;;  %570 = vst [vmem:[#allocation1 + $0x20] ss:$2 sm:$0xff] %v2599_v5  ;;  %v2653_v53 = vmax.f32 %v696_v52, %v4336_v37 }
  0x2c   :  { %4448 = vst [vmem:[#allocation22_spill] sm:$0xff] %v2615_v21  ;;  %v938_v58 = vmax.f32 %v874_v38, %v2480_v48  ;;  %v2681_v38 = vunpack.c.l.bf16 %v101_v8  ;;  %v2858_v21 = vld [vmem:[%s4324_s4 + $0xc] sm:$0x3] }
  0x2d   :  { %573 = vst [vmem:[#allocation1 + $0x30] ss:$2 sm:$0xff] %v2609_v15  ;;  %v565_v12 = vld.sshfl [vmem:[#allocation1] sm:$0xff pattern:$0x75316420] }
  0x2e   :  { %v599_v60 = vrot.slane %v565_v12, 1  ;;  %575 = vst [vmem:[#allocation1] ss:$2 sm:$0xff] %v2643_v42  ;;  %v2673_v12 = vunpack.c.l.bf16 %v96_v51  ;;  %v1002_v6 = vmax.f32 %v938_v58, %v2681_v38 }
  0x2f   :  { %4449 = vst [vmem:[#allocation23_spill] sm:$0xff] %v2657_v62 }
  0x30   :  { %v568_v16 = vld.sshfl [vmem:[#allocation1 + $0x10] sm:$0xff pattern:$0x75316420]  ;;  %v994_v49 = vmax.f32 %v930_v54, %v599_v60  ;;  %v2686_v54 = vld [vmem:[%s4324_s4] sm:$0x3]  ;;  %v4334_v60 = vunpack.c.l.bf16 %v2667_v22  ;;  %4459 = vst [vmem:[#allocation33_spill] sm:$0xff] %v2742_v1 }
  0x31   :  { %v600_v52 = vrot.slane %v568_v16, 1  ;;  %577 = vst [vmem:[#allocation1 + $0x10] ss:$2 sm:$0xff] %v2657_v62  ;;  %v4335_v51 = vunpack.c.l.bf16 %v2686_v54 }
  0x32   :  { %v2670_v36 = vld.sshfl [vmem:[#allocation1 + $0x20] sm:$0xff pattern:$0x75316420]  ;;  %v1125_v40 = vmax.f32 %v994_v49, %v2599_v5  ;;  %v2701_v8 = vmax.f32 %v637_v56, %v4334_v60  ;;  %v2746_v60 = vunpack.c.l.bf16 %v105_v63 }
  0x33   :  { %4450 = vst [vmem:[#allocation24_spill] sm:$0xff] %v2670_v36  ;;  %v688_v35 = vmax.f32 %v632_v10, %v600_v52  ;;  %v2706_v52 = vld [vmem:[%s4324_s4 + $0x1e] sm:$0x3] }
  0x34   :  { %v2675_v44 = vld.sshfl [vmem:[#allocation1 + $0x30] sm:$0xff pattern:$0x75316420]  ;;  %579 = vst [vmem:[#allocation1 + $0x20] ss:$2 sm:$0xff] %v2646_v46  ;;  %v2697_v49 = vmax.f32 %v1125_v40, %v4335_v51  ;;  %v4333_v58 = vunpack.c.l.bf16 %v2706_v52 }
  0x35   :  { %4451 = vst [vmem:[#allocation25_spill] sm:$0xff] %v2675_v44  ;;  %v2690_v16 = vmax.f32 %v688_v35, %v679_v18  ;;  %v2693_v10 = vld.sshfl [vmem:[#allocation1] sm:$0xff pattern:$0x75316420]  ;;  %v103_v40 = vld [vmem:[%s4323_s2 + $0x2a] sm:$0x3] }
  0x36   :  { %581 = vst [vmem:[#allocation1 + $0x30] ss:$2 sm:$0xff] %v2673_v12  ;;  %v2722_v2 = vmax.f32 %v1002_v6, %v4333_v58  ;;  %v106_v6 = vld [vmem:[%s4323_s2 + $0x32] sm:$0x3]  ;;  %v2954_v44 = vld [vmem:[%s4325_s6] sm:$0x3] }
  0x37   :  { %4452 = vst [vmem:[#allocation26_spill] sm:$0xff] %v2693_v10  ;;  %v2751_v51 = vunpack.c.l.bf16 %v106_v6  ;;  %v2767_v6 = vunpack.c.l.bf16 %v34_v59 }
  0x38   :  { %583 = vst [vmem:[#allocation1] ss:$2 sm:$0xff] %v428_v9  ;;  %v2711_v35 = vld.sshfl [vmem:[#allocation1 + $0x10] sm:$0xff pattern:$0x75316420]  ;;  %v2731_v9 = vunpack.c.l.bf16 %v103_v40 }
  0x39   :  { %4453 = vst [vmem:[#allocation27_spill] sm:$0xff] %v2711_v35 }
  0x3a   :  { %585 = vst [vmem:[#allocation1 + $0x10] ss:$2 sm:$0xff] %v429_v24 }
  0x3b   :  { %v2718_v56 = vld.sshfl [vmem:[#allocation1 + $0x20] sm:$0xff pattern:$0x75316420]  ;;  %4455 = vst [vmem:[#allocation29_spill] sm:$0xff] %v2722_v2 }
  0x3c   :  { %4454 = vst [vmem:[#allocation28_spill] sm:$0xff] %v2718_v56  ;;  %v2918_v56 = vld [vmem:[%s4324_s4 + $0x2a] sm:$0x3] }
  0x3d   :  { %v2724_v28 = vld.sshfl [vmem:[#allocation1 + $0x30] sm:$0xff pattern:$0x75316420]  ;;  %587 = vst [vmem:[#allocation1 + $0x20] ss:$2 sm:$0xff] %v2681_v38 }
  0x3e   :  { %4456 = vst [vmem:[#allocation30_spill] sm:$0xff] %v2724_v28 }
  0x3f   :  { %589 = vst [vmem:[#allocation1 + $0x30] ss:$2 sm:$0xff] %v2611_v23  ;;  %v2736_v24 = vld.sshfl [vmem:[#allocation1] sm:$0xff pattern:$0x75316420] }
  0x40   :  { %4457 = vst [vmem:[#allocation31_spill] sm:$0xff] %v2731_v9 }
  0x41   :  { %4458 = vst [vmem:[#allocation32_spill] sm:$0xff] %v2736_v24  ;;  %v2744_v58 = vld.sshfl [vmem:[#allocation1 + $0x10] sm:$0xff pattern:$0x75316420] }
  0x42   :  { %591 = vst [vmem:[#allocation1] ss:$2 sm:$0xff] %v2731_v9 }
  0x43   :  { %4460 = vst [vmem:[#allocation34_spill] sm:$0xff] %v2744_v58 }
  0x44   :  { %v2748_v40 = vld.sshfl [vmem:[#allocation1 + $0x20] sm:$0xff pattern:$0x75316420]  ;;  %593 = vst [vmem:[#allocation1 + $0x10] ss:$2 sm:$0xff] %v2742_v1 }
  0x45   :  { %4461 = vst [vmem:[#allocation35_spill] sm:$0xff] %v2748_v40 }
  0x46   :  { %4462 = vst [vmem:[#allocation36_spill] sm:$0xff] %v2751_v51  ;;  %v2753_v37 = vld.sshfl [vmem:[#allocation1 + $0x30] sm:$0xff pattern:$0x75316420] }
  0x47   :  { %4463 = vst [vmem:[#allocation37_spill] sm:$0xff] %v2753_v37 }
  0x48   :  { %595 = vst [vmem:[#allocation1 + $0x20] ss:$2 sm:$0xff] %v2746_v60 }
  0x49   :  { %597 = vst [vmem:[#allocation1 + $0x30] ss:$2 sm:$0xff] %v2751_v51  ;;  %v2757_v31 = vld.sshfl [vmem:[#allocation1] sm:$0xff pattern:$0x75316420] }
  0x4a   :  { %4464 = vst [vmem:[#allocation38_spill] sm:$0xff] %v2757_v31  ;;  %v37_v31 = vld [vmem:[%s4320_s0 + $0x10] sm:$0x3] }
  0x4b   :  { %799 = vst [vmem:[#allocation1] ss:$2 sm:$0xff] %v2389_v4  ;;  %v2763_v63 = vld.sshfl [vmem:[#allocation1 + $0x10] sm:$0xff pattern:$0x75316420] }
  0x4c   :  { %4465 = vst [vmem:[#allocation39_spill] sm:$0xff] %v2763_v63  ;;  %v40_v4 = vld [vmem:[%s4320_s0 + $0x16] sm:$0x3] }
  0x4d   :  { %802 = vst [vmem:[#allocation1 + $0x10] ss:$2 sm:$0xff] %v679_v18  ;;  %v2782_v18 = vunpack.c.l.bf16 %v37_v31  ;;  %v49_v31 = vld [vmem:[%s4320_s0 + $0x28] sm:$0x3] }
  0x4e   :  { %4467 = vst [vmem:[#allocation41_spill] sm:$0xff] %v2767_v6  ;;  %v2807_v47 = vunpack.c.l.bf16 %v49_v31 }
  0x4f   :  { %v2765_v17 = vld.sshfl [vmem:[#allocation1 + $0x20] sm:$0xff pattern:$0x75316420]  ;;  %4470 = vst [vmem:[#allocation44_spill] sm:$0xff] %v2782_v18 }
  0x50   :  { %4466 = vst [vmem:[#allocation40_spill] sm:$0xff] %v2765_v17  ;;  %v2770_v37 = vld.sshfl [vmem:[#allocation1 + $0x30] sm:$0xff pattern:$0x75316420] }
  0x51   :  { %805 = vst [vmem:[#allocation1 + $0x20] ss:$2 sm:$0xff] %v2408_v11 }
  0x52   :  { %4468 = vst [vmem:[#allocation42_spill] sm:$0xff] %v2770_v37  ;;  %v2776_v40 = vld.sshfl [vmem:[#allocation1] sm:$0xff pattern:$0x75316420]  ;;  %v2789_v37 = vunpack.c.l.bf16 %v40_v4  ;;  %v4478_v4 = vunpack.c.l.bf16 %v2630_v29 }
  0x53   :  { %808 = vst [vmem:[#allocation1 + $0x30] ss:$2 sm:$0xff] %v2767_v6 }
  0x54   :  { %4469 = vst [vmem:[#allocation43_spill] sm:$0xff] %v2776_v40  ;;  %v2784_v59 = vld.sshfl [vmem:[#allocation1 + $0x10] sm:$0xff pattern:$0x75316420] }
  0x55   :  { %810 = vst [vmem:[#allocation1] ss:$2 sm:$0xff] %v2439_v25 }
  0x56   :  { %4471 = vst [vmem:[#allocation45_spill] sm:$0xff] %v2784_v59 }
  0x57   :  { %812 = vst [vmem:[#allocation1 + $0x10] ss:$2 sm:$0xff] %v2782_v18 }
  0x58   :  { %v2786_v17 = vld.sshfl [vmem:[#allocation1 + $0x20] sm:$0xff pattern:$0x75316420]  ;;  %4473 = vst [vmem:[#allocation47_spill] sm:$0xff] %v2789_v37 }
  0x59   :  { %4472 = vst [vmem:[#allocation46_spill] sm:$0xff] %v2786_v17 }
  0x5a   :  { %814 = vst [vmem:[#allocation1 + $0x20] ss:$2 sm:$0xff] %v2450_v33  ;;  %v2792_v63 = vld.sshfl [vmem:[#allocation1 + $0x30] sm:$0xff pattern:$0x75316420] }
  0x5b   :  { %4474 = vst [vmem:[#allocation48_spill] sm:$0xff] %v2792_v63 }
  0x5c   :  { %816 = vst [vmem:[#allocation1 + $0x30] ss:$2 sm:$0xff] %v2789_v37  ;;  %v2795_v40 = vld.sshfl [vmem:[#allocation1] sm:$0xff pattern:$0x75316420] }
  0x5d   :  { %4475 = vst [vmem:[#allocation49_spill] sm:$0xff] %v2795_v40  ;;  %v52_v40 = vld [vmem:[%s4320_s0 + $0x2e] sm:$0x3] }
  0x5e   :  { %818 = vst [vmem:[#allocation1] ss:$2 sm:$0xff] %v2464_v41  ;;  %v2801_v59 = vld.sshfl [vmem:[#allocation1 + $0x10] sm:$0xff pattern:$0x75316420]  ;;  %v2822_v29 = vunpack.c.l.bf16 %v52_v40 }
  0x5f   :  { %4476 = vst [vmem:[#allocation50_spill] sm:$0xff] %v2801_v59  ;;  %v2841_v40 = vld [vmem:[%s4324_s4 + $0x6] sm:$0x3] }
  0x60   :  { %820 = vst [vmem:[#allocation1 + $0x10] ss:$2 sm:$0xff] %v4478_v4  ;;  %v4338_v24 = vunpack.c.l.bf16 %v2841_v40 }
  0x61   :  { %v2803_v17 = vld.sshfl [vmem:[#allocation1 + $0x20] sm:$0xff pattern:$0x75316420]  ;;  %4479 = vst [vmem:[#allocation52_spill] sm:$0xff] %v2807_v47 }
  0x62   :  { %4477 = vst [vmem:[#allocation51_spill] sm:$0xff] %v2803_v17  ;;  %v55_v17 = vld [vmem:[%s4320_s0 + $0x34] sm:$0x3] }
  0x63   :  { %822 = vst [vmem:[#allocation1 + $0x20] ss:$2 sm:$0xff] %v2480_v48  ;;  %v2810_v63 = vld.sshfl [vmem:[#allocation1 + $0x30] sm:$0xff pattern:$0x75316420] }
  0x64   :  { %4480 = vst [vmem:[#allocation53_spill] sm:$0xff] %v2810_v63  ;;  %v2829_v63 = vunpack.c.l.bf16 %v55_v17  ;;  %v133_v17 = vld [vmem:[%s4324_s4 + $0x8] sm:$0x3] }
  0x65   :  { %824 = vst [vmem:[#allocation1 + $0x30] ss:$2 sm:$0xff] %v2807_v47  ;;  %v2816_v41 = vld.sshfl [vmem:[#allocation1] sm:$0xff pattern:$0x75316420] }
  0x66   :  { %4481 = vst [vmem:[#allocation54_spill] sm:$0xff] %v2816_v41  ;;  %v130_v41 = vld [vmem:[%s4324_s4 + $0x2] sm:$0x3] }
  0x67   :  { %826 = vst [vmem:[#allocation1] ss:$2 sm:$0xff] %v2536_v14  ;;  %v2824_v31 = vld.sshfl [vmem:[#allocation1 + $0x10] sm:$0xff pattern:$0x75316420] }
  0x68   :  { %4482 = vst [vmem:[#allocation55_spill] sm:$0xff] %v2822_v29 }
  0x69   :  { %4483 = vst [vmem:[#allocation56_spill] sm:$0xff] %v2824_v31 }
  0x6a   :  { %v2826_v4 = vld.sshfl [vmem:[#allocation1 + $0x20] sm:$0xff pattern:$0x75316420]  ;;  %828 = vst [vmem:[#allocation1 + $0x10] ss:$2 sm:$0xff] %v2822_v29 }
  0x6b   :  { %4484 = vst [vmem:[#allocation57_spill] sm:$0xff] %v2826_v4  ;;  %v4488_v4 = vunpack.c.l.bf16 %v2686_v54  ;;  %v136_v54 = vld [vmem:[%s4324_s4 + $0xe] sm:$0x3] }
  0x6c   :  { %4485 = vst [vmem:[#allocation58_spill] sm:$0xff] %v2829_v63  ;;  %v2832_v59 = vld.sshfl [vmem:[#allocation1 + $0x30] sm:$0xff pattern:$0x75316420] }
  0x6d   :  { %830 = vst [vmem:[#allocation1 + $0x20] ss:$2 sm:$0xff] %v2547_v27 }
  0x6e   :  { %4486 = vst [vmem:[#allocation59_spill] sm:$0xff] %v2832_v59  ;;  %v2843_v31 = vld.sshfl [vmem:[#allocation1] sm:$0xff pattern:$0x75316420]  ;;  %v2850_v59 = vunpack.c.l.bf16 %v130_v41  ;;  %v4339_v41 = vunpack.c.l.bf16 %v2858_v21 }
  0x6f   :  { %832 = vst [vmem:[#allocation1 + $0x30] ss:$2 sm:$0xff] %v2829_v63 }
  0x70   :  { %4487 = vst [vmem:[#allocation60_spill] sm:$0xff] %v2843_v31  ;;  %v2863_v31 = vunpack.c.l.bf16 %v133_v17  ;;  %v139_v17 = vld [vmem:[%s4324_s4 + $0x14] sm:$0x3] }
  0x71   :  { %1058 = vst [vmem:[#allocation1] ss:$2 sm:$0xff] %v4488_v4  ;;  %v2852_v58 = vld.sshfl [vmem:[#allocation1 + $0x10] sm:$0xff pattern:$0x75316420] }
  0x72   :  { %4489 = vst [vmem:[#allocation61_spill] sm:$0xff] %v2852_v58 }
  0x73   :  { %1061 = vst [vmem:[#allocation1 + $0x10] ss:$2 sm:$0xff] %v2850_v59 }
  0x74   :  { %v2860_v3 = vld.sshfl [vmem:[#allocation1 + $0x20] sm:$0xff pattern:$0x75316420]  ;;  %4505 = vst [vmem:[#allocation75_spill] sm:$0xff] %v2954_v44 }
  0x75   :  { %4490 = vst [vmem:[#allocation62_spill] sm:$0xff] %v2860_v3  ;;  %v2888_v3 = vunpack.c.l.bf16 %v139_v17  ;;  %v145_v17 = vld [vmem:[%s4324_s4 + $0x26] sm:$0x3] }
  0x76   :  { %v2865_v28 = vld.sshfl [vmem:[#allocation1 + $0x30] sm:$0xff pattern:$0x75316420]  ;;  %1064 = vst [vmem:[#allocation1 + $0x20] ss:$2 sm:$0xff] %v4338_v24 }
  0x77   :  { %4491 = vst [vmem:[#allocation63_spill] sm:$0xff] %v2865_v28  ;;  %v2881_v28 = vunpack.c.l.bf16 %v136_v54  ;;  %v142_v54 = vld [vmem:[%s4324_s4 + $0x20] sm:$0x3] }
  0x78   :  { %1067 = vst [vmem:[#allocation1 + $0x30] ss:$2 sm:$0xff] %v2863_v31  ;;  %v2874_v4 = vld.sshfl [vmem:[#allocation1] sm:$0xff pattern:$0x75316420] }
  0x79   :  { %4492 = vst [vmem:[#allocation64_spill] sm:$0xff] %v2874_v4  ;;  %v4496_v4 = vunpack.c.l.bf16 %v2667_v22  ;;  %v4498_v22 = vunpack.c.l.bf16 %v2706_v52  ;;  %v148_v52 = vld [vmem:[%s4324_s4 + $0x2c] sm:$0x3] }
  0x7a   :  { %1069 = vst [vmem:[#allocation1] ss:$2 sm:$0xff] %v4339_v41  ;;  %v2883_v24 = vld.sshfl [vmem:[#allocation1 + $0x10] sm:$0xff pattern:$0x75316420] }
  0x7b   :  { %4493 = vst [vmem:[#allocation65_spill] sm:$0xff] %v2883_v24  ;;  %v2901_v41 = vld [vmem:[%s4324_s4 + $0x24] sm:$0x3] }
  0x7c   :  { %1071 = vst [vmem:[#allocation1 + $0x10] ss:$2 sm:$0xff] %v2881_v28  ;;  %v4340_v24 = vunpack.c.l.bf16 %v2901_v41 }
  0x7d   :  { %v2885_v58 = vld.sshfl [vmem:[#allocation1 + $0x20] sm:$0xff pattern:$0x75316420] }
  0x7e   :  { %4494 = vst [vmem:[#allocation66_spill] sm:$0xff] %v2885_v58 }
  0x7f   :  { %v2890_v30 = vld.sshfl [vmem:[#allocation1 + $0x30] sm:$0xff pattern:$0x75316420]  ;;  %1073 = vst [vmem:[#allocation1 + $0x20] ss:$2 sm:$0xff] %v4496_v4  ;;  %v2910_v4 = vunpack.c.l.bf16 %v142_v54  ;;  %v4341_v54 = vunpack.c.l.bf16 %v2918_v56 }
  0x80   :  { %4495 = vst [vmem:[#allocation67_spill] sm:$0xff] %v2890_v30 }
  0x81   :  { %1075 = vst [vmem:[#allocation1 + $0x30] ss:$2 sm:$0xff] %v2888_v3  ;;  %v2903_v58 = vld.sshfl [vmem:[#allocation1] sm:$0xff pattern:$0x75316420] }
  0x82   :  { %4497 = vst [vmem:[#allocation68_spill] sm:$0xff] %v2903_v58  ;;  %v2923_v58 = vunpack.c.l.bf16 %v145_v17 }
  0x83   :  { %1077 = vst [vmem:[#allocation1] ss:$2 sm:$0xff] %v4498_v22  ;;  %v2912_v30 = vld.sshfl [vmem:[#allocation1 + $0x10] sm:$0xff pattern:$0x75316420] }
  0x84   :  { %4499 = vst [vmem:[#allocation69_spill] sm:$0xff] %v2912_v30  ;;  %v2937_v22 = vld [vmem:[%s4324_s4 + $0x30] sm:$0x3] }
  0x85   :  { %1079 = vst [vmem:[#allocation1 + $0x10] ss:$2 sm:$0xff] %v2910_v4  ;;  %v4342_v30 = vunpack.c.l.bf16 %v2937_v22 }
  0x86   :  { %v2920_v10 = vld.sshfl [vmem:[#allocation1 + $0x20] sm:$0xff pattern:$0x75316420] }
  0x87   :  { %4500 = vst [vmem:[#allocation70_spill] sm:$0xff] %v2920_v10 }
  0x88   :  { %v2925_v35 = vld.sshfl [vmem:[#allocation1 + $0x30] sm:$0xff pattern:$0x75316420]  ;;  %1081 = vst [vmem:[#allocation1 + $0x20] ss:$2 sm:$0xff] %v4340_v24  ;;  %v2946_v24 = vunpack.c.l.bf16 %v148_v52 }
  0x89   :  { %4501 = vst [vmem:[#allocation71_spill] sm:$0xff] %v2925_v35  ;;  %v151_v35 = vld [vmem:[%s4324_s4 + $0x32] sm:$0x3]  ;;  %v2969_v52 = vld [vmem:[%s4325_s6 + $0x2] sm:$0x3] }
  0x8a   :  { %1083 = vst [vmem:[#allocation1 + $0x30] ss:$2 sm:$0xff] %v2923_v58  ;;  %v2939_v17 = vld.sshfl [vmem:[#allocation1] sm:$0xff pattern:$0x75316420] }
  0x8b   :  { %4502 = vst [vmem:[#allocation72_spill] sm:$0xff] %v2939_v17  ;;  %v2959_v17 = vunpack.c.l.bf16 %v151_v35  ;;  %v4347_v35 = vunpack.c.l.bf16 %v2954_v44  ;;  %v4515_v44 = vunpack.c.l.bf16 %v2568_v39  ;;  %v344_v39 = vrot.slane %v2467_v43, 1 }
  0x8c   :  { %1085 = vst [vmem:[#allocation1] ss:$2 sm:$0xff] %v4341_v54  ;;  %v2948_v10 = vld.sshfl [vmem:[#allocation1 + $0x10] sm:$0xff pattern:$0x75316420] }
  0x8d   :  { %4503 = vst [vmem:[#allocation73_spill] sm:$0xff] %v2946_v24  ;;  %v2974_v54 = vld [vmem:[%s4321_s1 + $0xc] sm:$0x3] }
  0x8e   :  { %4504 = vst [vmem:[#allocation74_spill] sm:$0xff] %v2948_v10  ;;  %v4349_v10 = vunpack.c.l.bf16 %v2969_v52  ;;  %v229_v50 = vunpack.c.l.bf16 %v2974_v54  ;;  %v243_v54 = vmax.f32 %v2399_v7, %v4515_v44  ;;  %v4517_v44 = vunpack.c.l.bf16 %v2589_v61 }
  0x8f   :  { %v2956_v36 = vld.sshfl [vmem:[#allocation1 + $0x20] sm:$0xff pattern:$0x75316420]  ;;  %1087 = vst [vmem:[#allocation1 + $0x10] ss:$2 sm:$0xff] %v2946_v24 }
  0x90   :  { %4506 = vst [vmem:[#allocation76_spill] sm:$0xff] %v2956_v36  ;;  %v2987_v36 = vld [vmem:[%s4325_s6 + $0x8] sm:$0x3] }
  0x91   :  { %4507 = vst [vmem:[#allocation77_spill] sm:$0xff] %v2959_v17  ;;  %v2961_v55 = vld.sshfl [vmem:[#allocation1 + $0x30] sm:$0xff pattern:$0x75316420] }
  0x92   :  { %4508 = vst [vmem:[#allocation78_spill] sm:$0xff] %v2961_v55  ;;  %v2980_v55 = vld [vmem:[%s4325_s6 + $0x6] sm:$0x3] }
  0x93   :  { %1089 = vst [vmem:[#allocation1 + $0x20] ss:$2 sm:$0xff] %v4342_v30  ;;  %v2982_v30 = vld.sshfl [vmem:[#allocation1] sm:$0xff pattern:$0x75316420] }
  0x94   :  { %1091 = vst [vmem:[#allocation1 + $0x30] ss:$2 sm:$0xff] %v2959_v17  ;;  %v4350_v17 = vunpack.c.l.bf16 %v2980_v55 }
  0x95   :  { %4509 = vst [vmem:[#allocation79_spill] sm:$0xff] %v2969_v52 }
  0x96   :  { %4510 = vst [vmem:[#allocation80_spill] sm:$0xff] %v2980_v55  ;;  %v2993_v34 = vld.sshfl [vmem:[#allocation1 + $0x10] sm:$0xff pattern:$0x75316420] }
  0x97   :  { %4511 = vst [vmem:[#allocation81_spill] sm:$0xff] %v2982_v30  ;;  %v2999_v30 = vld [vmem:[%s4325_s6 + $0xc] sm:$0x3]  ;;  %v3041_v55 = vld [vmem:[%s4325_s6 + $0x14] sm:$0x3] }
  0x98   :  { %4512 = vst [vmem:[#allocation82_spill] sm:$0xff] %v2987_v36  ;;  %v4357_v7 = vunpack.c.l.bf16 %v2999_v30 }
  0x99   :  { %1317 = vst [vmem:[#allocation1] ss:$2 sm:$0xff] %v4347_v35  ;;  %v4352_v35 = vunpack.c.l.bf16 %v2987_v36 }
  0x9a   :  { %4513 = vst [vmem:[#allocation83_spill] sm:$0xff] %v2993_v34  ;;  %v3001_v24 = vld.sshfl [vmem:[#allocation1 + $0x20] sm:$0xff pattern:$0x75316420]  ;;  %v342_v34 = vrot.slane %v2447_v32, 1 }
  0x9b   :  { %4514 = vst [vmem:[#allocation84_spill] sm:$0xff] %v3001_v24  ;;  %v3010_v2 = vld.sshfl [vmem:[#allocation1 + $0x30] sm:$0xff pattern:$0x75316420]  ;;  %v80_v24 = vld [vmem:[%s4321_s1 + $0x2a] sm:$0x3] }
  0x9c   :  { %1320 = vst [vmem:[#allocation1 + $0x10] ss:$2 sm:$0xff] %v4349_v10  ;;  %v245_v10 = vmax.f32 %v2413_v13, %v229_v50  ;;  %v3024_v32 = vld [vmem:[%s4325_s6 + $0xe] sm:$0x3]  ;;  %v374_v52 = vmax.f32 %v243_v54, %v342_v34  ;;  %v237_v43 = vunpack.c.l.bf16 %v80_v24  ;;  %v3052_v34 = vld [vmem:[%s4325_s6 + $0x1e] sm:$0x3] }
  0x9d   :  { %4516 = vst [vmem:[#allocation85_spill] sm:$0xff] %v3010_v2  ;;  %v350_v2 = vrot.slane %v2544_v26, 1  ;;  %v4358_v26 = vunpack.c.l.bf16 %v3024_v32 }
  0x9e   :  { %1323 = vst [vmem:[#allocation1 + $0x20] ss:$2 sm:$0xff] %v4350_v17  ;;  %v251_v17 = vmax.f32 %v2472_v45, %v4517_v44  ;;  %v376_v61 = vmax.f32 %v245_v10, %v344_v39  ;;  %v253_v10 = vmax.f32 %v2524_v0, %v237_v43 }
  0x9f   :  { %1326 = vst [vmem:[#allocation1 + $0x30] ss:$2 sm:$0xff] %v4352_v35  ;;  %v3034_v35 = vld [vmem:[%s4325_s6 + $0x12] sm:$0x3] }
  0xa0   :  { %v3036_v36 = vld.sshfl [vmem:[#allocation1] sm:$0xff pattern:$0x75316420]  ;;  %v4359_v45 = vunpack.c.l.bf16 %v3034_v35  ;;  %4520 = vst [vmem:[#allocation88_spill] sm:$0xff] %v3052_v34  ;;  %v382_v24 = vmax.f32 %v251_v17, %v350_v2  ;;  %v440_v2 = vmax.f32 %v376_v61, %v2439_v25 }
  0xa1   :  { %4518 = vst [vmem:[#allocation86_spill] sm:$0xff] %v3036_v36  ;;  %v438_v36 = vmax.f32 %v374_v52, %v2408_v11  ;;  %v3071_v17 = vld [vmem:[%s4325_s6 + $0x20] sm:$0x3]  ;;  %v4366_v52 = vunpack.c.l.bf16 %v3052_v34  ;;  %v3087_v61 = vld [vmem:[%s4325_s6 + $0x26] sm:$0x3] }
  0xa2   :  { %1328 = vst [vmem:[#allocation1] ss:$2 sm:$0xff] %v4357_v7  ;;  %v4360_v7 = vunpack.c.l.bf16 %v3041_v55 }
  0xa3   :  { %v3046_v44 = vld.sshfl [vmem:[#allocation1 + $0x10] sm:$0xff pattern:$0x75316420]  ;;  %4523 = vst [vmem:[#allocation91_spill] sm:$0xff] %v3071_v17 }
  0xa4   :  { %4519 = vst [vmem:[#allocation87_spill] sm:$0xff] %v3046_v44 }
  0xa5   :  { %v3054_v54 = vld.sshfl [vmem:[#allocation1 + $0x20] sm:$0xff pattern:$0x75316420]  ;;  %1330 = vst [vmem:[#allocation1 + $0x10] ss:$2 sm:$0xff] %v4358_v26  ;;  %v446_v26 = vmax.f32 %v382_v24, %v2480_v48 }
  0xa6   :  { %4521 = vst [vmem:[#allocation89_spill] sm:$0xff] %v3054_v54  ;;  %v3061_v39 = vld.sshfl [vmem:[#allocation1 + $0x30] sm:$0xff pattern:$0x75316420]  ;;  %v3078_v54 = vld [vmem:[%s4325_s6 + $0x24] sm:$0x3] }
  0xa7   :  { %4522 = vst [vmem:[#allocation90_spill] sm:$0xff] %v3061_v39  ;;  %v83_v24 = vld [vmem:[%s4321_s1 + $0x30] sm:$0x3]  ;;  %v4369_v39 = vunpack.c.l.bf16 %v3071_v17  ;;  %v510_v48 = vmax.f32 %v446_v26, %v2524_v0  ;;  %v3120_v26 = vld [vmem:[%s4323_s2 + $0x36] sm:$0x3] }
  0xa8   :  { %1332 = vst [vmem:[#allocation1 + $0x20] ss:$2 sm:$0xff] %v4359_v45  ;;  %v502_v45 = vmax.f32 %v438_v36, %v2413_v13  ;;  %v504_v36 = vmax.f32 %v440_v2, %v2429_v20  ;;  %v239_v20 = vunpack.c.l.bf16 %v83_v24  ;;  %v3163_v0 = vld [vmem:[%s4323_s2 + $0x38] sm:$0x3] }
  0xa9   :  { %1334 = vst [vmem:[#allocation1 + $0x30] ss:$2 sm:$0xff] %v4360_v7  ;;  %v384_v7 = vmax.f32 %v253_v10, %v2536_v14  ;;  %v3082_v44 = vld.sshfl [vmem:[#allocation1] sm:$0xff pattern:$0x75316420]  ;;  %v4371_v10 = vunpack.c.l.bf16 %v3078_v54 }
  0xaa   :  { %4524 = vst [vmem:[#allocation92_spill] sm:$0xff] %v3078_v54  ;;  %v633_v34 = vmax.f32 %v502_v45, %v229_v50  ;;  %v641_v45 = vmax.f32 %v510_v48, %v237_v43  ;;  %v61_v50 = vld [vmem:[%s4321_s1 + $0x4] sm:$0x3]  ;;  %v3146_v48 = vld [vmem:[%s4325_s6 + $0x32] sm:$0x3] }
  0xab   :  { %4525 = vst [vmem:[#allocation93_spill] sm:$0xff] %v3082_v44  ;;  %v3102_v44 = vld [vmem:[%s4325_s6 + $0x2a] sm:$0x3]  ;;  %v448_v2 = vmax.f32 %v384_v7, %v2541_v19  ;;  %v3127_v7 = vld [vmem:[%s4325_s6 + $0x2c] sm:$0x3]  ;;  %v4383_v54 = vunpack.c.l.bf16 %v3146_v48 }
  0xac   :  { %4526 = vst [vmem:[#allocation94_spill] sm:$0xff] %v3087_v61  ;;  %v3096_v13 = vld.sshfl [vmem:[#allocation1 + $0x10] sm:$0xff pattern:$0x75316420]  ;;  %v3151_v43 = vld [vmem:[%s4323_s2 + $0x1a] sm:$0x3] }
  0xad   :  { %1336 = vst [vmem:[#allocation1] ss:$2 sm:$0xff] %v4366_v52  ;;  %v4370_v52 = vunpack.c.l.bf16 %v3087_v61 }
  0xae   :  { %4527 = vst [vmem:[#allocation95_spill] sm:$0xff] %v3096_v13 }
  0xaf   :  { %4528 = vst [vmem:[#allocation96_spill] sm:$0xff] %v3102_v44  ;;  %v3105_v11 = vld.sshfl [vmem:[#allocation1 + $0x20] sm:$0xff pattern:$0x75316420] }
  0xb0   :  { %4529 = vst [vmem:[#allocation97_spill] sm:$0xff] %v3105_v11  ;;  %v3111_v13 = vld.sshfl [vmem:[#allocation1 + $0x30] sm:$0xff pattern:$0x75316420] }
  0xb1   :  { %1338 = vst [vmem:[#allocation1 + $0x10] ss:$2 sm:$0xff] %v4369_v39  ;;  %v4532_v39 = vunpack.c.l.bf16 %v2504_v57  ;;  %v689_v57 = vmax.f32 %v633_v34, %v2439_v25  ;;  %v255_v34 = vmax.f32 %v2541_v19, %v239_v20  ;;  %v735_v19 = vunpack.c.l.bf16 %v61_v50 }
  0xb2   :  { %4530 = vst [vmem:[#allocation98_spill] sm:$0xff] %v3111_v13  ;;  %v4535_v13 = vunpack.c.l.bf16 %v3102_v44  ;;  %v447_v44 = vmax.f32 %v2536_v14, %v2611_v23 }
  0xb3   :  { %1340 = vst [vmem:[#allocation1 + $0x20] ss:$2 sm:$0xff] %v4371_v10  ;;  %v635_v11 = vmax.f32 %v504_v36, %v4532_v39  ;;  %v512_v39 = vmax.f32 %v448_v2, %v239_v20  ;;  %v439_v36 = vmax.f32 %v2439_v25, %v2609_v15  ;;  %v441_v2 = vmax.f32 %v2450_v33, %v2657_v62 }
  0xb4   :  { %1342 = vst [vmem:[#allocation1 + $0x30] ss:$2 sm:$0xff] %v4370_v52  ;;  %v3136_v52 = vld [vmem:[%s4325_s6 + $0x30] sm:$0x3]  ;;  %v697_v20 = vmax.f32 %v641_v45, %v2536_v14  ;;  %v449_v45 = vmax.f32 %v2547_v27, %v2742_v1 }
  0xb5   :  { %4531 = vst [vmem:[#allocation99_spill] sm:$0xff] %v3120_v26  ;;  %v3141_v10 = vld.sshfl [vmem:[#allocation1] sm:$0xff pattern:$0x75316420]  ;;  %v691_v25 = vmax.f32 %v635_v11, %v2450_v33  ;;  %v4382_v24 = vunpack.c.l.bf16 %v3136_v52  ;;  %v643_v17 = vmax.f32 %v512_v39, %v2547_v27  ;;  %v745_v11 = vmax.f32 %v689_v57, %v2599_v5 }
  0xb6   :  { %4533 = vst [vmem:[#allocation100_spill] sm:$0xff] %v3141_v10  ;;  %v4381_v10 = vunpack.c.l.bf16 %v3127_v7  ;;  %v513_v57 = vmax.f32 %v449_v45, %v2751_v51 }
  0xb7   :  { %4534 = vst [vmem:[#allocation101_spill] sm:$0xff] %v3151_v43 }
  0xb8   :  { %1344 = vst [vmem:[#allocation1] ss:$2 sm:$0xff] %v4535_v13  ;;  %v3166_v61 = vld.sshfl [vmem:[#allocation1 + $0x10] sm:$0xff pattern:$0x75316420] }
  0xb9   :  { %4536 = vst [vmem:[#allocation102_spill] sm:$0xff] %v3163_v0 }
  0xba   :  { %4537 = vst [vmem:[#allocation103_spill] sm:$0xff] %v3166_v61  ;;  %v3172_v13 = vld.sshfl [vmem:[#allocation1 + $0x20] sm:$0xff pattern:$0x75316420]  ;;  %v503_v61 = vmax.f32 %v439_v36, %v2657_v62  ;;  %v747_v36 = vmax.f32 %v691_v25, %v2643_v42 }
  0xbb   :  { %4538 = vst [vmem:[#allocation104_spill] sm:$0xff] %v3172_v13  ;;  %v3182_v50 = vld.sshfl [vmem:[#allocation1 + $0x30] sm:$0xff pattern:$0x75316420]  ;;  %v4540_v13 = vunpack.c.l.bf16 %v3120_v26  ;;  %v3211_v26 = vld [vmem:[%s4324_s4 + $0xa] sm:$0x3] }
  0xbc   :  { %1346 = vst [vmem:[#allocation1 + $0x10] ss:$2 sm:$0xff] %v4381_v10  ;;  %v505_v10 = vmax.f32 %v441_v2, %v2673_v12  ;;  %v511_v2 = vmax.f32 %v447_v44, %v2742_v1  ;;  %v634_v39 = vmax.f32 %v503_v61, %v2767_v6  ;;  %v4542_v61 = vunpack.c.l.bf16 %v3151_v43 }
  0xbd   :  { %4539 = vst [vmem:[#allocation105_spill] sm:$0xff] %v3182_v50  ;;  %v386_v23 = vmax.f32 %v255_v34, %v4540_v13  ;;  %v3197_v50 = vld [vmem:[%s4324_s4 + $0x4] sm:$0x3]  ;;  %v753_v34 = vmax.f32 %v697_v20, %v2681_v38  ;;  %v868_v13 = vmax.f32 %v745_v11, %v2643_v42  ;;  %v4543_v11 = vunpack.c.l.bf16 %v3163_v0 }
  0xbe   :  { %1348 = vst [vmem:[#allocation1 + $0x20] ss:$2 sm:$0xff] %v4382_v24  ;;  %v867_v24 = vmax.f32 %v2690_v16, %v735_v19  ;;  %v636_v16 = vmax.f32 %v505_v10, %v2782_v18  ;;  %v4390_v44 = vunpack.c.l.bf16 %v3197_v50  ;;  %v443_v20 = vmax.f32 %v4542_v61, %v2673_v12 }
  0xbf   :  { %1350 = vst [vmem:[#allocation1 + $0x30] ss:$2 sm:$0xff] %v4383_v54  ;;  %v699_v54 = vmax.f32 %v643_v17, %v2731_v9  ;;  %v3206_v25 = vld.sshfl [vmem:[#allocation1] sm:$0xff pattern:$0x75316420]  ;;  %v450_v19 = vmax.f32 %v386_v23, %v2547_v27  ;;  %v870_v17 = vmax.f32 %v747_v36, %v2646_v46  ;;  %v451_v45 = vmax.f32 %v4543_v11, %v2751_v51 }
  0xc0   :  { %4541 = vst [vmem:[#allocation106_spill] sm:$0xff] %v3206_v25  ;;  %v931_v23 = vmax.f32 %v867_v24, %v2609_v15  ;;  %v876_v10 = vmax.f32 %v753_v34, %v2731_v9  ;;  %v642_v25 = vmax.f32 %v511_v2, %v2807_v47  ;;  %v4391_v36 = vunpack.c.l.bf16 %v3211_v26 }
  0xc1   :  { %1552 = vst [vmem:[#allocation1] ss:$2 sm:$0xff] %v2850_v59  ;;  %v755_v61 = vmax.f32 %v699_v54, %v2746_v60  ;;  %v690_v0 = vmax.f32 %v634_v39, %v2782_v18  ;;  %v644_v11 = vmax.f32 %v513_v57, %v2822_v29  ;;  %v4546_v43 = vunpack.c.l.bf16 %v2841_v40 }
  0xc2   :  { %v514_v2 = vmax.f32 %v450_v19, %v2746_v60  ;;  %v692_v9 = vmax.f32 %v636_v16, %v2789_v37  ;;  %v507_v54 = vmax.f32 %v443_v20, %v2789_v37  ;;  %v875_v39 = vmax.f32 %v2653_v53, %v2807_v47 }
  0xc3   :  { %v3224_v1 = vld.sshfl [vmem:[#allocation1 + $0x10] sm:$0xff pattern:$0x75316420]  ;;  %v932_v24 = vmax.f32 %v868_v13, %v4546_v43  ;;  %v4548_v57 = vunpack.c.l.bf16 %v2858_v21  ;;  %v995_v13 = vmax.f32 %v931_v23, %v2767_v6  ;;  %v698_v19 = vmax.f32 %v642_v25, %v2822_v29 }
  0xc4   :  { %4544 = vst [vmem:[#allocation107_spill] sm:$0xff] %v3224_v1  ;;  %v3254_v43 = vld [vmem:[%s4324_s4 + $0x10] sm:$0x3]  ;;  %v515_v16 = vmax.f32 %v451_v45, %v2829_v63  ;;  %v746_v53 = vmax.f32 %v690_v0, %v2863_v31  ;;  %v140_v25 = vld [vmem:[%s4324_s4 + $0x16] sm:$0x3]  ;;  %v1253_v45 = vmax.f32 %v2697_v49, %v2850_v59 }
  0xc5   :  { %v3229_v62 = vld.sshfl [vmem:[#allocation1 + $0x20] sm:$0xff pattern:$0x75316420]  ;;  %1555 = vst [vmem:[#allocation1 + $0x10] ss:$2 sm:$0xff] %v4390_v44  ;;  %v934_v40 = vmax.f32 %v870_v17, %v4548_v57  ;;  %v4549_v44 = vunpack.c.l.bf16 %v2901_v41  ;;  %v996_v21 = vmax.f32 %v932_v24, %v2863_v31  ;;  %v4550_v17 = vunpack.c.l.bf16 %v2918_v56 }
  0xc6   :  { %4545 = vst [vmem:[#allocation108_spill] sm:$0xff] %v3229_v62  ;;  %v3240_v34 = vld.sshfl [vmem:[#allocation1 + $0x30] sm:$0xff pattern:$0x75316420]  ;;  %v748_v41 = vmax.f32 %v692_v9, %v2881_v28  ;;  %v4395_v0 = vunpack.c.l.bf16 %v3254_v43  ;;  %v63_v49 = vld [vmem:[%s4321_s1 + $0x8] sm:$0x3]  ;;  %v1126_v9 = vmax.f32 %v995_v13, %v2850_v59 }
  0xc7   :  { %1558 = vst [vmem:[#allocation1 + $0x20] ss:$2 sm:$0xff] %v2863_v31  ;;  %v940_v20 = vmax.f32 %v876_v10, %v4549_v44  ;;  %v878_v57 = vmax.f32 %v755_v61, %v4550_v17  ;;  %v4552_v44 = vunpack.c.l.bf16 %v2937_v22  ;;  %v998_v56 = vmax.f32 %v934_v40, %v2881_v28 }
  0xc8   :  { %4547 = vst [vmem:[#allocation109_spill] sm:$0xff] %v3240_v34  ;;  %v3266_v18 = vld.sshfl [vmem:[#allocation1] sm:$0xff pattern:$0x75316420]  ;;  %v638_v31 = vmax.f32 %v507_v54, %v2888_v3  ;;  %v749_v10 = vmax.f32 %v2701_v8, %v2888_v3  ;;  %v939_v61 = vmax.f32 %v875_v39, %v2910_v4  ;;  %v754_v22 = vmax.f32 %v698_v19, %v2923_v58  ;;  %v4559_v19 = vld [vmem:[#allocation75_spill] sm:$0xff] }
  0xc9   :  { %1561 = vst [vmem:[#allocation1 + $0x30] ss:$2 sm:$0xff] %v4391_v36  ;;  %v700_v36 = vmax.f32 %v644_v11, %v2829_v63  ;;  %v645_v23 = vmax.f32 %v514_v2, %v4552_v44  ;;  %v1004_v24 = vmax.f32 %v940_v20, %v2923_v58  ;;  %v1435_v8 = vunpack.c.l.bf16 %v140_v25  ;;  %v4555_v2 = vld [vmem:[#allocation29_spill] sm:$0xff]  ;;  %v4561_v25 = vld [vmem:[#allocation80_spill] sm:$0xff] }
  0xca   :  { %4551 = vst [vmem:[#allocation110_spill] sm:$0xff] %v3266_v18  ;;  %v1197_v54 = vmax.f32 %v4555_v2, %v2910_v4  ;;  %v4556_v39 = vld [vmem:[#allocation73_spill] sm:$0xff]  ;;  %v4560_v20 = vunpack.c.l.bf16 %v4559_v19  ;;  %v4563_v2 = vld [vmem:[#allocation82_spill] sm:$0xff]  ;;  %v4567_v19 = vunpack.c.l.bf16 %v3034_v35 }
  0xcb   :  { %1563 = vst [vmem:[#allocation1] ss:$2 sm:$0xff] %v2881_v28  ;;  %v756_v40 = vmax.f32 %v700_v36, %v4556_v39  ;;  %v942_v17 = vmax.f32 %v878_v57, %v4556_v39  ;;  %v4557_v44 = vld [vmem:[#allocation77_spill] sm:$0xff]  ;;  %v4564_v36 = vunpack.c.l.bf16 %v4563_v2 }
  0xcc   :  { %v3283_v11 = vld.sshfl [vmem:[#allocation1 + $0x10] sm:$0xff pattern:$0x75316420]  ;;  %v646_v29 = vmax.f32 %v515_v16, %v4557_v44  ;;  %v701_v13 = vmax.f32 %v645_v23, %v4557_v44  ;;  %v3306_v63 = vmax.f32 %v1253_v45, %v4560_v20  ;;  %v4565_v16 = vunpack.c.l.bf16 %v2999_v30  ;;  %v3338_v30 = vld [vmem:[%s4320_s0 + $0x18] sm:$0x3] }
  0xcd   :  { %4553 = vst [vmem:[#allocation111_spill] sm:$0xff] %v3283_v11  ;;  %v869_v37 = vmax.f32 %v746_v53, %v4564_v36  ;;  %v4566_v23 = vunpack.c.l.bf16 %v3024_v32  ;;  %v872_v20 = vmax.f32 %v749_v10, %v4567_v19  ;;  %v143_v53 = vld [vmem:[%s4324_s4 + $0x22] sm:$0x3]  ;;  %v4569_v32 = vld [vmem:[#allocation79_spill] sm:$0xff]  ;;  %v4573_v10 = vld [vmem:[#allocation92_spill] sm:$0xff]  ;;  %v3361_v19 = vunpack.c.l.bf16 %v63_v49 }
  0xce   :  { %v3291_v28 = vld.sshfl [vmem:[#allocation1 + $0x20] sm:$0xff pattern:$0x75316420]  ;;  %1565 = vst [vmem:[#allocation1 + $0x10] ss:$2 sm:$0xff] %v4395_v0  ;;  %v4562_v0 = vunpack.c.l.bf16 %v4561_v25  ;;  %v3319_v57 = vmax.f32 %v998_v56, %v4565_v16  ;;  %v4570_v35 = vunpack.c.l.bf16 %v4569_v32  ;;  %v4574_v2 = vunpack.c.l.bf16 %v4573_v10 }
  0xcf   :  { %4554 = vst [vmem:[#allocation112_spill] sm:$0xff] %v3291_v28  ;;  %v871_v45 = vmax.f32 %v748_v41, %v4566_v23  ;;  %v3333_v25 = vld [vmem:[%s4324_s4 + $0x34] sm:$0x3]  ;;  %v146_v16 = vld [vmem:[%s4324_s4 + $0x28] sm:$0x3]  ;;  %v4581_v49 = vunpack.c.l.bf16 %v3146_v48 }
  0xd0   :  { %1567 = vst [vmem:[#allocation1 + $0x20] ss:$2 sm:$0xff] %v2888_v3  ;;  %v3301_v59 = vld.sshfl [vmem:[#allocation1 + $0x30] sm:$0xff pattern:$0x75316420]  ;;  %v3310_v47 = vmax.f32 %v996_v21, %v4562_v0  ;;  %v4568_v21 = vunpack.c.l.bf16 %v3041_v55  ;;  %v3342_v41 = vmax.f32 %v1126_v9, %v4570_v35  ;;  %v3348_v36 = vmax.f32 %v1004_v24, %v4574_v2  ;;  %v4577_v24 = vld [vmem:[#allocation96_spill] sm:$0xff] }
  0xd1   :  { %4558 = vst [vmem:[#allocation29_spill] sm:$0xff] %v3301_v59  ;;  %v66_v3 = vld [vmem:[%s4321_s1 + $0xe] sm:$0x3]  ;;  %v4571_v55 = vld [vmem:[#allocation91_spill] sm:$0xff]  ;;  %v42_v23 = vld [vmem:[%s4320_s0 + $0x1a] sm:$0x3]  ;;  %v4578_v35 = vunpack.c.l.bf16 %v4577_v24 }
  0xd2   :  { %1569 = vst [vmem:[#allocation1 + $0x30] ss:$2 sm:$0xff] %v1435_v8  ;;  %v694_v0 = vmax.f32 %v638_v31, %v4568_v21  ;;  %v4572_v56 = vunpack.c.l.bf16 %v4571_v55  ;;  %v3359_v9 = vld [vmem:[%s4320_s0 + $0x36] sm:$0x3]  ;;  %v3376_v59 = vld [vmem:[%s4324_s4 + $0x2e] sm:$0x3]  ;;  %v3378_v28 = vunpack.c.l.bf16 %v66_v3  ;;  %v3400_v24 = vunpack.c.l.bf16 %v42_v23 }
  0xd3   :  { %v3367_v55 = vmax.f32 %v942_v17, %v4578_v35  ;;  %v3371_v2 = vld.sshfl [vmem:[#allocation1] sm:$0xff pattern:$0x75316420] }
  0xd4   :  { %v1003_v31 = vmax.f32 %v939_v61, %v4572_v56  ;;  %v4575_v61 = vld [vmem:[#allocation94_spill] sm:$0xff]  ;;  %v4579_v56 = vunpack.c.l.bf16 %v3127_v7  ;;  %4580 = vst [vmem:[#allocation73_spill] sm:$0xff] %v3371_v2 }
  0xd5   :  { %v4576_v21 = vunpack.c.l.bf16 %v4575_v61  ;;  %v702_v61 = vmax.f32 %v646_v29, %v4581_v49  ;;  %1571 = vst [vmem:[#allocation1] ss:$2 sm:$0xff] %v2910_v4  ;;  %v69_v29 = vld [vmem:[%s4321_s1 + $0x14] sm:$0x3]  ;;  %v4583_v4 = vunpack.c.l.bf16 %v3136_v52  ;;  %v4586_v49 = vld [vmem:[#allocation88_spill] sm:$0xff]  ;;  %v1437_v52 = vunpack.c.l.bf16 %v146_v16 }
  0xd6   :  { %v879_v10 = vmax.f32 %v756_v40, %v4579_v56  ;;  %v57_v40 = vld [vmem:[%s4320_s0 + $0x38] sm:$0x3]  ;;  %v3398_v3 = vld.sshfl [vmem:[#allocation1 + $0x10] sm:$0xff pattern:$0x75316420]  ;;  %4585 = vst [vmem:[#allocation80_spill] sm:$0xff] %v3400_v24  ;;  %v4587_v7 = vunpack.c.l.bf16 %v4586_v49  ;;  %v4595_v16 = vunpack.c.l.bf16 %v3254_v43 }
  0xd7   :  { %v877_v32 = vmax.f32 %v754_v22, %v4576_v21  ;;  %v1436_v22 = vunpack.c.l.bf16 %v143_v53  ;;  %v3391_v21 = vld [vmem:[%s4320_s0 + $0x1c] sm:$0x3]  ;;  %v757_v48 = vmax.f32 %v701_v13, %v4583_v4  ;;  %4584 = vst [vmem:[#allocation75_spill] sm:$0xff] %v3398_v3  ;;  %v750_v53 = vmax.f32 %v694_v0, %v1435_v8  ;;  %v3406_v56 = vld [vmem:[%s4322_s3 + $0x6] sm:$0x3]  ;;  %v4589_v13 = vld [vmem:[#allocation3_spill] sm:$0xff] }
  0xd8   :  { %4582 = vst [vmem:[#allocation77_spill] sm:$0xff] %v3391_v21  ;;  %v3410_v17 = vmax.f32 %v1197_v54, %v4587_v7  ;;  %v3412_v2 = vld.sshfl [vmem:[#allocation1 + $0x20] sm:$0xff pattern:$0x75316420]  ;;  %v244_v8 = vmax.f32 %v4589_v13, %v3361_v19  ;;  %v4590_v0 = vld [vmem:[#allocation8_spill] sm:$0xff]  ;;  %v4591_v4 = vunpack.c.l.bf16 %v3211_v26  ;;  %v4593_v49 = vld [vmem:[#allocation6_spill] sm:$0xff]  ;;  %v3429_v18 = vmax.f32 %v871_v45, %v4595_v16 }
  0xd9   :  { %4588 = vst [vmem:[#allocation82_spill] sm:$0xff] %v3412_v2  ;;  %v343_v23 = vrot.slane %v4590_v0, 1  ;;  %v3420_v3 = vld.sshfl [vmem:[#allocation1 + $0x30] sm:$0xff pattern:$0x75316420]  ;;  %v246_v54 = vmax.f32 %v4593_v49, %v3378_v28  ;;  %v3425_v2 = vunpack.c.l.bf16 %v69_v29  ;;  %v1438_v0 = vunpack.c.l.bf16 %v3376_v59 }
  0xda   :  { %1573 = vst [vmem:[#allocation1 + $0x10] ss:$2 sm:$0xff] %v1436_v22  ;;  %v933_v35 = vmax.f32 %v869_v37, %v4591_v4  ;;  %v4594_v7 = vld [vmem:[#allocation11_spill] sm:$0xff]  ;;  %v4597_v37 = vunpack.c.l.bf16 %v3338_v30  ;;  %v3443_v6 = vunpack.c.l.bf16 %v57_v40  ;;  %v4399_v43 = vunpack.c.l.bf16 %v3391_v21  ;;  %v3449_v59 = vld [vmem:[%s4322_s3 + $0x8] sm:$0x3] }
  0xdb   :  { %1575 = vst [vmem:[#allocation1 + $0x20] ss:$2 sm:$0xff] %v2923_v58  ;;  %v345_v11 = vrot.slane %v4594_v7, 1  ;;  %v4596_v58 = vunpack.c.l.bf16 %v3333_v25  ;;  %v4598_v7 = vunpack.c.l.bf16 %v3359_v9  ;;  %v3451_v45 = vmax.f32 %v1003_v31, %v1436_v22  ;;  %v3468_v31 = vld [vmem:[%s4322_s3 + $0xc] sm:$0x3] }
  0xdc   :  { %4592 = vst [vmem:[#allocation79_spill] sm:$0xff] %v3420_v3  ;;  %v936_v4 = vmax.f32 %v872_v20, %v4597_v37  ;;  %v873_v3 = vmax.f32 %v750_v53, %v3400_v24  ;;  %v375_v53 = vmax.f32 %v244_v8, %v343_v23  ;;  %v3461_v40 = vld.sshfl [vmem:[#allocation1] sm:$0xff pattern:$0x75316420]  ;;  %v1191_v16 = vmax.f32 %v3310_v47, %v3361_v19  ;;  %v3473_v22 = vld [vmem:[%s4322_s3 + $0x12] sm:$0x3] }
  0xdd   :  { %1577 = vst [vmem:[#allocation1 + $0x30] ss:$2 sm:$0xff] %v1437_v52  ;;  %v3434_v26 = vmax.f32 %v702_v61, %v4596_v58  ;;  %v3441_v29 = vmax.f32 %v757_v48, %v4598_v7  ;;  %v3453_v61 = vmax.f32 %v877_v32, %v1437_v52  ;;  %v3459_v48 = vld [vmem:[%s4322_s3 + $0xe] sm:$0x3]  ;;  %v377_v32 = vmax.f32 %v246_v54, %v345_v11  ;;  %v4604_v8 = vld [vmem:[#allocation12_spill] sm:$0xff] }
  0xde   :  { %4599 = vst [vmem:[#allocation91_spill] sm:$0xff] %v3443_v6  ;;  %v248_v52 = vmax.f32 %v2450_v33, %v3425_v2  ;;  %v347_v23 = vrot.slane %v4604_v8, 1  ;;  %v3479_v58 = vmax.f32 %v879_v10, %v1438_v0  ;;  %v1000_v47 = vmax.f32 %v936_v4, %v3400_v24  ;;  %v3486_v11 = vld [vmem:[%s4320_s0 + $0x3a] sm:$0x3]  ;;  %v78_v54 = vld [vmem:[%s4321_s1 + $0x26] sm:$0x3] }
  0xdf   :  { %4600 = vst [vmem:[#allocation92_spill] sm:$0xff] %v3459_v48  ;;  %v997_v37 = vmax.f32 %v933_v35, %v375_v53  ;;  %v937_v35 = vmax.f32 %v873_v3, %v4399_v43  ;;  %v4607_v4 = vld [vmem:[#allocation24_spill] sm:$0xff]  ;;  %v3503_v8 = vld [vmem:[%s4321_s1 + $0xa] sm:$0x3]  ;;  %v4608_v7 = vunpack.c.l.bf16 %v3197_v50  ;;  %v1193_v3 = vmax.f32 %v3319_v57, %v3378_v28 }
  0xe0   :  { %4601 = vst [vmem:[#allocation94_spill] sm:$0xff] %v3461_v40  ;;  %v601_v53 = vrot.slane %v4607_v4, 1  ;;  %v4612_v21 = vunpack.c.l.bf16 %v3406_v56 }
  0xe1   :  { %4602 = vst [vmem:[#allocation96_spill] sm:$0xff] %v3468_v31  ;;  %v3491_v20 = vld.sshfl [vmem:[#allocation1 + $0x10] sm:$0xff pattern:$0x75316420] }
  0xe2   :  { %4603 = vst [vmem:[#allocation88_spill] sm:$0xff] %v3473_v22  ;;  %v3510_v40 = vld.sshfl [vmem:[#allocation1 + $0x20] sm:$0xff pattern:$0x75316420]  ;;  %v1255_v50 = vmax.f32 %v1191_v16, %v4612_v21  ;;  %v3533_v21 = vld [vmem:[%s4322_s3 + $0x14] sm:$0x3] }
  0xe3   :  { %1579 = vst [vmem:[#allocation1] ss:$2 sm:$0xff] %v4556_v39  ;;  %v881_v39 = vmax.f32 %v3434_v26, %v3443_v6  ;;  %v4610_v26 = vld [vmem:[#allocation25_spill] sm:$0xff]  ;;  %v4616_v16 = vld [vmem:[#allocation27_spill] sm:$0xff] }
  0xe4   :  { %4605 = vst [vmem:[#allocation8_spill] sm:$0xff] %v3486_v11  ;;  %v602_v10 = vrot.slane %v4610_v26, 1  ;;  %v3517_v43 = vld.sshfl [vmem:[#allocation1 + $0x30] sm:$0xff pattern:$0x75316420]  ;;  %v4614_v26 = vunpack.c.l.bf16 %v3449_v59 }
  0xe5   :  { %4606 = vst [vmem:[#allocation11_spill] sm:$0xff] %v3491_v20  ;;  %v3508_v20 = vmax.f32 %v3342_v41, %v4608_v7  ;;  %v999_v41 = vmax.f32 %v3429_v18, %v377_v32  ;;  %v4405_v7 = vunpack.c.l.bf16 %v3459_v48  ;;  %v3538_v18 = vld [vmem:[%s4322_s3 + $0x24] sm:$0x3]  ;;  %v604_v32 = vrot.slane %v4616_v16, 1  ;;  %v3558_v16 = vld [vmem:[%s4321_s1 + $0x10] sm:$0x3] }
  0xe6   :  { %4609 = vst [vmem:[#allocation12_spill] sm:$0xff] %v3510_v40  ;;  %v379_v40 = vmax.f32 %v248_v52, %v347_v23  ;;  %v1128_v57 = vmax.f32 %v997_v37, %v4614_v26  ;;  %v3544_v23 = vunpack.c.l.bf16 %v78_v54  ;;  %v84_v37 = vld [vmem:[%s4321_s1 + $0x32] sm:$0x3]  ;;  %v4617_v26 = vunpack.c.l.bf16 %v3468_v31  ;;  %v4620_v54 = vld [vmem:[#allocation28_spill] sm:$0xff] }
  0xe7   :  { %1581 = vst [vmem:[#allocation1 + $0x10] ss:$2 sm:$0xff] %v1438_v0  ;;  %v4613_v0 = vunpack.c.l.bf16 %v3333_v25  ;;  %v3540_v25 = vmax.f32 %v1255_v50, %v601_v53  ;;  %v4618_v53 = vld [vmem:[#allocation26_spill] sm:$0xff]  ;;  %v605_v52 = vrot.slane %v4620_v54, 1  ;;  %v1130_v62 = vmax.f32 %v999_v41, %v4405_v7  ;;  %v4624_v31 = vld [vmem:[#allocation16_spill] sm:$0xff] }
  0xe8   :  { %1583 = vst [vmem:[#allocation1 + $0x20] ss:$2 sm:$0xff] %v4557_v44  ;;  %v1131_v44 = vmax.f32 %v1000_v47, %v3425_v2  ;;  %v81_v47 = vld [vmem:[%s4321_s1 + $0x2c] sm:$0x3]  ;;  %v1257_v4 = vmax.f32 %v1193_v3, %v4617_v26  ;;  %v603_v50 = vrot.slane %v4618_v53, 1  ;;  %v1001_v34 = vmax.f32 %v937_v35, %v379_v40  ;;  %v4633_v40 = vld [vmem:[#allocation4_spill] sm:$0xff] }
  0xe9   :  { %4611 = vst [vmem:[#allocation24_spill] sm:$0xff] %v3517_v43  ;;  %v4622_v3 = vld [vmem:[#allocation2_spill] sm:$0xff]  ;;  %v4623_v26 = vunpack.c.l.bf16 %v3473_v22  ;;  %v351_v51 = vrot.slane %v4624_v31, 1  ;;  %v3571_v1 = vunpack.c.l.bf16 %v81_v47  ;;  %v3573_v54 = vunpack.c.l.bf16 %v84_v37  ;;  %v3581_v35 = vld [vmem:[%s4321_s1 + $0x16] sm:$0x3] }
  0xea   :  { %1585 = vst [vmem:[#allocation1 + $0x30] ss:$2 sm:$0xff] %v4613_v0  ;;  %v1192_v0 = vmax.f32 %v1128_v57, %v602_v10  ;;  %v3561_v43 = vld.sshfl [vmem:[#allocation1] sm:$0xff pattern:$0x75316420]  ;;  %v4407_v10 = vunpack.c.l.bf16 %v3533_v21  ;;  %v494_v57 = vunpack.c.l.bf16 %v3538_v18  ;;  %v1194_v48 = vmax.f32 %v1130_v62, %v604_v32  ;;  %v4629_v31 = vld [vmem:[#allocation10_spill] sm:$0xff] }
  0xeb   :  { %4615 = vst [vmem:[#allocation25_spill] sm:$0xff] %v3533_v21  ;;  %v1195_v53 = vmax.f32 %v1131_v44, %v4623_v26  ;;  %v4628_v41 = vunpack.c.l.bf16 %v3486_v11  ;;  %v252_v44 = vmax.f32 %v4629_v31, %v3544_v23  ;;  %v4631_v62 = vunpack.c.l.bf16 %v3503_v8  ;;  %v4632_v26 = vld [vmem:[#allocation30_spill] sm:$0xff] }
  0xec   :  { %4619 = vst [vmem:[#allocation27_spill] sm:$0xff] %v3558_v16  ;;  %v3596_v37 = vmax.f32 %v1257_v4, %v603_v50  ;;  %v606_v7 = vrot.slane %v4632_v26, 1  ;;  %v1132_v11 = vmax.f32 %v1001_v34, %v4407_v10  ;;  %v1392_v4 = vmax.f32 %v3410_v17, %v3544_v23  ;;  %v4639_v22 = vld [vmem:[#allocation34_spill] sm:$0xff] }
  0xed   :  { %4621 = vst [vmem:[#allocation26_spill] sm:$0xff] %v3561_v43  ;;  %v3585_v18 = vmax.f32 %v881_v39, %v4628_v41  ;;  %v3594_v32 = vmax.f32 %v1192_v0, %v4631_v62  ;;  %v1440_v41 = vmax.f32 %v3306_v63, %v3361_v19  ;;  %v1199_v0 = vmax.f32 %v3348_v36, %v3544_v23  ;;  %v4635_v63 = vld [vmem:[#allocation19_spill] sm:$0xff] }
  0xee   :  { %1775 = vst [vmem:[#allocation1] ss:$2 sm:$0xff] %v4622_v3  ;;  %v3575_v43 = vld.sshfl [vmem:[#allocation1 + $0x10] sm:$0xff pattern:$0x75316420]  ;;  %v3598_v3 = vmax.f32 %v1195_v53, %v605_v52  ;;  %v254_v50 = vmax.f32 %v2536_v14, %v3571_v1  ;;  %v353_v53 = vrot.slane %v4635_v63, 1  ;;  %v256_v34 = vmax.f32 %v2547_v27, %v3573_v54 }
  0xef   :  { %4625 = vst [vmem:[#allocation28_spill] sm:$0xff] %v3571_v1  ;;  %v3589_v47 = vld.sshfl [vmem:[#allocation1 + $0x20] sm:$0xff pattern:$0x75316420]  ;;  %v4637_v62 = vunpack.c.l.bf16 %v3558_v16  ;;  %v1198_v10 = vmax.f32 %v3451_v45, %v3544_v23  ;;  %v608_v63 = vrot.slane %v4639_v22, 1  ;;  %v4655_v21 = vunpack.c.l.bf16 %v3338_v30 }
  0xf0   :  { %4626 = vst [vmem:[#allocation2_spill] sm:$0xff] %v3573_v54  ;;  %v3616_v52 = vld [vmem:[%s4322_s3 + $0x26] sm:$0x3] }
  0xf1   :  { %4627 = vst [vmem:[#allocation16_spill] sm:$0xff] %v3575_v43  ;;  %v3602_v39 = vld.sshfl [vmem:[#allocation1 + $0x30] sm:$0xff pattern:$0x75316420]  ;;  %v3626_v17 = vmax.f32 %v1194_v48, %v4637_v62  ;;  %v4638_v43 = vld [vmem:[#allocation32_spill] sm:$0xff]  ;;  %v4643_v62 = vunpack.c.l.bf16 %v3406_v56  ;;  %v4646_v23 = vld [vmem:[#allocation5_spill] sm:$0xff]  ;;  %v1263_v56 = vmax.f32 %v1199_v0, %v494_v57  ;;  %v4656_v30 = vunpack.c.l.bf16 %v3616_v52 }
  0xf2   :  { %4630 = vst [vmem:[#allocation113_spill] sm:$0xff] %v3589_v47  ;;  %v1196_v47 = vmax.f32 %v1132_v11, %v606_v7  ;;  %v1137_v11 = vmax.f32 %v3367_v55, %v3571_v1  ;;  %v3655_v7 = vld [vmem:[%s4322_s3 + $0x2c] sm:$0x3] }
  0xf3   :  { %1778 = vst [vmem:[#allocation1 + $0x10] ss:$2 sm:$0xff] %v4589_v13  ;;  %v3636_v13 = vld [vmem:[%s4322_s3 + $0x2a] sm:$0x3]  ;;  %v3643_v26 = vmax.f32 %v1440_v41, %v4643_v62  ;;  %v385_v41 = vmax.f32 %v254_v50, %v353_v53  ;;  %v3666_v62 = vld [vmem:[%s4322_s3 + $0x32] sm:$0x3] }
  0xf4   :  { %1781 = vst [vmem:[#allocation1 + $0x20] ss:$2 sm:$0xff] %v4633_v40  ;;  %v4636_v40 = vld [vmem:[#allocation22_spill] sm:$0xff]  ;;  %v4650_v53 = vld [vmem:[#allocation20_spill] sm:$0xff] }
  0xf5   :  { %4634 = vst [vmem:[#allocation30_spill] sm:$0xff] %v3602_v39  ;;  %v355_v36 = vrot.slane %v4636_v40, 1  ;;  %v383_v39 = vmax.f32 %v252_v44, %v351_v51  ;;  %v4641_v40 = vld [vmem:[#allocation18_spill] sm:$0xff]  ;;  %v3639_v48 = vld.sshfl [vmem:[#allocation1] sm:$0xff pattern:$0x75316420]  ;;  %v1448_v44 = vmax.f32 %v1392_v4, %v494_v57  ;;  %v4649_v4 = vmax.f32 %v3441_v29, %v3443_v6 }
  0xf6   :  { %1784 = vst [vmem:[#allocation1 + $0x30] ss:$2 sm:$0xff] %v4593_v49  ;;  %v607_v49 = vrot.slane %v4638_v43, 1  ;;  %v352_v16 = vrot.slane %v4641_v40, 1  ;;  %v76_v51 = vld [vmem:[%s4321_s1 + $0x22] sm:$0x3]  ;;  %v1385_v29 = vmax.f32 %v3508_v20, %v3361_v19 }
  0xf7   :  { %4640 = vst [vmem:[#allocation4_spill] sm:$0xff] %v3636_v13  ;;  %v4644_v43 = vld [vmem:[#allocation35_spill] sm:$0xff]  ;;  %v387_v55 = vmax.f32 %v256_v34, %v355_v36  ;;  %v1005_v57 = vmax.f32 %v3453_v61, %v383_v39  ;;  %v1008_v50 = vmax.f32 %v4649_v4, %v3573_v54  ;;  %v354_v22 = vrot.slane %v4650_v53, 1  ;;  %v4653_v61 = vld [vmem:[#allocation37_spill] sm:$0xff]  ;;  %v3710_v19 = vld [vmem:[%s4321_s1 + $0x2e] sm:$0x3] }
  0xf8   :  { %4642 = vst [vmem:[#allocation19_spill] sm:$0xff] %v3639_v48  ;;  %v609_v45 = vrot.slane %v4644_v43, 1  ;;  %v3661_v40 = vld [vmem:[%s4322_s3 + $0x30] sm:$0x3]  ;;  %v4652_v34 = vunpack.c.l.bf16 %v3581_v35  ;;  %v739_v1 = vunpack.c.l.bf16 %v76_v51  ;;  %v610_v39 = vrot.slane %v4653_v61, 1 }
  0xf9   :  { %4645 = vst [vmem:[#allocation22_spill] sm:$0xff] %v3655_v7  ;;  %v3696_v4 = vmax.f32 %v1448_v44, %v607_v49  ;;  %v4658_v49 = vld [vmem:[#allocation39_spill] sm:$0xff]  ;;  %v4665_v44 = vld [vmem:[#allocation9_spill] sm:$0xff] }
  0xfa   :  { %1786 = vst [vmem:[#allocation1] ss:$2 sm:$0xff] %v4646_v23  ;;  %v3668_v43 = vld.sshfl [vmem:[#allocation1 + $0x10] sm:$0xff pattern:$0x75316420]  ;;  %v3687_v36 = vmax.f32 %v1196_v47, %v4652_v34  ;;  %v3698_v53 = vmax.f32 %v1263_v56, %v609_v45  ;;  %v612_v20 = vrot.slane %v4658_v49, 1  ;;  %v4664_v49 = vunpack.c.l.bf16 %v3636_v13 }
  0xfb   :  { %4647 = vst [vmem:[#allocation32_spill] sm:$0xff] %v3666_v62  ;;  %v3673_v23 = vld [vmem:[%s4321_s1 + $0x28] sm:$0x3]  ;;  %v3682_v48 = vld.sshfl [vmem:[#allocation1 + $0x20] sm:$0xff pattern:$0x75316420] }
  0xfc   :  { %4648 = vst [vmem:[#allocation34_spill] sm:$0xff] %v3668_v43  ;;  %v1262_v43 = vmax.f32 %v1198_v10, %v608_v63  ;;  %v1007_v10 = vmax.f32 %v3479_v58, %v385_v41  ;;  %v1009_v63 = vmax.f32 %v3585_v18, %v387_v55  ;;  %v153_v58 = vld [vmem:[%s4326_s5] sm:$0x3]  ;;  %v4659_v18 = vld [vmem:[#allocation43_spill] sm:$0xff]  ;;  %v4660_v55 = vld [vmem:[#allocation42_spill] sm:$0xff] }
  0xfd   :  { %4651 = vst [vmem:[#allocation18_spill] sm:$0xff] %v3682_v48  ;;  %v3690_v0 = vld.sshfl [vmem:[#allocation1 + $0x30] sm:$0xff pattern:$0x75316420]  ;;  %v1201_v48 = vmax.f32 %v1137_v11, %v352_v16  ;;  %v1139_v16 = vmax.f32 %v1008_v50, %v354_v22  ;;  %v834_v11 = vrot.slane %v4659_v18, 1  ;;  %v4662_v34 = vld [vmem:[#allocation45_spill] sm:$0xff] }
  0xfe   :  { %1788 = vst [vmem:[#allocation1 + $0x10] ss:$2 sm:$0xff] %v2450_v33  ;;  %v3718_v56 = vmax.f32 %v1262_v43, %v739_v1  ;;  %v3724_v41 = vld [vmem:[%s4321_s1 + $0x34] sm:$0x3]  ;;  %v154_v50 = vld [vmem:[%s4326_s5 + $0x2] sm:$0x3] }
  0xff   :  { %4654 = vst [vmem:[#allocation35_spill] sm:$0xff] %v3690_v0  ;;  %v835_v61 = vrot.slane %v4662_v34, 1  ;;  %v1265_v18 = vmax.f32 %v1201_v48, %v4664_v49  ;;  %v4666_v45 = vld [vmem:[#allocation48_spill] sm:$0xff]  ;;  %v4667_v47 = vld [vmem:[#allocation38_spill] sm:$0xff]  ;;  %v4668_v0 = vunpack.c.l.bf16 %v3655_v7  ;;  %v4669_v34 = vunpack.c.l.bf16 %v3666_v62  ;;  %v4673_v7 = vld [vmem:[#allocation49_spill] sm:$0xff] }
 0x100   :  { %1790 = vst [vmem:[#allocation1 + $0x20] ss:$2 sm:$0xff] %v4655_v21  ;;  %v1136_v21 = vmax.f32 %v1005_v57, %v4656_v30  ;;  %v614_v57 = vrot.slane %v4660_v55, 1  ;;  %v4663_v30 = vld [vmem:[#allocation46_spill] sm:$0xff]  ;;  %v156_v55 = vld [vmem:[%s4326_s5 + $0x6] sm:$0x3]  ;;  %v979_v54 = vunpack.c.l.bf16 %v154_v50  ;;  %v4678_v50 = vunpack.c.l.bf16 %v3710_v19 }
 0x101   :  { %1792 = vst [vmem:[#allocation1 + $0x30] ss:$2 sm:$0xff] %v3400_v24  ;;  %v3727_v22 = vld.sshfl [vmem:[#allocation1] sm:$0xff pattern:$0x75316420]  ;;  %v836_v1 = vrot.slane %v4663_v30, 1  ;;  %v1140_v30 = vmax.f32 %v1009_v63, %v4669_v34  ;;  %v980_v62 = vunpack.c.l.bf16 %v156_v55 }
 0x102   :  { %4657 = vst [vmem:[#allocation5_spill] sm:$0xff] %v3710_v19  ;;  %v1200_v43 = vmax.f32 %v1136_v21, %v610_v39  ;;  %v837_v51 = vrot.slane %v4666_v45, 1  ;;  %v611_v24 = vrot.slane %v4667_v47, 1  ;;  %v157_v48 = vld [vmem:[%s4326_s5 + $0x8] sm:$0x3]  ;;  %v4672_v45 = vld [vmem:[#allocation40_spill] sm:$0xff] }
 0x103   :  { %4661 = vst [vmem:[#allocation20_spill] sm:$0xff] %v3727_v22  ;;  %v1138_v22 = vmax.f32 %v1007_v10, %v4668_v0  ;;  %v613_v13 = vrot.slane %v4672_v45, 1  ;;  %v1619_v0 = vmax.f32 %v3643_v26, %v834_v11  ;;  %v978_v10 = vunpack.c.l.bf16 %v153_v58  ;;  %v159_v45 = vld [vmem:[%s4326_s5 + $0xc] sm:$0x3]  ;;  %v4675_v26 = vld [vmem:[#allocation51_spill] sm:$0xff] }
 0x104   :  { %1794 = vst [vmem:[#allocation1] ss:$2 sm:$0xff] %v4665_v44  ;;  %v4671_v44 = vunpack.c.l.bf16 %v3661_v40  ;;  %v1204_v34 = vmax.f32 %v1140_v30, %v614_v57  ;;  %v1442_v33 = vmax.f32 %v3540_v25, %v836_v1  ;;  %v838_v21 = vrot.slane %v4673_v7, 1  ;;  %v4674_v47 = vld [vmem:[#allocation50_spill] sm:$0xff]  ;;  %v4680_v30 = vld [vmem:[#allocation53_spill] sm:$0xff] }
 0x105   :  { %v3746_v39 = vld.sshfl [vmem:[#allocation1 + $0x10] sm:$0xff pattern:$0x75316420]  ;;  %v1202_v63 = vmax.f32 %v1138_v22, %v612_v20  ;;  %v840_v58 = vrot.slane %v4675_v26, 1  ;;  %v4676_v20 = vunpack.c.l.bf16 %v3673_v23  ;;  %v1396_v11 = vmax.f32 %v1265_v18, %v611_v24  ;;  %v3771_v7 = vld [vmem:[%s4326_s5 + $0xe] sm:$0x3] }
 0x106   :  { %4670 = vst [vmem:[#allocation37_spill] sm:$0xff] %v3746_v39  ;;  %v1203_v49 = vmax.f32 %v1139_v16, %v4671_v44  ;;  %v1441_v39 = vmax.f32 %v1385_v29, %v835_v61  ;;  %v1387_v16 = vmax.f32 %v3594_v32, %v837_v51  ;;  %v981_v44 = vunpack.c.l.bf16 %v157_v48  ;;  %v162_v32 = vld [vmem:[%s4326_s5 + $0x12] sm:$0x3]  ;;  %v4677_v51 = vld [vmem:[#allocation54_spill] sm:$0xff] }
 0x107   :  { %1796 = vst [vmem:[#allocation1 + $0x10] ss:$2 sm:$0xff] %v4629_v31  ;;  %v839_v31 = vrot.slane %v4674_v47, 1  ;;  %v1264_v29 = vmax.f32 %v1200_v43, %v4676_v20  ;;  %v1671_v57 = vmax.f32 %v1619_v0, %v978_v10  ;;  %v842_v22 = vrot.slane %v4677_v51, 1  ;;  %v4681_v47 = vld [vmem:[#allocation15_spill] sm:$0xff] }
 0x108   :  { %v1267_v25 = vmax.f32 %v1203_v49, %v613_v13  ;;  %v3779_v61 = vmax.f32 %v1202_v63, %v4678_v50  ;;  %v4679_v1 = vunpack.c.l.bf16 %v3724_v41  ;;  %v1498_v43 = vmax.f32 %v1442_v33, %v980_v62  ;;  %v165_v49 = vld [vmem:[%s4326_s5 + $0x1e] sm:$0x3]  ;;  %v163_v33 = vld [vmem:[%s4326_s5 + $0x14] sm:$0x3]  ;;  %v4682_v62 = vld [vmem:[#allocation57_spill] sm:$0xff] }
 0x109   :  { %v1444_v18 = vmax.f32 %v3596_v37, %v838_v21  ;;  %v982_v55 = vunpack.c.l.bf16 %v159_v45  ;;  %v841_v48 = vrot.slane %v4680_v30, 1  ;;  %v1497_v0 = vmax.f32 %v1441_v39, %v979_v54  ;;  %v168_v39 = vld [vmem:[%s4326_s5 + $0x24] sm:$0x3]  ;;  %v4685_v30 = vld [vmem:[#allocation60_spill] sm:$0xff] }
 0x10a   :  { %v3783_v24 = vmax.f32 %v1204_v34, %v4679_v1  ;;  %v3793_v10 = vmax.f32 %v1387_v16, %v981_v44  ;;  %v1389_v63 = vmax.f32 %v3626_v17, %v839_v31  ;;  %v844_v37 = vrot.slane %v4682_v62, 1  ;;  %v4683_v16 = vld [vmem:[#allocation56_spill] sm:$0xff]  ;;  %v166_v17 = vld [vmem:[%s4326_s5 + $0x20] sm:$0x3] }
 0x10b   :  { %v3785_v13 = vld.sshfl [vmem:[#allocation1] sm:$0xff pattern:$0x75316420]  ;;  %v983_v34 = vunpack.c.l.bf16 %v3771_v7  ;;  %v1390_v45 = vmax.f32 %v3598_v3, %v840_v58  ;;  %v984_v26 = vunpack.c.l.bf16 %v162_v32  ;;  %v843_v20 = vrot.slane %v4683_v16, 1  ;;  %v4684_v7 = vld [vmem:[#allocation59_spill] sm:$0xff] }
 0x10c   :  { %1802 = vst [vmem:[#allocation1] ss:$2 sm:$0xff] %v4681_v47  ;;  %v1723_v31 = vmax.f32 %v1671_v57, %v979_v54  ;;  %v1627_v51 = vmax.f32 %v3696_v4, %v842_v22  ;;  %v986_v50 = vunpack.c.l.bf16 %v165_v49  ;;  %v845_v1 = vrot.slane %v4684_v7, 1  ;;  %v169_v57 = vld [vmem:[%s4326_s5 + $0x26] sm:$0x3]  ;;  %v4686_v22 = vld [vmem:[#allocation62_spill] sm:$0xff] }
 0x10d   :  { %v3814_v3 = vmax.f32 %v1498_v43, %v981_v44  ;;  %v1500_v58 = vmax.f32 %v1444_v18, %v982_v55  ;;  %v1391_v32 = vmax.f32 %v3687_v36, %v841_v48  ;;  %v846_v47 = vrot.slane %v4685_v30, 1  ;;  %v171_v4 = vld [vmem:[%s4326_s5 + $0x2a] sm:$0x3]  ;;  %v4687_v48 = vld [vmem:[#allocation65_spill] sm:$0xff] }
 0x10e   :  { %v3800_v21 = vld.sshfl [vmem:[#allocation1 + $0x10] sm:$0xff pattern:$0x75316420]  ;;  %v985_v62 = vunpack.c.l.bf16 %v163_v33  ;;  %v1450_v16 = vmax.f32 %v3698_v53, %v844_v37  ;;  %v988_v54 = vunpack.c.l.bf16 %v168_v39  ;;  %v848_v44 = vrot.slane %v4686_v22, 1  ;;  %v172_v39 = vld [vmem:[%s4326_s5 + $0x2c] sm:$0x3] }
 0x10f   :  { %1804 = vst [vmem:[#allocation1 + $0x10] ss:$2 sm:$0xff] %v2547_v27  ;;  %v3826_v43 = vmax.f32 %v1389_v63, %v983_v34  ;;  %v1446_v18 = vmax.f32 %v1390_v45, %v984_v26  ;;  %v1449_v36 = vmax.f32 %v3718_v56, %v843_v20  ;;  %v987_v55 = vunpack.c.l.bf16 %v166_v17  ;;  %v174_v53 = vld [vmem:[%s4326_s5 + $0x30] sm:$0x3]  ;;  %v4688_v7 = vld [vmem:[#allocation61_spill] sm:$0xff] }
 0x110   :  { %v1094_v49 = vrot.slane %v4687_v48, 1  ;;  %v1679_v33 = vmax.f32 %v1627_v51, %v986_v50  ;;  %v1395_v37 = vmax.f32 %v1264_v29, %v845_v1  ;;  %v847_v30 = vrot.slane %v4688_v7, 1  ;;  %v175_v20 = vld [vmem:[%s4326_s5 + $0x32] sm:$0x3]  ;;  %v193_v29 = vld [vmem:[%s4327_s7] sm:$0x3] }
 0x111   :  { %v989_v45 = vunpack.c.l.bf16 %v169_v57  ;;  %v1452_v26 = vmax.f32 %v1396_v11, %v846_v47  ;;  %v990_v56 = vunpack.c.l.bf16 %v171_v4  ;;  %v4690_v17 = vld [vmem:[#allocation63_spill] sm:$0xff]  ;;  %v4691_v51 = vld [vmem:[#allocation64_spill] sm:$0xff]  ;;  %v1506_v1 = vmax.f32 %v1450_v16, %v988_v54  ;;  %v196_v11 = vld [vmem:[%s4327_s7 + $0x8] sm:$0x3] }
 0x112   :  { %v849_v22 = vrot.slane %v4690_v17, 1  ;;  %v1093_v50 = vrot.slane %v4691_v51, 1  ;;  %v1398_v48 = vmax.f32 %v1267_v25, %v848_v44  ;;  %v992_v7 = vunpack.c.l.bf16 %v174_v53  ;;  %v4693_v47 = vld [vmem:[#allocation67_spill] sm:$0xff]  ;;  %v4694_v44 = vld [vmem:[#allocation13_spill] sm:$0xff] }
 0x113   :  { %v3837_v63 = vld.sshfl [vmem:[#allocation1] sm:$0xff pattern:$0x75316420]  ;;  %v1096_v4 = vrot.slane %v4693_v47, 1  ;;  %v1623_v17 = vmax.f32 %v1500_v58, %v983_v34  ;;  %v3854_v19 = vmax.f32 %v1391_v32, %v985_v62  ;;  %v1620_v51 = vmax.f32 %v1497_v0, %v1094_v49  ;;  %v4696_v49 = vld [vmem:[#allocation66_spill] sm:$0xff] }
 0x114   :  { %4689 = vst [vmem:[#allocation39_spill] sm:$0xff] %v3837_v63  ;;  %v3857_v63 = vld.sshfl [vmem:[#allocation1 + $0x20] sm:$0xff pattern:$0x75316420]  ;;  %v1505_v16 = vmax.f32 %v1449_v36, %v987_v55  ;;  %v3859_v25 = vmax.f32 %v1679_v33, %v987_v55  ;;  %v1397_v54 = vmax.f32 %v3779_v61, %v847_v30  ;;  %v991_v47 = vunpack.c.l.bf16 %v172_v39 }
 0x115   :  { %1998 = vst [vmem:[#allocation1] ss:$2 sm:$0xff] %v2599_v5  ;;  %v1502_v5 = vmax.f32 %v1446_v18, %v985_v62  ;;  %v3863_v53 = vld.sshfl [vmem:[#allocation1 + $0x30] sm:$0xff pattern:$0x75316420]  ;;  %v1399_v34 = vmax.f32 %v3783_v24, %v849_v22  ;;  %v993_v58 = vunpack.c.l.bf16 %v175_v20  ;;  %v1451_v62 = vmax.f32 %v1395_v37, %v989_v45  ;;  %v4699_v20 = vld [vmem:[#allocation69_spill] sm:$0xff] }
 0x116   :  { %v3848_v57 = vld.sshfl [vmem:[#allocation1 + $0x10] sm:$0xff pattern:$0x75316420]  ;;  %1798 = vst [vmem:[#allocation1 + $0x20] ss:$2 sm:$0xff] %v4694_v44  ;;  %v1629_v0 = vmax.f32 %v1506_v1, %v989_v45  ;;  %v1454_v18 = vmax.f32 %v1398_v48, %v992_v7  ;;  %v1842_v36 = vmax.f32 %v1723_v31, %v1093_v50  ;;  %v1237_v55 = vunpack.c.l.bf16 %v193_v29  ;;  %v4700_v50 = vld [vmem:[#allocation70_spill] sm:$0xff] }
 0x117   :  { %4692 = vst [vmem:[#allocation43_spill] sm:$0xff] %v3848_v57  ;;  %v1508_v57 = vmax.f32 %v1452_v26, %v990_v56  ;;  %v3871_v61 = vld [vmem:[%s4327_s7 + $0x6] sm:$0x3]  ;;  %v1095_v33 = vrot.slane %v4696_v49, 1  ;;  %v1499_v39 = vmax.f32 %v3793_v10, %v1096_v4  ;;  %v3878_v24 = vld [vmem:[%s4327_s7 + $0x2] sm:$0x3]  ;;  %v4697_v37 = vunpack.c.l.bf16 %v3449_v59 }
 0x118   :  { %2001 = vst [vmem:[#allocation1 + $0x10] ss:$2 sm:$0xff] %v2609_v15  ;;  %v4695_v15 = vld [vmem:[#allocation74_spill] sm:$0xff]  ;;  %v1240_v45 = vunpack.c.l.bf16 %v196_v11  ;;  %v4698_v26 = vld [vmem:[#allocation68_spill] sm:$0xff]  ;;  %v1098_v22 = vrot.slane %v4699_v20, 1  ;;  %v1099_v1 = vrot.slane %v4700_v50, 1  ;;  %v3895_v59 = vmax.f32 %v1397_v54, %v991_v47 }
 0x119   :  { %1800 = vst [vmem:[#allocation1 + $0x30] ss:$2 sm:$0xff] %v2536_v14  ;;  %v1102_v32 = vrot.slane %v4695_v15, 1  ;;  %v1672_v30 = vmax.f32 %v1620_v51, %v4697_v37  ;;  %v3885_v31 = vld [vmem:[%s4327_s7 + $0xc] sm:$0x3]  ;;  %v1097_v56 = vrot.slane %v4698_v26, 1  ;;  %v3897_v48 = vmax.f32 %v1508_v57, %v991_v47 }
 0x11a   :  { %v198_v10 = vld [vmem:[%s4327_s7 + $0xe] sm:$0x3]  ;;  %v3899_v7 = vmax.f32 %v1399_v34, %v993_v58  ;;  %v3905_v11 = vld [vmem:[%s4327_s7 + $0x12] sm:$0x3]  ;;  %v3911_v44 = vld [vmem:[%s4327_s7 + $0x14] sm:$0x3]  ;;  %v3919_v34 = vmax.f32 %v1454_v18, %v993_v58  ;;  %v3923_v49 = vmax.f32 %v1842_v36, %v1237_v55  ;;  %v1673_v37 = vmax.f32 %v3814_v3, %v1095_v33 }
 0x11b   :  { %v4701_v4 = vld [vmem:[#allocation71_spill] sm:$0xff]  ;;  %v3916_v57 = vld [vmem:[%s4327_s7 + $0x1e] sm:$0x3]  ;;  %v1239_v26 = vunpack.c.l.bf16 %v3871_v61  ;;  %v203_v20 = vld [vmem:[%s4327_s7 + $0x24] sm:$0x3]  ;;  %v1622_v18 = vmax.f32 %v1499_v39, %v1240_v45  ;;  %v4707_v61 = vunpack.c.l.bf16 %v3359_v9  ;;  %v1675_v33 = vmax.f32 %v1623_v17, %v1097_v56 }
 0x11c   :  { %v3889_v29 = vld.sshfl [vmem:[#allocation1] sm:$0xff pattern:$0x75316420]  ;;  %v1100_v51 = vrot.slane %v4701_v4, 1  ;;  %v4702_v54 = vld [vmem:[#allocation72_spill] sm:$0xff]  ;;  %v4705_v36 = vld [vmem:[#allocation78_spill] sm:$0xff]  ;;  %v1625_v14 = vmax.f32 %v1502_v5, %v1099_v1  ;;  %v4709_v9 = vunpack.c.l.bf16 %v3616_v52  ;;  %v1243_v17 = vunpack.c.l.bf16 %v3905_v11 }
 0x11d   :  { %2009 = vst [vmem:[#allocation1] ss:$2 sm:$0xff] %v2646_v46  ;;  %v1101_v47 = vrot.slane %v4702_v54, 1  ;;  %v1628_v46 = vmax.f32 %v1505_v16, %v1102_v32  ;;  %v4703_v50 = vld [vmem:[#allocation76_spill] sm:$0xff]  ;;  %v4704_v16 = vunpack.c.l.bf16 %v3503_v8  ;;  %v1238_v32 = vunpack.c.l.bf16 %v3878_v24  ;;  %v4708_v8 = vld [vmem:[#allocation90_spill] sm:$0xff] }
 0x11e   :  { %v1103_v4 = vrot.slane %v4703_v50, 1  ;;  %v3932_v54 = vld.sshfl [vmem:[#allocation1 + $0x20] sm:$0xff pattern:$0x75316420]  ;;  %v1104_v3 = vrot.slane %v4705_v36, 1  ;;  %v1501_v50 = vmax.f32 %v3826_v43, %v1098_v22  ;;  %v1503_v39 = vmax.f32 %v3854_v19, %v1100_v51  ;;  %v4710_v19 = vld [vmem:[#allocation95_spill] sm:$0xff] }
 0x11f   :  { %v3921_v15 = vld.sshfl [vmem:[#allocation1 + $0x10] sm:$0xff pattern:$0x75316420]  ;;  %v1724_v58 = vmax.f32 %v1672_v30, %v4704_v16  ;;  %1806 = vst [vmem:[#allocation1 + $0x20] ss:$2 sm:$0xff] %v4707_v61  ;;  %v1355_v30 = vrot.slane %v4708_v8, 1  ;;  %v1242_v16 = vunpack.c.l.bf16 %v198_v10  ;;  %v1680_v45 = vmax.f32 %v1628_v46, %v4709_v9 }
 0x120   :  { %2011 = vst [vmem:[#allocation1 + $0x10] ss:$2 sm:$0xff] %v2673_v12  ;;  %v3938_v55 = vld.sshfl [vmem:[#allocation1 + $0x30] sm:$0xff pattern:$0x75316420]  ;;  %v1241_v12 = vunpack.c.l.bf16 %v3885_v31  ;;  %v1244_v43 = vunpack.c.l.bf16 %v3911_v44  ;;  %v1850_v5 = vmax.f32 %v3859_v25, %v1101_v47  ;;  %v1245_v31 = vunpack.c.l.bf16 %v3916_v57  ;;  %v4711_v46 = vld [vmem:[#allocation81_spill] sm:$0xff] }
 0x121   :  { %4706 = vst [vmem:[#allocation42_spill] sm:$0xff] %v3938_v55  ;;  %v204_v24 = vld [vmem:[%s4327_s7 + $0x26] sm:$0x3]  ;;  %v202_v56 = vld [vmem:[%s4327_s7 + $0x20] sm:$0x3]  ;;  %v1357_v22 = vrot.slane %v4710_v19, 1  ;;  %v1681_v10 = vmax.f32 %v1629_v0, %v1103_v4  ;;  %v1507_v1 = vmax.f32 %v1451_v62, %v1104_v3  ;;  %v1247_v51 = vunpack.c.l.bf16 %v203_v20 }
 0x122   :  { %1808 = vst [vmem:[#allocation1 + $0x30] ss:$2 sm:$0xff] %v3443_v6  ;;  %v1248_v52 = vunpack.c.l.bf16 %v204_v24  ;;  %v1105_v11 = vrot.slane %v4711_v46, 1  ;;  %v4712_v61 = vld [vmem:[#allocation83_spill] sm:$0xff]  ;;  %v4713_v8 = vld [vmem:[#allocation84_spill] sm:$0xff]  ;;  %v1674_v57 = vmax.f32 %v1622_v18, %v1355_v30  ;;  %v1624_v47 = vmax.f32 %v1501_v50, %v1242_v16  ;;  %v4716_v30 = vld [vmem:[#allocation21_spill] sm:$0xff] }
 0x123   :  { %v1106_v44 = vrot.slane %v4712_v61, 1  ;;  %v1107_v25 = vrot.slane %v4713_v8, 1  ;;  %v4714_v9 = vunpack.c.l.bf16 %v3673_v23  ;;  %v1246_v19 = vunpack.c.l.bf16 %v202_v56  ;;  %v205_v62 = vld [vmem:[%s4327_s7 + $0x2a] sm:$0x3]  ;;  %v206_v0 = vld [vmem:[%s4327_s7 + $0x2c] sm:$0x3] }
 0x124   :  { %v3960_v36 = vld.sshfl [vmem:[#allocation1] sm:$0xff pattern:$0x75316420]  ;;  %v1843_v4 = vmax.f32 %v1724_v58, %v1238_v32  ;;  %v1725_v3 = vmax.f32 %v1673_v37, %v1239_v26  ;;  %v1727_v24 = vmax.f32 %v1675_v33, %v1241_v12  ;;  %v208_v50 = vld [vmem:[%s4327_s7 + $0x32] sm:$0x3]  ;;  %v1676_v46 = vmax.f32 %v1624_v47, %v1357_v22 }
 0x125   :  { %2017 = vst [vmem:[#allocation1] ss:$2 sm:$0xff] %v2681_v38  ;;  %v1732_v6 = vmax.f32 %v1680_v45, %v4714_v9  ;;  %v207_v38 = vld [vmem:[%s4327_s7 + $0x30] sm:$0x3]  ;;  %v4715_v23 = vld [vmem:[#allocation85_spill] sm:$0xff]  ;;  %v3987_v58 = vmax.f32 %v1625_v14, %v1243_v17  ;;  %v3989_v37 = vmax.f32 %v1503_v39, %v1244_v43  ;;  %v3995_v12 = vmax.f32 %v1850_v5, %v1245_v31 }
 0x126   :  { %v1108_v18 = vrot.slane %v4715_v23, 1  ;;  %v3984_v16 = vld.sshfl [vmem:[#allocation1 + $0x20] sm:$0xff pattern:$0x75316420]  ;;  %v4718_v45 = vld [vmem:[#allocation87_spill] sm:$0xff]  ;;  %v3997_v61 = vmax.f32 %v1681_v10, %v1247_v51  ;;  %v1630_v8 = vmax.f32 %v1507_v1, %v1248_v52  ;;  %v1726_v39 = vmax.f32 %v1674_v57, %v3378_v28  ;;  %v4723_v57 = vld [vmem:[#allocation86_spill] sm:$0xff] }
 0x127   :  { %v3974_v20 = vld.sshfl [vmem:[#allocation1 + $0x10] sm:$0xff pattern:$0x75316420]  ;;  %4717 = vst [vmem:[#allocation45_spill] sm:$0xff] %v3984_v16  ;;  %v1353_v56 = vrot.slane %v4718_v45, 1  ;;  %v4720_v32 = vld [vmem:[#allocation89_spill] sm:$0xff]  ;;  %v1851_v17 = vmax.f32 %v1732_v6, %v1246_v19  ;;  %v1509_v43 = vmax.f32 %v3895_v59, %v1106_v44  ;;  %v1249_v5 = vunpack.c.l.bf16 %v205_v62 }
 0x128   :  { %2019 = vst [vmem:[#allocation1 + $0x10] ss:$2 sm:$0xff] %v4716_v30  ;;  %v1354_v33 = vrot.slane %v4720_v32, 1  ;;  %v4721_v9 = vld [vmem:[#allocation23_spill] sm:$0xff]  ;;  %v155_v14 = vld [vmem:[%s4326_s5 + $0x4] sm:$0x3]  ;;  %v1250_v31 = vunpack.c.l.bf16 %v206_v0  ;;  %v1633_v10 = vmax.f32 %v3919_v34, %v1107_v25  ;;  %v1728_v1 = vmax.f32 %v1676_v46, %v3425_v2 }
 0x129   :  { %2004 = vst [vmem:[#allocation1 + $0x20] ss:$2 sm:$0xff] %v2643_v42  ;;  %v3992_v26 = vld.sshfl [vmem:[#allocation1 + $0x30] sm:$0xff pattern:$0x75316420]  ;;  %v1683_v42 = vmax.f32 %v3897_v48, %v1105_v11  ;;  %v4722_v22 = vld [vmem:[#allocation93_spill] sm:$0xff]  ;;  %v1511_v51 = vmax.f32 %v3899_v7, %v1108_v18  ;;  %v1251_v52 = vunpack.c.l.bf16 %v207_v38  ;;  %v1252_v23 = vunpack.c.l.bf16 %v208_v50 }
 0x12a   :  { %4719 = vst [vmem:[#allocation46_spill] sm:$0xff] %v3992_v26  ;;  %v1356_v47 = vrot.slane %v4722_v22, 1  ;;  %v1352_v6 = vrot.slane %v4723_v57, 1  ;;  %v1895_v19 = vmax.f32 %v1843_v4, %v1353_v56  ;;  %v1844_v48 = vmax.f32 %v1725_v3, %v1354_v33  ;;  %v158_v59 = vld [vmem:[%s4326_s5 + $0xa] sm:$0x3]  ;;  %v4724_v34 = vld [vmem:[#allocation92_spill] sm:$0xff] }
 0x12b   :  { %2007 = vst [vmem:[#allocation1 + $0x30] ss:$2 sm:$0xff] %v4721_v9  ;;  %v1488_v11 = vunpack.c.l.bf16 %v155_v14  ;;  %v4725_v44 = vunpack.c.l.bf16 %v4724_v34  ;;  %v164_v7 = vld [vmem:[%s4326_s5 + $0x16] sm:$0x3]  ;;  %v4726_v62 = vld [vmem:[#allocation98_spill] sm:$0xff]  ;;  %v4727_v38 = vld [vmem:[#allocation105_spill] sm:$0xff]  ;;  %v1735_v56 = vmax.f32 %v1683_v42, %v1249_v5  ;;  %v1632_v46 = vmax.f32 %v1509_v43, %v1250_v31 }
 0x12c   :  { %v4010_v30 = vld.sshfl [vmem:[#allocation1] sm:$0xff pattern:$0x75316420]  ;;  %v1359_v0 = vrot.slane %v4726_v62, 1  ;;  %v1363_v18 = vrot.slane %v4727_v38, 1  ;;  %v4728_v4 = vld [vmem:[#allocation107_spill] sm:$0xff]  ;;  %v1846_v45 = vmax.f32 %v1727_v24, %v1356_v47  ;;  %v1685_v62 = vmax.f32 %v1633_v10, %v1251_v52 }
 0x12d   :  { %2025 = vst [vmem:[#allocation1] ss:$2 sm:$0xff] %v2746_v60  ;;  %v1845_v25 = vmax.f32 %v1726_v39, %v4725_v44  ;;  %v1365_v3 = vrot.slane %v4728_v4, 1  ;;  %v161_v60 = vld [vmem:[%s4326_s5 + $0x10] sm:$0x3]  ;;  %v4729_v32 = vld [vmem:[#allocation106_spill] sm:$0xff]  ;;  %v1634_v38 = vmax.f32 %v1511_v51, %v1252_v23  ;;  %v4042_v42 = vmax.f32 %v3923_v49, %v1352_v6 }
 0x12e   :  { %v1364_v33 = vrot.slane %v4729_v32, 1  ;;  %v4730_v9 = vld [vmem:[#allocation36_spill] sm:$0xff]  ;;  %v4731_v39 = vld [vmem:[#allocation25_spill] sm:$0xff]  ;;  %v4733_v34 = vld [vmem:[#allocation103_spill] sm:$0xff]  ;;  %v4044_v43 = vmax.f32 %v1895_v19, %v1488_v11  ;;  %v1896_v5 = vmax.f32 %v1844_v48, %v3378_v28  ;;  %v1489_v52 = vunpack.c.l.bf16 %v158_v59 }
 0x12f   :  { %v4025_v50 = vld.sshfl [vmem:[#allocation1 + $0x10] sm:$0xff pattern:$0x75316420]  ;;  %v4732_v22 = vunpack.c.l.bf16 %v4731_v39  ;;  %v1361_v44 = vrot.slane %v4733_v34, 1  ;;  %v4734_v47 = vld [vmem:[#allocation17_spill] sm:$0xff]  ;;  %v4736_v31 = vld [vmem:[#allocation104_spill] sm:$0xff]  ;;  %v1684_v49 = vmax.f32 %v1632_v46, %v1365_v3  ;;  %v1898_v6 = vmax.f32 %v1846_v45, %v3425_v2 }
 0x130   :  { %2027 = vst [vmem:[#allocation1 + $0x10] ss:$2 sm:$0xff] %v4730_v9  ;;  %v4032_v14 = vld.sshfl [vmem:[#allocation1 + $0x20] sm:$0xff pattern:$0x75316420]  ;;  %v4735_v4 = vunpack.c.l.bf16 %v4734_v47  ;;  %v1362_v32 = vrot.slane %v4736_v31, 1  ;;  %v1491_v28 = vunpack.c.l.bf16 %v164_v7  ;;  %v1854_v48 = vmax.f32 %v1735_v56, %v1364_v33 }
 0x131   :  { %v1847_v57 = vmax.f32 %v1728_v1, %v4732_v22  ;;  %v4737_v9 = vld [vmem:[#allocation101_spill] sm:$0xff]  ;;  %v4739_v39 = vld [vmem:[#allocation27_spill] sm:$0xff]  ;;  %v1682_v22 = vmax.f32 %v1630_v8, %v1363_v18  ;;  %v4742_v34 = vunpack.c.l.bf16 %v3581_v35  ;;  %v1678_v31 = vmax.f32 %v3989_v37, %v1359_v0  ;;  %v4746_v3 = vld [vmem:[#allocation96_spill] sm:$0xff] }
 0x132   :  { %v4037_v24 = vld.sshfl [vmem:[#allocation1 + $0x30] sm:$0xff pattern:$0x75316420]  ;;  %2013 = vst [vmem:[#allocation1 + $0x20] ss:$2 sm:$0xff] %v4735_v4  ;;  %v4738_v1 = vunpack.c.l.bf16 %v4737_v9  ;;  %v4740_v10 = vunpack.c.l.bf16 %v4739_v39  ;;  %v4741_v19 = vld [vmem:[#allocation97_spill] sm:$0xff]  ;;  %v1490_v4 = vunpack.c.l.bf16 %v161_v60  ;;  %v1903_v8 = vmax.f32 %v1851_v17, %v1361_v44 }
 0x133   :  { %v167_v23 = vld [vmem:[%s4326_s5 + $0x22] sm:$0x3]  ;;  %v1358_v11 = vrot.slane %v4741_v19, 1  ;;  %v1899_v47 = vmax.f32 %v1847_v57, %v4742_v34  ;;  %v4065_v18 = vmax.f32 %v3997_v61, %v1362_v32  ;;  %v176_v7 = vld [vmem:[%s4326_s5 + $0x34] sm:$0x3]  ;;  %v4747_v45 = vunpack.c.l.bf16 %v4746_v3  ;;  %v4748_v60 = vld [vmem:[#allocation28_spill] sm:$0xff] }
 0x134   :  { %2015 = vst [vmem:[#allocation1 + $0x30] ss:$2 sm:$0xff] %v4738_v1  ;;  %v1897_v51 = vmax.f32 %v1845_v25, %v4740_v10  ;;  %v4743_v25 = vld [vmem:[#allocation109_spill] sm:$0xff]  ;;  %v4744_v1 = vld [vmem:[#allocation100_spill] sm:$0xff]  ;;  %v1492_v2 = vunpack.c.l.bf16 %v167_v23  ;;  %v4745_v35 = vld [vmem:[#allocation3_spill] sm:$0xff]  ;;  %v1734_v56 = vmax.f32 %v1682_v22, %v4748_v60  ;;  %v1730_v19 = vmax.f32 %v1678_v31, %v1491_v28 }
 0x135   :  { %v1367_v59 = vrot.slane %v4743_v25, 1  ;;  %v4061_v9 = vld.sshfl [vmem:[#allocation1] sm:$0xff pattern:$0x75316420]  ;;  %v1360_v39 = vrot.slane %v4744_v1, 1  ;;  %v1948_v37 = vmax.f32 %v1896_v5, %v4747_v45  ;;  %v4749_v46 = vld [vmem:[#allocation2_spill] sm:$0xff]  ;;  %v1729_v32 = vmax.f32 %v3987_v58, %v1358_v11 }
 0x136   :  { %2215 = vst [vmem:[#allocation1] ss:$2 sm:$0xff] %v4745_v35  ;;  %v4073_v0 = vmax.f32 %v1897_v51, %v1489_v52  ;;  %v1736_v33 = vmax.f32 %v1684_v49, %v4749_v46  ;;  %v4750_v61 = vld [vmem:[#allocation88_spill] sm:$0xff]  ;;  %v4085_v10 = vld [vmem:[%s4326_s5 + $0x28] sm:$0x3]  ;;  %v1906_v5 = vmax.f32 %v1854_v48, %v4749_v46  ;;  %v4753_v23 = vld [vmem:[#allocation41_spill] sm:$0xff]  ;;  %v1951_v49 = vmax.f32 %v1899_v47, %v1490_v4 }
 0x137   :  { %v4077_v17 = vld.sshfl [vmem:[#allocation1 + $0x10] sm:$0xff pattern:$0x75316420]  ;;  %v4751_v57 = vunpack.c.l.bf16 %v4750_v61  ;;  %v4752_v51 = vld [vmem:[#allocation108_spill] sm:$0xff]  ;;  %v1686_v34 = vmax.f32 %v1634_v38, %v1367_v59  ;;  %v1495_v25 = vunpack.c.l.bf16 %v176_v7  ;;  %v4755_v11 = vld [vmem:[#allocation110_spill] sm:$0xff]  ;;  %v4097_v35 = vmax.f32 %v3995_v12, %v1360_v39 }
 0x138   :  { %v1366_v52 = vrot.slane %v4752_v51, 1  ;;  %2218 = vst [vmem:[#allocation1 + $0x10] ss:$2 sm:$0xff] %v4753_v23  ;;  %v4754_v58 = vld [vmem:[#allocation31_spill] sm:$0xff]  ;;  %v1587_v1 = vrot.slane %v4755_v11, 1  ;;  %v4099_v48 = vmax.f32 %v1903_v8, %v1492_v2  ;;  %v4756_v45 = vld [vmem:[#allocation33_spill] sm:$0xff] }
 0x139   :  { %v1950_v44 = vmax.f32 %v1898_v6, %v4751_v57  ;;  %v4090_v22 = vld.sshfl [vmem:[#allocation1 + $0x20] sm:$0xff pattern:$0x75316420]  ;;  %v4757_v47 = vld [vmem:[#allocation111_spill] sm:$0xff]  ;;  %v4758_v38 = vld [vmem:[#allocation22_spill] sm:$0xff]  ;;  %v4764_v57 = vunpack.c.l.bf16 %v3661_v40  ;;  %v4131_v40 = vmax.f32 %v1686_v34, %v1495_v25  ;;  %v4772_v34 = vunpack.c.l.bf16 %v3724_v41 }
 0x13a   :  { %2021 = vst [vmem:[#allocation1 + $0x20] ss:$2 sm:$0xff] %v4754_v58  ;;  %v1588_v28 = vrot.slane %v4757_v47, 1  ;;  %v4759_v4 = vunpack.c.l.bf16 %v4758_v38  ;;  %v4760_v7 = vld [vmem:[#allocation32_spill] sm:$0xff]  ;;  %v4762_v12 = vld [vmem:[#allocation19_spill] sm:$0xff]  ;;  %v4763_v8 = vld [vmem:[#allocation82_spill] sm:$0xff] }
 0x13b   :  { %v4092_v6 = vld.sshfl [vmem:[#allocation1 + $0x30] sm:$0xff pattern:$0x75316420]  ;;  %v4761_v46 = vunpack.c.l.bf16 %v4760_v7  ;;  %v1810_v39 = vrot.slane %v4762_v12, 1  ;;  %v1593_v2 = vrot.slane %v4763_v8, 1  ;;  %v4116_v51 = vmax.f32 %v1906_v5, %v4764_v57  ;;  %v4765_v58 = vld [vmem:[#allocation34_spill] sm:$0xff] }
 0x13c   :  { %2023 = vst [vmem:[#allocation1 + $0x30] ss:$2 sm:$0xff] %v4756_v45  ;;  %v4107_v31 = vmax.f32 %v1734_v56, %v4759_v4  ;;  %v4121_v23 = vld [vmem:[%s4326_s5 + $0x2e] sm:$0x3]  ;;  %v4123_v56 = vmax.f32 %v1685_v62, %v1366_v52  ;;  %v1811_v11 = vrot.slane %v4765_v58, 1  ;;  %v4766_v45 = vld [vmem:[#allocation112_spill] sm:$0xff]  ;;  %v2065_v7 = vmax.f32 %v4042_v42, %v1587_v1 }
 0x13d   :  { %v1855_v61 = vmax.f32 %v1736_v33, %v4761_v46  ;;  %v1589_v47 = vrot.slane %v4766_v45, 1  ;;  %v4767_v33 = vld [vmem:[#allocation73_spill] sm:$0xff]  ;;  %v71_v4 = vld [vmem:[%s4321_s1 + $0x18] sm:$0x3]  ;;  %v2033_v46 = vrot.slane %v3889_v29, 1  ;;  %v4768_v12 = vld [vmem:[#allocation75_spill] sm:$0xff]  ;;  %v2066_v58 = vmax.f32 %v4044_v43, %v1588_v28 }
 0x13e   :  { %v1591_v38 = vrot.slane %v4767_v33, 1  ;;  %v2216_v5 = vld.sshfl [vmem:[#allocation1] sm:$0xff pattern:$0x75316420]  ;;  %v1592_v62 = vrot.slane %v4768_v12, 1  ;;  %v4769_v52 = vld [vmem:[#allocation79_spill] sm:$0xff]  ;;  %v2115_v16 = vmax.f32 %v2065_v7, %v1810_v39  ;;  %v1848_v42 = vmax.f32 %v1729_v32, %v1593_v2 }
 0x13f   :  { %v1594_v8 = vrot.slane %v4769_v52, 1  ;;  %v4770_v57 = vld [vmem:[#allocation7_spill] sm:$0xff]  ;;  %v2034_v45 = vrot.slane %v3921_v15, 1  ;;  %v4771_v33 = vld [vmem:[#allocation29_spill] sm:$0xff]  ;;  %v1907_v25 = vmax.f32 %v1855_v61, %v4772_v34  ;;  %v72_v29 = vld [vmem:[%s4321_s1 + $0x1a] sm:$0x3]  ;;  %v1719_v1 = vunpack.c.l.bf16 %v71_v4 }
 0x140   :  { %2226 = vst [vmem:[#allocation1] ss:$2 sm:$0xff] %v4770_v57  ;;  %v1590_v59 = vrot.slane %v4771_v33, 1  ;;  %v2219_v3 = vld.sshfl [vmem:[#allocation1 + $0x10] sm:$0xff pattern:$0x75316420]  ;;  %v1494_v12 = vunpack.c.l.bf16 %v4121_v23  ;;  %v2116_v15 = vmax.f32 %v2066_v58, %v1811_v11  ;;  %v2067_v28 = vmax.f32 %v1948_v37, %v1589_v47 }
 0x141   :  { %v4773_v52 = vld [vmem:[#allocation47_spill] sm:$0xff]  ;;  %v4148_v43 = vld.sshfl [vmem:[#allocation1 + $0x20] sm:$0xff pattern:$0x75316420]  ;;  %v2069_v57 = vmax.f32 %v1950_v44, %v1591_v38  ;;  %v4774_v33 = vld [vmem:[#allocation20_spill] sm:$0xff]  ;;  %v2165_v34 = vmax.f32 %v2115_v16, %v2033_v46  ;;  %v2250_v26 = vrot.slane %v2216_v5, 1  ;;  %v2070_v32 = vmax.f32 %v1951_v49, %v1592_v62 }
 0x142   :  { %2228 = vst [vmem:[#allocation1 + $0x10] ss:$2 sm:$0xff] %v4773_v52  ;;  %v1814_v41 = vrot.slane %v4774_v33, 1  ;;  %v4776_v39 = vld [vmem:[#allocation99_spill] sm:$0xff]  ;;  %v1849_v2 = vmax.f32 %v1730_v19, %v1594_v8  ;;  %v4778_v4 = vld [vmem:[#allocation102_spill] sm:$0xff]  ;;  %v2166_v52 = vmax.f32 %v2116_v15, %v2034_v45  ;;  %v2251_v55 = vrot.slane %v2219_v3, 1 }
 0x143   :  { %v4151_v61 = vld.sshfl [vmem:[#allocation1 + $0x30] sm:$0xff pattern:$0x75316420]  ;;  %v4777_v7 = vunpack.c.l.bf16 %v4776_v39  ;;  %v4779_v23 = vunpack.c.l.bf16 %v4778_v4  ;;  %v2037_v11 = vrot.slane %v3960_v36, 1  ;;  %v4780_v37 = vld [vmem:[#allocation37_spill] sm:$0xff]  ;;  %v2282_v47 = vmax.f32 %v2165_v34, %v2250_v26  ;;  %v4781_v33 = vld [vmem:[#allocation94_spill] sm:$0xff] }
 0x144   :  { %4775 = vst [vmem:[#allocation9_spill] sm:$0xff] %v4151_v61  ;;  %v1815_v44 = vrot.slane %v4780_v37, 1  ;;  %v1900_v38 = vmax.f32 %v1848_v42, %v1719_v1  ;;  %v1720_v58 = vunpack.c.l.bf16 %v72_v29  ;;  %v1595_v61 = vrot.slane %v4781_v33, 1  ;;  %v4782_v46 = vld [vmem:[#allocation11_spill] sm:$0xff]  ;;  %v4783_v8 = vld [vmem:[#allocation12_spill] sm:$0xff]  ;;  %v4784_v45 = vld [vmem:[#allocation26_spill] sm:$0xff] }
 0x145   :  { %2029 = vst [vmem:[#allocation1 + $0x20] ss:$2 sm:$0xff] %v4777_v7  ;;  %v2283_v39 = vmax.f32 %v2166_v52, %v2251_v55  ;;  %v2119_v16 = vmax.f32 %v2069_v57, %v1814_v41  ;;  %v2038_v49 = vrot.slane %v3974_v20, 1  ;;  %v2298_v5 = vpack.c.bf16 %v2282_v47, %v2282_v47  ;;  %v4785_v15 = vld [vmem:[#allocation10_spill] sm:$0xff]  ;;  %v4787_v4 = vld [vmem:[#allocation52_spill] sm:$0xff] }
 0x146   :  { %2031 = vst [vmem:[#allocation1 + $0x30] ss:$2 sm:$0xff] %v4779_v23  ;;  %v1596_v62 = vrot.slane %v4782_v46, 1  ;;  %v1597_v3 = vrot.slane %v4783_v8, 1  ;;  %v1599_v36 = vrot.slane %v4784_v45, 1  ;;  %v4786_v26 = vld [vmem:[#allocation18_spill] sm:$0xff]  ;;  %v2120_v7 = vmax.f32 %v2070_v32, %v1815_v44 }
 0x147   :  { %v2227_v19 = vld.sshfl [vmem:[#allocation1] sm:$0xff pattern:$0x75316420]  ;;  %v1812_v42 = vrot.slane %v4786_v26, 1  ;;  %v2169_v29 = vmax.f32 %v2119_v16, %v2037_v11  ;;  %2315 = vst.msk [vmem:[%s4328_s8] sm:$0x1] %vm2314_vm0, %v2298_v5  ;;  %v2299_v55 = vpack.c.bf16 %v2283_v39, %v2283_v39  ;;  %v2068_v20 = vmax.f32 %v4073_v0, %v1590_v59 }
 0x148   :  { %2234 = vst [vmem:[#allocation1] ss:$2 sm:$0xff] %v4785_v15  ;;  %v2254_v1 = vrot.slane %v2227_v19, 1  ;;  %v1818_v57 = vrot.slane %v3785_v13, 1  ;;  %v1959_v41 = vmax.f32 %v1907_v25, %v1494_v12  ;;  %v2170_v11 = vmax.f32 %v2120_v7, %v2038_v49  ;;  %v4788_v47 = vld [vmem:[#allocation6_spill] sm:$0xff]  ;;  %v4789_v59 = vld [vmem:[#allocation44_spill] sm:$0xff] }
 0x149   :  { %v2229_v34 = vld.sshfl [vmem:[#allocation1 + $0x10] sm:$0xff pattern:$0x75316420]  ;;  %v1901_v32 = vmax.f32 %v1849_v2, %v1720_v58  ;;  %v1952_v33 = vmax.f32 %v1900_v38, %v1720_v58  ;;  %v2073_v39 = vmax.f32 %v4097_v35, %v1595_v61  ;;  %v2074_v0 = vmax.f32 %v4099_v48, %v1596_v62  ;;  %v4790_v49 = vld [vmem:[#allocation16_spill] sm:$0xff]  ;;  %2316 = vst.msk [vmem:[%s4328_s8 + $0x1] sm:$0x1] %vm2314_vm0, %v2299_v55 }
 0x14a   :  { %2236 = vst [vmem:[#allocation1 + $0x10] ss:$2 sm:$0xff] %v4787_v4  ;;  %v2286_v52 = vmax.f32 %v2169_v29, %v2254_v1  ;;  %v2255_v37 = vrot.slane %v2229_v34, 1  ;;  %v1819_v13 = vrot.slane %v3800_v21, 1  ;;  %v2041_v16 = vrot.slane %v4010_v30, 1  ;;  %v4791_v2 = vld [vmem:[#allocation35_spill] sm:$0xff] }
 0x14b   :  { %v1600_v19 = vrot.slane %v4790_v49, 1  ;;  %v1813_v38 = vrot.slane %v4791_v2, 1  ;;  %v1817_v35 = vrot.slane %v3863_v53, 1  ;;  %v4792_v48 = vld [vmem:[#allocation113_spill] sm:$0xff]  ;;  %v4793_v21 = vld [vmem:[#allocation30_spill] sm:$0xff]  ;;  %v2117_v5 = vmax.f32 %v2067_v28, %v1812_v42  ;;  %v4794_v34 = vld [vmem:[#allocation39_spill] sm:$0xff] }
 0x14c   :  { %v4173_v23 = vld.sshfl [vmem:[#allocation1 + $0x20] sm:$0xff pattern:$0x75316420]  ;;  %v2302_v25 = vpack.c.bf16 %v2286_v52, %v2286_v52  ;;  %v2287_v12 = vmax.f32 %v2170_v11, %v2255_v37  ;;  %v1601_v61 = vrot.slane %v4792_v48, 1  ;;  %v1602_v58 = vrot.slane %v4793_v21, 1 }
 0x14d   :  { %v4175_v44 = vld.sshfl [vmem:[#allocation1 + $0x30] sm:$0xff pattern:$0x75316420]  ;;  %2221 = vst [vmem:[#allocation1 + $0x20] ss:$2 sm:$0xff] %v4788_v47  ;;  %v2123_v62 = vmax.f32 %v2073_v39, %v1818_v57  ;;  %v2042_v45 = vrot.slane %v4025_v50, 1  ;;  %v2124_v42 = vmax.f32 %v2074_v0, %v1819_v13  ;;  %v2118_v52 = vmax.f32 %v2068_v20, %v1813_v38 }
 0x14e   :  { %2224 = vst [vmem:[#allocation1 + $0x30] ss:$2 sm:$0xff] %v4789_v59  ;;  %v2303_v30 = vpack.c.bf16 %v2287_v12, %v2287_v12  ;;  %v118_v46 = vld [vmem:[%s4322_s3 + $0x1a] sm:$0x3]  ;;  %v2035_v53 = vrot.slane %v4032_v14, 1  ;;  %v2036_v26 = vrot.slane %v4037_v24, 1  ;;  %v2077_v0 = vmax.f32 %v4116_v51, %v1599_v36 }
 0x14f   :  { %2319 = vst.msk [vmem:[%s4328_s8 + $0x4] sm:$0x1] %vm2314_vm0, %v2302_v25  ;;  %v2235_v15 = vld.sshfl [vmem:[#allocation1] sm:$0xff pattern:$0x75316420]  ;;  %v1816_v28 = vrot.slane %v3857_v63, 1  ;;  %v2173_v1 = vmax.f32 %v2123_v62, %v2041_v16  ;;  %v1953_v63 = vmax.f32 %v1901_v32, %v1817_v35  ;;  %v1943_v14 = vunpack.c.l.bf16 %v118_v46 }
 0x150   :  { %2242 = vst [vmem:[#allocation1] ss:$2 sm:$0xff] %v2547_v27  ;;  %v117_v29 = vld [vmem:[%s4322_s3 + $0x18] sm:$0x3]  ;;  %v2258_v7 = vrot.slane %v2235_v15, 1  ;;  %v1822_v55 = vrot.slane %v4794_v34, 1  ;;  %v2174_v47 = vmax.f32 %v2124_v42, %v2042_v45  ;;  %v2167_v20 = vmax.f32 %v2117_v5, %v2035_v53 }
 0x151   :  { %v4795_v57 = vld [vmem:[#allocation43_spill] sm:$0xff]  ;;  %2320 = vst.msk [vmem:[%s4328_s8 + $0x5] sm:$0x1] %vm2314_vm0, %v2303_v30  ;;  %v2040_v27 = vrot.slane %v4092_v6, 1  ;;  %v4796_v24 = vld [vmem:[#allocation58_spill] sm:$0xff]  ;;  %v4797_v59 = vld [vmem:[#allocation80_spill] sm:$0xff]  ;;  %v2168_v12 = vmax.f32 %v2118_v52, %v2036_v26  ;;  %v2078_v16 = vmax.f32 %v1959_v41, %v1600_v19  ;;  %v2071_v36 = vmax.f32 %v1952_v33, %v1816_v28 }
 0x152   :  { %v1823_v50 = vrot.slane %v4795_v57, 1  ;;  %v2237_v4 = vld.sshfl [vmem:[#allocation1 + $0x10] sm:$0xff pattern:$0x75316420]  ;;  %v2290_v37 = vmax.f32 %v2173_v1, %v2258_v7  ;;  %v4798_v49 = vld [vmem:[#allocation77_spill] sm:$0xff]  ;;  %v2045_v30 = vrot.slane %v4061_v9, 1  ;;  %v1942_v46 = vunpack.c.l.bf16 %v117_v29 }
 0x153   :  { %2244 = vst [vmem:[#allocation1 + $0x10] ss:$2 sm:$0xff] %v4796_v24  ;;  %v2259_v39 = vrot.slane %v2237_v4, 1  ;;  %v4799_v32 = vunpack.c.l.bf16 %v4798_v49  ;;  %v73_v6 = vld [vmem:[%s4321_s1 + $0x1c] sm:$0x3]  ;;  %v2072_v62 = vmax.f32 %v1953_v63, %v1943_v14  ;;  %v2127_v19 = vmax.f32 %v2077_v0, %v1822_v55  ;;  %v4800_v34 = vld [vmem:[#allocation5_spill] sm:$0xff] }
 0x154   :  { %v2222_v11 = vld.sshfl [vmem:[#allocation1 + $0x20] sm:$0xff pattern:$0x75316420]  ;;  %v2306_v38 = vpack.c.bf16 %v2290_v37, %v2290_v37  ;;  %v2046_v45 = vrot.slane %v4077_v17, 1  ;;  %v2039_v53 = vrot.slane %v4090_v22, 1  ;;  %v2163_v26 = vunpack.c.l.bf16 %v73_v6  ;;  %v4803_v37 = vld [vmem:[#allocation14_spill] sm:$0xff] }
 0x155   :  { %v2225_v13 = vld.sshfl [vmem:[#allocation1 + $0x30] sm:$0xff pattern:$0x75316420]  ;;  %2230 = vst [vmem:[#allocation1 + $0x20] ss:$2 sm:$0xff] %v4797_v59  ;;  %v2252_v25 = vrot.slane %v2222_v11, 1  ;;  %v2291_v35 = vmax.f32 %v2174_v47, %v2259_v39  ;;  %v2128_v9 = vmax.f32 %v2078_v16, %v1823_v50  ;;  %v2122_v29 = vmax.f32 %v2072_v62, %v2040_v27 }
 0x156   :  { %2232 = vst [vmem:[#allocation1 + $0x30] ss:$2 sm:$0xff] %v4799_v32  ;;  %v2253_v2 = vrot.slane %v2225_v13, 1  ;;  %v86_v33 = vld [vmem:[%s4321_s1 + $0x36] sm:$0x3]  ;;  %v2177_v1 = vmax.f32 %v2127_v19, %v2045_v30  ;;  %v2121_v22 = vmax.f32 %v2071_v36, %v1942_v46  ;;  %v4801_v55 = vunpack.c.l.bf16 %v4800_v34  ;;  %v4802_v50 = vld [vmem:[#allocation24_spill] sm:$0xff] }
 0x157   :  { %v2284_v51 = vmax.f32 %v2167_v20, %v2252_v25  ;;  %2323 = vst.msk [vmem:[%s4328_s8 + $0x8] sm:$0x1] %vm2314_vm0, %v2306_v38  ;;  %v2307_v41 = vpack.c.bf16 %v2291_v35, %v2291_v35  ;;  %v2243_v42 = vld.sshfl [vmem:[#allocation1] sm:$0xff pattern:$0x75316420]  ;;  %v1598_v4 = vrot.slane %v4802_v50, 1  ;;  %v1856_v63 = vmax.f32 %v4123_v56, %v1601_v61 }
 0x158   :  { %v2285_v5 = vmax.f32 %v2168_v12, %v2253_v2  ;;  %v2262_v7 = vrot.slane %v2243_v42, 1  ;;  %v87_v17 = vld [vmem:[%s4321_s1 + $0x38] sm:$0x3]  ;;  %v1905_v57 = vmax.f32 %v4107_v31, %v4801_v55  ;;  %v2178_v24 = vmax.f32 %v2128_v9, %v2046_v45  ;;  %v4804_v61 = vld [vmem:[#allocation55_spill] sm:$0xff]  ;;  %v4809_v38 = vld [vmem:[#allocation42_spill] sm:$0xff] }
 0x159   :  { %v2300_v15 = vpack.c.bf16 %v2284_v51, %v2284_v51  ;;  %2324 = vst.msk [vmem:[%s4328_s8 + $0x9] sm:$0x1] %vm2314_vm0, %v2307_v41  ;;  %v1857_v31 = vmax.f32 %v4131_v40, %v1602_v58  ;;  %v2171_v39 = vmax.f32 %v2121_v22, %v2039_v53  ;;  %v1721_v0 = vunpack.c.l.bf16 %v86_v33  ;;  %v4805_v16 = vld [vmem:[#allocation4_spill] sm:$0xff]  ;;  %v4810_v51 = vld [vmem:[#allocation46_spill] sm:$0xff]  ;;  %v4811_v41 = vld [vmem:[#allocation9_spill] sm:$0xff] }
 0x15a   :  { %v2301_v28 = vpack.c.bf16 %v2285_v5, %v2285_v5  ;;  %v2245_v52 = vld.sshfl [vmem:[#allocation1 + $0x10] sm:$0xff pattern:$0x75316420]  ;;  %v2294_v27 = vmax.f32 %v2177_v1, %v2262_v7  ;;  %v1722_v56 = vunpack.c.l.bf16 %v87_v17  ;;  %v2172_v13 = vmax.f32 %v2122_v29, %v2163_v26  ;;  %v4814_v17 = vld [vmem:[#allocation8_spill] sm:$0xff] }
 0x15b   :  { %2317 = vst.msk [vmem:[%s4328_s8 + $0x2] sm:$0x1] %vm2314_vm0, %v2300_v15  ;;  %v2263_v11 = vrot.slane %v2245_v52, 1  ;;  %v4806_v49 = vunpack.c.l.bf16 %v4805_v16  ;;  %v4807_v21 = vmax.f32 %v4065_v18, %v4748_v60  ;;  %v1820_v58 = vrot.slane %v3932_v54, 1  ;;  %v127_v8 = vld [vmem:[%s4322_s3 + $0x36] sm:$0x3] }
 0x15c   :  { %v2231_v14 = vld.sshfl [vmem:[#allocation1 + $0x20] sm:$0xff pattern:$0x75316420]  ;;  %2318 = vst.msk [vmem:[%s4328_s8 + $0x3] sm:$0x1] %vm2314_vm0, %v2301_v28  ;;  %v2310_v20 = vpack.c.bf16 %v2294_v27, %v2294_v27  ;;  %v4808_v32 = vunpack.c.l.bf16 %v4085_v10  ;;  %v1821_v35 = vrot.slane %v4809_v38, 1  ;;  %v1908_v60 = vmax.f32 %v1856_v63, %v1721_v0 }
 0x15d   :  { %2238 = vst [vmem:[#allocation1 + $0x20] ss:$2 sm:$0xff] %v4803_v37  ;;  %v2233_v47 = vld.sshfl [vmem:[#allocation1 + $0x30] sm:$0xff pattern:$0x75316420]  ;;  %v2256_v48 = vrot.slane %v2231_v14, 1  ;;  %v2295_v25 = vmax.f32 %v2178_v24, %v2263_v11  ;;  %v1956_v40 = vmax.f32 %v4807_v21, %v4806_v49  ;;  %v1909_v45 = vmax.f32 %v1857_v31, %v1722_v56 }
 0x15e   :  { %2240 = vst [vmem:[#allocation1 + $0x30] ss:$2 sm:$0xff] %v4804_v61  ;;  %v2257_v59 = vrot.slane %v2233_v47, 1  ;;  %v1957_v2 = vmax.f32 %v1905_v57, %v4808_v32  ;;  %v1825_v36 = vrot.slane %v4810_v51, 1  ;;  %v2043_v54 = vrot.slane %v4148_v43, 1  ;;  %v4813_v33 = vld [vmem:[#allocation91_spill] sm:$0xff] }
 0x15f   :  { %v2288_v12 = vmax.f32 %v2171_v39, %v2256_v48  ;;  %2327 = vst.msk [vmem:[%s4328_s8 + $0xc] sm:$0x1] %vm2314_vm0, %v2310_v20  ;;  %v2311_v30 = vpack.c.bf16 %v2295_v25, %v2295_v25  ;;  %v2075_v18 = vmax.f32 %v1956_v40, %v1597_v3  ;;  %v128_v10 = vld [vmem:[%s4322_s3 + $0x38] sm:$0x3]  ;;  %v2044_v19 = vrot.slane %v4811_v41, 1  ;;  %v4812_v3 = vld [vmem:[#allocation45_spill] sm:$0xff] }
 0x160   :  { %v2289_v6 = vmax.f32 %v2172_v13, %v2257_v59  ;;  %v2076_v5 = vmax.f32 %v1957_v2, %v1598_v4  ;;  %v1824_v15 = vrot.slane %v4812_v3, 1  ;;  %v1961_v42 = vmax.f32 %v1909_v45, %v1825_v36  ;;  %v88_v63 = vld [vmem:[%s4321_s1 + $0x3a] sm:$0x3] }
 0x161   :  { %v2304_v46 = vpack.c.bf16 %v2288_v12, %v2288_v12  ;;  %2328 = vst.msk [vmem:[%s4328_s8 + $0xd] sm:$0x1] %vm2314_vm0, %v2311_v30  ;;  %v2125_v43 = vmax.f32 %v2075_v18, %v1820_v58  ;;  %v1945_v9 = vunpack.c.l.bf16 %v128_v10  ;;  %v1960_v7 = vmax.f32 %v1908_v60, %v1722_v56 }
 0x162   :  { %v2305_v62 = vpack.c.bf16 %v2289_v6, %v2289_v6  ;;  %v2126_v26 = vmax.f32 %v2076_v5, %v1821_v35  ;;  %v4815_v22 = vunpack.c.l.bf16 %v4814_v17  ;;  %v2048_v57 = vrot.slane %v4175_v44, 1 }
 0x163   :  { %2321 = vst.msk [vmem:[%s4328_s8 + $0x6] sm:$0x1] %vm2314_vm0, %v2304_v46  ;;  %v2175_v29 = vmax.f32 %v2125_v43, %v2043_v54  ;;  %v2079_v4 = vmax.f32 %v1960_v7, %v1824_v15  ;;  %v1944_v52 = vunpack.c.l.bf16 %v127_v8  ;;  %v2080_v27 = vmax.f32 %v1961_v42, %v1945_v9 }
 0x164   :  { %v2239_v53 = vld.sshfl [vmem:[#allocation1 + $0x20] sm:$0xff pattern:$0x75316420]  ;;  %2322 = vst.msk [vmem:[%s4328_s8 + $0x7] sm:$0x1] %vm2314_vm0, %v2305_v62  ;;  %v2176_v34 = vmax.f32 %v2126_v26, %v2044_v19  ;;  %v2047_v11 = vrot.slane %v4173_v23, 1  ;;  %v2164_v47 = vunpack.c.l.bf16 %v88_v63 }
 0x165   :  { %2246 = vst [vmem:[#allocation1 + $0x20] ss:$2 sm:$0xff] %v4813_v33  ;;  %v2241_v28 = vld.sshfl [vmem:[#allocation1 + $0x30] sm:$0xff pattern:$0x75316420]  ;;  %v2260_v1 = vrot.slane %v2239_v53, 1  ;;  %v2130_v37 = vmax.f32 %v2080_v27, %v2048_v57  ;;  %v2129_v44 = vmax.f32 %v2079_v4, %v1944_v52 }
 0x166   :  { %2248 = vst [vmem:[#allocation1 + $0x30] ss:$2 sm:$0xff] %v4815_v22  ;;  %v2261_v55 = vrot.slane %v2241_v28, 1 }
 0x167   :  { %v2292_v50 = vmax.f32 %v2175_v29, %v2260_v1  ;;  %v2179_v48 = vmax.f32 %v2129_v44, %v2047_v11  ;;  %v2180_v61 = vmax.f32 %v2130_v37, %v2164_v47 }
 0x168   :  { %v2293_v14 = vmax.f32 %v2176_v34, %v2261_v55 }
 0x169   :  { %v2308_v24 = vpack.c.bf16 %v2292_v50, %v2292_v50 }
 0x16a   :  { %v2309_v31 = vpack.c.bf16 %v2293_v14, %v2293_v14 }
 0x16b   :  { %2325 = vst.msk [vmem:[%s4328_s8 + $0xa] sm:$0x1] %vm2314_vm0, %v2308_v24 }
 0x16c   :  { %2326 = vst.msk [vmem:[%s4328_s8 + $0xb] sm:$0x1] %vm2314_vm0, %v2309_v31  ;;  %v2247_v39 = vld.sshfl [vmem:[#allocation1 + $0x20] sm:$0xff pattern:$0x75316420] }
 0x16d   :  { %v2264_v0 = vrot.slane %v2247_v39, 1  ;;  %v2249_v56 = vld.sshfl [vmem:[#allocation1 + $0x30] sm:$0xff pattern:$0x75316420] }
 0x16e   :  { %v2265_v23 = vrot.slane %v2249_v56, 1 }
 0x16f   :  { %v2296_v13 = vmax.f32 %v2179_v48, %v2264_v0 }
 0x170   :  { %v2297_v59 = vmax.f32 %v2180_v61, %v2265_v23 }
 0x171   :  { %v2312_v20 = vpack.c.bf16 %v2296_v13, %v2296_v13 }
 0x172   :  { %v2313_v25 = vpack.c.bf16 %v2297_v59, %v2297_v59 }
 0x173   :  { %2329 = vst.msk [vmem:[%s4328_s8 + $0xe] sm:$0x1] %vm2314_vm0, %v2312_v20 }
 0x174   :  { %2330 = vst.msk [vmem:[%s4328_s8 + $0xf] sm:$0x1] %vm2314_vm0, %v2313_v25 }

// kernel: resnet_forward.16
= control target key start
LH: loop header
LB: loop body
LE: loop exit
PB: predicated region body
PF: predicated region fallthrough
CT: control target
= control target key end

     0   :  { %vm168_vm0 = vcmask 1043456   ;;  %vm161_vm1 = vcmask 719872   ;;  %vm22_vm2 = vcmask 64512   ;;  %v363_v29 = vmov 0.0   ;;  %s485_s1 = inlined_call_operand.vmem [shape: bf16[216,8], index: 1, kind: input, shape index: {}]   ;;  %s486_s0 = inlined_call_operand.vmem [shape: bf16[32,216], index: 0, kind: input, shape index: {}]   ;;  %s487_s2 = inlined_call_operand.vmem [shape: f32[1,8], index: 2, kind: input, shape index: {}]   ;;  %s488_s3 = inlined_call_operand.vmem [shape: f32[1,8], index: 3, kind: input, shape index: {}]   ;;  %s489_s4 = inlined_call_operand.vmem [shape: bf16[32,8], index: 4, kind: output, shape index: {}]  }
   0x1   :  { %v340_v0 = vld [vmem:[%s485_s1 + $0x38] sm:$0xff]  ;;  %v61_v1 = vld [vmem:[%s485_s1 + $0x68] sm:$0xf]  ;;  %v339_v3 = vld [vmem:[%s485_s1 + $0x30] sm:$0xff]  ;;  %23 = vst.msk [vmem:[#allocation2] sm:$0xff] %vm22_vm2, %v363_v29  ;;  %vm250_vm3 = vcmask 60416  }
   0x2   :  { %v133_v2 = vunpack.c.l.b16 %v61_v1  ;;  %172 = vmatpush.bf16.msra.mxu0 %v340_v0  ;;  %346 = vmatpush.bf16.msra.mxu2 %v340_v0  ;;  %v345_v6 = vld [vmem:[%s485_s1 + $0x60] sm:$0xff]  ;;  %v338_v7 = vld [vmem:[%s485_s1 + $0x28] sm:$0xff]  ;;  %v344_v8 = vld [vmem:[%s485_s1 + $0x58] sm:$0xff]  ;;  %24 = vst.msk [vmem:[#allocation2 + $0x8] sm:$0xff] %vm22_vm2, %v363_v29 }
   0x3   :  { %v337_v9 = vld [vmem:[%s485_s1 + $0x20] sm:$0xff]  ;;  %v343_v10 = vld [vmem:[%s485_s1 + $0x50] sm:$0xff]  ;;  %v336_v11 = vld [vmem:[%s485_s1 + $0x18] sm:$0xff]  ;;  %25 = vst.msk [vmem:[#allocation2 + $0x10] sm:$0xff] %vm22_vm2, %v363_v29 }
   0x4   :  { %v147_v4 = vpack.c.b16 %v133_v2, %v133_v2  ;;  %v342_v12 = vld [vmem:[%s485_s1 + $0x48] sm:$0xff]  ;;  %v335_v13 = vld [vmem:[%s485_s1 + $0x10] sm:$0xff]  ;;  %v341_v14 = vld [vmem:[%s485_s1 + $0x40] sm:$0xff]  ;;  %26 = vst.msk [vmem:[#allocation2 + $0x18] sm:$0xff] %vm22_vm2, %v363_v29 }
   0x5   :  { %v334_v15 = vld [vmem:[%s485_s1 + $0x8] sm:$0xff]  ;;  %v331_v16 = vld [vmem:[%s486_s0 + $0x14] sm:$0xf]  ;;  %v271_v17 = vld [vmem:[%s486_s0 + $0x18] sm:$0xf0] }
   0x6   :  { %v170_v5 = vsel %vm168_vm0, %v147_v4, 0  ;;  %173 = vmatpush.bf16.msra.mxu0 %v339_v3  ;;  %347 = vmatpush.bf16.msra.mxu2 %v339_v3  ;;  %v329_v18 = vld [vmem:[%s486_s0 + $0x4] sm:$0xf]  ;;  %v263_v19 = vld [vmem:[%s486_s0 + $0x8] sm:$0xf0]  ;;  %v274_v20 = vor.u32 %v331_v16, %v271_v17 }
   0x7   :  { %354 = vmatpush.bf16.msra.mxu3 %v170_v5  ;;  %193 = vmatpush.bf16.msra.mxu1 %v170_v5  ;;  %v333_v21 = vld [vmem:[%s485_s1] sm:$0xff]  ;;  %v266_v22 = vor.u32 %v329_v18, %v263_v19  ;;  %v330_v24 = vld [vmem:[%s486_s0 + $0x4] sm:$0xf0]  ;;  %v269_v25 = vld [vmem:[%s486_s0 + $0x10] sm:$0xf] }
   0x8   :  { %v261_v23 = vld [vmem:[%s486_s0] sm:$0xf]  ;;  %v332_v26 = vld [vmem:[%s486_s0 + $0x14] sm:$0xf0] }
   0x9   :  { %v262_v27 = vor.u32 %v330_v24, %v261_v23  ;;  %v270_v28 = vor.u32 %v332_v26, %v269_v25  ;;  %v27_v31 = vld [vmem:[#allocation2] sm:$0xff]  ;;  %v28_v40 = vld [vmem:[#allocation2 + $0x8] sm:$0xff] }
   0xa   :  { %174 = vmatpush.bf16.msra.mxu0 %v338_v7  ;;  %348 = vmatpush.bf16.msra.mxu2 %v338_v7  ;;  %v29_v36 = vld [vmem:[#allocation2 + $0x10] sm:$0xff]  ;;  %v361_v42 = vld [vmem:[%s487_s2] ss:$0 sm:$0xff] }
   0xb   :  { %355 = vmatpush.bf16.msra.mxu3 %v345_v6  ;;  %194 = vmatpush.bf16.msra.mxu1 %v345_v6  ;;  %v362_v45 = vld [vmem:[%s488_s3] ss:$0 sm:$0xff]  ;;  %v30_v51 = vld [vmem:[#allocation2 + $0x18] sm:$0xff] }
   0xe   :  { %175 = vmatpush.bf16.msra.mxu0 %v337_v9  ;;  %349 = vmatpush.bf16.msra.mxu2 %v337_v9 }
   0xf   :  { %356 = vmatpush.bf16.msra.mxu3 %v344_v8  ;;  %195 = vmatpush.bf16.msra.mxu1 %v344_v8 }
  0x12   :  { %176 = vmatpush.bf16.msra.mxu0 %v336_v11  ;;  %350 = vmatpush.bf16.msra.mxu2 %v336_v11 }
  0x13   :  { %357 = vmatpush.bf16.msra.mxu3 %v343_v10  ;;  %196 = vmatpush.bf16.msra.mxu1 %v343_v10 }
  0x16   :  { %177 = vmatpush.bf16.msra.mxu0 %v335_v13  ;;  %351 = vmatpush.bf16.msra.mxu2 %v335_v13 }
  0x17   :  { %358 = vmatpush.bf16.msra.mxu3 %v342_v12  ;;  %197 = vmatpush.bf16.msra.mxu1 %v342_v12 }
  0x1a   :  { %178 = vmatpush.bf16.msra.mxu0 %v334_v15  ;;  %352 = vmatpush.bf16.msra.mxu2 %v334_v15 }
  0x1b   :  { %359 = vmatpush.bf16.msra.mxu3 %v341_v14  ;;  %198 = vmatpush.bf16.msra.mxu1 %v341_v14 }
  0x1e   :  { %328 = vmatmul.msk.bf16.vlgmr.msra.gmra.mxu3 %vm161_vm1, %v274_v20  ;;  %179 = vmatpush.bf16.msra.mxu0 %v333_v21 }
  0x1f   :  { %327 = vmatmul.msk.bf16.vlgmr.msra.gmra.mxu1 %vm161_vm1, %v266_v22  ;;  %353 = vmatpush.bf16.msra.mxu2 %v333_v21 }
  0x21   :  { %180 = vmatmul.bf16.vlgmr.msra.gmra.mxu0 %v262_v27 }
  0x22   :  { %185 = vmatmul.bf16.vlgmr.msra.gmra.mxu2 %v270_v28 }
  0x9c   :  { %v200_v30 = vpop.f32.mrf.mxu1 }
  0x9e   :  { %v181_v32 = vpop.f32.mrf.mxu0 }
  0x9f   :  { %v201_v33 = vadd.f32 %v200_v30, %v181_v32 }
  0xa1   :  { %v210_v34 = vadd.f32 %v201_v33, %v27_v31  ;;  %v205_v35 = vpop.f32.mrf.mxu3 }
  0xa3   :  { %215 = vst.msk [vmem:[#allocation2] sm:$0xff] %vm22_vm2, %v210_v34 }
  0xa4   :  { %v202_v39 = vpop.f32.mrf.mxu1 }
  0xa5   :  { %v186_v37 = vpop.f32.mrf.mxu2 }
  0xa6   :  { %v206_v38 = vadd.f32 %v205_v35, %v186_v37  ;;  %v183_v41 = vpop.f32.mrf.mxu0 }
  0xa7   :  { %v203_v43 = vadd.f32 %v202_v39, %v183_v41 }
  0xa8   :  { %v212_v44 = vadd.f32 %v206_v38, %v29_v36 }
  0xa9   :  { %v211_v46 = vadd.f32 %v203_v43, %v28_v40  ;;  %v207_v50 = vpop.f32.mrf.mxu3 }
  0xaa   :  { %v222_v47 = vld [vmem:[#allocation2] sm:$0xff]  ;;  %217 = vst.msk [vmem:[#allocation2 + $0x10] sm:$0xff] %vm22_vm2, %v212_v44 }
  0xab   :  { %v230_v48 = vmul.f32 %v361_v42, %v222_v47  ;;  %216 = vst.msk [vmem:[#allocation2 + $0x8] sm:$0xff] %vm22_vm2, %v211_v46 }
  0xad   :  { %v238_v49 = vadd.f32 %v362_v45, %v230_v48  ;;  %v188_v52 = vpop.f32.mrf.mxu2 }
  0xae   :  { %v208_v53 = vadd.f32 %v207_v50, %v188_v52 }
  0xaf   :  { %v242_v54 = vmax.f32 %v238_v49, 0.0 }
  0xb0   :  { %v213_v55 = vadd.f32 %v208_v53, %v30_v51 }
  0xb1   :  { %v246_v56 = vpack.c.bf16 %v242_v54, %v242_v54  ;;  %v224_v57 = vld [vmem:[#allocation2 + $0x10] sm:$0xff] }
  0xb2   :  { %v232_v58 = vmul.f32 %v361_v42, %v224_v57  ;;  %v223_v59 = vld [vmem:[#allocation2 + $0x8] sm:$0xff]  ;;  %218 = vst.msk [vmem:[#allocation2 + $0x18] sm:$0xff] %vm22_vm2, %v213_v55 }
  0xb3   :  { %251 = vst.msk [vmem:[%s489_s4] sm:$0xf] %vm250_vm3, %v246_v56  ;;  %v231_v60 = vmul.f32 %v361_v42, %v223_v59 }
  0xb4   :  { %v240_v61 = vadd.f32 %v362_v45, %v232_v58 }
  0xb5   :  { %v239_v62 = vadd.f32 %v362_v45, %v231_v60 }
  0xb6   :  { %v244_v63 = vmax.f32 %v240_v61, 0.0 }
  0xb7   :  { %v243_v0 = vmax.f32 %v239_v62, 0.0 }
  0xb8   :  { %v248_v1 = vpack.c.bf16 %v244_v63, %v244_v63 }
  0xb9   :  { %v247_v2 = vpack.c.bf16 %v243_v0, %v243_v0  ;;  %v225_v3 = vld [vmem:[#allocation2 + $0x18] sm:$0xff] }
  0xba   :  { %253 = vst.msk [vmem:[%s489_s4 + $0x8] sm:$0xf] %vm250_vm3, %v248_v1  ;;  %v233_v4 = vmul.f32 %v361_v42, %v225_v3 }
  0xbb   :  { %252 = vst.msk [vmem:[%s489_s4 + $0x4] sm:$0xf] %vm250_vm3, %v247_v2 }
  0xbc   :  { %v241_v5 = vadd.f32 %v362_v45, %v233_v4 }
  0xbe   :  { %v245_v6 = vmax.f32 %v241_v5, 0.0 }
  0xc0   :  { %v249_v7 = vpack.c.bf16 %v245_v6, %v245_v6 }
  0xc2   :  { %254 = vst.msk [vmem:[%s489_s4 + $0xc] sm:$0xf] %vm250_vm3, %v249_v7 }

// kernel: resnet_forward.17
= control target key start
LH: loop header
LB: loop body
LE: loop exit
PB: predicated region body
PF: predicated region fallthrough
CT: control target
= control target key end

     0   :  { %vm171_vm0 = vcmask 1043456   ;;  %vm164_vm1 = vcmask 719872   ;;  %vm25_vm2 = vcmask 64512   ;;  %v387_v29 = vmov 0.0   ;;  %s520_s1 = inlined_call_operand.vmem [shape: bf16[216,8], index: 1, kind: input, shape index: {}]   ;;  %s521_s0 = inlined_call_operand.vmem [shape: bf16[32,216], index: 0, kind: input, shape index: {}]   ;;  %s522_s2 = inlined_call_operand.vmem [shape: f32[1,8], index: 2, kind: input, shape index: {}]   ;;  %s523_s3 = inlined_call_operand.vmem [shape: f32[1,8], index: 3, kind: input, shape index: {}]   ;;  %s524_s4 = inlined_call_operand.vmem [shape: bf16[32,8], index: 4, kind: input, shape index: {}]   ;;  %s525_s5 = inlined_call_operand.vmem [shape: bf16[32,8], index: 5, kind: output, shape index: {}]  }
   0x1   :  { %v355_v0 = vld [vmem:[%s520_s1 + $0x38] sm:$0xff]  ;;  %v64_v1 = vld [vmem:[%s520_s1 + $0x68] sm:$0xf]  ;;  %v354_v3 = vld [vmem:[%s520_s1 + $0x30] sm:$0xff]  ;;  %26 = vst.msk [vmem:[#allocation2] sm:$0xff] %vm25_vm2, %v387_v29  ;;  %vm265_vm3 = vcmask 60416  }
   0x2   :  { %v136_v2 = vunpack.c.l.b16 %v64_v1  ;;  %175 = vmatpush.bf16.msra.mxu0 %v355_v0  ;;  %370 = vmatpush.bf16.msra.mxu2 %v355_v0  ;;  %v360_v6 = vld [vmem:[%s520_s1 + $0x60] sm:$0xff]  ;;  %v353_v7 = vld [vmem:[%s520_s1 + $0x28] sm:$0xff]  ;;  %v359_v8 = vld [vmem:[%s520_s1 + $0x58] sm:$0xff]  ;;  %27 = vst.msk [vmem:[#allocation2 + $0x8] sm:$0xff] %vm25_vm2, %v387_v29 }
   0x3   :  { %v352_v9 = vld [vmem:[%s520_s1 + $0x20] sm:$0xff]  ;;  %v358_v10 = vld [vmem:[%s520_s1 + $0x50] sm:$0xff]  ;;  %v351_v11 = vld [vmem:[%s520_s1 + $0x18] sm:$0xff]  ;;  %28 = vst.msk [vmem:[#allocation2 + $0x10] sm:$0xff] %vm25_vm2, %v387_v29 }
   0x4   :  { %v150_v4 = vpack.c.b16 %v136_v2, %v136_v2  ;;  %v357_v12 = vld [vmem:[%s520_s1 + $0x48] sm:$0xff]  ;;  %v350_v13 = vld [vmem:[%s520_s1 + $0x10] sm:$0xff]  ;;  %v356_v14 = vld [vmem:[%s520_s1 + $0x40] sm:$0xff]  ;;  %29 = vst.msk [vmem:[#allocation2 + $0x18] sm:$0xff] %vm25_vm2, %v387_v29 }
   0x5   :  { %v349_v15 = vld [vmem:[%s520_s1 + $0x8] sm:$0xff]  ;;  %v346_v16 = vld [vmem:[%s521_s0 + $0x14] sm:$0xf]  ;;  %v286_v17 = vld [vmem:[%s521_s0 + $0x18] sm:$0xf0] }
   0x6   :  { %v173_v5 = vsel %vm171_vm0, %v150_v4, 0  ;;  %176 = vmatpush.bf16.msra.mxu0 %v354_v3  ;;  %371 = vmatpush.bf16.msra.mxu2 %v354_v3  ;;  %v344_v18 = vld [vmem:[%s521_s0 + $0x4] sm:$0xf]  ;;  %v278_v19 = vld [vmem:[%s521_s0 + $0x8] sm:$0xf0]  ;;  %v289_v20 = vor.u32 %v346_v16, %v286_v17 }
   0x7   :  { %378 = vmatpush.bf16.msra.mxu3 %v173_v5  ;;  %196 = vmatpush.bf16.msra.mxu1 %v173_v5  ;;  %v348_v21 = vld [vmem:[%s520_s1] sm:$0xff]  ;;  %v281_v22 = vor.u32 %v344_v18, %v278_v19  ;;  %v345_v24 = vld [vmem:[%s521_s0 + $0x4] sm:$0xf0]  ;;  %v284_v25 = vld [vmem:[%s521_s0 + $0x10] sm:$0xf] }
   0x8   :  { %v276_v23 = vld [vmem:[%s521_s0] sm:$0xf]  ;;  %v347_v26 = vld [vmem:[%s521_s0 + $0x14] sm:$0xf0]  ;;  %v369_v57 = vld [vmem:[%s524_s4 + $0x8] sm:$0xff]  }
   0x9   :  { %v277_v27 = vor.u32 %v345_v24, %v276_v23  ;;  %v285_v28 = vor.u32 %v347_v26, %v284_v25  ;;  %v30_v31 = vld [vmem:[#allocation2] sm:$0xff]  ;;  %v31_v40 = vld [vmem:[#allocation2 + $0x8] sm:$0xff]  ;;  %v367_v62 = vunpack.c.l.bf16 %v369_v57 }
   0xa   :  { %177 = vmatpush.bf16.msra.mxu0 %v353_v7  ;;  %372 = vmatpush.bf16.msra.mxu2 %v353_v7  ;;  %v32_v36 = vld [vmem:[#allocation2 + $0x10] sm:$0xff]  ;;  %v385_v42 = vld [vmem:[%s522_s2] ss:$0 sm:$0xff] }
   0xb   :  { %379 = vmatpush.bf16.msra.mxu3 %v360_v6  ;;  %197 = vmatpush.bf16.msra.mxu1 %v360_v6  ;;  %v362_v44 = vld [vmem:[%s524_s4] sm:$0xff]   ;;  %v33_v53 = vld [vmem:[#allocation2 + $0x18] sm:$0xff] }
   0xc   :  { %v386_v46 = vld [vmem:[%s523_s3] ss:$0 sm:$0xff]  ;;  %v363_v50 = vunpack.c.l.bf16 %v362_v44  ;;  %v364_v2 = vunpack.c.h.bf16 %v362_v44 }
   0xe   :  { %178 = vmatpush.bf16.msra.mxu0 %v352_v9  ;;  %373 = vmatpush.bf16.msra.mxu2 %v352_v9 }
   0xf   :  { %380 = vmatpush.bf16.msra.mxu3 %v359_v8  ;;  %198 = vmatpush.bf16.msra.mxu1 %v359_v8 }
  0x12   :  { %179 = vmatpush.bf16.msra.mxu0 %v351_v11  ;;  %374 = vmatpush.bf16.msra.mxu2 %v351_v11 }
  0x13   :  { %381 = vmatpush.bf16.msra.mxu3 %v358_v10  ;;  %199 = vmatpush.bf16.msra.mxu1 %v358_v10 }
  0x16   :  { %180 = vmatpush.bf16.msra.mxu0 %v350_v13  ;;  %375 = vmatpush.bf16.msra.mxu2 %v350_v13 }
  0x17   :  { %382 = vmatpush.bf16.msra.mxu3 %v357_v12  ;;  %200 = vmatpush.bf16.msra.mxu1 %v357_v12  ;;  %v368_v12 = vunpack.c.h.bf16 %v369_v57 }
  0x1a   :  { %181 = vmatpush.bf16.msra.mxu0 %v349_v15  ;;  %376 = vmatpush.bf16.msra.mxu2 %v349_v15 }
  0x1b   :  { %383 = vmatpush.bf16.msra.mxu3 %v356_v14  ;;  %201 = vmatpush.bf16.msra.mxu1 %v356_v14 }
  0x1e   :  { %343 = vmatmul.msk.bf16.vlgmr.msra.gmra.mxu3 %vm164_vm1, %v289_v20  ;;  %182 = vmatpush.bf16.msra.mxu0 %v348_v21 }
  0x1f   :  { %342 = vmatmul.msk.bf16.vlgmr.msra.gmra.mxu1 %vm164_vm1, %v281_v22  ;;  %377 = vmatpush.bf16.msra.mxu2 %v348_v21 }
  0x21   :  { %183 = vmatmul.bf16.vlgmr.msra.gmra.mxu0 %v277_v27 }
  0x22   :  { %188 = vmatmul.bf16.vlgmr.msra.gmra.mxu2 %v285_v28 }
  0x9c   :  { %v203_v30 = vpop.f32.mrf.mxu1 }
  0x9e   :  { %v184_v32 = vpop.f32.mrf.mxu0 }
  0x9f   :  { %v204_v33 = vadd.f32 %v203_v30, %v184_v32 }
  0xa1   :  { %v213_v34 = vadd.f32 %v204_v33, %v30_v31  ;;  %v208_v35 = vpop.f32.mrf.mxu3 }
  0xa3   :  { %218 = vst.msk [vmem:[#allocation2] sm:$0xff] %vm25_vm2, %v213_v34 }
  0xa4   :  { %v205_v39 = vpop.f32.mrf.mxu1 }
  0xa5   :  { %v189_v37 = vpop.f32.mrf.mxu2 }
  0xa6   :  { %v209_v38 = vadd.f32 %v208_v35, %v189_v37  ;;  %v186_v41 = vpop.f32.mrf.mxu0 }
  0xa7   :  { %v206_v43 = vadd.f32 %v205_v39, %v186_v41 }
  0xa8   :  { %v215_v45 = vadd.f32 %v209_v38, %v32_v36 }
  0xa9   :  { %v214_v47 = vadd.f32 %v206_v43, %v31_v40  ;;  %v210_v52 = vpop.f32.mrf.mxu3 }
  0xaa   :  { %v225_v48 = vld [vmem:[#allocation2] sm:$0xff]  ;;  %220 = vst.msk [vmem:[#allocation2 + $0x10] sm:$0xff] %vm25_vm2, %v215_v45 }
  0xab   :  { %v233_v49 = vmul.f32 %v385_v42, %v225_v48  ;;  %219 = vst.msk [vmem:[#allocation2 + $0x8] sm:$0xff] %vm25_vm2, %v214_v47 }
  0xad   :  { %v241_v51 = vadd.f32 %v386_v46, %v233_v49  ;;  %v191_v54 = vpop.f32.mrf.mxu2 }
  0xae   :  { %v211_v55 = vadd.f32 %v210_v52, %v191_v54 }
  0xaf   :  { %v253_v56 = vadd.f32 %v363_v50, %v241_v51 }
  0xb0   :  { %v216_v58 = vadd.f32 %v211_v55, %v33_v53 }
  0xb1   :  { %v257_v59 = vmax.f32 %v253_v56, 0.0  ;;  %v227_v60 = vld [vmem:[#allocation2 + $0x10] sm:$0xff] }
  0xb2   :  { %v235_v61 = vmul.f32 %v385_v42, %v227_v60  ;;  %v226_v63 = vld [vmem:[#allocation2 + $0x8] sm:$0xff]  ;;  %221 = vst.msk [vmem:[#allocation2 + $0x18] sm:$0xff] %vm25_vm2, %v216_v58 }
  0xb3   :  { %v261_v0 = vpack.c.bf16 %v257_v59, %v257_v59  ;;  %v234_v1 = vmul.f32 %v385_v42, %v226_v63 }
  0xb4   :  { %v243_v3 = vadd.f32 %v386_v46, %v235_v61 }
  0xb5   :  { %266 = vst.msk [vmem:[%s525_s5] sm:$0xf] %vm265_vm3, %v261_v0  ;;  %v242_v4 = vadd.f32 %v386_v46, %v234_v1 }
  0xb6   :  { %v255_v5 = vadd.f32 %v367_v62, %v243_v3 }
  0xb7   :  { %v254_v6 = vadd.f32 %v364_v2, %v242_v4 }
  0xb8   :  { %v259_v7 = vmax.f32 %v255_v5, 0.0 }
  0xb9   :  { %v258_v8 = vmax.f32 %v254_v6, 0.0  ;;  %v228_v9 = vld [vmem:[#allocation2 + $0x18] sm:$0xff] }
  0xba   :  { %v263_v10 = vpack.c.bf16 %v259_v7, %v259_v7  ;;  %v236_v11 = vmul.f32 %v385_v42, %v228_v9 }
  0xbb   :  { %v262_v13 = vpack.c.bf16 %v258_v8, %v258_v8 }
  0xbc   :  { %268 = vst.msk [vmem:[%s525_s5 + $0x8] sm:$0xf] %vm265_vm3, %v263_v10  ;;  %v244_v14 = vadd.f32 %v386_v46, %v236_v11 }
  0xbd   :  { %267 = vst.msk [vmem:[%s525_s5 + $0x4] sm:$0xf] %vm265_vm3, %v262_v13 }
  0xbe   :  { %v256_v15 = vadd.f32 %v368_v12, %v244_v14 }
  0xc0   :  { %v260_v16 = vmax.f32 %v256_v15, 0.0 }
  0xc2   :  { %v264_v17 = vpack.c.bf16 %v260_v16, %v260_v16 }
  0xc4   :  { %269 = vst.msk [vmem:[%s525_s5 + $0xc] sm:$0xf] %vm265_vm3, %v264_v17 }

// kernel: resnet_forward.18
= control target key start
LH: loop header
LB: loop body
LE: loop exit
PB: predicated region body
PF: predicated region fallthrough
CT: control target
= control target key end

     0   :  { %vm144_vm0 = vcmask 1043456   ;;  %vm140_vm1 = vcmask 719872   ;;  %vm22_vm2 = vcmask 130048   ;;  %v268_v22 = vmov 0.0   ;;  %s348_s1 = inlined_call_operand.vmem [shape: bf16[216,16], index: 1, kind: input, shape index: {}]   ;;  %s349_s0 = inlined_call_operand.vmem [shape: bf16[8,216], index: 0, kind: input, shape index: {}]   ;;  %s350_s2 = inlined_call_operand.vmem [shape: f32[1,16], index: 2, kind: input, shape index: {}]   ;;  %s351_s3 = inlined_call_operand.vmem [shape: f32[1,16], index: 3, kind: input, shape index: {}]   ;;  %s352_s4 = inlined_call_operand.vmem [shape: bf16[8,16], index: 4, kind: output, shape index: {}]  }
   0x1   :  { %v259_v0 = vld [vmem:[%s348_s1 + $0x38] sm:$0xff]  ;;  %v52_v1 = vld [vmem:[%s348_s1 + $0x68] sm:$0xf]  ;;  %v258_v3 = vld [vmem:[%s348_s1 + $0x30] sm:$0xff]  ;;  %23 = vst.msk [vmem:[#allocation2] sm:$0xff] %vm22_vm2, %v268_v22  ;;  %vm193_vm3 = vcmask 125952  }
   0x2   :  { %v112_v2 = vunpack.c.l.b16 %v52_v1  ;;  %148 = vmatpush.bf16.msra.mxu0 %v259_v0  ;;  %v264_v6 = vld [vmem:[%s348_s1 + $0x60] sm:$0xff]  ;;  %v257_v7 = vld [vmem:[%s348_s1 + $0x28] sm:$0xff]  ;;  %v263_v8 = vld [vmem:[%s348_s1 + $0x58] sm:$0xff] }
   0x3   :  { %v256_v9 = vld [vmem:[%s348_s1 + $0x20] sm:$0xff]  ;;  %v262_v10 = vld [vmem:[%s348_s1 + $0x50] sm:$0xff]  ;;  %v255_v11 = vld [vmem:[%s348_s1 + $0x18] sm:$0xff] }
   0x4   :  { %v126_v4 = vpack.c.b16 %v112_v2, %v112_v2  ;;  %v261_v12 = vld [vmem:[%s348_s1 + $0x48] sm:$0xff]  ;;  %v254_v13 = vld [vmem:[%s348_s1 + $0x10] sm:$0xff]  ;;  %v25_v14 = vld [vmem:[%s349_s0] sm:$0xff] }
   0x5   :  { %v55_v15 = vunpack.c.h.b16 %v25_v14  ;;  %v260_v16 = vld [vmem:[%s348_s1 + $0x40] sm:$0xff]  ;;  %v253_v17 = vld [vmem:[%s348_s1 + $0x8] sm:$0xff]  ;;  %v54_v19 = vunpack.c.l.b16 %v25_v14 }
   0x6   :  { %v146_v5 = vsel %vm144_vm0, %v126_v4, 0  ;;  %149 = vmatpush.bf16.msra.mxu0 %v258_v3  ;;  %v252_v20 = vld [vmem:[%s348_s1] sm:$0xff] }
   0x7   :  { %163 = vmatpush.bf16.msra.mxu1 %v146_v5  ;;  %v57_v18 = vpack.c.b16 %v55_v15, %v55_v15  ;;  %v56_v21 = vpack.c.b16 %v54_v19, %v54_v19  ;;  %v266_v30 = vld [vmem:[%s350_s2] ss:$0 sm:$0xff] }
   0x8   :  { %v24_v24 = vld [vmem:[#allocation2] sm:$0xff] }
   0x9   :  { %v267_v31 = vld [vmem:[%s351_s3] ss:$0 sm:$0xff] }
   0xa   :  { %150 = vmatpush.bf16.msra.mxu0 %v257_v7 }
   0xb   :  { %164 = vmatpush.bf16.msra.mxu1 %v264_v6 }
   0xe   :  { %151 = vmatpush.bf16.msra.mxu0 %v256_v9 }
   0xf   :  { %165 = vmatpush.bf16.msra.mxu1 %v263_v8 }
  0x12   :  { %152 = vmatpush.bf16.msra.mxu0 %v255_v11 }
  0x13   :  { %166 = vmatpush.bf16.msra.mxu1 %v262_v10 }
  0x16   :  { %153 = vmatpush.bf16.msra.mxu0 %v254_v13 }
  0x17   :  { %167 = vmatpush.bf16.msra.mxu1 %v261_v12 }
  0x1a   :  { %154 = vmatpush.bf16.msra.mxu0 %v253_v17 }
  0x1b   :  { %168 = vmatpush.bf16.msra.mxu1 %v260_v16 }
  0x1e   :  { %251 = vmatmul.msk.bf16.vlgmr.msra.gmra.mxu1 %vm140_vm1, %v57_v18  ;;  %155 = vmatpush.bf16.msra.mxu0 %v252_v20 }
  0x21   :  { %156 = vmatmul.bf16.vlgmr.msra.gmra.mxu0 %v56_v21 }
  0x9b   :  { %v170_v23 = vpop.f32.mrf.mxu1 }
  0x9e   :  { %v157_v25 = vpop.f32.mrf.mxu0 }
  0x9f   :  { %v171_v26 = vadd.f32 %v170_v23, %v157_v25 }
  0xa1   :  { %v174_v27 = vadd.f32 %v171_v26, %v24_v24 }
  0xa3   :  { %v172_v28 = vpop.f32.mrf.mxu1  ;;  %176 = vst.msk [vmem:[#allocation2] sm:$0xff] %vm22_vm2, %v174_v27 }
  0xa6   :  { %v159_v29 = vpop.f32.mrf.mxu0 }
  0xaa   :  { %v180_v32 = vld [vmem:[#allocation2] sm:$0xff] }
  0xab   :  { %v185_v33 = vmul.f32 %v266_v30, %v180_v32 }
  0xad   :  { %v190_v34 = vadd.f32 %v267_v31, %v185_v33 }
  0xaf   :  { %v191_v35 = vmax.f32 %v190_v34, 0.0 }
  0xb1   :  { %v192_v36 = vpack.c.bf16 %v191_v35, %v191_v35 }
  0xb3   :  { %194 = vst.msk [vmem:[%s352_s4] sm:$0xf] %vm193_vm3, %v192_v36 }

// kernel: resnet_forward.20
= control target key start
LH: loop header
LB: loop body
LE: loop exit
PB: predicated region body
PF: predicated region fallthrough
CT: control target
= control target key end

     0   :  { %vm259_vm0 = vcmask 392192   ;;  %vm25_vm1 = vcmask 130048   ;;  %v482_v37 = vmov 0.0   ;;  %vm337_vm2 = vcmask 125952   ;;  %s612_s1 = inlined_call_operand.vmem [shape: bf16[432,16], index: 1, kind: input, shape index: {}]   ;;  %s613_s0 = inlined_call_operand.vmem [shape: bf16[8,432], index: 0, kind: input, shape index: {}]   ;;  %s614_s2 = inlined_call_operand.vmem [shape: f32[1,16], index: 2, kind: input, shape index: {}]   ;;  %s615_s3 = inlined_call_operand.vmem [shape: f32[1,16], index: 3, kind: input, shape index: {}]   ;;  %s616_s4 = inlined_call_operand.vmem [shape: bf16[8,16], index: 4, kind: input, shape index: {}]   ;;  %s617_s5 = inlined_call_operand.vmem [shape: bf16[8,16], index: 5, kind: output, shape index: {}]  }
   0x1   :  { %v459_v0 = vld [vmem:[%s612_s1 + $0x38] sm:$0xff]  ;;  %v458_v3 = vld [vmem:[%s612_s1 + $0x30] sm:$0xff]  ;;  %v457_v7 = vld [vmem:[%s612_s1 + $0x28] sm:$0xff]  ;;  %26 = vst.msk [vmem:[#allocation2] sm:$0xff] %vm25_vm1, %v482_v37 }
   0x2   :  { %v467_v1 = vld [vmem:[%s612_s1 + $0x78] sm:$0xff]  ;;  %263 = vmatpush.bf16.msra.mxu0 %v459_v0  ;;  %v466_v4 = vld [vmem:[%s612_s1 + $0x70] sm:$0xff]  ;;  %v465_v8 = vld [vmem:[%s612_s1 + $0x68] sm:$0xff] }
   0x3   :  { %v475_v2 = vld [vmem:[%s612_s1 + $0xb8] sm:$0xff]  ;;  %276 = vmatpush.bf16.msra.mxu1 %v467_v1  ;;  %v474_v5 = vld [vmem:[%s612_s1 + $0xb0] sm:$0xff]  ;;  %v473_v9 = vld [vmem:[%s612_s1 + $0xa8] sm:$0xff] }
   0x4   :  { %289 = vmatpush.bf16.msra.mxu2 %v475_v2  ;;  %v478_v6 = vld [vmem:[%s612_s1 + $0xd0] sm:$0xff]  ;;  %v477_v10 = vld [vmem:[%s612_s1 + $0xc8] sm:$0xff]  ;;  %v456_v12 = vld [vmem:[%s612_s1 + $0x20] sm:$0xff] }
   0x5   :  { %307 = vmatpush.bf16.msra.mxu3 %v478_v6  ;;  %v29_v11 = vld [vmem:[%s613_s0 + $0x8] sm:$0xff]  ;;  %v464_v13 = vld [vmem:[%s612_s1 + $0x60] sm:$0xff]  ;;  %v455_v17 = vld [vmem:[%s612_s1 + $0x18] sm:$0xff] }
   0x6   :  { %264 = vmatpush.bf16.msra.mxu0 %v458_v3  ;;  %v472_v14 = vld [vmem:[%s612_s1 + $0xa0] sm:$0xff]  ;;  %v89_v16 = vunpack.c.h.b16 %v29_v11  ;;  %v463_v18 = vld [vmem:[%s612_s1 + $0x58] sm:$0xff]  ;;  %v454_v21 = vld [vmem:[%s612_s1 + $0x10] sm:$0xff]  ;;  %v88_v32 = vunpack.c.l.b16 %v29_v11 }
   0x7   :  { %277 = vmatpush.bf16.msra.mxu1 %v466_v4  ;;  %v476_v15 = vld [vmem:[%s612_s1 + $0xc0] sm:$0xff]  ;;  %v471_v19 = vld [vmem:[%s612_s1 + $0x98] sm:$0xff]  ;;  %v462_v22 = vld [vmem:[%s612_s1 + $0x50] sm:$0xff] }
   0x8   :  { %290 = vmatpush.bf16.msra.mxu2 %v474_v5  ;;  %v93_v20 = vpack.c.b16 %v89_v16, %v89_v16  ;;  %v470_v23 = vld [vmem:[%s612_s1 + $0x90] sm:$0xff]  ;;  %v453_v24 = vld [vmem:[%s612_s1 + $0x8] sm:$0xff]  ;;  %v28_v26 = vld [vmem:[%s613_s0] sm:$0xff]  ;;  %v92_v36 = vpack.c.b16 %v88_v32, %v88_v32 }
   0x9   :  { %308 = vmatpush.bf16.msra.mxu3 %v477_v10  ;;  %v461_v25 = vld [vmem:[%s612_s1 + $0x48] sm:$0xff]  ;;  %v86_v28 = vunpack.c.l.b16 %v28_v26  ;;  %v87_v29 = vunpack.c.h.b16 %v28_v26  ;;  %v452_v30 = vld [vmem:[%s612_s1] sm:$0xff] }
   0xa   :  { %265 = vmatpush.bf16.msra.mxu0 %v457_v7  ;;  %v469_v27 = vld [vmem:[%s612_s1 + $0x88] sm:$0xff]  ;;  %v460_v31 = vld [vmem:[%s612_s1 + $0x40] sm:$0xff] }
   0xb   :  { %278 = vmatpush.bf16.msra.mxu1 %v465_v8  ;;  %v468_v33 = vld [vmem:[%s612_s1 + $0x80] sm:$0xff]  ;;  %v90_v34 = vpack.c.b16 %v86_v28, %v86_v28  ;;  %v91_v35 = vpack.c.b16 %v87_v29, %v87_v29 }
   0xc   :  { %291 = vmatpush.bf16.msra.mxu2 %v473_v9  ;;  %v27_v47 = vld [vmem:[#allocation2] sm:$0xff] }
   0xd   :  { %309 = vmatpush.bf16.msra.mxu3 %v476_v15  ;;  %v480_v51 = vld [vmem:[%s614_s2] ss:$0 sm:$0xff] }
   0xe   :  { %266 = vmatpush.bf16.msra.mxu0 %v456_v12  ;;  %v332_v52 = vld [vmem:[%s616_s4] sm:$0xf] }
   0xf   :  { %279 = vmatpush.bf16.msra.mxu1 %v464_v13  ;;  %v481_v53 = vld [vmem:[%s615_s3] ss:$0 sm:$0xff]  ;;  %v333_v56 = vunpack.c.l.bf16 %v332_v52 }
  0x10   :  { %292 = vmatpush.bf16.msra.mxu2 %v472_v14  ;;  %451 = vmatmul.msk.bf16.vlgmr.msra.gmra.mxu3 %vm259_vm0, %v93_v20 }
  0x12   :  { %267 = vmatpush.bf16.msra.mxu0 %v455_v17 }
  0x13   :  { %280 = vmatpush.bf16.msra.mxu1 %v463_v18 }
  0x14   :  { %293 = vmatpush.bf16.msra.mxu2 %v471_v19 }
  0x16   :  { %268 = vmatpush.bf16.msra.mxu0 %v454_v21 }
  0x17   :  { %281 = vmatpush.bf16.msra.mxu1 %v462_v22 }
  0x18   :  { %294 = vmatpush.bf16.msra.mxu2 %v470_v23 }
  0x1a   :  { %269 = vmatpush.bf16.msra.mxu0 %v453_v24 }
  0x1b   :  { %282 = vmatpush.bf16.msra.mxu1 %v461_v25 }
  0x1c   :  { %295 = vmatpush.bf16.msra.mxu2 %v469_v27 }
  0x1e   :  { %270 = vmatpush.bf16.msra.mxu0 %v452_v30 }
  0x1f   :  { %283 = vmatpush.bf16.msra.mxu1 %v460_v31 }
  0x20   :  { %296 = vmatpush.bf16.msra.mxu2 %v468_v33 }
  0x21   :  { %271 = vmatmul.bf16.vlgmr.msra.gmra.mxu0 %v90_v34 }
  0x22   :  { %284 = vmatmul.bf16.vlgmr.msra.gmra.mxu1 %v91_v35 }
  0x23   :  { %297 = vmatmul.bf16.vlgmr.msra.gmra.mxu2 %v92_v36 }
  0x93   :  { %v311_v38 = vpop.f32.mrf.mxu3 }
  0x9b   :  { %v313_v41 = vpop.f32.mrf.mxu3 }
  0x9e   :  { %v272_v39 = vpop.f32.mrf.mxu0 }
  0x9f   :  { %v285_v40 = vpop.f32.mrf.mxu1 }
  0xa0   :  { %v286_v42 = vadd.f32 %v285_v40, %v272_v39 }
  0xa6   :  { %v298_v43 = vpop.f32.mrf.mxu2  ;;  %v274_v45 = vpop.f32.mrf.mxu0 }
  0xa7   :  { %v299_v44 = vadd.f32 %v298_v43, %v286_v42  ;;  %v287_v46 = vpop.f32.mrf.mxu1 }
  0xa9   :  { %v312_v48 = vadd.f32 %v311_v38, %v299_v44 }
  0xab   :  { %v315_v49 = vadd.f32 %v312_v48, %v27_v47 }
  0xad   :  { %317 = vst.msk [vmem:[#allocation2] sm:$0xff] %vm25_vm1, %v315_v49 }
  0xae   :  { %v300_v50 = vpop.f32.mrf.mxu2 }
  0xb4   :  { %v321_v54 = vld [vmem:[#allocation2] sm:$0xff] }
  0xb5   :  { %v326_v55 = vmul.f32 %v480_v51, %v321_v54 }
  0xb7   :  { %v331_v57 = vadd.f32 %v481_v53, %v326_v55 }
  0xb9   :  { %v334_v58 = vadd.f32 %v333_v56, %v331_v57 }
  0xbb   :  { %v335_v59 = vmax.f32 %v334_v58, 0.0 }
  0xbd   :  { %v336_v60 = vpack.c.bf16 %v335_v59, %v335_v59 }
  0xbf   :  { %338 = vst.msk [vmem:[%s617_s5] sm:$0xf] %vm337_vm2, %v336_v60 }

// kernel: resnet_forward.19
= control target key start
LH: loop header
LB: loop body
LE: loop exit
PB: predicated region body
PF: predicated region fallthrough
CT: control target
= control target key end

     0   :  { %vm31_vm0 = vcmask 1043456   ;;  %vm22_vm1 = vcmask 130048   ;;  %v76_v1 = vmov 0.0   ;;  %vm27_vm2 = vcmask 64512   ;;  %s117_s1 = inlined_call_operand.vmem [shape: bf16[8,16], index: 1, kind: input, shape index: {}]   ;;  %s118_s0 = inlined_call_operand.vmem [shape: bf16[8,8], index: 0, kind: input, shape index: {}]   ;;  %s119_s2 = inlined_call_operand.vmem [shape: f32[1,16], index: 2, kind: input, shape index: {}]   ;;  %s120_s3 = inlined_call_operand.vmem [shape: f32[1,16], index: 3, kind: input, shape index: {}]   ;;  %s121_s4 = inlined_call_operand.vmem [shape: bf16[8,16], index: 4, kind: output, shape index: {}]  }
   0x1   :  { %v26_v0 = vld [vmem:[%s117_s1] sm:$0xf]  ;;  %23 = vst.msk [vmem:[#allocation2] sm:$0xff] %vm22_vm1, %v76_v1  ;;  %vm66_vm3 = vcmask 125952  }
   0x2   :  { %v33_v2 = vsel %vm31_vm0, %v26_v0, 0  ;;  %v25_v3 = vld [vmem:[%s118_s0] sm:$0xf] }
   0x3   :  { %42 = vmatpush.bf16.msra.mxu0 %v33_v2  ;;  %v74_v7 = vld [vmem:[%s119_s2] ss:$0 sm:$0xff] }
   0x4   :  { %v75_v9 = vld [vmem:[%s120_s3] ss:$0 sm:$0xff] }
   0x6   :  { %72 = vmatmul.msk.bf16.vlgmr.msra.gmra.mxu0 %vm27_vm2, %v25_v3 }
   0x8   :  { %v24_v4 = vld [vmem:[#allocation2] sm:$0xff] }
  0x83   :  { %v44_v5 = vpop.f32.mrf.mxu0 }
  0x84   :  { %v48_v6 = vadd.f32 %v44_v5, %v24_v4 }
  0x86   :  { %50 = vst.msk [vmem:[#allocation2] sm:$0xff] %vm22_vm1, %v48_v6 }
  0x8b   :  { %v46_v8 = vpop.f32.mrf.mxu0 }
  0x8d   :  { %v54_v10 = vld [vmem:[#allocation2] sm:$0xff] }
  0x8e   :  { %v59_v11 = vmul.f32 %v74_v7, %v54_v10 }
  0x90   :  { %v64_v12 = vadd.f32 %v75_v9, %v59_v11 }
  0x92   :  { %v65_v13 = vpack.c.bf16 %v64_v12, %v64_v12 }
  0x94   :  { %67 = vst.msk [vmem:[%s121_s4] sm:$0xf] %vm66_vm3, %v65_v13 }

// kernel: resnet_forward.21
= control target key start
LH: loop header
LB: loop body
LE: loop exit
PB: predicated region body
PF: predicated region fallthrough
CT: control target
= control target key end

     0   :  { %vm256_vm0 = vcmask 392192   ;;  %vm22_vm1 = vcmask 261120   ;;  %v476_v37 = vmov 0.0   ;;  %vm331_vm2 = vcmask 257024   ;;  %s598_s1 = inlined_call_operand.vmem [shape: bf16[432,32], index: 1, kind: input, shape index: {}]   ;;  %s599_s0 = inlined_call_operand.vmem [shape: bf16[8,432], index: 0, kind: input, shape index: {}]   ;;  %s600_s2 = inlined_call_operand.vmem [shape: f32[1,32], index: 2, kind: input, shape index: {}]   ;;  %s601_s3 = inlined_call_operand.vmem [shape: f32[1,32], index: 3, kind: input, shape index: {}]   ;;  %s602_s4 = inlined_call_operand.vmem [shape: bf16[8,32], index: 4, kind: output, shape index: {}]  }
   0x1   :  { %v453_v0 = vld [vmem:[%s598_s1 + $0x38] sm:$0xff]  ;;  %v452_v3 = vld [vmem:[%s598_s1 + $0x30] sm:$0xff]  ;;  %v451_v7 = vld [vmem:[%s598_s1 + $0x28] sm:$0xff]  ;;  %23 = vst.msk [vmem:[#allocation2] sm:$0xff] %vm22_vm1, %v476_v37 }
   0x2   :  { %v461_v1 = vld [vmem:[%s598_s1 + $0x78] sm:$0xff]  ;;  %260 = vmatpush.bf16.msra.mxu0 %v453_v0  ;;  %v460_v4 = vld [vmem:[%s598_s1 + $0x70] sm:$0xff]  ;;  %v459_v8 = vld [vmem:[%s598_s1 + $0x68] sm:$0xff] }
   0x3   :  { %v469_v2 = vld [vmem:[%s598_s1 + $0xb8] sm:$0xff]  ;;  %273 = vmatpush.bf16.msra.mxu1 %v461_v1  ;;  %v468_v5 = vld [vmem:[%s598_s1 + $0xb0] sm:$0xff]  ;;  %v467_v9 = vld [vmem:[%s598_s1 + $0xa8] sm:$0xff] }
   0x4   :  { %286 = vmatpush.bf16.msra.mxu2 %v469_v2  ;;  %v472_v6 = vld [vmem:[%s598_s1 + $0xd0] sm:$0xff]  ;;  %v471_v10 = vld [vmem:[%s598_s1 + $0xc8] sm:$0xff]  ;;  %v450_v12 = vld [vmem:[%s598_s1 + $0x20] sm:$0xff] }
   0x5   :  { %304 = vmatpush.bf16.msra.mxu3 %v472_v6  ;;  %v26_v11 = vld [vmem:[%s599_s0 + $0x8] sm:$0xff]  ;;  %v458_v13 = vld [vmem:[%s598_s1 + $0x60] sm:$0xff]  ;;  %v449_v17 = vld [vmem:[%s598_s1 + $0x18] sm:$0xff] }
   0x6   :  { %261 = vmatpush.bf16.msra.mxu0 %v452_v3  ;;  %v466_v14 = vld [vmem:[%s598_s1 + $0xa0] sm:$0xff]  ;;  %v86_v16 = vunpack.c.h.b16 %v26_v11  ;;  %v457_v18 = vld [vmem:[%s598_s1 + $0x58] sm:$0xff]  ;;  %v448_v21 = vld [vmem:[%s598_s1 + $0x10] sm:$0xff]  ;;  %v85_v32 = vunpack.c.l.b16 %v26_v11 }
   0x7   :  { %274 = vmatpush.bf16.msra.mxu1 %v460_v4  ;;  %v470_v15 = vld [vmem:[%s598_s1 + $0xc0] sm:$0xff]  ;;  %v465_v19 = vld [vmem:[%s598_s1 + $0x98] sm:$0xff]  ;;  %v456_v22 = vld [vmem:[%s598_s1 + $0x50] sm:$0xff] }
   0x8   :  { %287 = vmatpush.bf16.msra.mxu2 %v468_v5  ;;  %v90_v20 = vpack.c.b16 %v86_v16, %v86_v16  ;;  %v464_v23 = vld [vmem:[%s598_s1 + $0x90] sm:$0xff]  ;;  %v447_v24 = vld [vmem:[%s598_s1 + $0x8] sm:$0xff]  ;;  %v25_v26 = vld [vmem:[%s599_s0] sm:$0xff]  ;;  %v89_v36 = vpack.c.b16 %v85_v32, %v85_v32 }
   0x9   :  { %305 = vmatpush.bf16.msra.mxu3 %v471_v10  ;;  %v455_v25 = vld [vmem:[%s598_s1 + $0x48] sm:$0xff]  ;;  %v83_v28 = vunpack.c.l.b16 %v25_v26  ;;  %v84_v29 = vunpack.c.h.b16 %v25_v26  ;;  %v446_v30 = vld [vmem:[%s598_s1] sm:$0xff] }
   0xa   :  { %262 = vmatpush.bf16.msra.mxu0 %v451_v7  ;;  %v463_v27 = vld [vmem:[%s598_s1 + $0x88] sm:$0xff]  ;;  %v454_v31 = vld [vmem:[%s598_s1 + $0x40] sm:$0xff] }
   0xb   :  { %275 = vmatpush.bf16.msra.mxu1 %v459_v8  ;;  %v462_v33 = vld [vmem:[%s598_s1 + $0x80] sm:$0xff]  ;;  %v87_v34 = vpack.c.b16 %v83_v28, %v83_v28  ;;  %v88_v35 = vpack.c.b16 %v84_v29, %v84_v29 }
   0xc   :  { %288 = vmatpush.bf16.msra.mxu2 %v467_v9  ;;  %v24_v47 = vld [vmem:[#allocation2] sm:$0xff] }
   0xd   :  { %306 = vmatpush.bf16.msra.mxu3 %v470_v15  ;;  %v474_v51 = vld [vmem:[%s600_s2] ss:$0 sm:$0xff] }
   0xe   :  { %263 = vmatpush.bf16.msra.mxu0 %v450_v12  ;;  %v475_v52 = vld [vmem:[%s601_s3] ss:$0 sm:$0xff] }
   0xf   :  { %276 = vmatpush.bf16.msra.mxu1 %v458_v13 }
  0x10   :  { %289 = vmatpush.bf16.msra.mxu2 %v466_v14  ;;  %445 = vmatmul.msk.bf16.vlgmr.msra.gmra.mxu3 %vm256_vm0, %v90_v20 }
  0x12   :  { %264 = vmatpush.bf16.msra.mxu0 %v449_v17 }
  0x13   :  { %277 = vmatpush.bf16.msra.mxu1 %v457_v18 }
  0x14   :  { %290 = vmatpush.bf16.msra.mxu2 %v465_v19 }
  0x16   :  { %265 = vmatpush.bf16.msra.mxu0 %v448_v21 }
  0x17   :  { %278 = vmatpush.bf16.msra.mxu1 %v456_v22 }
  0x18   :  { %291 = vmatpush.bf16.msra.mxu2 %v464_v23 }
  0x1a   :  { %266 = vmatpush.bf16.msra.mxu0 %v447_v24 }
  0x1b   :  { %279 = vmatpush.bf16.msra.mxu1 %v455_v25 }
  0x1c   :  { %292 = vmatpush.bf16.msra.mxu2 %v463_v27 }
  0x1e   :  { %267 = vmatpush.bf16.msra.mxu0 %v446_v30 }
  0x1f   :  { %280 = vmatpush.bf16.msra.mxu1 %v454_v31 }
  0x20   :  { %293 = vmatpush.bf16.msra.mxu2 %v462_v33 }
  0x21   :  { %268 = vmatmul.bf16.vlgmr.msra.gmra.mxu0 %v87_v34 }
  0x22   :  { %281 = vmatmul.bf16.vlgmr.msra.gmra.mxu1 %v88_v35 }
  0x23   :  { %294 = vmatmul.bf16.vlgmr.msra.gmra.mxu2 %v89_v36 }
  0x93   :  { %v308_v38 = vpop.f32.mrf.mxu3 }
  0x9b   :  { %v310_v41 = vpop.f32.mrf.mxu3 }
  0x9e   :  { %v269_v39 = vpop.f32.mrf.mxu0 }
  0x9f   :  { %v282_v40 = vpop.f32.mrf.mxu1 }
  0xa0   :  { %v283_v42 = vadd.f32 %v282_v40, %v269_v39 }
  0xa6   :  { %v295_v43 = vpop.f32.mrf.mxu2  ;;  %v271_v45 = vpop.f32.mrf.mxu0 }
  0xa7   :  { %v296_v44 = vadd.f32 %v295_v43, %v283_v42  ;;  %v284_v46 = vpop.f32.mrf.mxu1 }
  0xa9   :  { %v309_v48 = vadd.f32 %v308_v38, %v296_v44 }
  0xab   :  { %v312_v49 = vadd.f32 %v309_v48, %v24_v47 }
  0xad   :  { %314 = vst.msk [vmem:[#allocation2] sm:$0xff] %vm22_vm1, %v312_v49 }
  0xae   :  { %v297_v50 = vpop.f32.mrf.mxu2 }
  0xb4   :  { %v318_v53 = vld [vmem:[#allocation2] sm:$0xff] }
  0xb5   :  { %v323_v54 = vmul.f32 %v474_v51, %v318_v53 }
  0xb7   :  { %v328_v55 = vadd.f32 %v475_v52, %v323_v54 }
  0xb9   :  { %v329_v56 = vmax.f32 %v328_v55, 0.0 }
  0xbb   :  { %v330_v57 = vpack.c.bf16 %v329_v56, %v329_v56 }
  0xbd   :  { %332 = vst.msk [vmem:[%s602_s4] sm:$0xf] %vm331_vm2, %v330_v57 }

// kernel: resnet_forward.23
= control target key start
LH: loop header
LB: loop body
LE: loop exit
PB: predicated region body
PF: predicated region fallthrough
CT: control target
= control target key end

     0   :  { %vm488_vm0 = vcmask 785408   ;;  %vm25_vm1 = vcmask 261120   ;;  %vm605_vm2 = vcmask 257024   ;;  %s1104_s1 = inlined_call_operand.vmem [shape: bf16[864,32], index: 1, kind: input, shape index: {}]   ;;  %s1105_s0 = inlined_call_operand.vmem [shape: bf16[8,864], index: 0, kind: input, shape index: {}]   ;;  %s1106_s2 = inlined_call_operand.vmem [shape: f32[1,32], index: 2, kind: input, shape index: {}]   ;;  %s1107_s3 = inlined_call_operand.vmem [shape: f32[1,32], index: 3, kind: input, shape index: {}]   ;;  %s1108_s4 = inlined_call_operand.vmem [shape: bf16[8,32], index: 4, kind: input, shape index: {}]   ;;  %s1109_s5 = inlined_call_operand.vmem [shape: bf16[8,32], index: 5, kind: output, shape index: {}]  }
   0x1   :  { %v835_v0 = vld [vmem:[%s1104_s1 + $0x38] sm:$0xff]  ;;  %v834_v3 = vld [vmem:[%s1104_s1 + $0x30] sm:$0xff]  ;;  %v833_v8 = vld [vmem:[%s1104_s1 + $0x28] sm:$0xff] }
   0x2   :  { %v843_v1 = vld [vmem:[%s1104_s1 + $0x78] sm:$0xff]  ;;  %492 = vmatpush.bf16.msra.mxu0 %v835_v0  ;;  %v842_v4 = vld [vmem:[%s1104_s1 + $0x70] sm:$0xff]  ;;  %v841_v9 = vld [vmem:[%s1104_s1 + $0x68] sm:$0xff] }
   0x3   :  { %v851_v2 = vld [vmem:[%s1104_s1 + $0xb8] sm:$0xff]  ;;  %505 = vmatpush.bf16.msra.mxu1 %v843_v1  ;;  %v850_v5 = vld [vmem:[%s1104_s1 + $0xb0] sm:$0xff]  ;;  %v849_v10 = vld [vmem:[%s1104_s1 + $0xa8] sm:$0xff] }
   0x4   :  { %518 = vmatpush.bf16.msra.mxu2 %v851_v2  ;;  %v859_v6 = vld [vmem:[%s1104_s1 + $0xf8] sm:$0xff]  ;;  %v858_v7 = vld [vmem:[%s1104_s1 + $0xf0] sm:$0xff]  ;;  %v857_v11 = vld [vmem:[%s1104_s1 + $0xe8] sm:$0xff] }
   0x5   :  { %531 = vmatpush.bf16.msra.mxu3 %v859_v6  ;;  %v832_v12 = vld [vmem:[%s1104_s1 + $0x20] sm:$0xff]  ;;  %v831_v16 = vld [vmem:[%s1104_s1 + $0x18] sm:$0xff]  ;;  %v830_v20 = vld [vmem:[%s1104_s1 + $0x10] sm:$0xff] }
   0x6   :  { %493 = vmatpush.bf16.msra.mxu0 %v834_v3  ;;  %v840_v13 = vld [vmem:[%s1104_s1 + $0x60] sm:$0xff]  ;;  %v839_v17 = vld [vmem:[%s1104_s1 + $0x58] sm:$0xff]  ;;  %v838_v21 = vld [vmem:[%s1104_s1 + $0x50] sm:$0xff] }
   0x7   :  { %506 = vmatpush.bf16.msra.mxu1 %v842_v4  ;;  %v848_v14 = vld [vmem:[%s1104_s1 + $0xa0] sm:$0xff]  ;;  %v847_v18 = vld [vmem:[%s1104_s1 + $0x98] sm:$0xff]  ;;  %v846_v22 = vld [vmem:[%s1104_s1 + $0x90] sm:$0xff] }
   0x8   :  { %519 = vmatpush.bf16.msra.mxu2 %v850_v5  ;;  %v856_v15 = vld [vmem:[%s1104_s1 + $0xe0] sm:$0xff]  ;;  %v855_v19 = vld [vmem:[%s1104_s1 + $0xd8] sm:$0xff]  ;;  %v854_v23 = vld [vmem:[%s1104_s1 + $0xd0] sm:$0xff] }
   0x9   :  { %532 = vmatpush.bf16.msra.mxu3 %v858_v7  ;;  %v829_v24 = vld [vmem:[%s1104_s1 + $0x8] sm:$0xff]  ;;  %v28_v26 = vld [vmem:[%s1105_s0] sm:$0xff]  ;;  %v867_v36 = vld [vmem:[%s1104_s1 + $0x138] sm:$0xff] }
   0xa   :  { %494 = vmatpush.bf16.msra.mxu0 %v833_v8  ;;  %v837_v25 = vld [vmem:[%s1104_s1 + $0x48] sm:$0xff]  ;;  %v144_v30 = vunpack.c.l.b16 %v28_v26  ;;  %v145_v31 = vunpack.c.h.b16 %v28_v26  ;;  %v828_v32 = vld [vmem:[%s1104_s1] sm:$0xff]  ;;  %v875_v37 = vld [vmem:[%s1104_s1 + $0x178] sm:$0xff]  ;;  %v885_v8 = vmov 0.0  }
   0xb   :  { %507 = vmatpush.bf16.msra.mxu1 %v841_v9  ;;  %v845_v27 = vld [vmem:[%s1104_s1 + $0x88] sm:$0xff]  ;;  %v836_v33 = vld [vmem:[%s1104_s1 + $0x40] sm:$0xff]  ;;  %v866_v44 = vld [vmem:[%s1104_s1 + $0x130] sm:$0xff]  ;;  %26 = vst.msk [vmem:[#allocation2] sm:$0xff] %vm25_vm1, %v885_v8 }
   0xc   :  { %520 = vmatpush.bf16.msra.mxu2 %v849_v10  ;;  %v29_v28 = vld [vmem:[%s1105_s0 + $0x8] sm:$0xff]  ;;  %v844_v35 = vld [vmem:[%s1104_s1 + $0x80] sm:$0xff]  ;;  %v151_v39 = vpack.c.b16 %v144_v30, %v144_v30  ;;  %v152_v40 = vpack.c.b16 %v145_v31, %v145_v31  ;;  %v874_v45 = vld [vmem:[%s1104_s1 + $0x170] sm:$0xff] }
   0xd   :  { %533 = vmatpush.bf16.msra.mxu3 %v857_v11  ;;  %v853_v29 = vld [vmem:[%s1104_s1 + $0xc8] sm:$0xff]  ;;  %v146_v34 = vunpack.c.l.b16 %v29_v28  ;;  %v147_v41 = vunpack.c.h.b16 %v29_v28  ;;  %v852_v43 = vld [vmem:[%s1104_s1 + $0xc0] sm:$0xff]  ;;  %v879_v50 = vld [vmem:[%s1104_s1 + $0x198] sm:$0xff] }
   0xe   :  { %495 = vmatpush.bf16.msra.mxu0 %v832_v12  ;;  %v881_v38 = vld [vmem:[%s1104_s1 + $0x1a8] sm:$0xff]  ;;  %v880_v46 = vld [vmem:[%s1104_s1 + $0x1a0] sm:$0xff]  ;;  %v878_v53 = vld [vmem:[%s1104_s1 + $0x190] sm:$0xff] }
   0xf   :  { %508 = vmatpush.bf16.msra.mxu1 %v840_v13  ;;  %v153_v42 = vpack.c.b16 %v146_v34, %v146_v34  ;;  %v154_v47 = vpack.c.b16 %v147_v41, %v147_v41  ;;  %v865_v48 = vld [vmem:[%s1104_s1 + $0x128] sm:$0xff]  ;;  %v864_v51 = vld [vmem:[%s1104_s1 + $0x120] sm:$0xff]  ;;  %v863_v54 = vld [vmem:[%s1104_s1 + $0x118] sm:$0xff] }
  0x10   :  { %521 = vmatpush.bf16.msra.mxu2 %v848_v14  ;;  %v873_v49 = vld [vmem:[%s1104_s1 + $0x168] sm:$0xff]  ;;  %v872_v52 = vld [vmem:[%s1104_s1 + $0x160] sm:$0xff]  ;;  %v871_v55 = vld [vmem:[%s1104_s1 + $0x158] sm:$0xff] }
  0x11   :  { %534 = vmatpush.bf16.msra.mxu3 %v856_v15  ;;  %v877_v56 = vld [vmem:[%s1104_s1 + $0x188] sm:$0xff]  ;;  %v31_v57 = vld [vmem:[%s1105_s0 + $0x18] sm:$0xf]  ;;  %v862_v58 = vld [vmem:[%s1104_s1 + $0x110] sm:$0xff] }
  0x12   :  { %496 = vmatpush.bf16.msra.mxu0 %v831_v16  ;;  %v150_v59 = vunpack.c.l.b16 %v31_v57  ;;  %v870_v60 = vld [vmem:[%s1104_s1 + $0x150] sm:$0xff]  ;;  %v876_v61 = vld [vmem:[%s1104_s1 + $0x180] sm:$0xff]  ;;  %v861_v63 = vld [vmem:[%s1104_s1 + $0x108] sm:$0xff] }
  0x13   :  { %509 = vmatpush.bf16.msra.mxu1 %v839_v17  ;;  %v30_v0 = vld [vmem:[%s1105_s0 + $0x10] sm:$0xff]  ;;  %v869_v1 = vld [vmem:[%s1104_s1 + $0x148] sm:$0xff]  ;;  %v860_v3 = vld [vmem:[%s1104_s1 + $0x100] sm:$0xff] }
  0x14   :  { %522 = vmatpush.bf16.msra.mxu2 %v847_v18  ;;  %v157_v62 = vpack.c.b16 %v150_v59, %v150_v59  ;;  %v148_v2 = vunpack.c.l.b16 %v30_v0  ;;  %v149_v4 = vunpack.c.h.b16 %v30_v0  ;;  %v868_v5 = vld [vmem:[%s1104_s1 + $0x140] sm:$0xff] }
  0x15   :  { %535 = vmatpush.bf16.msra.mxu3 %v855_v19  ;;  %v883_v31 = vld [vmem:[%s1106_s2] ss:$0 sm:$0xff] }
  0x16   :  { %497 = vmatpush.bf16.msra.mxu0 %v830_v20  ;;  %v155_v6 = vpack.c.b16 %v148_v2, %v148_v2  ;;  %v156_v7 = vpack.c.b16 %v149_v4, %v149_v4 }
  0x17   :  { %510 = vmatpush.bf16.msra.mxu1 %v838_v21 }
  0x18   :  { %523 = vmatpush.bf16.msra.mxu2 %v846_v22 }
  0x19   :  { %536 = vmatpush.bf16.msra.mxu3 %v854_v23 }
  0x1a   :  { %498 = vmatpush.bf16.msra.mxu0 %v829_v24 }
  0x1b   :  { %511 = vmatpush.bf16.msra.mxu1 %v837_v25  ;;  %v27_v25 = vld [vmem:[#allocation2] sm:$0xff] }
  0x1c   :  { %524 = vmatpush.bf16.msra.mxu2 %v845_v27 }
  0x1d   :  { %537 = vmatpush.bf16.msra.mxu3 %v853_v29 }
  0x1e   :  { %499 = vmatpush.bf16.msra.mxu0 %v828_v32  ;;  %v600_v32 = vld [vmem:[%s1108_s4] sm:$0xf] }
  0x1f   :  { %512 = vmatpush.bf16.msra.mxu1 %v836_v33  ;;  %v884_v33 = vld [vmem:[%s1107_s3] ss:$0 sm:$0xff] }
  0x20   :  { %525 = vmatpush.bf16.msra.mxu2 %v844_v35 }
  0x21   :  { %500 = vmatmul.bf16.vlgmr.msra.gmra.mxu0 %v151_v39  ;;  %538 = vmatpush.bf16.msra.mxu3 %v852_v43 }
  0x22   :  { %544 = vmatpush.bf16.msrb.mxu0 %v867_v36  ;;  %513 = vmatmul.bf16.vlgmr.msra.gmra.mxu1 %v152_v40  ;;  %v601_v36 = vunpack.c.l.bf16 %v600_v32 }
  0x23   :  { %557 = vmatpush.bf16.msrb.mxu1 %v875_v37  ;;  %526 = vmatmul.bf16.vlgmr.msra.gmra.mxu2 %v153_v42 }
  0x24   :  { %572 = vmatpush.bf16.msrb.mxu2 %v881_v38  ;;  %539 = vmatmul.bf16.vlgmr.msra.gmra.mxu3 %v154_v47 }
  0x26   :  { %545 = vmatpush.bf16.msrb.mxu0 %v866_v44 }
  0x27   :  { %558 = vmatpush.bf16.msrb.mxu1 %v874_v45 }
  0x28   :  { %573 = vmatpush.bf16.msrb.mxu2 %v880_v46 }
  0x2a   :  { %546 = vmatpush.bf16.msrb.mxu0 %v865_v48 }
  0x2b   :  { %559 = vmatpush.bf16.msrb.mxu1 %v873_v49 }
  0x2c   :  { %574 = vmatpush.bf16.msrb.mxu2 %v879_v50 }
  0x2e   :  { %547 = vmatpush.bf16.msrb.mxu0 %v864_v51 }
  0x2f   :  { %560 = vmatpush.bf16.msrb.mxu1 %v872_v52 }
  0x30   :  { %575 = vmatpush.bf16.msrb.mxu2 %v878_v53 }
  0x32   :  { %548 = vmatpush.bf16.msrb.mxu0 %v863_v54 }
  0x33   :  { %561 = vmatpush.bf16.msrb.mxu1 %v871_v55 }
  0x34   :  { %576 = vmatpush.bf16.msrb.mxu2 %v877_v56 }
  0x36   :  { %549 = vmatpush.bf16.msrb.mxu0 %v862_v58 }
  0x37   :  { %562 = vmatpush.bf16.msrb.mxu1 %v870_v60 }
  0x38   :  { %577 = vmatpush.bf16.msrb.mxu2 %v876_v61 }
  0x3a   :  { %550 = vmatpush.bf16.msrb.mxu0 %v861_v63 }
  0x3b   :  { %827 = vmatmul.msk.bf16.vlgmr.msrb.gmra.mxu2 %vm488_vm0, %v157_v62  ;;  %563 = vmatpush.bf16.msrb.mxu1 %v869_v1 }
  0x3e   :  { %551 = vmatpush.bf16.msrb.mxu0 %v860_v3 }
  0x3f   :  { %564 = vmatpush.bf16.msrb.mxu1 %v868_v5 }
  0x41   :  { %552 = vmatmul.bf16.vlgmr.msrb.gmra.mxu0 %v155_v6 }
  0x42   :  { %565 = vmatmul.bf16.vlgmr.msrb.gmra.mxu1 %v156_v7 }
  0x9e   :  { %v501_v9 = vpop.f32.mrf.mxu0 }
  0x9f   :  { %v514_v10 = vpop.f32.mrf.mxu1 }
  0xa0   :  { %v515_v17 = vadd.f32 %v514_v10, %v501_v9 }
  0xa6   :  { %v527_v11 = vpop.f32.mrf.mxu2  ;;  %v503_v12 = vpop.f32.mrf.mxu0 }
  0xa7   :  { %v516_v13 = vpop.f32.mrf.mxu1  ;;  %v540_v14 = vpop.f32.mrf.mxu3  ;;  %v528_v18 = vadd.f32 %v527_v11, %v515_v17 }
  0xa9   :  { %v541_v19 = vadd.f32 %v540_v14, %v528_v18 }
  0xae   :  { %v529_v15 = vpop.f32.mrf.mxu2 }
  0xaf   :  { %v542_v16 = vpop.f32.mrf.mxu3 }
  0xbe   :  { %v579_v20 = vpop.f32.mrf.mxu2  ;;  %v553_v21 = vpop.f32.mrf.mxu0 }
  0xbf   :  { %v554_v22 = vadd.f32 %v553_v21, %v541_v19  ;;  %v566_v23 = vpop.f32.mrf.mxu1 }
  0xc1   :  { %v567_v24 = vadd.f32 %v566_v23, %v554_v22 }
  0xc3   :  { %v580_v26 = vadd.f32 %v579_v20, %v567_v24 }
  0xc5   :  { %v583_v27 = vadd.f32 %v580_v26, %v27_v25 }
  0xc6   :  { %v581_v28 = vpop.f32.mrf.mxu2  ;;  %v555_v29 = vpop.f32.mrf.mxu0 }
  0xc7   :  { %585 = vst.msk [vmem:[#allocation2] sm:$0xff] %vm25_vm1, %v583_v27  ;;  %v568_v30 = vpop.f32.mrf.mxu1 }
  0xce   :  { %v589_v34 = vld [vmem:[#allocation2] sm:$0xff] }
  0xcf   :  { %v594_v35 = vmul.f32 %v883_v31, %v589_v34 }
  0xd1   :  { %v599_v37 = vadd.f32 %v884_v33, %v594_v35 }
  0xd3   :  { %v602_v38 = vadd.f32 %v601_v36, %v599_v37 }
  0xd5   :  { %v603_v39 = vmax.f32 %v602_v38, 0.0 }
  0xd7   :  { %v604_v40 = vpack.c.bf16 %v603_v39, %v603_v39 }
  0xd9   :  { %606 = vst.msk [vmem:[%s1109_s5] sm:$0xf] %vm605_vm2, %v604_v40 }

// kernel: resnet_forward.22
= control target key start
LH: loop header
LB: loop body
LE: loop exit
PB: predicated region body
PF: predicated region fallthrough
CT: control target
= control target key end

     0   :  { %vm22_vm0 = vcmask 261120   ;;  %v84_v1 = vmov 0.0   ;;  %vm34_vm1 = vcmask 130048   ;;  %vm69_vm2 = vcmask 257024   ;;  %s125_s1 = inlined_call_operand.vmem [shape: bf16[16,32], index: 1, kind: input, shape index: {}]   ;;  %s126_s0 = inlined_call_operand.vmem [shape: bf16[8,16], index: 0, kind: input, shape index: {}]   ;;  %s127_s2 = inlined_call_operand.vmem [shape: f32[1,32], index: 2, kind: input, shape index: {}]   ;;  %s128_s3 = inlined_call_operand.vmem [shape: f32[1,32], index: 3, kind: input, shape index: {}]   ;;  %s129_s4 = inlined_call_operand.vmem [shape: bf16[8,32], index: 4, kind: output, shape index: {}]  }
   0x1   :  { %v80_v0 = vld [vmem:[%s125_s1] sm:$0xff]  ;;  %23 = vst.msk [vmem:[#allocation2] sm:$0xff] %vm22_vm0, %v84_v1 }
   0x2   :  { %45 = vmatpush.bf16.msra.mxu0 %v80_v0  ;;  %v25_v2 = vld [vmem:[%s126_s0] sm:$0xf] }
   0x3   :  { %v82_v6 = vld [vmem:[%s127_s2] ss:$0 sm:$0xff] }
   0x4   :  { %v83_v8 = vld [vmem:[%s128_s3] ss:$0 sm:$0xff] }
   0x5   :  { %79 = vmatmul.msk.bf16.vlgmr.msra.gmra.mxu0 %vm34_vm1, %v25_v2 }
   0x8   :  { %v24_v3 = vld [vmem:[#allocation2] sm:$0xff] }
  0x82   :  { %v47_v4 = vpop.f32.mrf.mxu0 }
  0x83   :  { %v51_v5 = vadd.f32 %v47_v4, %v24_v3 }
  0x85   :  { %53 = vst.msk [vmem:[#allocation2] sm:$0xff] %vm22_vm0, %v51_v5 }
  0x8a   :  { %v49_v7 = vpop.f32.mrf.mxu0 }
  0x8c   :  { %v57_v9 = vld [vmem:[#allocation2] sm:$0xff] }
  0x8d   :  { %v62_v10 = vmul.f32 %v82_v6, %v57_v9 }
  0x8f   :  { %v67_v11 = vadd.f32 %v83_v8, %v62_v10 }
  0x91   :  { %v68_v12 = vpack.c.bf16 %v67_v11, %v67_v11 }
  0x93   :  { %70 = vst.msk [vmem:[%s129_s4] sm:$0xf] %vm69_vm2, %v68_v12 }

// kernel: resnet_forward.25
= control target key start
LH: loop header
LB: loop body
LE: loop exit
PB: predicated region body
PF: predicated region fallthrough
CT: control target
= control target key end

     0   :  { %vm22_vm0 = vcmask 523264   ;;  %v97_v1 = vmov 0.0   ;;  %vm42_vm1 = vcmask 261120   ;;  %vm77_vm2 = vcmask 519168   ;;  %s143_s1 = inlined_call_operand.vmem [shape: bf16[32,64], index: 1, kind: input, shape index: {}]   ;;  %s144_s2 = inlined_call_operand.vmem [shape: f32[1,64], index: 2, kind: input, shape index: {}]   ;;  %s145_s3 = inlined_call_operand.vmem [shape: f32[1,64], index: 3, kind: input, shape index: {}]   ;;  %s146_s0 = inlined_call_operand.vmem [shape: bf16[8,32], index: 0, kind: input, shape index: {}]   ;;  %s147_s4 = inlined_call_operand.vmem [shape: bf16[8,64], index: 4, kind: output, shape index: {}]  }
   0x1   :  { %v93_v0 = vld [vmem:[%s143_s1 + $0x8] sm:$0xff]  ;;  %23 = vst.msk [vmem:[#allocation2] sm:$0xff] %vm22_vm0, %v97_v1  ;;  %v92_v2 = vld [vmem:[%s143_s1] sm:$0xff] }
   0x2   :  { %52 = vmatpush.bf16.msra.mxu0 %v93_v0  ;;  %v25_v3 = vld [vmem:[%s146_s0] sm:$0xf] }
   0x3   :  { %v95_v7 = vld [vmem:[%s144_s2] ss:$0 sm:$0xff] }
   0x4   :  { %v96_v9 = vld [vmem:[%s145_s3] ss:$0 sm:$0xff] }
   0x6   :  { %53 = vmatpush.bf16.msra.mxu0 %v92_v2 }
   0x8   :  { %v24_v4 = vld [vmem:[#allocation2] sm:$0xff] }
   0x9   :  { %91 = vmatmul.msk.bf16.vlgmr.msra.gmra.mxu0 %vm42_vm1, %v25_v3 }
  0x86   :  { %v55_v5 = vpop.f32.mrf.mxu0 }
  0x87   :  { %v59_v6 = vadd.f32 %v55_v5, %v24_v4 }
  0x89   :  { %61 = vst.msk [vmem:[#allocation2] sm:$0xff] %vm22_vm0, %v59_v6 }
  0x8e   :  { %v57_v8 = vpop.f32.mrf.mxu0 }
  0x90   :  { %v65_v10 = vld [vmem:[#allocation2] sm:$0xff] }
  0x91   :  { %v70_v11 = vmul.f32 %v95_v7, %v65_v10 }
  0x93   :  { %v75_v12 = vadd.f32 %v96_v9, %v70_v11 }
  0x95   :  { %v76_v13 = vpack.c.bf16 %v75_v12, %v75_v12 }
  0x97   :  { %78 = vst.msk [vmem:[%s147_s4] sm:$0xf] %vm77_vm2, %v76_v13 }

// kernel: resnet_forward.24
= control target key start
LH: loop header
LB: loop body
LE: loop exit
PB: predicated region body
PF: predicated region fallthrough
CT: control target
= control target key end

     0   :  { %vm485_vm0 = vcmask 785408   ;;  %vm22_vm1 = vcmask 523264   ;;  %vm599_vm2 = vcmask 519168   ;;  %s1090_s1 = inlined_call_operand.vmem [shape: bf16[864,64], index: 1, kind: input, shape index: {}]   ;;  %s1091_s0 = inlined_call_operand.vmem [shape: bf16[8,864], index: 0, kind: input, shape index: {}]   ;;  %s1092_s2 = inlined_call_operand.vmem [shape: f32[1,64], index: 2, kind: input, shape index: {}]   ;;  %s1093_s3 = inlined_call_operand.vmem [shape: f32[1,64], index: 3, kind: input, shape index: {}]   ;;  %s1094_s4 = inlined_call_operand.vmem [shape: bf16[8,64], index: 4, kind: output, shape index: {}]  }
   0x1   :  { %v829_v0 = vld [vmem:[%s1090_s1 + $0x38] sm:$0xff]  ;;  %v828_v3 = vld [vmem:[%s1090_s1 + $0x30] sm:$0xff]  ;;  %v827_v8 = vld [vmem:[%s1090_s1 + $0x28] sm:$0xff] }
   0x2   :  { %v837_v1 = vld [vmem:[%s1090_s1 + $0x78] sm:$0xff]  ;;  %489 = vmatpush.bf16.msra.mxu0 %v829_v0  ;;  %v836_v4 = vld [vmem:[%s1090_s1 + $0x70] sm:$0xff]  ;;  %v835_v9 = vld [vmem:[%s1090_s1 + $0x68] sm:$0xff] }
   0x3   :  { %v845_v2 = vld [vmem:[%s1090_s1 + $0xb8] sm:$0xff]  ;;  %502 = vmatpush.bf16.msra.mxu1 %v837_v1  ;;  %v844_v5 = vld [vmem:[%s1090_s1 + $0xb0] sm:$0xff]  ;;  %v843_v10 = vld [vmem:[%s1090_s1 + $0xa8] sm:$0xff] }
   0x4   :  { %515 = vmatpush.bf16.msra.mxu2 %v845_v2  ;;  %v853_v6 = vld [vmem:[%s1090_s1 + $0xf8] sm:$0xff]  ;;  %v852_v7 = vld [vmem:[%s1090_s1 + $0xf0] sm:$0xff]  ;;  %v851_v11 = vld [vmem:[%s1090_s1 + $0xe8] sm:$0xff] }
   0x5   :  { %528 = vmatpush.bf16.msra.mxu3 %v853_v6  ;;  %v826_v12 = vld [vmem:[%s1090_s1 + $0x20] sm:$0xff]  ;;  %v825_v16 = vld [vmem:[%s1090_s1 + $0x18] sm:$0xff]  ;;  %v824_v20 = vld [vmem:[%s1090_s1 + $0x10] sm:$0xff] }
   0x6   :  { %490 = vmatpush.bf16.msra.mxu0 %v828_v3  ;;  %v834_v13 = vld [vmem:[%s1090_s1 + $0x60] sm:$0xff]  ;;  %v833_v17 = vld [vmem:[%s1090_s1 + $0x58] sm:$0xff]  ;;  %v832_v21 = vld [vmem:[%s1090_s1 + $0x50] sm:$0xff] }
   0x7   :  { %503 = vmatpush.bf16.msra.mxu1 %v836_v4  ;;  %v842_v14 = vld [vmem:[%s1090_s1 + $0xa0] sm:$0xff]  ;;  %v841_v18 = vld [vmem:[%s1090_s1 + $0x98] sm:$0xff]  ;;  %v840_v22 = vld [vmem:[%s1090_s1 + $0x90] sm:$0xff] }
   0x8   :  { %516 = vmatpush.bf16.msra.mxu2 %v844_v5  ;;  %v850_v15 = vld [vmem:[%s1090_s1 + $0xe0] sm:$0xff]  ;;  %v849_v19 = vld [vmem:[%s1090_s1 + $0xd8] sm:$0xff]  ;;  %v848_v23 = vld [vmem:[%s1090_s1 + $0xd0] sm:$0xff] }
   0x9   :  { %529 = vmatpush.bf16.msra.mxu3 %v852_v7  ;;  %v823_v24 = vld [vmem:[%s1090_s1 + $0x8] sm:$0xff]  ;;  %v25_v26 = vld [vmem:[%s1091_s0] sm:$0xff]  ;;  %v861_v36 = vld [vmem:[%s1090_s1 + $0x138] sm:$0xff] }
   0xa   :  { %491 = vmatpush.bf16.msra.mxu0 %v827_v8  ;;  %v831_v25 = vld [vmem:[%s1090_s1 + $0x48] sm:$0xff]  ;;  %v141_v30 = vunpack.c.l.b16 %v25_v26  ;;  %v142_v31 = vunpack.c.h.b16 %v25_v26  ;;  %v822_v32 = vld [vmem:[%s1090_s1] sm:$0xff]  ;;  %v869_v37 = vld [vmem:[%s1090_s1 + $0x178] sm:$0xff]  ;;  %v879_v8 = vmov 0.0  }
   0xb   :  { %504 = vmatpush.bf16.msra.mxu1 %v835_v9  ;;  %v839_v27 = vld [vmem:[%s1090_s1 + $0x88] sm:$0xff]  ;;  %v830_v33 = vld [vmem:[%s1090_s1 + $0x40] sm:$0xff]  ;;  %v860_v44 = vld [vmem:[%s1090_s1 + $0x130] sm:$0xff]  ;;  %23 = vst.msk [vmem:[#allocation2] sm:$0xff] %vm22_vm1, %v879_v8 }
   0xc   :  { %517 = vmatpush.bf16.msra.mxu2 %v843_v10  ;;  %v26_v28 = vld [vmem:[%s1091_s0 + $0x8] sm:$0xff]  ;;  %v838_v35 = vld [vmem:[%s1090_s1 + $0x80] sm:$0xff]  ;;  %v148_v39 = vpack.c.b16 %v141_v30, %v141_v30  ;;  %v149_v40 = vpack.c.b16 %v142_v31, %v142_v31  ;;  %v868_v45 = vld [vmem:[%s1090_s1 + $0x170] sm:$0xff] }
   0xd   :  { %530 = vmatpush.bf16.msra.mxu3 %v851_v11  ;;  %v847_v29 = vld [vmem:[%s1090_s1 + $0xc8] sm:$0xff]  ;;  %v143_v34 = vunpack.c.l.b16 %v26_v28  ;;  %v144_v41 = vunpack.c.h.b16 %v26_v28  ;;  %v846_v43 = vld [vmem:[%s1090_s1 + $0xc0] sm:$0xff]  ;;  %v873_v50 = vld [vmem:[%s1090_s1 + $0x198] sm:$0xff] }
   0xe   :  { %492 = vmatpush.bf16.msra.mxu0 %v826_v12  ;;  %v875_v38 = vld [vmem:[%s1090_s1 + $0x1a8] sm:$0xff]  ;;  %v874_v46 = vld [vmem:[%s1090_s1 + $0x1a0] sm:$0xff]  ;;  %v872_v53 = vld [vmem:[%s1090_s1 + $0x190] sm:$0xff] }
   0xf   :  { %505 = vmatpush.bf16.msra.mxu1 %v834_v13  ;;  %v150_v42 = vpack.c.b16 %v143_v34, %v143_v34  ;;  %v151_v47 = vpack.c.b16 %v144_v41, %v144_v41  ;;  %v859_v48 = vld [vmem:[%s1090_s1 + $0x128] sm:$0xff]  ;;  %v858_v51 = vld [vmem:[%s1090_s1 + $0x120] sm:$0xff]  ;;  %v857_v54 = vld [vmem:[%s1090_s1 + $0x118] sm:$0xff] }
  0x10   :  { %518 = vmatpush.bf16.msra.mxu2 %v842_v14  ;;  %v867_v49 = vld [vmem:[%s1090_s1 + $0x168] sm:$0xff]  ;;  %v866_v52 = vld [vmem:[%s1090_s1 + $0x160] sm:$0xff]  ;;  %v865_v55 = vld [vmem:[%s1090_s1 + $0x158] sm:$0xff] }
  0x11   :  { %531 = vmatpush.bf16.msra.mxu3 %v850_v15  ;;  %v871_v56 = vld [vmem:[%s1090_s1 + $0x188] sm:$0xff]  ;;  %v28_v57 = vld [vmem:[%s1091_s0 + $0x18] sm:$0xf]  ;;  %v856_v58 = vld [vmem:[%s1090_s1 + $0x110] sm:$0xff] }
  0x12   :  { %493 = vmatpush.bf16.msra.mxu0 %v825_v16  ;;  %v147_v59 = vunpack.c.l.b16 %v28_v57  ;;  %v864_v60 = vld [vmem:[%s1090_s1 + $0x150] sm:$0xff]  ;;  %v870_v61 = vld [vmem:[%s1090_s1 + $0x180] sm:$0xff]  ;;  %v855_v63 = vld [vmem:[%s1090_s1 + $0x108] sm:$0xff] }
  0x13   :  { %506 = vmatpush.bf16.msra.mxu1 %v833_v17  ;;  %v27_v0 = vld [vmem:[%s1091_s0 + $0x10] sm:$0xff]  ;;  %v863_v1 = vld [vmem:[%s1090_s1 + $0x148] sm:$0xff]  ;;  %v854_v3 = vld [vmem:[%s1090_s1 + $0x100] sm:$0xff] }
  0x14   :  { %519 = vmatpush.bf16.msra.mxu2 %v841_v18  ;;  %v154_v62 = vpack.c.b16 %v147_v59, %v147_v59  ;;  %v145_v2 = vunpack.c.l.b16 %v27_v0  ;;  %v146_v4 = vunpack.c.h.b16 %v27_v0  ;;  %v862_v5 = vld [vmem:[%s1090_s1 + $0x140] sm:$0xff] }
  0x15   :  { %532 = vmatpush.bf16.msra.mxu3 %v849_v19  ;;  %v877_v31 = vld [vmem:[%s1092_s2] ss:$0 sm:$0xff] }
  0x16   :  { %494 = vmatpush.bf16.msra.mxu0 %v824_v20  ;;  %v152_v6 = vpack.c.b16 %v145_v2, %v145_v2  ;;  %v153_v7 = vpack.c.b16 %v146_v4, %v146_v4 }
  0x17   :  { %507 = vmatpush.bf16.msra.mxu1 %v832_v21 }
  0x18   :  { %520 = vmatpush.bf16.msra.mxu2 %v840_v22 }
  0x19   :  { %533 = vmatpush.bf16.msra.mxu3 %v848_v23 }
  0x1a   :  { %495 = vmatpush.bf16.msra.mxu0 %v823_v24 }
  0x1b   :  { %508 = vmatpush.bf16.msra.mxu1 %v831_v25  ;;  %v24_v25 = vld [vmem:[#allocation2] sm:$0xff] }
  0x1c   :  { %521 = vmatpush.bf16.msra.mxu2 %v839_v27 }
  0x1d   :  { %534 = vmatpush.bf16.msra.mxu3 %v847_v29 }
  0x1e   :  { %496 = vmatpush.bf16.msra.mxu0 %v822_v32  ;;  %v878_v32 = vld [vmem:[%s1093_s3] ss:$0 sm:$0xff] }
  0x1f   :  { %509 = vmatpush.bf16.msra.mxu1 %v830_v33 }
  0x20   :  { %522 = vmatpush.bf16.msra.mxu2 %v838_v35 }
  0x21   :  { %497 = vmatmul.bf16.vlgmr.msra.gmra.mxu0 %v148_v39  ;;  %535 = vmatpush.bf16.msra.mxu3 %v846_v43 }
  0x22   :  { %541 = vmatpush.bf16.msrb.mxu0 %v861_v36  ;;  %510 = vmatmul.bf16.vlgmr.msra.gmra.mxu1 %v149_v40 }
  0x23   :  { %554 = vmatpush.bf16.msrb.mxu1 %v869_v37  ;;  %523 = vmatmul.bf16.vlgmr.msra.gmra.mxu2 %v150_v42 }
  0x24   :  { %569 = vmatpush.bf16.msrb.mxu2 %v875_v38  ;;  %536 = vmatmul.bf16.vlgmr.msra.gmra.mxu3 %v151_v47 }
  0x26   :  { %542 = vmatpush.bf16.msrb.mxu0 %v860_v44 }
  0x27   :  { %555 = vmatpush.bf16.msrb.mxu1 %v868_v45 }
  0x28   :  { %570 = vmatpush.bf16.msrb.mxu2 %v874_v46 }
  0x2a   :  { %543 = vmatpush.bf16.msrb.mxu0 %v859_v48 }
  0x2b   :  { %556 = vmatpush.bf16.msrb.mxu1 %v867_v49 }
  0x2c   :  { %571 = vmatpush.bf16.msrb.mxu2 %v873_v50 }
  0x2e   :  { %544 = vmatpush.bf16.msrb.mxu0 %v858_v51 }
  0x2f   :  { %557 = vmatpush.bf16.msrb.mxu1 %v866_v52 }
  0x30   :  { %572 = vmatpush.bf16.msrb.mxu2 %v872_v53 }
  0x32   :  { %545 = vmatpush.bf16.msrb.mxu0 %v857_v54 }
  0x33   :  { %558 = vmatpush.bf16.msrb.mxu1 %v865_v55 }
  0x34   :  { %573 = vmatpush.bf16.msrb.mxu2 %v871_v56 }
  0x36   :  { %546 = vmatpush.bf16.msrb.mxu0 %v856_v58 }
  0x37   :  { %559 = vmatpush.bf16.msrb.mxu1 %v864_v60 }
  0x38   :  { %574 = vmatpush.bf16.msrb.mxu2 %v870_v61 }
  0x3a   :  { %547 = vmatpush.bf16.msrb.mxu0 %v855_v63 }
  0x3b   :  { %821 = vmatmul.msk.bf16.vlgmr.msrb.gmra.mxu2 %vm485_vm0, %v154_v62  ;;  %560 = vmatpush.bf16.msrb.mxu1 %v863_v1 }
  0x3e   :  { %548 = vmatpush.bf16.msrb.mxu0 %v854_v3 }
  0x3f   :  { %561 = vmatpush.bf16.msrb.mxu1 %v862_v5 }
  0x41   :  { %549 = vmatmul.bf16.vlgmr.msrb.gmra.mxu0 %v152_v6 }
  0x42   :  { %562 = vmatmul.bf16.vlgmr.msrb.gmra.mxu1 %v153_v7 }
  0x9e   :  { %v498_v9 = vpop.f32.mrf.mxu0 }
  0x9f   :  { %v511_v10 = vpop.f32.mrf.mxu1 }
  0xa0   :  { %v512_v17 = vadd.f32 %v511_v10, %v498_v9 }
  0xa6   :  { %v524_v11 = vpop.f32.mrf.mxu2  ;;  %v500_v12 = vpop.f32.mrf.mxu0 }
  0xa7   :  { %v513_v13 = vpop.f32.mrf.mxu1  ;;  %v537_v14 = vpop.f32.mrf.mxu3  ;;  %v525_v18 = vadd.f32 %v524_v11, %v512_v17 }
  0xa9   :  { %v538_v19 = vadd.f32 %v537_v14, %v525_v18 }
  0xae   :  { %v526_v15 = vpop.f32.mrf.mxu2 }
  0xaf   :  { %v539_v16 = vpop.f32.mrf.mxu3 }
  0xbe   :  { %v576_v20 = vpop.f32.mrf.mxu2  ;;  %v550_v21 = vpop.f32.mrf.mxu0 }
  0xbf   :  { %v551_v22 = vadd.f32 %v550_v21, %v538_v19  ;;  %v563_v23 = vpop.f32.mrf.mxu1 }
  0xc1   :  { %v564_v24 = vadd.f32 %v563_v23, %v551_v22 }
  0xc3   :  { %v577_v26 = vadd.f32 %v576_v20, %v564_v24 }
  0xc5   :  { %v580_v27 = vadd.f32 %v577_v26, %v24_v25 }
  0xc6   :  { %v578_v28 = vpop.f32.mrf.mxu2  ;;  %v552_v29 = vpop.f32.mrf.mxu0 }
  0xc7   :  { %582 = vst.msk [vmem:[#allocation2] sm:$0xff] %vm22_vm1, %v580_v27  ;;  %v565_v30 = vpop.f32.mrf.mxu1 }
  0xce   :  { %v586_v33 = vld [vmem:[#allocation2] sm:$0xff] }
  0xcf   :  { %v591_v34 = vmul.f32 %v877_v31, %v586_v33 }
  0xd1   :  { %v596_v35 = vadd.f32 %v878_v32, %v591_v34 }
  0xd3   :  { %v597_v36 = vmax.f32 %v596_v35, 0.0 }
  0xd5   :  { %v598_v37 = vpack.c.bf16 %v597_v36, %v597_v36 }
  0xd7   :  { %600 = vst.msk [vmem:[%s1094_s4] sm:$0xf] %vm599_vm2, %v598_v37 }

// kernel: resnet_forward.27
= control target key start
LH: loop header
LB: loop body
LE: loop exit
PB: predicated region body
PF: predicated region fallthrough
CT: control target
= control target key end

     0   :  { %s166_s0 = inlined_call_operand.vmem [shape: bf16[2,1,64], index: 0, kind: input, shape index: {}]   ;;  %s167_s1 = inlined_call_operand.vmem [shape: f32[64,10], index: 1, kind: input, shape index: {}]   ;;  %s168_s2 = inlined_call_operand.vmem [shape: f32[1,10], index: 2, kind: input, shape index: {}]   ;;  %s169_s3 = inlined_call_operand.hbm [shape: f32[2,10], index: 3, kind: output, shape index: {}]  }
   0x1   :  { %v28_v0 = vld [vmem:[%s167_s1 + $0x38] sm:$0xff]  ;;  %v27_v1 = vld [vmem:[%s167_s1 + $0x30] sm:$0xff]  ;;  %v26_v2 = vld [vmem:[%s167_s1 + $0x28] sm:$0xff] }
   0x2   :  { %50 = vmatpush.msra.mxu0 %v28_v0  ;;  %v15_v3 = vld [vmem:[%s166_s0] sm:$0x1]  ;;  %v16_v4 = vld [vmem:[%s166_s0 + $0x1] sm:$0x1] }
   0x3   :  { %v25_v5 = vld [vmem:[%s167_s1 + $0x20] sm:$0xff] }
   0x4   :  { %51 = vmatpush.msra.mxu0 %v27_v1 }
   0x5   :  { %8 = vsyncpa [#allocation3], 0  ;;  %v17_v6 = vunpack.c.l.bf16 %v15_v3  ;;  %v18_v7 = vunpack.c.l.bf16 %v16_v4  ;;  %v24_v8 = vld [vmem:[%s167_s1 + $0x18] sm:$0xff]  ;;  %v23_v9 = vld [vmem:[%s167_s1 + $0x10] sm:$0xff]  ;;  %vm37_vm0 = vcmask 1041409   ;;  %vm39_vm1 = vcmask 523264  }
   0x6   :  { %52 = vmatpush.msra.mxu0 %v26_v2  ;;  %v22_v12 = vld [vmem:[%s167_s1 + $0x8] sm:$0xff]  ;;  %v21_v13 = vld [vmem:[%s167_s1] sm:$0xff]  ;;  %s109_s6 = smov [#allocation2]   ;;  %s71_s10 = sshll.u32 %s169_s3, 4  ;;  %vm62_vm2 = vcmask 74752   ;;  %s72_s10 = int_to_ptr.hbm [resolvable:$true] %s71_s10 }
   0x7   :  { %v35_v10 = vperm.slane %v17_v6, 0  ;;  %v36_v11 = vperm.slane %v18_v7, 0  ;;  %v82_v15 = vld [vmem:[%s168_s2] ss:$0 sm:$0xff]  ;;  %s69_s7 = sshll.u32 %s109_s6, 4  ;;  %s70_s7 = int_to_ptr.vmem [resolvable:$true] %s69_s7 }
   0x8   :  { %53 = vmatpush.msra.mxu0 %v25_v5 }
   0x9   :  { %v38_v14 = vsel %vm37_vm0, %v36_v11, %v35_v10 }
   0xa   :  { %54 = vmatpush.msra.mxu0 %v24_v8 }
   0xc   :  { %55 = vmatpush.msra.mxu0 %v23_v9 }
   0xe   :  { %56 = vmatpush.msra.mxu0 %v22_v12 }
  0x10   :  { %57 = vmatpush.msra.mxu0 %v21_v13 }
  0x11   :  { %80 = vmatmul.msk.f32.vlgmr.msra.gmra.mxu0 %vm39_vm1, %v38_v14 }
  0x8e   :  { %v59_v16 = vpop.f32.mrf.mxu0 }
  0x8f   :  { %v60_v17 = vadd.f32 %v82_v15, %v59_v16 }
  0x91   :  { %63 = vst.msk [vmem:[#allocation2] sm:$0x3] %vm62_vm2, %v60_v17 }
  0x92   :  { %74 = dma.vmem_to_hbm [thread:$0]  %s70_s7, 32, %s72_s10, [#allocation3]  }
  0x93   :  { %107 = dma.done.wait [#allocation3], 32  }
  0x94   :  { %108 = vsyncadd [#allocation3], 4294967264 }
  0x95   :  { %79 = vsyncpa [#allocation3], 1 }

// kernel: resnet_forward.26
= control target key start
LH: loop header
LB: loop body
LE: loop exit
PB: predicated region body
PF: predicated region fallthrough
CT: control target
= control target key end

     0   :  { %vm25_vm0 = vcmask 523264   ;;  %vm1154_vm1 = vcmask 519168   ;;  %s2095_s1 = inlined_call_operand.vmem [shape: bf16[1728,64], index: 1, kind: input, shape index: {}]   ;;  %s2096_s0 = inlined_call_operand.vmem [shape: bf16[8,1728], index: 0, kind: input, shape index: {}]   ;;  %s2097_s2 = inlined_call_operand.vmem [shape: f32[1,64], index: 2, kind: input, shape index: {}]   ;;  %s2098_s3 = inlined_call_operand.vmem [shape: f32[1,64], index: 3, kind: input, shape index: {}]   ;;  %s2099_s4 = inlined_call_operand.vmem [shape: bf16[8,64], index: 4, kind: input, shape index: {}]   ;;  %s2100_s5 = inlined_call_operand.vmem [shape: bf16[8,64], index: 5, kind: output, shape index: {}]  }
   0x1   :  { %v1600_v0 = vld [vmem:[%s2095_s1 + $0x38] sm:$0xff]  ;;  %v1599_v4 = vld [vmem:[%s2095_s1 + $0x30] sm:$0xff]  ;;  %v1598_v8 = vld [vmem:[%s2095_s1 + $0x28] sm:$0xff] }
   0x2   :  { %v1616_v1 = vld [vmem:[%s2095_s1 + $0xb8] sm:$0xff]  ;;  %951 = vmatpush.bf16.msra.mxu0 %v1600_v0  ;;  %v1615_v5 = vld [vmem:[%s2095_s1 + $0xb0] sm:$0xff]  ;;  %v1614_v9 = vld [vmem:[%s2095_s1 + $0xa8] sm:$0xff] }
   0x3   :  { %v1608_v2 = vld [vmem:[%s2095_s1 + $0x78] sm:$0xff]  ;;  %977 = vmatpush.bf16.msra.mxu2 %v1616_v1  ;;  %v1607_v6 = vld [vmem:[%s2095_s1 + $0x70] sm:$0xff]  ;;  %v1606_v10 = vld [vmem:[%s2095_s1 + $0x68] sm:$0xff] }
   0x4   :  { %v1624_v3 = vld [vmem:[%s2095_s1 + $0xf8] sm:$0xff]  ;;  %964 = vmatpush.bf16.msra.mxu1 %v1608_v2  ;;  %v1623_v7 = vld [vmem:[%s2095_s1 + $0xf0] sm:$0xff]  ;;  %v1622_v11 = vld [vmem:[%s2095_s1 + $0xe8] sm:$0xff] }
   0x5   :  { %990 = vmatpush.bf16.msra.mxu3 %v1624_v3  ;;  %v1597_v12 = vld [vmem:[%s2095_s1 + $0x20] sm:$0xff]  ;;  %v1596_v16 = vld [vmem:[%s2095_s1 + $0x18] sm:$0xff]  ;;  %v1595_v20 = vld [vmem:[%s2095_s1 + $0x10] sm:$0xff] }
   0x6   :  { %952 = vmatpush.bf16.msra.mxu0 %v1599_v4  ;;  %v1613_v13 = vld [vmem:[%s2095_s1 + $0xa0] sm:$0xff]  ;;  %v1612_v17 = vld [vmem:[%s2095_s1 + $0x98] sm:$0xff]  ;;  %v1611_v21 = vld [vmem:[%s2095_s1 + $0x90] sm:$0xff] }
   0x7   :  { %978 = vmatpush.bf16.msra.mxu2 %v1615_v5  ;;  %v1605_v14 = vld [vmem:[%s2095_s1 + $0x60] sm:$0xff]  ;;  %v1604_v18 = vld [vmem:[%s2095_s1 + $0x58] sm:$0xff]  ;;  %v1603_v22 = vld [vmem:[%s2095_s1 + $0x50] sm:$0xff] }
   0x8   :  { %965 = vmatpush.bf16.msra.mxu1 %v1607_v6  ;;  %v1621_v15 = vld [vmem:[%s2095_s1 + $0xe0] sm:$0xff]  ;;  %v1620_v19 = vld [vmem:[%s2095_s1 + $0xd8] sm:$0xff]  ;;  %v1619_v23 = vld [vmem:[%s2095_s1 + $0xd0] sm:$0xff] }
   0x9   :  { %991 = vmatpush.bf16.msra.mxu3 %v1623_v7  ;;  %v1594_v24 = vld [vmem:[%s2095_s1 + $0x8] sm:$0xff]  ;;  %v28_v29 = vld [vmem:[%s2096_s0] sm:$0xff]  ;;  %v1632_v34 = vld [vmem:[%s2095_s1 + $0x138] sm:$0xff] }
   0xa   :  { %953 = vmatpush.bf16.msra.mxu0 %v1598_v8  ;;  %v1610_v25 = vld [vmem:[%s2095_s1 + $0x88] sm:$0xff]  ;;  %v1593_v30 = vld [vmem:[%s2095_s1] sm:$0xff]  ;;  %v258_v33 = vunpack.c.l.b16 %v28_v29  ;;  %v1648_v35 = vld [vmem:[%s2095_s1 + $0x1b8] sm:$0xff]  ;;  %v259_v39 = vunpack.c.h.b16 %v28_v29 }
   0xb   :  { %979 = vmatpush.bf16.msra.mxu2 %v1614_v9  ;;  %v1602_v26 = vld [vmem:[%s2095_s1 + $0x48] sm:$0xff]  ;;  %v1609_v31 = vld [vmem:[%s2095_s1 + $0x80] sm:$0xff]  ;;  %v1640_v40 = vld [vmem:[%s2095_s1 + $0x178] sm:$0xff] }
   0xc   :  { %966 = vmatpush.bf16.msra.mxu1 %v1606_v10  ;;  %v1618_v27 = vld [vmem:[%s2095_s1 + $0xc8] sm:$0xff]  ;;  %v1601_v36 = vld [vmem:[%s2095_s1 + $0x40] sm:$0xff]  ;;  %v1656_v41 = vld [vmem:[%s2095_s1 + $0x1f8] sm:$0xff]  ;;  %v272_v43 = vpack.c.b16 %v258_v33, %v258_v33  ;;  %v273_v47 = vpack.c.b16 %v259_v39, %v259_v39 }
   0xd   :  { %992 = vmatpush.bf16.msra.mxu3 %v1622_v11  ;;  %v29_v28 = vld [vmem:[%s2096_s0 + $0x8] sm:$0xff]  ;;  %v1617_v37 = vld [vmem:[%s2095_s1 + $0xc0] sm:$0xff]  ;;  %v1631_v44 = vld [vmem:[%s2095_s1 + $0x130] sm:$0xff] }
   0xe   :  { %954 = vmatpush.bf16.msra.mxu0 %v1597_v12  ;;  %v260_v32 = vunpack.c.l.b16 %v29_v28  ;;  %v261_v38 = vunpack.c.h.b16 %v29_v28  ;;  %v1647_v45 = vld [vmem:[%s2095_s1 + $0x1b0] sm:$0xff]  ;;  %v1630_v50 = vld [vmem:[%s2095_s1 + $0x128] sm:$0xff]  ;;  %v1629_v54 = vld [vmem:[%s2095_s1 + $0x120] sm:$0xff] }
   0xf   :  { %980 = vmatpush.bf16.msra.mxu2 %v1613_v13  ;;  %v1639_v48 = vld [vmem:[%s2095_s1 + $0x170] sm:$0xff]  ;;  %v1646_v51 = vld [vmem:[%s2095_s1 + $0x1a8] sm:$0xff]  ;;  %v1645_v55 = vld [vmem:[%s2095_s1 + $0x1a0] sm:$0xff] }
  0x10   :  { %967 = vmatpush.bf16.msra.mxu1 %v1605_v14  ;;  %v274_v42 = vpack.c.b16 %v260_v32, %v260_v32  ;;  %v275_v46 = vpack.c.b16 %v261_v38, %v261_v38  ;;  %v1655_v49 = vld [vmem:[%s2095_s1 + $0x1f0] sm:$0xff]  ;;  %v1638_v52 = vld [vmem:[%s2095_s1 + $0x168] sm:$0xff]  ;;  %v1637_v56 = vld [vmem:[%s2095_s1 + $0x160] sm:$0xff] }
  0x11   :  { %993 = vmatpush.bf16.msra.mxu3 %v1621_v15  ;;  %v1654_v53 = vld [vmem:[%s2095_s1 + $0x1e8] sm:$0xff]  ;;  %v1653_v57 = vld [vmem:[%s2095_s1 + $0x1e0] sm:$0xff]  ;;  %v1628_v58 = vld [vmem:[%s2095_s1 + $0x118] sm:$0xff] }
  0x12   :  { %955 = vmatpush.bf16.msra.mxu0 %v1596_v16  ;;  %v1644_v59 = vld [vmem:[%s2095_s1 + $0x198] sm:$0xff]  ;;  %v1627_v62 = vld [vmem:[%s2095_s1 + $0x110] sm:$0xff]  ;;  %v1626_v2 = vld [vmem:[%s2095_s1 + $0x108] sm:$0xff] }
  0x13   :  { %981 = vmatpush.bf16.msra.mxu2 %v1612_v17  ;;  %v1636_v60 = vld [vmem:[%s2095_s1 + $0x158] sm:$0xff]  ;;  %v1643_v63 = vld [vmem:[%s2095_s1 + $0x190] sm:$0xff]  ;;  %v1642_v3 = vld [vmem:[%s2095_s1 + $0x188] sm:$0xff] }
  0x14   :  { %968 = vmatpush.bf16.msra.mxu1 %v1604_v18  ;;  %v1652_v61 = vld [vmem:[%s2095_s1 + $0x1d8] sm:$0xff]  ;;  %v1635_v0 = vld [vmem:[%s2095_s1 + $0x150] sm:$0xff]  ;;  %v1634_v6 = vld [vmem:[%s2095_s1 + $0x148] sm:$0xff] }
  0x15   :  { %994 = vmatpush.bf16.msra.mxu3 %v1620_v19  ;;  %v1651_v1 = vld [vmem:[%s2095_s1 + $0x1d0] sm:$0xff]  ;;  %v31_v4 = vld [vmem:[%s2096_s0 + $0x18] sm:$0xff]  ;;  %v1650_v7 = vld [vmem:[%s2095_s1 + $0x1c8] sm:$0xff] }
  0x16   :  { %956 = vmatpush.bf16.msra.mxu0 %v1595_v20  ;;  %v30_v5 = vld [vmem:[%s2096_s0 + $0x10] sm:$0xff]  ;;  %v1625_v8 = vld [vmem:[%s2095_s1 + $0x100] sm:$0xff]  ;;  %v264_v10 = vunpack.c.l.b16 %v31_v4  ;;  %v1664_v12 = vld [vmem:[%s2095_s1 + $0x238] sm:$0xff]  ;;  %v265_v16 = vunpack.c.h.b16 %v31_v4 }
  0x17   :  { %982 = vmatpush.bf16.msra.mxu2 %v1611_v21  ;;  %v1641_v9 = vld [vmem:[%s2095_s1 + $0x180] sm:$0xff]  ;;  %v262_v11 = vunpack.c.l.b16 %v30_v5  ;;  %v1680_v13 = vld [vmem:[%s2095_s1 + $0x2b8] sm:$0xff]  ;;  %v263_v17 = vunpack.c.h.b16 %v30_v5  ;;  %v1662_v28 = vld [vmem:[%s2095_s1 + $0x228] sm:$0xff] }
  0x18   :  { %969 = vmatpush.bf16.msra.mxu1 %v1603_v22  ;;  %v1633_v14 = vld [vmem:[%s2095_s1 + $0x140] sm:$0xff]  ;;  %v1672_v18 = vld [vmem:[%s2095_s1 + $0x278] sm:$0xff]  ;;  %v278_v20 = vpack.c.b16 %v264_v10, %v264_v10  ;;  %v1663_v22 = vld [vmem:[%s2095_s1 + $0x230] sm:$0xff] }
  0x19   :  { %995 = vmatpush.bf16.msra.mxu3 %v1619_v23  ;;  %v1649_v15 = vld [vmem:[%s2095_s1 + $0x1c0] sm:$0xff]  ;;  %v1688_v19 = vld [vmem:[%s2095_s1 + $0x2f8] sm:$0xff]  ;;  %v276_v21 = vpack.c.b16 %v262_v11, %v262_v11  ;;  %v1679_v23 = vld [vmem:[%s2095_s1 + $0x2b0] sm:$0xff] }
  0x1a   :  { %957 = vmatpush.bf16.msra.mxu0 %v1594_v24  ;;  %v279_v24 = vpack.c.b16 %v265_v16, %v265_v16  ;;  %v1678_v29 = vld [vmem:[%s2095_s1 + $0x2a8] sm:$0xff]  ;;  %v1661_v32 = vld [vmem:[%s2095_s1 + $0x220] sm:$0xff]  ;;  %v1668_v38 = vld [vmem:[%s2095_s1 + $0x258] sm:$0xff] }
  0x1b   :  { %983 = vmatpush.bf16.msra.mxu2 %v1610_v25  ;;  %v277_v25 = vpack.c.b16 %v263_v17, %v263_v17  ;;  %v1677_v33 = vld [vmem:[%s2095_s1 + $0x2a0] sm:$0xff]  ;;  %v1684_v39 = vld [vmem:[%s2095_s1 + $0x2d8] sm:$0xff]  ;;  %v1698_v4 = vld [vmem:[%s2095_s1 + $0x348] sm:$0xff] }
  0x1c   :  { %970 = vmatpush.bf16.msra.mxu1 %v1602_v26  ;;  %v1671_v26 = vld [vmem:[%s2095_s1 + $0x270] sm:$0xff]  ;;  %v1693_v5 = vld [vmem:[%s2095_s1 + $0x320] sm:$0xff] }
  0x1d   :  { %996 = vmatpush.bf16.msra.mxu3 %v1618_v27  ;;  %v1687_v27 = vld [vmem:[%s2095_s1 + $0x2f0] sm:$0xff] }
  0x1e   :  { %958 = vmatpush.bf16.msra.mxu0 %v1593_v30  ;;  %v1670_v30 = vld [vmem:[%s2095_s1 + $0x268] sm:$0xff]  ;;  %v1691_v11 = vld [vmem:[%s2095_s1 + $0x310] sm:$0xff] }
  0x1f   :  { %984 = vmatpush.bf16.msra.mxu2 %v1609_v31  ;;  %v1686_v31 = vld [vmem:[%s2095_s1 + $0x2e8] sm:$0xff] }
  0x20   :  { %971 = vmatpush.bf16.msra.mxu1 %v1601_v36  ;;  %v1660_v36 = vld [vmem:[%s2095_s1 + $0x218] sm:$0xff] }
  0x21   :  { %997 = vmatpush.bf16.msra.mxu3 %v1617_v37  ;;  %959 = vmatmul.bf16.vlgmr.msra.gmra.mxu0 %v272_v43  ;;  %v1676_v37 = vld [vmem:[%s2095_s1 + $0x298] sm:$0xff]  ;;  %v1683_v43 = vld [vmem:[%s2095_s1 + $0x2d0] sm:$0xff] }
  0x22   :  { %1003 = vmatpush.bf16.msrb.mxu0 %v1632_v34  ;;  %985 = vmatmul.bf16.vlgmr.msra.gmra.mxu2 %v274_v42  ;;  %v1669_v34 = vld [vmem:[%s2095_s1 + $0x260] sm:$0xff]  ;;  %v1667_v42 = vld [vmem:[%s2095_s1 + $0x250] sm:$0xff] }
  0x23   :  { %1029 = vmatpush.bf16.msrb.mxu2 %v1648_v35  ;;  %972 = vmatmul.bf16.vlgmr.msra.gmra.mxu1 %v273_v47  ;;  %v1685_v35 = vld [vmem:[%s2095_s1 + $0x2e0] sm:$0xff]  ;;  %v33_v47 = vld [vmem:[%s2096_s0 + $0x28] sm:$0xff] }
  0x24   :  { %1016 = vmatpush.bf16.msrb.mxu1 %v1640_v40  ;;  %998 = vmatmul.bf16.vlgmr.msra.gmra.mxu3 %v275_v46  ;;  %v1659_v40 = vld [vmem:[%s2095_s1 + $0x210] sm:$0xff]  ;;  %v32_v46 = vld [vmem:[%s2096_s0 + $0x20] sm:$0xff] }
  0x25   :  { %1042 = vmatpush.bf16.msrb.mxu3 %v1656_v41  ;;  %v1675_v41 = vld [vmem:[%s2095_s1 + $0x290] sm:$0xff] }
  0x26   :  { %1004 = vmatpush.bf16.msrb.mxu0 %v1631_v44  ;;  %v1658_v44 = vld [vmem:[%s2095_s1 + $0x208] sm:$0xff] }
  0x27   :  { %1030 = vmatpush.bf16.msrb.mxu2 %v1647_v45  ;;  %v1674_v45 = vld [vmem:[%s2095_s1 + $0x288] sm:$0xff] }
  0x28   :  { %1017 = vmatpush.bf16.msrb.mxu1 %v1639_v48  ;;  %v1666_v48 = vld [vmem:[%s2095_s1 + $0x248] sm:$0xff] }
  0x29   :  { %1043 = vmatpush.bf16.msrb.mxu3 %v1655_v49  ;;  %v1682_v49 = vld [vmem:[%s2095_s1 + $0x2c8] sm:$0xff] }
  0x2a   :  { %1005 = vmatpush.bf16.msrb.mxu0 %v1630_v50  ;;  %v266_v50 = vunpack.c.l.b16 %v32_v46 }
  0x2b   :  { %1031 = vmatpush.bf16.msrb.mxu2 %v1646_v51  ;;  %v268_v51 = vunpack.c.l.b16 %v33_v47 }
  0x2c   :  { %1018 = vmatpush.bf16.msrb.mxu1 %v1638_v52  ;;  %v1704_v52 = vmov 0.0  }
  0x2d   :  { %1044 = vmatpush.bf16.msrb.mxu3 %v1654_v53  ;;  %26 = vst.msk [vmem:[#allocation2] sm:$0xff] %vm25_vm0, %v1704_v52  ;;  %v1657_v53 = vld [vmem:[%s2095_s1 + $0x200] sm:$0xff] }
  0x2e   :  { %1006 = vmatpush.bf16.msrb.mxu0 %v1629_v54  ;;  %v1673_v54 = vld [vmem:[%s2095_s1 + $0x280] sm:$0xff] }
  0x2f   :  { %1032 = vmatpush.bf16.msrb.mxu2 %v1645_v55  ;;  %v1696_v55 = vld [vmem:[%s2095_s1 + $0x338] sm:$0xff] }
  0x30   :  { %1019 = vmatpush.bf16.msrb.mxu1 %v1637_v56  ;;  %v267_v56 = vunpack.c.h.b16 %v32_v46 }
  0x31   :  { %1045 = vmatpush.bf16.msrb.mxu3 %v1653_v57  ;;  %v269_v57 = vunpack.c.h.b16 %v33_v47 }
  0x32   :  { %1007 = vmatpush.bf16.msrb.mxu0 %v1628_v58  ;;  %v1665_v58 = vld [vmem:[%s2095_s1 + $0x240] sm:$0xff] }
  0x33   :  { %1033 = vmatpush.bf16.msrb.mxu2 %v1644_v59  ;;  %v1681_v59 = vld [vmem:[%s2095_s1 + $0x2c0] sm:$0xff] }
  0x34   :  { %1020 = vmatpush.bf16.msrb.mxu1 %v1636_v60  ;;  %v280_v60 = vpack.c.b16 %v266_v50, %v266_v50 }
  0x35   :  { %1046 = vmatpush.bf16.msrb.mxu3 %v1652_v61  ;;  %v282_v61 = vpack.c.b16 %v268_v51, %v268_v51 }
  0x36   :  { %1008 = vmatpush.bf16.msrb.mxu0 %v1627_v62  ;;  %v1700_v62 = vld [vmem:[%s2095_s1 + $0x358] sm:$0xff] }
  0x37   :  { %1034 = vmatpush.bf16.msrb.mxu2 %v1643_v63  ;;  %v281_v63 = vpack.c.b16 %v267_v56, %v267_v56 }
  0x38   :  { %1021 = vmatpush.bf16.msrb.mxu1 %v1635_v0  ;;  %v283_v0 = vpack.c.b16 %v269_v57, %v269_v57 }
  0x39   :  { %1047 = vmatpush.bf16.msrb.mxu3 %v1651_v1  ;;  %v1695_v1 = vld [vmem:[%s2095_s1 + $0x330] sm:$0xff] }
  0x3a   :  { %1009 = vmatpush.bf16.msrb.mxu0 %v1626_v2  ;;  %v1699_v2 = vld [vmem:[%s2095_s1 + $0x350] sm:$0xff] }
  0x3b   :  { %1035 = vmatpush.bf16.msrb.mxu2 %v1642_v3  ;;  %v1694_v3 = vld [vmem:[%s2095_s1 + $0x328] sm:$0xff] }
  0x3c   :  { %1022 = vmatpush.bf16.msrb.mxu1 %v1634_v6  ;;  %v34_v6 = vld [vmem:[%s2096_s0 + $0x30] sm:$0xff] }
  0x3d   :  { %1048 = vmatpush.bf16.msrb.mxu3 %v1650_v7  ;;  %v1697_v7 = vld [vmem:[%s2095_s1 + $0x340] sm:$0xff] }
  0x3e   :  { %1010 = vmatpush.bf16.msrb.mxu0 %v1625_v8  ;;  %v271_v8 = vunpack.c.h.b16 %v34_v6 }
  0x3f   :  { %1036 = vmatpush.bf16.msrb.mxu2 %v1641_v9  ;;  %v1692_v9 = vld [vmem:[%s2095_s1 + $0x318] sm:$0xff] }
  0x40   :  { %1023 = vmatpush.bf16.msrb.mxu1 %v1633_v14  ;;  %v285_v10 = vpack.c.b16 %v271_v8, %v271_v8  ;;  %v1689_v14 = vld [vmem:[%s2095_s1 + $0x300] sm:$0xff] }
  0x41   :  { %1049 = vmatpush.bf16.msrb.mxu3 %v1649_v15  ;;  %1011 = vmatmul.bf16.vlgmr.msrb.gmra.mxu0 %v276_v21 }
  0x42   :  { %1055 = vmatpush.bf16.msra.mxu0 %v1664_v12  ;;  %1037 = vmatmul.bf16.vlgmr.msrb.gmra.mxu2 %v278_v20  ;;  %v1690_v12 = vld [vmem:[%s2095_s1 + $0x308] sm:$0xff] }
  0x43   :  { %1081 = vmatpush.bf16.msra.mxu2 %v1680_v13  ;;  %1024 = vmatmul.bf16.vlgmr.msrb.gmra.mxu1 %v277_v25  ;;  %v270_v13 = vunpack.c.l.b16 %v34_v6 }
  0x44   :  { %1068 = vmatpush.bf16.msra.mxu1 %v1672_v18  ;;  %1050 = vmatmul.bf16.vlgmr.msrb.gmra.mxu3 %v279_v24 }
  0x45   :  { %1094 = vmatpush.bf16.msra.mxu3 %v1688_v19  ;;  %v284_v15 = vpack.c.b16 %v270_v13, %v270_v13 }
  0x46   :  { %1056 = vmatpush.bf16.msra.mxu0 %v1663_v22 }
  0x47   :  { %1082 = vmatpush.bf16.msra.mxu2 %v1679_v23 }
  0x48   :  { %1069 = vmatpush.bf16.msra.mxu1 %v1671_v26 }
  0x49   :  { %1095 = vmatpush.bf16.msra.mxu3 %v1687_v27 }
  0x4a   :  { %1057 = vmatpush.bf16.msra.mxu0 %v1662_v28 }
  0x4b   :  { %1083 = vmatpush.bf16.msra.mxu2 %v1678_v29 }
  0x4c   :  { %1070 = vmatpush.bf16.msra.mxu1 %v1670_v30 }
  0x4d   :  { %1096 = vmatpush.bf16.msra.mxu3 %v1686_v31 }
  0x4e   :  { %1058 = vmatpush.bf16.msra.mxu0 %v1661_v32 }
  0x4f   :  { %1084 = vmatpush.bf16.msra.mxu2 %v1677_v33 }
  0x50   :  { %1071 = vmatpush.bf16.msra.mxu1 %v1669_v34 }
  0x51   :  { %1097 = vmatpush.bf16.msra.mxu3 %v1685_v35 }
  0x52   :  { %1059 = vmatpush.bf16.msra.mxu0 %v1660_v36 }
  0x53   :  { %1085 = vmatpush.bf16.msra.mxu2 %v1676_v37 }
  0x54   :  { %1072 = vmatpush.bf16.msra.mxu1 %v1668_v38 }
  0x55   :  { %1098 = vmatpush.bf16.msra.mxu3 %v1684_v39 }
  0x56   :  { %1060 = vmatpush.bf16.msra.mxu0 %v1659_v40 }
  0x57   :  { %1086 = vmatpush.bf16.msra.mxu2 %v1675_v41 }
  0x58   :  { %1073 = vmatpush.bf16.msra.mxu1 %v1667_v42 }
  0x59   :  { %1099 = vmatpush.bf16.msra.mxu3 %v1683_v43 }
  0x5a   :  { %1061 = vmatpush.bf16.msra.mxu0 %v1658_v44 }
  0x5b   :  { %1087 = vmatpush.bf16.msra.mxu2 %v1674_v45 }
  0x5c   :  { %1074 = vmatpush.bf16.msra.mxu1 %v1666_v48 }
  0x5d   :  { %1100 = vmatpush.bf16.msra.mxu3 %v1682_v49 }
  0x5e   :  { %1062 = vmatpush.bf16.msra.mxu0 %v1657_v53 }
  0x5f   :  { %1088 = vmatpush.bf16.msra.mxu2 %v1673_v54 }
  0x60   :  { %1075 = vmatpush.bf16.msra.mxu1 %v1665_v58 }
  0x61   :  { %1101 = vmatpush.bf16.msra.mxu3 %v1681_v59  ;;  %1063 = vmatmul.bf16.vlgmr.msra.gmra.mxu0 %v280_v60  ;;  %v1702_v59 = vld [vmem:[%s2097_s2] ss:$0 sm:$0xff] }
  0x62   :  { %1107 = vmatpush.bf16.msrb.mxu0 %v1696_v55  ;;  %1089 = vmatmul.bf16.vlgmr.msra.gmra.mxu2 %v282_v61  ;;  %v27_v55 = vld [vmem:[#allocation2] sm:$0xff] }
  0x63   :  { %1076 = vmatmul.bf16.vlgmr.msra.gmra.mxu1 %v281_v63  ;;  %v1149_v60 = vld [vmem:[%s2099_s4] sm:$0xf] }
  0x64   :  { %1124 = vmatpush.bf16.msrb.mxu1 %v1700_v62  ;;  %1102 = vmatmul.bf16.vlgmr.msra.gmra.mxu3 %v283_v0  ;;  %v1703_v61 = vld [vmem:[%s2098_s3] ss:$0 sm:$0xff]  ;;  %v1150_v0 = vunpack.c.l.bf16 %v1149_v60 }
  0x66   :  { %1108 = vmatpush.bf16.msrb.mxu0 %v1695_v1 }
  0x68   :  { %1125 = vmatpush.bf16.msrb.mxu1 %v1699_v2 }
  0x6a   :  { %1109 = vmatpush.bf16.msrb.mxu0 %v1694_v3 }
  0x6c   :  { %1126 = vmatpush.bf16.msrb.mxu1 %v1698_v4 }
  0x6e   :  { %1110 = vmatpush.bf16.msrb.mxu0 %v1693_v5 }
  0x70   :  { %1127 = vmatpush.bf16.msrb.mxu1 %v1697_v7 }
  0x72   :  { %1111 = vmatpush.bf16.msrb.mxu0 %v1692_v9 }
  0x73   :  { %1592 = vmatmul.msk.bf16.vlgmr.msrb.gmra.mxu1 %vm25_vm0, %v285_v10 }
  0x76   :  { %1112 = vmatpush.bf16.msrb.mxu0 %v1691_v11 }
  0x7a   :  { %1113 = vmatpush.bf16.msrb.mxu0 %v1690_v12 }
  0x7e   :  { %1114 = vmatpush.bf16.msrb.mxu0 %v1689_v14 }
  0x81   :  { %1115 = vmatmul.bf16.vlgmr.msrb.gmra.mxu0 %v284_v15 }
  0x9e   :  { %v960_v16 = vpop.f32.mrf.mxu0 }
  0xa0   :  { %v973_v17 = vpop.f32.mrf.mxu1 }
  0xa1   :  { %v974_v32 = vadd.f32 %v973_v17, %v960_v16 }
  0xa5   :  { %v986_v18 = vpop.f32.mrf.mxu2 }
  0xa6   :  { %v962_v20 = vpop.f32.mrf.mxu0  ;;  %v987_v33 = vadd.f32 %v986_v18, %v974_v32 }
  0xa7   :  { %v999_v19 = vpop.f32.mrf.mxu3 }
  0xa8   :  { %v975_v21 = vpop.f32.mrf.mxu1  ;;  %v1000_v35 = vadd.f32 %v999_v19, %v987_v33 }
  0xad   :  { %v988_v22 = vpop.f32.mrf.mxu2 }
  0xaf   :  { %v1001_v23 = vpop.f32.mrf.mxu3 }
  0xbe   :  { %v1012_v24 = vpop.f32.mrf.mxu0 }
  0xbf   :  { %v1013_v37 = vadd.f32 %v1012_v24, %v1000_v35 }
  0xc0   :  { %v1025_v25 = vpop.f32.mrf.mxu1 }
  0xc1   :  { %v1026_v41 = vadd.f32 %v1025_v25, %v1013_v37 }
  0xc5   :  { %v1038_v26 = vpop.f32.mrf.mxu2 }
  0xc6   :  { %v1014_v28 = vpop.f32.mrf.mxu0  ;;  %v1039_v43 = vadd.f32 %v1038_v26, %v1026_v41 }
  0xc7   :  { %v1051_v27 = vpop.f32.mrf.mxu3 }
  0xc8   :  { %v1027_v29 = vpop.f32.mrf.mxu1  ;;  %v1052_v46 = vadd.f32 %v1051_v27, %v1039_v43 }
  0xcd   :  { %v1040_v30 = vpop.f32.mrf.mxu2 }
  0xcf   :  { %v1053_v31 = vpop.f32.mrf.mxu3 }
  0xde   :  { %v1064_v34 = vpop.f32.mrf.mxu0 }
  0xdf   :  { %v1065_v48 = vadd.f32 %v1064_v34, %v1052_v46 }
  0xe0   :  { %v1077_v36 = vpop.f32.mrf.mxu1 }
  0xe1   :  { %v1078_v49 = vadd.f32 %v1077_v36, %v1065_v48 }
  0xe5   :  { %v1090_v38 = vpop.f32.mrf.mxu2 }
  0xe6   :  { %v1066_v40 = vpop.f32.mrf.mxu0  ;;  %v1091_v50 = vadd.f32 %v1090_v38, %v1078_v49 }
  0xe7   :  { %v1103_v39 = vpop.f32.mrf.mxu3 }
  0xe8   :  { %v1079_v42 = vpop.f32.mrf.mxu1  ;;  %v1104_v52 = vadd.f32 %v1103_v39, %v1091_v50 }
  0xed   :  { %v1092_v44 = vpop.f32.mrf.mxu2 }
  0xef   :  { %v1105_v45 = vpop.f32.mrf.mxu3 }
  0xf0   :  { %v1129_v47 = vpop.f32.mrf.mxu1 }
  0xf8   :  { %v1131_v51 = vpop.f32.mrf.mxu1 }
  0xfe   :  { %v1116_v53 = vpop.f32.mrf.mxu0 }
  0xff   :  { %v1117_v54 = vadd.f32 %v1116_v53, %v1104_v52 }
 0x101   :  { %v1130_v56 = vadd.f32 %v1129_v47, %v1117_v54 }
 0x103   :  { %v1133_v57 = vadd.f32 %v1130_v56, %v27_v55 }
 0x105   :  { %1134 = vst.msk [vmem:[#allocation2] sm:$0xff] %vm25_vm0, %v1133_v57 }
 0x106   :  { %v1118_v58 = vpop.f32.mrf.mxu0 }
 0x10c   :  { %v1138_v62 = vld [vmem:[#allocation2] sm:$0xff] }
 0x10d   :  { %v1143_v63 = vmul.f32 %v1702_v59, %v1138_v62 }
 0x10f   :  { %v1148_v1 = vadd.f32 %v1703_v61, %v1143_v63 }
 0x111   :  { %v1151_v2 = vadd.f32 %v1150_v0, %v1148_v1 }
 0x113   :  { %v1152_v3 = vmax.f32 %v1151_v2, 0.0 }
 0x115   :  { %v1153_v4 = vpack.c.bf16 %v1152_v3, %v1152_v3 }
 0x117   :  { %1155 = vst.msk [vmem:[%s2100_s5] sm:$0xf] %vm1154_vm1, %v1153_v4 }

</bundles_post_ra>
